<compile_context>
chip_gen: v5e
topology: v5e:2x2
jax: 0.10.0
libtpu: 0.0.40
codegen_flags: <defaults>
</compile_context>

<pallas_src>
import functools

import jax
import jax.numpy as jnp
from jax.experimental import pallas as pl
from jax.experimental.pallas import tpu as pltpu


# ---------------------------------------------------------------------------
# small helpers
# ---------------------------------------------------------------------------
def _pick_tile(extent, target):
    """Largest divisor of `extent` that is <= target (>= 1)."""
    t = max(1, min(target, extent))
    while extent % t != 0:
        t -= 1
    return t
# TODO(synk): for awkward extents (_pick_tile -> 1) switch to a pl.cdiv grid
# with in-kernel row masking; not needed for the demo / typical UNet shapes.


def _full_spec(shape):
    """BlockSpec for a small array that is fully resident for every grid step."""
    rank = len(shape)
    if rank == 2:
        return pl.BlockSpec(shape, lambda n, t: (0, 0))
    if rank == 3:
        return pl.BlockSpec(shape, lambda n, t: (0, 0, 0))
    return pl.BlockSpec(shape, lambda n, t: (0, 0, 0, 0))


def _row_halo_specs(H, TH, W, C):
    """(above, main, below) specs for an (N, H, W, C) array tiled over rows with
    a 1-row halo on each side.  Border rows are clamped in the index map and
    replaced by zeros inside the kernel (the conv's zero padding)."""
    above = pl.BlockSpec((1, 1, W, C),
                         lambda n, t: (n, jnp.maximum(t * TH - 1, 0), 0, 0))
    main = pl.BlockSpec((1, TH, W, C), lambda n, t: (n, t, 0, 0))
    below = pl.BlockSpec((1, 1, W, C),
                         lambda n, t: (n, jnp.minimum((t + 1) * TH, H - 1), 0, 0))
    return above, main, below


def _vmem_limit_bytes():
    """Generation-aware VMEM budget: ~half physical, capped at 96 MiB.
    v5e/v6e (128 MiB) -> 64 MiB; v7x (64 MiB) -> 32 MiB; fallback 32 MiB."""
    try:
        cap = int(pltpu.get_tpu_info().vmem_capacity_bytes)
        return int(min(96 * 1024 * 1024, max(32 * 1024 * 1024, cap // 2)))
    except Exception:
        return 32 * 1024 * 1024


def _compiler_params(vmem_limit):
    return pltpu.CompilerParams(
        dimension_semantics=("parallel", "parallel"),  # (batch, row-tile)
        vmem_limit_bytes=vmem_limit)


# ---------------------------------------------------------------------------
# in-kernel building blocks
# ---------------------------------------------------------------------------
def _halo_pad(top, mid, bot, t, n_tiles):
    """Assemble a zero-bordered (TH+2, W+2, C) f32 tile from row blocks.
    top/bot are replaced by zeros at the image borders (conv zero padding)."""
    top = jnp.where(t == 0, jnp.zeros_like(top), top)
    bot = jnp.where(t == n_tiles - 1, jnp.zeros_like(bot), bot)
    xt = jnp.concatenate([top, mid, bot], axis=0)              # (TH+2, W, C)
    zc = jnp.zeros((xt.shape[0], 1, xt.shape[2]), xt.dtype)
    return jnp.concatenate([zc, xt, zc], axis=1)               # (TH+2, W+2, C)


def _conv3x3_acc(xt, w3):
    """3x3 conv on a zero-padded f32 tile xt:(TH+2, W+2, C) with kw-fused
    weights w3:(3, 3C, Cout) bf16.  The width shifts + kw concat + bf16 cast
    are hoisted out of the kh loop; three fat MXU matmuls, f32 accumulation."""
    th = xt.shape[0] - 2
    w = xt.shape[1] - 2
    c = xt.shape[2]
    cout = w3.shape[-1]
    patches = jnp.concatenate(
        [xt[:, 0:w], xt[:, 1:w + 1], xt[:, 2:w + 2]],
        axis=-1).astype(jnp.bfloat16)                          # (TH+2, W, 3C)
    acc = jnp.zeros((th * w, cout), jnp.float32)
    for kh in range(3):
        p = patches[kh:kh + th].reshape(th * w, 3 * c)
        acc = acc + jnp.dot(p, w3[kh], preferred_element_type=jnp.float32)
    return acc


def _moments(y):
    """Per-channel [sum, sum-of-squares] of a (rows, C) f32 block -> (2, C)."""
    s = jnp.sum(y, axis=0, keepdims=True)
    ss = jnp.sum(y * y, axis=0, keepdims=True)
    return jnp.concatenate([s, ss], axis=0)


# ---------------------------------------------------------------------------
# Kernel 1: ConvTranspose2d(k=3, s=2, p=1, op=1) via sub-pixel phases,
#           with in-kernel phase interleave and per-tile BN statistics
# ---------------------------------------------------------------------------
def _upconv_phase_kernel(xm_ref, xb_ref, w00_ref, w01_ref, w10_ref, w11_ref,
                         b_ref, o_ref, st_ref, *, n_tiles):
    t = pl.program_id(1)
    xm = xm_ref[0]                                            # (thi, W, Cin) f32
    xb_raw = xb_ref[0]                                        # (1,  W, Cin)
    xb = jnp.where(t == n_tiles - 1, jnp.zeros_like(xb_raw), xb_raw)
    xt = jnp.concatenate([xm, xb], axis=0)                    # (thi+1, W, Cin)
    zc = jnp.zeros((xt.shape[0], 1, xt.shape[2]), xt.dtype)
    xt = jnp.concatenate([xt, zc], axis=1)                    # (thi+1, W+1, Cin)

    thi, w, cin = xm.shape

    def flat(rs, cs):
        return xt[rs:rs + thi, cs:cs + w].reshape(thi * w, cin).astype(
            jnp.bfloat16)

    a, ar = flat(0, 0), flat(0, 1)                            # x[m,n], x[m,n+1]
    b, br = flat(1, 0), flat(1, 1)                            # x[m+1,n], x[m+1,n+1]

    bias = b_ref[...]                                         # (1, Ch) f32

    def mm(p, w_ref):
        return jnp.dot(p, w_ref[...], preferred_element_type=jnp.float32) + bias

    y00 = mm(a, w00_ref)                                      # even row, even col
    y01 = mm(jnp.concatenate([ar, a], axis=-1), w01_ref)      # even row, odd  col
    y10 = mm(jnp.concatenate([b, a], axis=-1), w10_ref)       # odd  row, even col
    y11 = mm(jnp.concatenate([br, b, ar, a], axis=-1), w11_ref)

    ch = y00.shape[-1]
    st_ref[0, 0] = (_moments(y00) + _moments(y01)
                    + _moments(y10) + _moments(y11))

    # interleave phases in VMEM (minor dim Ch preserved by every reshape):
    r00 = y00.reshape(thi, w, ch)
    r01 = y01.reshape(thi, w, ch)
    r10 = y10.reshape(thi, w, ch)
    r11 = y11.reshape(thi, w, ch)
    even = jnp.stack([r00, r01], axis=2).reshape(thi, 2 * w, ch)  # out rows 2m
    odd = jnp.stack([r10, r11], axis=2).reshape(thi, 2 * w, ch)   # out rows 2m+1
    tile = jnp.stack([even, odd], axis=1).reshape(2 * thi, 2 * w, ch)
    o_ref[0] = tile.astype(o_ref.dtype)                       # bf16 store


# ---------------------------------------------------------------------------
# Kernel 2: fused BN1+ReLU + (virtual) channel concat + 3x3 conv + bias + stats
# ---------------------------------------------------------------------------
def _concat_conv_bn_kernel(ya_ref, ym_ref, yb_ref, xa_ref, xm_ref, xb_ref,
                           sc_ref, sh_ref, w3a_ref, w3b_ref, b_ref,
                           o_ref, st_ref, *, n_tiles):
    t = pl.program_id(1)
    sc, sh = sc_ref[...], sh_ref[...]                         # (1, 1, Ch) f32

    def bnrelu(v):                                            # v: (rows, W, Ch) bf16
        return jnp.maximum(v.astype(jnp.float32) * sc + sh, 0.0)

    # stream A: normalized+ReLU'd up-conv output (first half of the concat)
    yt = _halo_pad(bnrelu(ya_ref[0]), bnrelu(ym_ref[0]), bnrelu(yb_ref[0]),
                   t, n_tiles)
    # stream B: raw cropped skip connection (second half of the concat)
    xt = _halo_pad(xa_ref[0].astype(jnp.float32),
                   xm_ref[0].astype(jnp.float32),
                   xb_ref[0].astype(jnp.float32), t, n_tiles)

    acc = _conv3x3_acc(yt, w3a_ref[...]) + _conv3x3_acc(xt, w3b_ref[...])
    acc = acc + b_ref[...]

    th, w = ym_ref.shape[1], ym_ref.shape[2]
    cout = o_ref.shape[-1]
    st_ref[0, 0] = _moments(acc)
    o_ref[0] = acc.reshape(th, w, cout).astype(o_ref.dtype)   # bf16 store


# ---------------------------------------------------------------------------
# Kernel 3: fused BN+ReLU on the input + 3x3 conv + bias + stats
# ---------------------------------------------------------------------------
def _conv_bn_kernel(ya_ref, ym_ref, yb_ref, sc_ref, sh_ref, w3_ref, b_ref,
                    o_ref, st_ref, *, n_tiles):
    t = pl.program_id(1)
    sc, sh = sc_ref[...], sh_ref[...]

    def bnrelu(v):
        return jnp.maximum(v.astype(jnp.float32) * sc + sh, 0.0)

    yt = _halo_pad(bnrelu(ya_ref[0]), bnrelu(ym_ref[0]), bnrelu(yb_ref[0]),
                   t, n_tiles)
    acc = _conv3x3_acc(yt, w3_ref[...]) + b_ref[...]

    th, w = ym_ref.shape[1], ym_ref.shape[2]
    cout = o_ref.shape[-1]
    st_ref[0, 0] = _moments(acc)
    o_ref[0] = acc.reshape(th, w, cout).astype(o_ref.dtype)   # bf16 store


# ---------------------------------------------------------------------------
# parameters (deterministic, matching the PyTorch module shapes)
# ---------------------------------------------------------------------------
def init_upscale_params(key, in_channels, out_channels):
    c_half = in_channels // 2
    ks = jax.random.split(key, 6)
    return {
        # ConvTranspose2d(in, in//2, 3): weight (in, out, 3, 3)
        "wt": jax.random.normal(ks[0], (in_channels, c_half, 3, 3), jnp.float32) * 0.1,
        "bt": jax.random.normal(ks[1], (c_half,), jnp.float32) * 0.1,
        "g_t": jnp.ones((c_half,), jnp.float32),
        "b_t": jnp.zeros((c_half,), jnp.float32),
        # DoubleConv conv1: Conv2d(in, out, 3): weight (out, in, 3, 3)
        "w1": jax.random.normal(ks[2], (out_channels, in_channels, 3, 3), jnp.float32) * 0.1,
        "b1": jax.random.normal(ks[3], (out_channels,), jnp.float32) * 0.1,
        "g1": jnp.ones((out_channels,), jnp.float32),
        "be1": jnp.zeros((out_channels,), jnp.float32),
        # DoubleConv conv2: Conv2d(out, out, 3)
        "w2": jax.random.normal(ks[4], (out_channels, out_channels, 3, 3), jnp.float32) * 0.1,
        "b2": jax.random.normal(ks[5], (out_channels,), jnp.float32) * 0.1,
        "g2": jnp.ones((out_channels,), jnp.float32),
        "be2": jnp.zeros((out_channels,), jnp.float32),
    }


def _batchnorm_affine(stats, count, gamma, beta, eps=1e-5):
    """Fold per-tile [sum, sumsq] stats into per-channel scale/shift (f32)."""
    # TODO(synk): E[x^2]-E[x]^2 cancels badly for huge counts; a Welford-style
    # fold would be more robust (fine at these sizes).
    s = jnp.sum(stats, axis=(0, 1))                           # (2, C)
    mean = s[0] / count
    var = jnp.maximum(s[1] / count - mean * mean, 0.0)        # biased, clamped
    scale = gamma / jnp.sqrt(var + eps)
    shift = beta - mean * scale
    return scale.astype(jnp.float32), shift.astype(jnp.float32)


def _fuse_kw(w):
    """(3, 3, Cin, Cout) conv weight -> (3, 3*Cin, Cout) bf16 with the three kw
    taps fused along the contraction axis (one fat matmul per kh)."""
    return jnp.concatenate([w[:, 0], w[:, 1], w[:, 2]], axis=1).astype(jnp.bfloat16)


# ---------------------------------------------------------------------------
# forward pass
# ---------------------------------------------------------------------------
def upscale_forward(params, x1_nchw, x2_nchw, *, row_tile=16):
    N, Cin, H, W = x1_nchw.shape
    Ch = Cin // 2
    Cout = params["w1"].shape[0]
    Ho, Wo = 2 * H, 2 * W
    f32, bf16 = jnp.float32, jnp.bfloat16
    vmem_limit = _vmem_limit_bytes()
    cp = _compiler_params(vmem_limit)

    # ------------- K1: transposed conv via sub-pixel phases -------------
    x1 = jnp.transpose(x1_nchw, (0, 2, 3, 1)).astype(f32)     # (N, H, W, Cin)
    wk = jnp.transpose(params["wt"], (2, 3, 0, 1))            # (kh, kw, Cin, Ch)
    w00 = wk[1, 1].astype(bf16)                                        # (Cin, Ch)
    w01 = jnp.concatenate([wk[1, 0], wk[1, 2]], axis=0).astype(bf16)   # (2Cin, Ch)
    w10 = jnp.concatenate([wk[0, 1], wk[2, 1]], axis=0).astype(bf16)   # (2Cin, Ch)
    w11 = jnp.concatenate([wk[0, 0], wk[0, 2], wk[2, 0], wk[2, 2]],
                          axis=0).astype(bf16)                         # (4Cin, Ch)
    bt = params["bt"].reshape(1, Ch).astype(f32)

    thi = _pick_tile(H, max(1, row_tile // 2))
    ti = H // thi
    up_main = pl.BlockSpec((1, thi, W, Cin), lambda n, t: (n, t, 0, 0))
    up_below = pl.BlockSpec(
        (1, 1, W, Cin), lambda n, t: (n, jnp.minimum((t + 1) * thi, H - 1), 0, 0))
    # output block covers the 2*thi already-interleaved output rows of this tile
    up_out = pl.BlockSpec((1, 2 * thi, Wo, Ch), lambda n, t: (n, t, 0, 0))

    y1, st1 = pl.pallas_call(
        functools.partial(_upconv_phase_kernel, n_tiles=ti),
        out_shape=(jax.ShapeDtypeStruct((N, Ho, Wo, Ch), bf16),
                   jax.ShapeDtypeStruct((N, ti, 2, Ch), f32)),
        grid=(N, ti),
        in_specs=[up_main, up_below,
                  _full_spec(w00.shape), _full_spec(w01.shape),
                  _full_spec(w10.shape), _full_spec(w11.shape),
                  _full_spec(bt.shape)],
        out_specs=(up_out, pl.BlockSpec((1, 1, 2, Ch), lambda n, t: (n, t, 0, 0))),
        compiler_params=cp,
        cost_estimate=pl.CostEstimate(
            flops=2 * 9 * N * H * W * Cin * Ch, transcendentals=0,
            bytes_accessed=4 * N * H * W * Cin + 2 * N * Ho * Wo * Ch),
    )(x1, x1, w00, w01, w10, w11, bt)

    scale1, shift1 = _batchnorm_affine(st1, N * Ho * Wo,
                                       params["g_t"], params["b_t"])

    # ------------- center-crop the skip connection (fused with transpose) ----
    H2, W2 = x2_nchw.shape[2], x2_nchw.shape[3]
    dh, dw = H2 - Ho, W2 - Wo
    x2c = x2_nchw[:, :, dh // 2:H2 - dh // 2, dw // 2:W2 - dw // 2]
    x2c = jnp.transpose(x2c, (0, 2, 3, 1)).astype(bf16)       # (N, Ho, Wo, Ch)

    # ------------- K2: BN1+ReLU + concat + conv1 + bias -------------
    w1 = jnp.transpose(params["w1"], (2, 3, 1, 0))            # (3, 3, Cin, Cout)
    w1a = _fuse_kw(w1[:, :, :Ch, :])                          # up-conv half
    w1b = _fuse_kw(w1[:, :, Ch:, :])                          # skip half
    b1 = params["b1"].reshape(1, Cout).astype(f32)

    th = _pick_tile(Ho, row_tile)
    tt = Ho // th
    above, main, below = _row_halo_specs(Ho, th, Wo, Ch)
    out_spec = pl.BlockSpec((1, th, Wo, Cout), lambda n, t: (n, t, 0, 0))
    st_spec = pl.BlockSpec((1, 1, 2, Cout), lambda n, t: (n, t, 0, 0))

    y2, st2 = pl.pallas_call(
        functools.partial(_concat_conv_bn_kernel, n_tiles=tt),
        out_shape=(jax.ShapeDtypeStruct((N, Ho, Wo, Cout), bf16),
                   jax.ShapeDtypeStruct((N, tt, 2, Cout), f32)),
        grid=(N, tt),
        in_specs=[above, main, below, above, main, below,
                  _full_spec((1, 1, Ch)), _full_spec((1, 1, Ch)),
                  _full_spec(w1a.shape), _full_spec(w1b.shape),
                  _full_spec(b1.shape)],
        out_specs=(out_spec, st_spec),
        compiler_params=cp,
        cost_estimate=pl.CostEstimate(
            flops=2 * 9 * N * Ho * Wo * Cin * Cout, transcendentals=0,
            bytes_accessed=2 * N * Ho * Wo * (2 * Ch + Cout)),
    )(y1, y1, y1, x2c, x2c, x2c,
      scale1.reshape(1, 1, Ch), shift1.reshape(1, 1, Ch), w1a, w1b, b1)

    scale2, shift2 = _batchnorm_affine(st2, N * Ho * Wo,
                                       params["g1"], params["be1"])

    # ------------- K3: BN2+ReLU + conv2 + bias -------------
    w2 = _fuse_kw(jnp.transpose(params["w2"], (2, 3, 1, 0)))  # (3, 3*Cout, Cout)
    b2 = params["b2"].reshape(1, Cout).astype(f32)
    above2, main2, below2 = _row_halo_specs(Ho, th, Wo, Cout)

    y3, st3 = pl.pallas_call(
        functools.partial(_conv_bn_kernel, n_tiles=tt),
        out_shape=(jax.ShapeDtypeStruct((N, Ho, Wo, Cout), bf16),
                   jax.ShapeDtypeStruct((N, tt, 2, Cout), f32)),
        grid=(N, tt),
        in_specs=[above2, main2, below2,
                  _full_spec((1, 1, Cout)), _full_spec((1, 1, Cout)),
                  _full_spec(w2.shape), _full_spec(b2.shape)],
        out_specs=(out_spec, st_spec),
        compiler_params=cp,
        cost_estimate=pl.CostEstimate(
            flops=2 * 9 * N * Ho * Wo * Cout * Cout, transcendentals=0,
            bytes_accessed=2 * N * Ho * Wo * 2 * Cout),
    )(y2, y2, y2, scale2.reshape(1, 1, Cout), shift2.reshape(1, 1, Cout), w2, b2)

    scale3, shift3 = _batchnorm_affine(st3, N * Ho * Wo,
                                       params["g2"], params["be2"])

    # ------------- final BN3 + ReLU fused into the NHWC->NCHW conversion -----
    # (single XLA pass over y3 instead of a separate Pallas BN pass + transpose)
    y = jnp.maximum(y3.astype(f32) * scale3.reshape(1, 1, 1, Cout)
                    + shift3.reshape(1, 1, 1, Cout), 0.0)
    return jnp.transpose(y, (0, 3, 1, 2))                     # NCHW f32


if __name__ == "__main__":
    key = jax.random.PRNGKey(0)
    k_p, k_x1, k_x2 = jax.random.split(key, 3)

    in_channels, out_channels = 8, 4
    N, H, W = 2, 8, 8  # x1 spatial; x2 is 2x larger (standard UNet skip)

    params = init_upscale_params(k_p, in_channels, out_channels)
    x1 = jax.random.normal(k_x1, (N, in_channels, H, W), jnp.float32)
    x2 = jax.random.normal(k_x2, (N, in_channels // 2, 2 * H, 2 * W), jnp.float32)

    fwd = jax.jit(upscale_forward)
    out = jax.block_until_ready(fwd(params, x1, x2))

    assert out.shape == (N, out_channels, 2 * H, 2 * W), out.shape
    assert bool(jnp.all(jnp.isfinite(out)))
    print("KERNEL_OK")
</pallas_src>

<mosaic_0001>
module attributes {stable_mosaic.version = 11 : i64} {
  func.func @_upconv_phase_kernel(%arg0: i32, %arg1: i32, %arg2: memref<1x8x8x8xf32, #tpu.memory_space<vmem>>, %arg3: memref<1x1x8x8xf32, #tpu.memory_space<vmem>>, %arg4: memref<8x4xbf16, #tpu.memory_space<vmem>>, %arg5: memref<16x4xbf16, #tpu.memory_space<vmem>>, %arg6: memref<16x4xbf16, #tpu.memory_space<vmem>>, %arg7: memref<32x4xbf16, #tpu.memory_space<vmem>>, %arg8: memref<1x4xf32, #tpu.memory_space<vmem>>, %arg9: memref<1x16x16x4xbf16, #tpu.memory_space<vmem>>, %arg10: memref<1x1x2x4xf32, #tpu.memory_space<vmem>>) attributes {dimension_semantics = [#tpu.dimension_semantics<parallel>, #tpu.dimension_semantics<parallel>], iteration_bounds = array<i64: 2, 1>, scalar_prefetch = 0 : i64, scratch_operands = 0 : i64, tpu.core_type = #tpu.core_type<tc>, window_params = [{transform_indices = @transform_0, window_bounds = array<i64: 1, 8, 8, 8>}, {transform_indices = @transform_1, window_bounds = array<i64: 1, 1, 8, 8>}, {pipeline_mode = #tpu.pipeline_mode<synchronous>, transform_indices = @transform_2, window_bounds = array<i64: 8, 4>}, {pipeline_mode = #tpu.pipeline_mode<synchronous>, transform_indices = @transform_3, window_bounds = array<i64: 16, 4>}, {pipeline_mode = #tpu.pipeline_mode<synchronous>, transform_indices = @transform_4, window_bounds = array<i64: 16, 4>}, {pipeline_mode = #tpu.pipeline_mode<synchronous>, transform_indices = @transform_5, window_bounds = array<i64: 32, 4>}, {pipeline_mode = #tpu.pipeline_mode<synchronous>, transform_indices = @transform_6, window_bounds = array<i64: 1, 4>}, {transform_indices = @transform_7, window_bounds = array<i64: 1, 16, 16, 4>}, {transform_indices = @transform_8, window_bounds = array<i64: 1, 1, 2, 4>}]} {
    %c0 = arith.constant 0 : index
    %c0_0 = arith.constant 0 : index
    %c0_1 = arith.constant 0 : index
    %c0_2 = arith.constant 0 : index
    %0 = vector.load %arg2[%c0, %c0_0, %c0_1, %c0_2] : memref<1x8x8x8xf32, #tpu.memory_space<vmem>>, vector<1x8x8x8xf32>
    %1 = vector.shape_cast %0 : vector<1x8x8x8xf32> to vector<8x8x8xf32>
    %c0_3 = arith.constant 0 : index
    %c0_4 = arith.constant 0 : index
    %c0_5 = arith.constant 0 : index
    %c0_6 = arith.constant 0 : index
    %2 = vector.load %arg3[%c0_3, %c0_4, %c0_5, %c0_6] : memref<1x1x8x8xf32, #tpu.memory_space<vmem>>, vector<1x1x8x8xf32>
    %3 = vector.shape_cast %2 : vector<1x1x8x8xf32> to vector<1x8x8xf32>
    %c0_i32 = arith.constant 0 : i32
    %4 = arith.cmpi eq, %arg1, %c0_i32 : i32
    %cst = arith.constant 0.000000e+00 : f32
    %5 = vector.broadcast %cst : f32 to vector<1x8x8xf32>
    %6 = arith.select %4, %5, %3 : vector<1x8x8xf32>
    %7 = tpu.concatenate %1, %6 in 0 : vector<8x8x8xf32>, vector<1x8x8xf32> -> vector<9x8x8xf32>
    %cst_7 = arith.constant 0.000000e+00 : f32
    %8 = vector.broadcast %cst_7 : f32 to vector<9x1x8xf32>
    %9 = tpu.concatenate %7, %8 in 1 : vector<9x8x8xf32>, vector<9x1x8xf32> -> vector<9x9x8xf32>
    %10 = vector.extract_strided_slice %9 {offsets = [0, 0, 0], sizes = [8, 8, 8], strides = [1, 1, 1]} : vector<9x9x8xf32> to vector<8x8x8xf32>
    %11 = vector.shape_cast %10 : vector<8x8x8xf32> to vector<64x8xf32>
    %12 = arith.truncf %11 : vector<64x8xf32> to vector<64x8xbf16>
    %13 = vector.extract_strided_slice %9 {offsets = [0, 1, 0], sizes = [8, 8, 8], strides = [1, 1, 1]} : vector<9x9x8xf32> to vector<8x8x8xf32>
    %14 = vector.shape_cast %13 : vector<8x8x8xf32> to vector<64x8xf32>
    %15 = arith.truncf %14 : vector<64x8xf32> to vector<64x8xbf16>
    %16 = vector.extract_strided_slice %9 {offsets = [1, 0, 0], sizes = [8, 8, 8], strides = [1, 1, 1]} : vector<9x9x8xf32> to vector<8x8x8xf32>
    %17 = vector.shape_cast %16 : vector<8x8x8xf32> to vector<64x8xf32>
    %18 = arith.truncf %17 : vector<64x8xf32> to vector<64x8xbf16>
    %19 = vector.extract_strided_slice %9 {offsets = [1, 1, 0], sizes = [8, 8, 8], strides = [1, 1, 1]} : vector<9x9x8xf32> to vector<8x8x8xf32>
    %20 = vector.shape_cast %19 : vector<8x8x8xf32> to vector<64x8xf32>
    %21 = arith.truncf %20 : vector<64x8xf32> to vector<64x8xbf16>
    %c0_8 = arith.constant 0 : index
    %c0_9 = arith.constant 0 : index
    %22 = vector.load %arg8[%c0_8, %c0_9] : memref<1x4xf32, #tpu.memory_space<vmem>>, vector<1x4xf32>
    %c0_10 = arith.constant 0 : index
    %c0_11 = arith.constant 0 : index
    %23 = vector.load %arg4[%c0_10, %c0_11] : memref<8x4xbf16, #tpu.memory_space<vmem>>, vector<8x4xbf16>
    %cst_12 = arith.constant dense<0.000000e+00> : vector<64x4xf32>
    %24 = tpu.matmul %12, %23, %cst_12 {dimension_numbers = #tpu.dot_dimension_numbers<[1], [0], [0], [1], [0, 0, 1, 1], [], []>} : vector<64x8xbf16>, vector<8x4xbf16>, vector<64x4xf32> -> vector<64x4xf32>
    %25 = vector.broadcast %22 : vector<1x4xf32> to vector<64x4xf32>
    %26 = arith.addf %24, %25 : vector<64x4xf32>
    %27 = tpu.concatenate %15, %12 in 1 : vector<64x8xbf16>, vector<64x8xbf16> -> vector<64x16xbf16>
    %c0_13 = arith.constant 0 : index
    %c0_14 = arith.constant 0 : index
    %28 = vector.load %arg5[%c0_13, %c0_14] : memref<16x4xbf16, #tpu.memory_space<vmem>>, vector<16x4xbf16>
    %cst_15 = arith.constant dense<0.000000e+00> : vector<64x4xf32>
    %29 = tpu.matmul %27, %28, %cst_15 {dimension_numbers = #tpu.dot_dimension_numbers<[1], [0], [0], [1], [0, 0, 1, 1], [], []>} : vector<64x16xbf16>, vector<16x4xbf16>, vector<64x4xf32> -> vector<64x4xf32>
    %30 = vector.broadcast %22 : vector<1x4xf32> to vector<64x4xf32>
    %31 = arith.addf %29, %30 : vector<64x4xf32>
    %32 = tpu.concatenate %18, %12 in 1 : vector<64x8xbf16>, vector<64x8xbf16> -> vector<64x16xbf16>
    %c0_16 = arith.constant 0 : index
    %c0_17 = arith.constant 0 : index
    %33 = vector.load %arg6[%c0_16, %c0_17] : memref<16x4xbf16, #tpu.memory_space<vmem>>, vector<16x4xbf16>
    %cst_18 = arith.constant dense<0.000000e+00> : vector<64x4xf32>
    %34 = tpu.matmul %32, %33, %cst_18 {dimension_numbers = #tpu.dot_dimension_numbers<[1], [0], [0], [1], [0, 0, 1, 1], [], []>} : vector<64x16xbf16>, vector<16x4xbf16>, vector<64x4xf32> -> vector<64x4xf32>
    %35 = vector.broadcast %22 : vector<1x4xf32> to vector<64x4xf32>
    %36 = arith.addf %34, %35 : vector<64x4xf32>
    %37 = tpu.concatenate %21, %18, %15, %12 in 1 : vector<64x8xbf16>, vector<64x8xbf16>, vector<64x8xbf16>, vector<64x8xbf16> -> vector<64x32xbf16>
    %c0_19 = arith.constant 0 : index
    %c0_20 = arith.constant 0 : index
    %38 = vector.load %arg7[%c0_19, %c0_20] : memref<32x4xbf16, #tpu.memory_space<vmem>>, vector<32x4xbf16>
    %cst_21 = arith.constant dense<0.000000e+00> : vector<64x4xf32>
    %39 = tpu.matmul %37, %38, %cst_21 {dimension_numbers = #tpu.dot_dimension_numbers<[1], [0], [0], [1], [0, 0, 1, 1], [], []>} : vector<64x32xbf16>, vector<32x4xbf16>, vector<64x4xf32> -> vector<64x4xf32>
    %40 = vector.broadcast %22 : vector<1x4xf32> to vector<64x4xf32>
    %41 = arith.addf %39, %40 : vector<64x4xf32>
    %cst_22 = arith.constant dense<0.000000e+00> : vector<4xf32>
    %42 = vector.multi_reduction <add>, %26, %cst_22 [0] : vector<64x4xf32> to vector<4xf32>
    %43 = vector.shape_cast %42 : vector<4xf32> to vector<1x4xf32>
    %44 = arith.mulf %26, %26 : vector<64x4xf32>
    %cst_23 = arith.constant dense<0.000000e+00> : vector<4xf32>
    %45 = vector.multi_reduction <add>, %44, %cst_23 [0] : vector<64x4xf32> to vector<4xf32>
    %46 = vector.shape_cast %45 : vector<4xf32> to vector<1x4xf32>
    %47 = tpu.concatenate %43, %46 in 0 : vector<1x4xf32>, vector<1x4xf32> -> vector<2x4xf32>
    %cst_24 = arith.constant dense<0.000000e+00> : vector<4xf32>
    %48 = vector.multi_reduction <add>, %31, %cst_24 [0] : vector<64x4xf32> to vector<4xf32>
    %49 = vector.shape_cast %48 : vector<4xf32> to vector<1x4xf32>
    %50 = arith.mulf %31, %31 : vector<64x4xf32>
    %cst_25 = arith.constant dense<0.000000e+00> : vector<4xf32>
    %51 = vector.multi_reduction <add>, %50, %cst_25 [0] : vector<64x4xf32> to vector<4xf32>
    %52 = vector.shape_cast %51 : vector<4xf32> to vector<1x4xf32>
    %53 = tpu.concatenate %49, %52 in 0 : vector<1x4xf32>, vector<1x4xf32> -> vector<2x4xf32>
    %54 = arith.addf %47, %53 : vector<2x4xf32>
    %cst_26 = arith.constant dense<0.000000e+00> : vector<4xf32>
    %55 = vector.multi_reduction <add>, %36, %cst_26 [0] : vector<64x4xf32> to vector<4xf32>
    %56 = vector.shape_cast %55 : vector<4xf32> to vector<1x4xf32>
    %57 = arith.mulf %36, %36 : vector<64x4xf32>
    %cst_27 = arith.constant dense<0.000000e+00> : vector<4xf32>
    %58 = vector.multi_reduction <add>, %57, %cst_27 [0] : vector<64x4xf32> to vector<4xf32>
    %59 = vector.shape_cast %58 : vector<4xf32> to vector<1x4xf32>
    %60 = tpu.concatenate %56, %59 in 0 : vector<1x4xf32>, vector<1x4xf32> -> vector<2x4xf32>
    %61 = arith.addf %54, %60 : vector<2x4xf32>
    %cst_28 = arith.constant dense<0.000000e+00> : vector<4xf32>
    %62 = vector.multi_reduction <add>, %41, %cst_28 [0] : vector<64x4xf32> to vector<4xf32>
    %63 = vector.shape_cast %62 : vector<4xf32> to vector<1x4xf32>
    %64 = arith.mulf %41, %41 : vector<64x4xf32>
    %cst_29 = arith.constant dense<0.000000e+00> : vector<4xf32>
    %65 = vector.multi_reduction <add>, %64, %cst_29 [0] : vector<64x4xf32> to vector<4xf32>
    %66 = vector.shape_cast %65 : vector<4xf32> to vector<1x4xf32>
    %67 = tpu.concatenate %63, %66 in 0 : vector<1x4xf32>, vector<1x4xf32> -> vector<2x4xf32>
    %68 = arith.addf %61, %67 : vector<2x4xf32>
    %c0_30 = arith.constant 0 : index
    %c0_31 = arith.constant 0 : index
    %c0_32 = arith.constant 0 : index
    %c0_33 = arith.constant 0 : index
    %69 = vector.load %arg10[%c0_30, %c0_31, %c0_32, %c0_33] : memref<1x1x2x4xf32, #tpu.memory_space<vmem>>, vector<1x1x2x4xf32>
    %70 = vector.shape_cast %69 : vector<1x1x2x4xf32> to vector<2x4xf32>
    %71 = vector.shape_cast %68 : vector<2x4xf32> to vector<1x1x2x4xf32>
    tpu.vector_store %arg10[%c0_30, %c0_31, %c0_32, %c0_33], %71 {strides = array<i32>} : memref<1x1x2x4xf32, #tpu.memory_space<vmem>>, vector<1x1x2x4xf32>,
    %72 = vector.shape_cast %26 : vector<64x4xf32> to vector<8x8x4xf32>
    %73 = vector.shape_cast %31 : vector<64x4xf32> to vector<8x8x4xf32>
    %74 = vector.shape_cast %36 : vector<64x4xf32> to vector<8x8x4xf32>
    %75 = vector.shape_cast %41 : vector<64x4xf32> to vector<8x8x4xf32>
    %76 = vector.shape_cast %72 : vector<8x8x4xf32> to vector<8x8x1x4xf32>
    %77 = vector.shape_cast %73 : vector<8x8x4xf32> to vector<8x8x1x4xf32>
    %78 = tpu.concatenate %76, %77 in 2 : vector<8x8x1x4xf32>, vector<8x8x1x4xf32> -> vector<8x8x2x4xf32>
    %79 = vector.shape_cast %78 : vector<8x8x2x4xf32> to vector<8x16x4xf32>
    %80 = vector.shape_cast %74 : vector<8x8x4xf32> to vector<8x8x1x4xf32>
    %81 = vector.shape_cast %75 : vector<8x8x4xf32> to vector<8x8x1x4xf32>
    %82 = tpu.concatenate %80, %81 in 2 : vector<8x8x1x4xf32>, vector<8x8x1x4xf32> -> vector<8x8x2x4xf32>
    %83 = vector.shape_cast %82 : vector<8x8x2x4xf32> to vector<8x16x4xf32>
    %84 = vector.shape_cast %79 : vector<8x16x4xf32> to vector<8x1x16x4xf32>
    %85 = vector.shape_cast %83 : vector<8x16x4xf32> to vector<8x1x16x4xf32>
    %86 = tpu.concatenate %84, %85 in 1 : vector<8x1x16x4xf32>, vector<8x1x16x4xf32> -> vector<8x2x16x4xf32>
    %87 = vector.shape_cast %86 : vector<8x2x16x4xf32> to vector<16x16x4xf32>
    %88 = arith.truncf %87 : vector<16x16x4xf32> to vector<16x16x4xbf16>
    %c0_34 = arith.constant 0 : index
    %c0_35 = arith.constant 0 : index
    %c0_36 = arith.constant 0 : index
    %c0_37 = arith.constant 0 : index
    %89 = vector.load %arg9[%c0_34, %c0_35, %c0_36, %c0_37] : memref<1x16x16x4xbf16, #tpu.memory_space<vmem>>, vector<1x16x16x4xbf16>
    %90 = vector.shape_cast %89 : vector<1x16x16x4xbf16> to vector<16x16x4xbf16>
    %91 = vector.shape_cast %88 : vector<16x16x4xbf16> to vector<1x16x16x4xbf16>
    tpu.vector_store %arg9[%c0_34, %c0_35, %c0_36, %c0_37], %91 {strides = array<i32>} : memref<1x16x16x4xbf16, #tpu.memory_space<vmem>>, vector<1x16x16x4xbf16>,
    return
  }
  func.func @transform_0(%arg0: i32, %arg1: i32) -> (i32, i32, i32, i32) {
    %c0_i32 = arith.constant 0 : i32
    %c0_i32_0 = arith.constant 0 : i32
    %c0_i32_1 = arith.constant 0 : i32
    return %arg0, %arg1, %c0_i32, %c0_i32_0 : i32, i32, i32, i32
  }
  func.func @transform_1(%arg0: i32, %arg1: i32) -> (i32, i32, i32, i32) {
    %c1_i32 = arith.constant 1 : i32
    %0 = arith.addi %arg1, %c1_i32 : i32
    %c8_i32 = arith.constant 8 : i32
    %1 = arith.muli %0, %c8_i32 : i32
    %c7_i32 = arith.constant 7 : i32
    %2 = arith.minsi %1, %c7_i32 : i32
    %c0_i32 = arith.constant 0 : i32
    %c0_i32_0 = arith.constant 0 : i32
    %c0_i32_1 = arith.constant 0 : i32
    return %arg0, %2, %c0_i32, %c0_i32_0 : i32, i32, i32, i32
  }
  func.func @transform_2(%arg0: i32, %arg1: i32) -> (i32, i32) {
    %c0_i32 = arith.constant 0 : i32
    %c0_i32_0 = arith.constant 0 : i32
    %c0_i32_1 = arith.constant 0 : i32
    return %c0_i32, %c0_i32_0 : i32, i32
  }
  func.func @transform_3(%arg0: i32, %arg1: i32) -> (i32, i32) {
    %c0_i32 = arith.constant 0 : i32
    %c0_i32_0 = arith.constant 0 : i32
    %c0_i32_1 = arith.constant 0 : i32
    return %c0_i32, %c0_i32_0 : i32, i32
  }
  func.func @transform_4(%arg0: i32, %arg1: i32) -> (i32, i32) {
    %c0_i32 = arith.constant 0 : i32
    %c0_i32_0 = arith.constant 0 : i32
    %c0_i32_1 = arith.constant 0 : i32
    return %c0_i32, %c0_i32_0 : i32, i32
  }
  func.func @transform_5(%arg0: i32, %arg1: i32) -> (i32, i32) {
    %c0_i32 = arith.constant 0 : i32
    %c0_i32_0 = arith.constant 0 : i32
    %c0_i32_1 = arith.constant 0 : i32
    return %c0_i32, %c0_i32_0 : i32, i32
  }
  func.func @transform_6(%arg0: i32, %arg1: i32) -> (i32, i32) {
    %c0_i32 = arith.constant 0 : i32
    %c0_i32_0 = arith.constant 0 : i32
    %c0_i32_1 = arith.constant 0 : i32
    return %c0_i32, %c0_i32_0 : i32, i32
  }
  func.func @transform_7(%arg0: i32, %arg1: i32) -> (i32, i32, i32, i32) {
    %c0_i32 = arith.constant 0 : i32
    %c0_i32_0 = arith.constant 0 : i32
    %c0_i32_1 = arith.constant 0 : i32
    return %arg0, %arg1, %c0_i32, %c0_i32_0 : i32, i32, i32, i32
  }
  func.func @transform_8(%arg0: i32, %arg1: i32) -> (i32, i32, i32, i32) {
    %c0_i32 = arith.constant 0 : i32
    %c0_i32_0 = arith.constant 0 : i32
    %c0_i32_1 = arith.constant 0 : i32
    return %arg0, %arg1, %c0_i32, %c0_i32_0 : i32, i32, i32, i32
  }
}

module attributes {stable_mosaic.version = 11 : i64} {
  func.func @_concat_conv_bn_kernel(%arg0: i32, %arg1: i32, %arg2: memref<1x1x16x4xbf16, #tpu.memory_space<vmem>>, %arg3: memref<1x16x16x4xbf16, #tpu.memory_space<vmem>>, %arg4: memref<1x1x16x4xbf16, #tpu.memory_space<vmem>>, %arg5: memref<1x1x16x4xbf16, #tpu.memory_space<vmem>>, %arg6: memref<1x16x16x4xbf16, #tpu.memory_space<vmem>>, %arg7: memref<1x1x16x4xbf16, #tpu.memory_space<vmem>>, %arg8: memref<1x1x4xf32, #tpu.memory_space<vmem>>, %arg9: memref<1x1x4xf32, #tpu.memory_space<vmem>>, %arg10: memref<3x12x4xbf16, #tpu.memory_space<vmem>>, %arg11: memref<3x12x4xbf16, #tpu.memory_space<vmem>>, %arg12: memref<1x4xf32, #tpu.memory_space<vmem>>, %arg13: memref<1x16x16x4xbf16, #tpu.memory_space<vmem>>, %arg14: memref<1x1x2x4xf32, #tpu.memory_space<vmem>>) attributes {dimension_semantics = [#tpu.dimension_semantics<parallel>, #tpu.dimension_semantics<parallel>], iteration_bounds = array<i64: 2, 1>, scalar_prefetch = 0 : i64, scratch_operands = 0 : i64, tpu.core_type = #tpu.core_type<tc>, window_params = [{transform_indices = @transform_0, window_bounds = array<i64: 1, 1, 16, 4>}, {transform_indices = @transform_1, window_bounds = array<i64: 1, 16, 16, 4>}, {transform_indices = @transform_2, window_bounds = array<i64: 1, 1, 16, 4>}, {transform_indices = @transform_3, window_bounds = array<i64: 1, 1, 16, 4>}, {transform_indices = @transform_4, window_bounds = array<i64: 1, 16, 16, 4>}, {transform_indices = @transform_5, window_bounds = array<i64: 1, 1, 16, 4>}, {pipeline_mode = #tpu.pipeline_mode<synchronous>, transform_indices = @transform_6, window_bounds = array<i64: 1, 1, 4>}, {pipeline_mode = #tpu.pipeline_mode<synchronous>, transform_indices = @transform_7, window_bounds = array<i64: 1, 1, 4>}, {pipeline_mode = #tpu.pipeline_mode<synchronous>, transform_indices = @transform_8, window_bounds = array<i64: 3, 12, 4>}, {pipeline_mode = #tpu.pipeline_mode<synchronous>, transform_indices = @transform_9, window_bounds = array<i64: 3, 12, 4>}, {pipeline_mode = #tpu.pipeline_mode<synchronous>, transform_indices = @transform_10, window_bounds = array<i64: 1, 4>}, {transform_indices = @transform_11, window_bounds = array<i64: 1, 16, 16, 4>}, {transform_indices = @transform_12, window_bounds = array<i64: 1, 1, 2, 4>}]} {
    %c0 = arith.constant 0 : index
    %c0_0 = arith.constant 0 : index
    %c0_1 = arith.constant 0 : index
    %0 = vector.load %arg8[%c0, %c0_0, %c0_1] : memref<1x1x4xf32, #tpu.memory_space<vmem>>, vector<1x1x4xf32>
    %c0_2 = arith.constant 0 : index
    %c0_3 = arith.constant 0 : index
    %c0_4 = arith.constant 0 : index
    %1 = vector.load %arg9[%c0_2, %c0_3, %c0_4] : memref<1x1x4xf32, #tpu.memory_space<vmem>>, vector<1x1x4xf32>
    %c0_5 = arith.constant 0 : index
    %c0_6 = arith.constant 0 : index
    %c0_7 = arith.constant 0 : index
    %c0_8 = arith.constant 0 : index
    %2 = vector.load %arg2[%c0_5, %c0_6, %c0_7, %c0_8] : memref<1x1x16x4xbf16, #tpu.memory_space<vmem>>, vector<1x1x16x4xbf16>
    %3 = vector.shape_cast %2 : vector<1x1x16x4xbf16> to vector<1x16x4xbf16>
    %4 = arith.extf %3 : vector<1x16x4xbf16> to vector<1x16x4xf32>
    %5 = vector.broadcast %0 : vector<1x1x4xf32> to vector<1x16x4xf32>
    %6 = arith.mulf %4, %5 : vector<1x16x4xf32>
    %7 = vector.broadcast %1 : vector<1x1x4xf32> to vector<1x16x4xf32>
    %8 = arith.addf %6, %7 : vector<1x16x4xf32>
    %cst = arith.constant 0.000000e+00 : f32
    %9 = vector.broadcast %cst : f32 to vector<1x16x4xf32>
    %10 = arith.maximumf %8, %9 : vector<1x16x4xf32>
    %c0_9 = arith.constant 0 : index
    %c0_10 = arith.constant 0 : index
    %c0_11 = arith.constant 0 : index
    %c0_12 = arith.constant 0 : index
    %11 = vector.load %arg3[%c0_9, %c0_10, %c0_11, %c0_12] : memref<1x16x16x4xbf16, #tpu.memory_space<vmem>>, vector<1x16x16x4xbf16>
    %12 = vector.shape_cast %11 : vector<1x16x16x4xbf16> to vector<16x16x4xbf16>
    %13 = arith.extf %12 : vector<16x16x4xbf16> to vector<16x16x4xf32>
    %14 = vector.broadcast %0 : vector<1x1x4xf32> to vector<16x16x4xf32>
    %15 = arith.mulf %13, %14 : vector<16x16x4xf32>
    %16 = vector.broadcast %1 : vector<1x1x4xf32> to vector<16x16x4xf32>
    %17 = arith.addf %15, %16 : vector<16x16x4xf32>
    %cst_13 = arith.constant 0.000000e+00 : f32
    %18 = vector.broadcast %cst_13 : f32 to vector<16x16x4xf32>
    %19 = arith.maximumf %17, %18 : vector<16x16x4xf32>
    %c0_14 = arith.constant 0 : index
    %c0_15 = arith.constant 0 : index
    %c0_16 = arith.constant 0 : index
    %c0_17 = arith.constant 0 : index
    %20 = vector.load %arg4[%c0_14, %c0_15, %c0_16, %c0_17] : memref<1x1x16x4xbf16, #tpu.memory_space<vmem>>, vector<1x1x16x4xbf16>
    %21 = vector.shape_cast %20 : vector<1x1x16x4xbf16> to vector<1x16x4xbf16>
    %22 = arith.extf %21 : vector<1x16x4xbf16> to vector<1x16x4xf32>
    %23 = vector.broadcast %0 : vector<1x1x4xf32> to vector<1x16x4xf32>
    %24 = arith.mulf %22, %23 : vector<1x16x4xf32>
    %25 = vector.broadcast %1 : vector<1x1x4xf32> to vector<1x16x4xf32>
    %26 = arith.addf %24, %25 : vector<1x16x4xf32>
    %cst_18 = arith.constant 0.000000e+00 : f32
    %27 = vector.broadcast %cst_18 : f32 to vector<1x16x4xf32>
    %28 = arith.maximumf %26, %27 : vector<1x16x4xf32>
    %c0_i32 = arith.constant 0 : i32
    %29 = arith.cmpi eq, %arg1, %c0_i32 : i32
    %cst_19 = arith.constant 0.000000e+00 : f32
    %30 = vector.broadcast %cst_19 : f32 to vector<1x16x4xf32>
    %31 = arith.select %29, %30, %10 : vector<1x16x4xf32>
    %c0_i32_20 = arith.constant 0 : i32
    %32 = arith.cmpi eq, %arg1, %c0_i32_20 : i32
    %cst_21 = arith.constant 0.000000e+00 : f32
    %33 = vector.broadcast %cst_21 : f32 to vector<1x16x4xf32>
    %34 = arith.select %32, %33, %28 : vector<1x16x4xf32>
    %35 = tpu.concatenate %31, %19, %34 in 0 : vector<1x16x4xf32>, vector<16x16x4xf32>, vector<1x16x4xf32> -> vector<18x16x4xf32>
    %cst_22 = arith.constant 0.000000e+00 : f32
    %36 = vector.broadcast %cst_22 : f32 to vector<18x1x4xf32>
    %37 = tpu.concatenate %36, %35, %36 in 1 : vector<18x1x4xf32>, vector<18x16x4xf32>, vector<18x1x4xf32> -> vector<18x18x4xf32>
    %c0_23 = arith.constant 0 : index
    %c0_24 = arith.constant 0 : index
    %c0_25 = arith.constant 0 : index
    %c0_26 = arith.constant 0 : index
    %38 = vector.load %arg5[%c0_23, %c0_24, %c0_25, %c0_26] : memref<1x1x16x4xbf16, #tpu.memory_space<vmem>>, vector<1x1x16x4xbf16>
    %39 = vector.shape_cast %38 : vector<1x1x16x4xbf16> to vector<1x16x4xbf16>
    %40 = arith.extf %39 : vector<1x16x4xbf16> to vector<1x16x4xf32>
    %c0_27 = arith.constant 0 : index
    %c0_28 = arith.constant 0 : index
    %c0_29 = arith.constant 0 : index
    %c0_30 = arith.constant 0 : index
    %41 = vector.load %arg6[%c0_27, %c0_28, %c0_29, %c0_30] : memref<1x16x16x4xbf16, #tpu.memory_space<vmem>>, vector<1x16x16x4xbf16>
    %42 = vector.shape_cast %41 : vector<1x16x16x4xbf16> to vector<16x16x4xbf16>
    %43 = arith.extf %42 : vector<16x16x4xbf16> to vector<16x16x4xf32>
    %c0_31 = arith.constant 0 : index
    %c0_32 = arith.constant 0 : index
    %c0_33 = arith.constant 0 : index
    %c0_34 = arith.constant 0 : index
    %44 = vector.load %arg7[%c0_31, %c0_32, %c0_33, %c0_34] : memref<1x1x16x4xbf16, #tpu.memory_space<vmem>>, vector<1x1x16x4xbf16>
    %45 = vector.shape_cast %44 : vector<1x1x16x4xbf16> to vector<1x16x4xbf16>
    %46 = arith.extf %45 : vector<1x16x4xbf16> to vector<1x16x4xf32>
    %c0_i32_35 = arith.constant 0 : i32
    %47 = arith.cmpi eq, %arg1, %c0_i32_35 : i32
    %cst_36 = arith.constant 0.000000e+00 : f32
    %48 = vector.broadcast %cst_36 : f32 to vector<1x16x4xf32>
    %49 = arith.select %47, %48, %40 : vector<1x16x4xf32>
    %c0_i32_37 = arith.constant 0 : i32
    %50 = arith.cmpi eq, %arg1, %c0_i32_37 : i32
    %cst_38 = arith.constant 0.000000e+00 : f32
    %51 = vector.broadcast %cst_38 : f32 to vector<1x16x4xf32>
    %52 = arith.select %50, %51, %46 : vector<1x16x4xf32>
    %53 = tpu.concatenate %49, %43, %52 in 0 : vector<1x16x4xf32>, vector<16x16x4xf32>, vector<1x16x4xf32> -> vector<18x16x4xf32>
    %cst_39 = arith.constant 0.000000e+00 : f32
    %54 = vector.broadcast %cst_39 : f32 to vector<18x1x4xf32>
    %55 = tpu.concatenate %54, %53, %54 in 1 : vector<18x1x4xf32>, vector<18x16x4xf32>, vector<18x1x4xf32> -> vector<18x18x4xf32>
    %c0_40 = arith.constant 0 : index
    %c0_41 = arith.constant 0 : index
    %c0_42 = arith.constant 0 : index
    %56 = vector.load %arg10[%c0_40, %c0_41, %c0_42] : memref<3x12x4xbf16, #tpu.memory_space<vmem>>, vector<3x12x4xbf16>
    %57 = vector.extract_strided_slice %37 {offsets = [0, 0, 0], sizes = [18, 16, 4], strides = [1, 1, 1]} : vector<18x18x4xf32> to vector<18x16x4xf32>
    %58 = vector.extract_strided_slice %37 {offsets = [0, 1, 0], sizes = [18, 16, 4], strides = [1, 1, 1]} : vector<18x18x4xf32> to vector<18x16x4xf32>
    %59 = vector.extract_strided_slice %37 {offsets = [0, 2, 0], sizes = [18, 16, 4], strides = [1, 1, 1]} : vector<18x18x4xf32> to vector<18x16x4xf32>
    %60 = tpu.concatenate %57, %58, %59 in 2 : vector<18x16x4xf32>, vector<18x16x4xf32>, vector<18x16x4xf32> -> vector<18x16x12xf32>
    %61 = arith.truncf %60 : vector<18x16x12xf32> to vector<18x16x12xbf16>
    %cst_43 = arith.constant 0.000000e+00 : f32
    %62 = vector.broadcast %cst_43 : f32 to vector<256x4xf32>
    %63 = vector.extract_strided_slice %61 {offsets = [0, 0, 0], sizes = [16, 16, 12], strides = [1, 1, 1]} : vector<18x16x12xbf16> to vector<16x16x12xbf16>
    %64 = vector.shape_cast %63 : vector<16x16x12xbf16> to vector<256x12xbf16>
    %65 = vector.extract_strided_slice %56 {offsets = [0, 0, 0], sizes = [1, 12, 4], strides = [1, 1, 1]} : vector<3x12x4xbf16> to vector<1x12x4xbf16>
    %66 = vector.shape_cast %65 : vector<1x12x4xbf16> to vector<12x4xbf16>
    %cst_44 = arith.constant dense<0.000000e+00> : vector<256x4xf32>
    %67 = tpu.matmul %64, %66, %cst_44 {dimension_numbers = #tpu.dot_dimension_numbers<[1], [0], [0], [1], [0, 0, 1, 1], [], []>} : vector<256x12xbf16>, vector<12x4xbf16>, vector<256x4xf32> -> vector<256x4xf32>
    %68 = arith.addf %62, %67 : vector<256x4xf32>
    %69 = vector.extract_strided_slice %61 {offsets = [1, 0, 0], sizes = [16, 16, 12], strides = [1, 1, 1]} : vector<18x16x12xbf16> to vector<16x16x12xbf16>
    %70 = vector.shape_cast %69 : vector<16x16x12xbf16> to vector<256x12xbf16>
    %71 = vector.extract_strided_slice %56 {offsets = [1, 0, 0], sizes = [1, 12, 4], strides = [1, 1, 1]} : vector<3x12x4xbf16> to vector<1x12x4xbf16>
    %72 = vector.shape_cast %71 : vector<1x12x4xbf16> to vector<12x4xbf16>
    %cst_45 = arith.constant dense<0.000000e+00> : vector<256x4xf32>
    %73 = tpu.matmul %70, %72, %cst_45 {dimension_numbers = #tpu.dot_dimension_numbers<[1], [0], [0], [1], [0, 0, 1, 1], [], []>} : vector<256x12xbf16>, vector<12x4xbf16>, vector<256x4xf32> -> vector<256x4xf32>
    %74 = arith.addf %68, %73 : vector<256x4xf32>
    %75 = vector.extract_strided_slice %61 {offsets = [2, 0, 0], sizes = [16, 16, 12], strides = [1, 1, 1]} : vector<18x16x12xbf16> to vector<16x16x12xbf16>
    %76 = vector.shape_cast %75 : vector<16x16x12xbf16> to vector<256x12xbf16>
    %77 = vector.extract_strided_slice %56 {offsets = [2, 0, 0], sizes = [1, 12, 4], strides = [1, 1, 1]} : vector<3x12x4xbf16> to vector<1x12x4xbf16>
    %78 = vector.shape_cast %77 : vector<1x12x4xbf16> to vector<12x4xbf16>
    %cst_46 = arith.constant dense<0.000000e+00> : vector<256x4xf32>
    %79 = tpu.matmul %76, %78, %cst_46 {dimension_numbers = #tpu.dot_dimension_numbers<[1], [0], [0], [1], [0, 0, 1, 1], [], []>} : vector<256x12xbf16>, vector<12x4xbf16>, vector<256x4xf32> -> vector<256x4xf32>
    %80 = arith.addf %74, %79 : vector<256x4xf32>
    %c0_47 = arith.constant 0 : index
    %c0_48 = arith.constant 0 : index
    %c0_49 = arith.constant 0 : index
    %81 = vector.load %arg11[%c0_47, %c0_48, %c0_49] : memref<3x12x4xbf16, #tpu.memory_space<vmem>>, vector<3x12x4xbf16>
    %82 = vector.extract_strided_slice %55 {offsets = [0, 0, 0], sizes = [18, 16, 4], strides = [1, 1, 1]} : vector<18x18x4xf32> to vector<18x16x4xf32>
    %83 = vector.extract_strided_slice %55 {offsets = [0, 1, 0], sizes = [18, 16, 4], strides = [1, 1, 1]} : vector<18x18x4xf32> to vector<18x16x4xf32>
    %84 = vector.extract_strided_slice %55 {offsets = [0, 2, 0], sizes = [18, 16, 4], strides = [1, 1, 1]} : vector<18x18x4xf32> to vector<18x16x4xf32>
    %85 = tpu.concatenate %82, %83, %84 in 2 : vector<18x16x4xf32>, vector<18x16x4xf32>, vector<18x16x4xf32> -> vector<18x16x12xf32>
    %86 = arith.truncf %85 : vector<18x16x12xf32> to vector<18x16x12xbf16>
    %cst_50 = arith.constant 0.000000e+00 : f32
    %87 = vector.broadcast %cst_50 : f32 to vector<256x4xf32>
    %88 = vector.extract_strided_slice %86 {offsets = [0, 0, 0], sizes = [16, 16, 12], strides = [1, 1, 1]} : vector<18x16x12xbf16> to vector<16x16x12xbf16>
    %89 = vector.shape_cast %88 : vector<16x16x12xbf16> to vector<256x12xbf16>
    %90 = vector.extract_strided_slice %81 {offsets = [0, 0, 0], sizes = [1, 12, 4], strides = [1, 1, 1]} : vector<3x12x4xbf16> to vector<1x12x4xbf16>
    %91 = vector.shape_cast %90 : vector<1x12x4xbf16> to vector<12x4xbf16>
    %cst_51 = arith.constant dense<0.000000e+00> : vector<256x4xf32>
    %92 = tpu.matmul %89, %91, %cst_51 {dimension_numbers = #tpu.dot_dimension_numbers<[1], [0], [0], [1], [0, 0, 1, 1], [], []>} : vector<256x12xbf16>, vector<12x4xbf16>, vector<256x4xf32> -> vector<256x4xf32>
    %93 = arith.addf %87, %92 : vector<256x4xf32>
    %94 = vector.extract_strided_slice %86 {offsets = [1, 0, 0], sizes = [16, 16, 12], strides = [1, 1, 1]} : vector<18x16x12xbf16> to vector<16x16x12xbf16>
    %95 = vector.shape_cast %94 : vector<16x16x12xbf16> to vector<256x12xbf16>
    %96 = vector.extract_strided_slice %81 {offsets = [1, 0, 0], sizes = [1, 12, 4], strides = [1, 1, 1]} : vector<3x12x4xbf16> to vector<1x12x4xbf16>
    %97 = vector.shape_cast %96 : vector<1x12x4xbf16> to vector<12x4xbf16>
    %cst_52 = arith.constant dense<0.000000e+00> : vector<256x4xf32>
    %98 = tpu.matmul %95, %97, %cst_52 {dimension_numbers = #tpu.dot_dimension_numbers<[1], [0], [0], [1], [0, 0, 1, 1], [], []>} : vector<256x12xbf16>, vector<12x4xbf16>, vector<256x4xf32> -> vector<256x4xf32>
    %99 = arith.addf %93, %98 : vector<256x4xf32>
    %100 = vector.extract_strided_slice %86 {offsets = [2, 0, 0], sizes = [16, 16, 12], strides = [1, 1, 1]} : vector<18x16x12xbf16> to vector<16x16x12xbf16>
    %101 = vector.shape_cast %100 : vector<16x16x12xbf16> to vector<256x12xbf16>
    %102 = vector.extract_strided_slice %81 {offsets = [2, 0, 0], sizes = [1, 12, 4], strides = [1, 1, 1]} : vector<3x12x4xbf16> to vector<1x12x4xbf16>
    %103 = vector.shape_cast %102 : vector<1x12x4xbf16> to vector<12x4xbf16>
    %cst_53 = arith.constant dense<0.000000e+00> : vector<256x4xf32>
    %104 = tpu.matmul %101, %103, %cst_53 {dimension_numbers = #tpu.dot_dimension_numbers<[1], [0], [0], [1], [0, 0, 1, 1], [], []>} : vector<256x12xbf16>, vector<12x4xbf16>, vector<256x4xf32> -> vector<256x4xf32>
    %105 = arith.addf %99, %104 : vector<256x4xf32>
    %106 = arith.addf %80, %105 : vector<256x4xf32>
    %c0_54 = arith.constant 0 : index
    %c0_55 = arith.constant 0 : index
    %107 = vector.load %arg12[%c0_54, %c0_55] : memref<1x4xf32, #tpu.memory_space<vmem>>, vector<1x4xf32>
    %108 = vector.broadcast %107 : vector<1x4xf32> to vector<256x4xf32>
    %109 = arith.addf %106, %108 : vector<256x4xf32>
    %cst_56 = arith.constant dense<0.000000e+00> : vector<4xf32>
    %110 = vector.multi_reduction <add>, %109, %cst_56 [0] : vector<256x4xf32> to vector<4xf32>
    %111 = vector.shape_cast %110 : vector<4xf32> to vector<1x4xf32>
    %112 = arith.mulf %109, %109 : vector<256x4xf32>
    %cst_57 = arith.constant dense<0.000000e+00> : vector<4xf32>
    %113 = vector.multi_reduction <add>, %112, %cst_57 [0] : vector<256x4xf32> to vector<4xf32>
    %114 = vector.shape_cast %113 : vector<4xf32> to vector<1x4xf32>
    %115 = tpu.concatenate %111, %114 in 0 : vector<1x4xf32>, vector<1x4xf32> -> vector<2x4xf32>
    %c0_58 = arith.constant 0 : index
    %c0_59 = arith.constant 0 : index
    %c0_60 = arith.constant 0 : index
    %c0_61 = arith.constant 0 : index
    %116 = vector.load %arg14[%c0_58, %c0_59, %c0_60, %c0_61] : memref<1x1x2x4xf32, #tpu.memory_space<vmem>>, vector<1x1x2x4xf32>
    %117 = vector.shape_cast %116 : vector<1x1x2x4xf32> to vector<2x4xf32>
    %118 = vector.shape_cast %115 : vector<2x4xf32> to vector<1x1x2x4xf32>
    tpu.vector_store %arg14[%c0_58, %c0_59, %c0_60, %c0_61], %118 {strides = array<i32>} : memref<1x1x2x4xf32, #tpu.memory_space<vmem>>, vector<1x1x2x4xf32>,
    %119 = vector.shape_cast %109 : vector<256x4xf32> to vector<16x16x4xf32>
    %120 = arith.truncf %119 : vector<16x16x4xf32> to vector<16x16x4xbf16>
    %c0_62 = arith.constant 0 : index
    %c0_63 = arith.constant 0 : index
    %c0_64 = arith.constant 0 : index
    %c0_65 = arith.constant 0 : index
    %121 = vector.load %arg13[%c0_62, %c0_63, %c0_64, %c0_65] : memref<1x16x16x4xbf16, #tpu.memory_space<vmem>>, vector<1x16x16x4xbf16>
    %122 = vector.shape_cast %121 : vector<1x16x16x4xbf16> to vector<16x16x4xbf16>
    %123 = vector.shape_cast %120 : vector<16x16x4xbf16> to vector<1x16x16x4xbf16>
    tpu.vector_store %arg13[%c0_62, %c0_63, %c0_64, %c0_65], %123 {strides = array<i32>} : memref<1x16x16x4xbf16, #tpu.memory_space<vmem>>, vector<1x16x16x4xbf16>,
    return
  }
  func.func @transform_0(%arg0: i32, %arg1: i32) -> (i32, i32, i32, i32) {
    %c16_i32 = arith.constant 16 : i32
    %0 = arith.muli %arg1, %c16_i32 : i32
    %c1_i32 = arith.constant 1 : i32
    %1 = arith.subi %0, %c1_i32 : i32
    %c0_i32 = arith.constant 0 : i32
    %2 = arith.maxsi %1, %c0_i32 : i32
    %c0_i32_0 = arith.constant 0 : i32
    %c0_i32_1 = arith.constant 0 : i32
    %c0_i32_2 = arith.constant 0 : i32
    return %arg0, %2, %c0_i32_0, %c0_i32_1 : i32, i32, i32, i32
  }
  func.func @transform_1(%arg0: i32, %arg1: i32) -> (i32, i32, i32, i32) {
    %c0_i32 = arith.constant 0 : i32
    %c0_i32_0 = arith.constant 0 : i32
    %c0_i32_1 = arith.constant 0 : i32
    return %arg0, %arg1, %c0_i32, %c0_i32_0 : i32, i32, i32, i32
  }
  func.func @transform_2(%arg0: i32, %arg1: i32) -> (i32, i32, i32, i32) {
    %c1_i32 = arith.constant 1 : i32
    %0 = arith.addi %arg1, %c1_i32 : i32
    %c16_i32 = arith.constant 16 : i32
    %1 = arith.muli %0, %c16_i32 : i32
    %c15_i32 = arith.constant 15 : i32
    %2 = arith.minsi %1, %c15_i32 : i32
    %c0_i32 = arith.constant 0 : i32
    %c0_i32_0 = arith.constant 0 : i32
    %c0_i32_1 = arith.constant 0 : i32
    return %arg0, %2, %c0_i32, %c0_i32_0 : i32, i32, i32, i32
  }
  func.func @transform_3(%arg0: i32, %arg1: i32) -> (i32, i32, i32, i32) {
    %c16_i32 = arith.constant 16 : i32
    %0 = arith.muli %arg1, %c16_i32 : i32
    %c1_i32 = arith.constant 1 : i32
    %1 = arith.subi %0, %c1_i32 : i32
    %c0_i32 = arith.constant 0 : i32
    %2 = arith.maxsi %1, %c0_i32 : i32
    %c0_i32_0 = arith.constant 0 : i32
    %c0_i32_1 = arith.constant 0 : i32
    %c0_i32_2 = arith.constant 0 : i32
    return %arg0, %2, %c0_i32_0, %c0_i32_1 : i32, i32, i32, i32
  }
  func.func @transform_4(%arg0: i32, %arg1: i32) -> (i32, i32, i32, i32) {
    %c0_i32 = arith.constant 0 : i32
    %c0_i32_0 = arith.constant 0 : i32
    %c0_i32_1 = arith.constant 0 : i32
    return %arg0, %arg1, %c0_i32, %c0_i32_0 : i32, i32, i32, i32
  }
  func.func @transform_5(%arg0: i32, %arg1: i32) -> (i32, i32, i32, i32) {
    %c1_i32 = arith.constant 1 : i32
    %0 = arith.addi %arg1, %c1_i32 : i32
    %c16_i32 = arith.constant 16 : i32
    %1 = arith.muli %0, %c16_i32 : i32
    %c15_i32 = arith.constant 15 : i32
    %2 = arith.minsi %1, %c15_i32 : i32
    %c0_i32 = arith.constant 0 : i32
    %c0_i32_0 = arith.constant 0 : i32
    %c0_i32_1 = arith.constant 0 : i32
    return %arg0, %2, %c0_i32, %c0_i32_0 : i32, i32, i32, i32
  }
  func.func @transform_6(%arg0: i32, %arg1: i32) -> (i32, i32, i32) {
    %c0_i32 = arith.constant 0 : i32
    %c0_i32_0 = arith.constant 0 : i32
    %c0_i32_1 = arith.constant 0 : i32
    %c0_i32_2 = arith.constant 0 : i32
    return %c0_i32, %c0_i32_0, %c0_i32_1 : i32, i32, i32
  }
  func.func @transform_7(%arg0: i32, %arg1: i32) -> (i32, i32, i32) {
    %c0_i32 = arith.constant 0 : i32
    %c0_i32_0 = arith.constant 0 : i32
    %c0_i32_1 = arith.constant 0 : i32
    %c0_i32_2 = arith.constant 0 : i32
    return %c0_i32, %c0_i32_0, %c0_i32_1 : i32, i32, i32
  }
  func.func @transform_8(%arg0: i32, %arg1: i32) -> (i32, i32, i32) {
    %c0_i32 = arith.constant 0 : i32
    %c0_i32_0 = arith.constant 0 : i32
    %c0_i32_1 = arith.constant 0 : i32
    %c0_i32_2 = arith.constant 0 : i32
    return %c0_i32, %c0_i32_0, %c0_i32_1 : i32, i32, i32
  }
  func.func @transform_9(%arg0: i32, %arg1: i32) -> (i32, i32, i32) {
    %c0_i32 = arith.constant 0 : i32
    %c0_i32_0 = arith.constant 0 : i32
    %c0_i32_1 = arith.constant 0 : i32
    %c0_i32_2 = arith.constant 0 : i32
    return %c0_i32, %c0_i32_0, %c0_i32_1 : i32, i32, i32
  }
  func.func @transform_10(%arg0: i32, %arg1: i32) -> (i32, i32) {
    %c0_i32 = arith.constant 0 : i32
    %c0_i32_0 = arith.constant 0 : i32
    %c0_i32_1 = arith.constant 0 : i32
    return %c0_i32, %c0_i32_0 : i32, i32
  }
  func.func @transform_11(%arg0: i32, %arg1: i32) -> (i32, i32, i32, i32) {
    %c0_i32 = arith.constant 0 : i32
    %c0_i32_0 = arith.constant 0 : i32
    %c0_i32_1 = arith.constant 0 : i32
    return %arg0, %arg1, %c0_i32, %c0_i32_0 : i32, i32, i32, i32
  }
  func.func @transform_12(%arg0: i32, %arg1: i32) -> (i32, i32, i32, i32) {
    %c0_i32 = arith.constant 0 : i32
    %c0_i32_0 = arith.constant 0 : i32
    %c0_i32_1 = arith.constant 0 : i32
    return %arg0, %arg1, %c0_i32, %c0_i32_0 : i32, i32, i32, i32
  }
}

module attributes {stable_mosaic.version = 11 : i64} {
  func.func @_conv_bn_kernel(%arg0: i32, %arg1: i32, %arg2: memref<1x1x16x4xbf16, #tpu.memory_space<vmem>>, %arg3: memref<1x16x16x4xbf16, #tpu.memory_space<vmem>>, %arg4: memref<1x1x16x4xbf16, #tpu.memory_space<vmem>>, %arg5: memref<1x1x4xf32, #tpu.memory_space<vmem>>, %arg6: memref<1x1x4xf32, #tpu.memory_space<vmem>>, %arg7: memref<3x12x4xbf16, #tpu.memory_space<vmem>>, %arg8: memref<1x4xf32, #tpu.memory_space<vmem>>, %arg9: memref<1x16x16x4xbf16, #tpu.memory_space<vmem>>, %arg10: memref<1x1x2x4xf32, #tpu.memory_space<vmem>>) attributes {dimension_semantics = [#tpu.dimension_semantics<parallel>, #tpu.dimension_semantics<parallel>], iteration_bounds = array<i64: 2, 1>, scalar_prefetch = 0 : i64, scratch_operands = 0 : i64, tpu.core_type = #tpu.core_type<tc>, window_params = [{transform_indices = @transform_0, window_bounds = array<i64: 1, 1, 16, 4>}, {transform_indices = @transform_1, window_bounds = array<i64: 1, 16, 16, 4>}, {transform_indices = @transform_2, window_bounds = array<i64: 1, 1, 16, 4>}, {pipeline_mode = #tpu.pipeline_mode<synchronous>, transform_indices = @transform_3, window_bounds = array<i64: 1, 1, 4>}, {pipeline_mode = #tpu.pipeline_mode<synchronous>, transform_indices = @transform_4, window_bounds = array<i64: 1, 1, 4>}, {pipeline_mode = #tpu.pipeline_mode<synchronous>, transform_indices = @transform_5, window_bounds = array<i64: 3, 12, 4>}, {pipeline_mode = #tpu.pipeline_mode<synchronous>, transform_indices = @transform_6, window_bounds = array<i64: 1, 4>}, {transform_indices = @transform_7, window_bounds = array<i64: 1, 16, 16, 4>}, {transform_indices = @transform_8, window_bounds = array<i64: 1, 1, 2, 4>}]} {
    %c0 = arith.constant 0 : index
    %c0_0 = arith.constant 0 : index
    %c0_1 = arith.constant 0 : index
    %0 = vector.load %arg5[%c0, %c0_0, %c0_1] : memref<1x1x4xf32, #tpu.memory_space<vmem>>, vector<1x1x4xf32>
    %c0_2 = arith.constant 0 : index
    %c0_3 = arith.constant 0 : index
    %c0_4 = arith.constant 0 : index
    %1 = vector.load %arg6[%c0_2, %c0_3, %c0_4] : memref<1x1x4xf32, #tpu.memory_space<vmem>>, vector<1x1x4xf32>
    %c0_5 = arith.constant 0 : index
    %c0_6 = arith.constant 0 : index
    %c0_7 = arith.constant 0 : index
    %c0_8 = arith.constant 0 : index
    %2 = vector.load %arg2[%c0_5, %c0_6, %c0_7, %c0_8] : memref<1x1x16x4xbf16, #tpu.memory_space<vmem>>, vector<1x1x16x4xbf16>
    %3 = vector.shape_cast %2 : vector<1x1x16x4xbf16> to vector<1x16x4xbf16>
    %4 = arith.extf %3 : vector<1x16x4xbf16> to vector<1x16x4xf32>
    %5 = vector.broadcast %0 : vector<1x1x4xf32> to vector<1x16x4xf32>
    %6 = arith.mulf %4, %5 : vector<1x16x4xf32>
    %7 = vector.broadcast %1 : vector<1x1x4xf32> to vector<1x16x4xf32>
    %8 = arith.addf %6, %7 : vector<1x16x4xf32>
    %cst = arith.constant 0.000000e+00 : f32
    %9 = vector.broadcast %cst : f32 to vector<1x16x4xf32>
    %10 = arith.maximumf %8, %9 : vector<1x16x4xf32>
    %c0_9 = arith.constant 0 : index
    %c0_10 = arith.constant 0 : index
    %c0_11 = arith.constant 0 : index
    %c0_12 = arith.constant 0 : index
    %11 = vector.load %arg3[%c0_9, %c0_10, %c0_11, %c0_12] : memref<1x16x16x4xbf16, #tpu.memory_space<vmem>>, vector<1x16x16x4xbf16>
    %12 = vector.shape_cast %11 : vector<1x16x16x4xbf16> to vector<16x16x4xbf16>
    %13 = arith.extf %12 : vector<16x16x4xbf16> to vector<16x16x4xf32>
    %14 = vector.broadcast %0 : vector<1x1x4xf32> to vector<16x16x4xf32>
    %15 = arith.mulf %13, %14 : vector<16x16x4xf32>
    %16 = vector.broadcast %1 : vector<1x1x4xf32> to vector<16x16x4xf32>
    %17 = arith.addf %15, %16 : vector<16x16x4xf32>
    %cst_13 = arith.constant 0.000000e+00 : f32
    %18 = vector.broadcast %cst_13 : f32 to vector<16x16x4xf32>
    %19 = arith.maximumf %17, %18 : vector<16x16x4xf32>
    %c0_14 = arith.constant 0 : index
    %c0_15 = arith.constant 0 : index
    %c0_16 = arith.constant 0 : index
    %c0_17 = arith.constant 0 : index
    %20 = vector.load %arg4[%c0_14, %c0_15, %c0_16, %c0_17] : memref<1x1x16x4xbf16, #tpu.memory_space<vmem>>, vector<1x1x16x4xbf16>
    %21 = vector.shape_cast %20 : vector<1x1x16x4xbf16> to vector<1x16x4xbf16>
    %22 = arith.extf %21 : vector<1x16x4xbf16> to vector<1x16x4xf32>
    %23 = vector.broadcast %0 : vector<1x1x4xf32> to vector<1x16x4xf32>
    %24 = arith.mulf %22, %23 : vector<1x16x4xf32>
    %25 = vector.broadcast %1 : vector<1x1x4xf32> to vector<1x16x4xf32>
    %26 = arith.addf %24, %25 : vector<1x16x4xf32>
    %cst_18 = arith.constant 0.000000e+00 : f32
    %27 = vector.broadcast %cst_18 : f32 to vector<1x16x4xf32>
    %28 = arith.maximumf %26, %27 : vector<1x16x4xf32>
    %c0_i32 = arith.constant 0 : i32
    %29 = arith.cmpi eq, %arg1, %c0_i32 : i32
    %cst_19 = arith.constant 0.000000e+00 : f32
    %30 = vector.broadcast %cst_19 : f32 to vector<1x16x4xf32>
    %31 = arith.select %29, %30, %10 : vector<1x16x4xf32>
    %c0_i32_20 = arith.constant 0 : i32
    %32 = arith.cmpi eq, %arg1, %c0_i32_20 : i32
    %cst_21 = arith.constant 0.000000e+00 : f32
    %33 = vector.broadcast %cst_21 : f32 to vector<1x16x4xf32>
    %34 = arith.select %32, %33, %28 : vector<1x16x4xf32>
    %35 = tpu.concatenate %31, %19, %34 in 0 : vector<1x16x4xf32>, vector<16x16x4xf32>, vector<1x16x4xf32> -> vector<18x16x4xf32>
    %cst_22 = arith.constant 0.000000e+00 : f32
    %36 = vector.broadcast %cst_22 : f32 to vector<18x1x4xf32>
    %37 = tpu.concatenate %36, %35, %36 in 1 : vector<18x1x4xf32>, vector<18x16x4xf32>, vector<18x1x4xf32> -> vector<18x18x4xf32>
    %c0_23 = arith.constant 0 : index
    %c0_24 = arith.constant 0 : index
    %c0_25 = arith.constant 0 : index
    %38 = vector.load %arg7[%c0_23, %c0_24, %c0_25] : memref<3x12x4xbf16, #tpu.memory_space<vmem>>, vector<3x12x4xbf16>
    %39 = vector.extract_strided_slice %37 {offsets = [0, 0, 0], sizes = [18, 16, 4], strides = [1, 1, 1]} : vector<18x18x4xf32> to vector<18x16x4xf32>
    %40 = vector.extract_strided_slice %37 {offsets = [0, 1, 0], sizes = [18, 16, 4], strides = [1, 1, 1]} : vector<18x18x4xf32> to vector<18x16x4xf32>
    %41 = vector.extract_strided_slice %37 {offsets = [0, 2, 0], sizes = [18, 16, 4], strides = [1, 1, 1]} : vector<18x18x4xf32> to vector<18x16x4xf32>
    %42 = tpu.concatenate %39, %40, %41 in 2 : vector<18x16x4xf32>, vector<18x16x4xf32>, vector<18x16x4xf32> -> vector<18x16x12xf32>
    %43 = arith.truncf %42 : vector<18x16x12xf32> to vector<18x16x12xbf16>
    %cst_26 = arith.constant 0.000000e+00 : f32
    %44 = vector.broadcast %cst_26 : f32 to vector<256x4xf32>
    %45 = vector.extract_strided_slice %43 {offsets = [0, 0, 0], sizes = [16, 16, 12], strides = [1, 1, 1]} : vector<18x16x12xbf16> to vector<16x16x12xbf16>
    %46 = vector.shape_cast %45 : vector<16x16x12xbf16> to vector<256x12xbf16>
    %47 = vector.extract_strided_slice %38 {offsets = [0, 0, 0], sizes = [1, 12, 4], strides = [1, 1, 1]} : vector<3x12x4xbf16> to vector<1x12x4xbf16>
    %48 = vector.shape_cast %47 : vector<1x12x4xbf16> to vector<12x4xbf16>
    %cst_27 = arith.constant dense<0.000000e+00> : vector<256x4xf32>
    %49 = tpu.matmul %46, %48, %cst_27 {dimension_numbers = #tpu.dot_dimension_numbers<[1], [0], [0], [1], [0, 0, 1, 1], [], []>} : vector<256x12xbf16>, vector<12x4xbf16>, vector<256x4xf32> -> vector<256x4xf32>
    %50 = arith.addf %44, %49 : vector<256x4xf32>
    %51 = vector.extract_strided_slice %43 {offsets = [1, 0, 0], sizes = [16, 16, 12], strides = [1, 1, 1]} : vector<18x16x12xbf16> to vector<16x16x12xbf16>
    %52 = vector.shape_cast %51 : vector<16x16x12xbf16> to vector<256x12xbf16>
    %53 = vector.extract_strided_slice %38 {offsets = [1, 0, 0], sizes = [1, 12, 4], strides = [1, 1, 1]} : vector<3x12x4xbf16> to vector<1x12x4xbf16>
    %54 = vector.shape_cast %53 : vector<1x12x4xbf16> to vector<12x4xbf16>
    %cst_28 = arith.constant dense<0.000000e+00> : vector<256x4xf32>
    %55 = tpu.matmul %52, %54, %cst_28 {dimension_numbers = #tpu.dot_dimension_numbers<[1], [0], [0], [1], [0, 0, 1, 1], [], []>} : vector<256x12xbf16>, vector<12x4xbf16>, vector<256x4xf32> -> vector<256x4xf32>
    %56 = arith.addf %50, %55 : vector<256x4xf32>
    %57 = vector.extract_strided_slice %43 {offsets = [2, 0, 0], sizes = [16, 16, 12], strides = [1, 1, 1]} : vector<18x16x12xbf16> to vector<16x16x12xbf16>
    %58 = vector.shape_cast %57 : vector<16x16x12xbf16> to vector<256x12xbf16>
    %59 = vector.extract_strided_slice %38 {offsets = [2, 0, 0], sizes = [1, 12, 4], strides = [1, 1, 1]} : vector<3x12x4xbf16> to vector<1x12x4xbf16>
    %60 = vector.shape_cast %59 : vector<1x12x4xbf16> to vector<12x4xbf16>
    %cst_29 = arith.constant dense<0.000000e+00> : vector<256x4xf32>
    %61 = tpu.matmul %58, %60, %cst_29 {dimension_numbers = #tpu.dot_dimension_numbers<[1], [0], [0], [1], [0, 0, 1, 1], [], []>} : vector<256x12xbf16>, vector<12x4xbf16>, vector<256x4xf32> -> vector<256x4xf32>
    %62 = arith.addf %56, %61 : vector<256x4xf32>
    %c0_30 = arith.constant 0 : index
    %c0_31 = arith.constant 0 : index
    %63 = vector.load %arg8[%c0_30, %c0_31] : memref<1x4xf32, #tpu.memory_space<vmem>>, vector<1x4xf32>
    %64 = vector.broadcast %63 : vector<1x4xf32> to vector<256x4xf32>
    %65 = arith.addf %62, %64 : vector<256x4xf32>
    %cst_32 = arith.constant dense<0.000000e+00> : vector<4xf32>
    %66 = vector.multi_reduction <add>, %65, %cst_32 [0] : vector<256x4xf32> to vector<4xf32>
    %67 = vector.shape_cast %66 : vector<4xf32> to vector<1x4xf32>
    %68 = arith.mulf %65, %65 : vector<256x4xf32>
    %cst_33 = arith.constant dense<0.000000e+00> : vector<4xf32>
    %69 = vector.multi_reduction <add>, %68, %cst_33 [0] : vector<256x4xf32> to vector<4xf32>
    %70 = vector.shape_cast %69 : vector<4xf32> to vector<1x4xf32>
    %71 = tpu.concatenate %67, %70 in 0 : vector<1x4xf32>, vector<1x4xf32> -> vector<2x4xf32>
    %c0_34 = arith.constant 0 : index
    %c0_35 = arith.constant 0 : index
    %c0_36 = arith.constant 0 : index
    %c0_37 = arith.constant 0 : index
    %72 = vector.load %arg10[%c0_34, %c0_35, %c0_36, %c0_37] : memref<1x1x2x4xf32, #tpu.memory_space<vmem>>, vector<1x1x2x4xf32>
    %73 = vector.shape_cast %72 : vector<1x1x2x4xf32> to vector<2x4xf32>
    %74 = vector.shape_cast %71 : vector<2x4xf32> to vector<1x1x2x4xf32>
    tpu.vector_store %arg10[%c0_34, %c0_35, %c0_36, %c0_37], %74 {strides = array<i32>} : memref<1x1x2x4xf32, #tpu.memory_space<vmem>>, vector<1x1x2x4xf32>,
    %75 = vector.shape_cast %65 : vector<256x4xf32> to vector<16x16x4xf32>
    %76 = arith.truncf %75 : vector<16x16x4xf32> to vector<16x16x4xbf16>
    %c0_38 = arith.constant 0 : index
    %c0_39 = arith.constant 0 : index
    %c0_40 = arith.constant 0 : index
    %c0_41 = arith.constant 0 : index
    %77 = vector.load %arg9[%c0_38, %c0_39, %c0_40, %c0_41] : memref<1x16x16x4xbf16, #tpu.memory_space<vmem>>, vector<1x16x16x4xbf16>
    %78 = vector.shape_cast %77 : vector<1x16x16x4xbf16> to vector<16x16x4xbf16>
    %79 = vector.shape_cast %76 : vector<16x16x4xbf16> to vector<1x16x16x4xbf16>
    tpu.vector_store %arg9[%c0_38, %c0_39, %c0_40, %c0_41], %79 {strides = array<i32>} : memref<1x16x16x4xbf16, #tpu.memory_space<vmem>>, vector<1x16x16x4xbf16>,
    return
  }
  func.func @transform_0(%arg0: i32, %arg1: i32) -> (i32, i32, i32, i32) {
    %c16_i32 = arith.constant 16 : i32
    %0 = arith.muli %arg1, %c16_i32 : i32
    %c1_i32 = arith.constant 1 : i32
    %1 = arith.subi %0, %c1_i32 : i32
    %c0_i32 = arith.constant 0 : i32
    %2 = arith.maxsi %1, %c0_i32 : i32
    %c0_i32_0 = arith.constant 0 : i32
    %c0_i32_1 = arith.constant 0 : i32
    %c0_i32_2 = arith.constant 0 : i32
    return %arg0, %2, %c0_i32_0, %c0_i32_1 : i32, i32, i32, i32
  }
  func.func @transform_1(%arg0: i32, %arg1: i32) -> (i32, i32, i32, i32) {
    %c0_i32 = arith.constant 0 : i32
    %c0_i32_0 = arith.constant 0 : i32
    %c0_i32_1 = arith.constant 0 : i32
    return %arg0, %arg1, %c0_i32, %c0_i32_0 : i32, i32, i32, i32
  }
  func.func @transform_2(%arg0: i32, %arg1: i32) -> (i32, i32, i32, i32) {
    %c1_i32 = arith.constant 1 : i32
    %0 = arith.addi %arg1, %c1_i32 : i32
    %c16_i32 = arith.constant 16 : i32
    %1 = arith.muli %0, %c16_i32 : i32
    %c15_i32 = arith.constant 15 : i32
    %2 = arith.minsi %1, %c15_i32 : i32
    %c0_i32 = arith.constant 0 : i32
    %c0_i32_0 = arith.constant 0 : i32
    %c0_i32_1 = arith.constant 0 : i32
    return %arg0, %2, %c0_i32, %c0_i32_0 : i32, i32, i32, i32
  }
  func.func @transform_3(%arg0: i32, %arg1: i32) -> (i32, i32, i32) {
    %c0_i32 = arith.constant 0 : i32
    %c0_i32_0 = arith.constant 0 : i32
    %c0_i32_1 = arith.constant 0 : i32
    %c0_i32_2 = arith.constant 0 : i32
    return %c0_i32, %c0_i32_0, %c0_i32_1 : i32, i32, i32
  }
  func.func @transform_4(%arg0: i32, %arg1: i32) -> (i32, i32, i32) {
    %c0_i32 = arith.constant 0 : i32
    %c0_i32_0 = arith.constant 0 : i32
    %c0_i32_1 = arith.constant 0 : i32
    %c0_i32_2 = arith.constant 0 : i32
    return %c0_i32, %c0_i32_0, %c0_i32_1 : i32, i32, i32
  }
  func.func @transform_5(%arg0: i32, %arg1: i32) -> (i32, i32, i32) {
    %c0_i32 = arith.constant 0 : i32
    %c0_i32_0 = arith.constant 0 : i32
    %c0_i32_1 = arith.constant 0 : i32
    %c0_i32_2 = arith.constant 0 : i32
    return %c0_i32, %c0_i32_0, %c0_i32_1 : i32, i32, i32
  }
  func.func @transform_6(%arg0: i32, %arg1: i32) -> (i32, i32) {
    %c0_i32 = arith.constant 0 : i32
    %c0_i32_0 = arith.constant 0 : i32
    %c0_i32_1 = arith.constant 0 : i32
    return %c0_i32, %c0_i32_0 : i32, i32
  }
  func.func @transform_7(%arg0: i32, %arg1: i32) -> (i32, i32, i32, i32) {
    %c0_i32 = arith.constant 0 : i32
    %c0_i32_0 = arith.constant 0 : i32
    %c0_i32_1 = arith.constant 0 : i32
    return %arg0, %arg1, %c0_i32, %c0_i32_0 : i32, i32, i32, i32
  }
  func.func @transform_8(%arg0: i32, %arg1: i32) -> (i32, i32, i32, i32) {
    %c0_i32 = arith.constant 0 : i32
    %c0_i32_0 = arith.constant 0 : i32
    %c0_i32_1 = arith.constant 0 : i32
    return %arg0, %arg1, %c0_i32, %c0_i32_0 : i32, i32, i32, i32
  }
}

</mosaic_0001>

<bundles_post_ra>
// kernel: upscale_forward.5
= control target key start
LH: loop header
LB: loop body
LE: loop exit
PB: predicated region body
PF: predicated region fallthrough
CT: control target
= control target key end

     0   :  { %s2790_s26 = smov 0   ;;  %s2792_s2 = smov 0   ;;  %s3754_s0 = inlined_call_operand.vmem [shape: bf16[2,16,16,4], index: 0, kind: input, shape index: {}, may-alias: {0,1,2}]   ;;  %s3755_s1 = inlined_call_operand.vmem [shape: bf16[2,16,16,4], index: 1, kind: input, shape index: {}, may-alias: {0,1,2}]   ;;  %s3756_s2 = inlined_call_operand.vmem [shape: bf16[2,16,16,4], index: 2, kind: input, shape index: {}, may-alias: {0,1,2}]   ;;  %s3757_s3 = inlined_call_operand.vmem [shape: f32[1,1,4], index: 3, kind: input, shape index: {}]   ;;  %s3758_s4 = inlined_call_operand.vmem [shape: f32[1,1,4], index: 4, kind: input, shape index: {}]   ;;  %s3759_s5 = inlined_call_operand.vmem [shape: bf16[3,12,4], index: 5, kind: input, shape index: {}]   ;;  %s3760_s6 = inlined_call_operand.vmem [shape: f32[1,4], index: 6, kind: input, shape index: {}]   ;;  %s3761_s7 = inlined_call_operand.vmem [shape: bf16[2,16,16,4], index: 7, kind: output, shape index: {0}]   ;;  %s3762_s8 = inlined_call_operand.vmem [shape: f32[2,1,2,4], index: 8, kind: output, shape index: {1}]  }
   0x1   :  { %s2794_s27 = smov 0  }
   0x2 LB: > { %s31_s28 = sadd.s32 1, %s2736_s2  ;;  %p2346_p0 = scmp.ge.s32.totalorder %s2740_s27, 1  ;;  %s2740_s27 = sphi %s2794_s27, %s19_s27   ;;  %s2736_s2 = sphi %s2792_s2, %s3764_s2   ;;  %s2732_s26 = sphi %s2790_s26, %s3763_s26  }
   0x3   : > { %p33_p1 = scmp.ge.s32.totalorder %s31_s28, 2  ;;  %p353_p2 = scmp.lt.s32.totalorder %s2740_s27, 3 }
   0x5   : > { %s3766_s28 = smov (%p33_p1, %s31_s28), 0  ;;  %p354_p3 = pnand %p2346_p0, %p353_p2 }
   0x6   : > { %p448_p4 = scmp.lt.s32.totalorder (!%p354_p3), %s2732_s26, 1  ;;  %s2743_s15 = smov (!%p354_p3), 4  }
   0x7   : > { %357 = sbr.rel (%p354_p3) target bundleno = 521 (0x209), region = 48  ;;  %s2744_s16 = smov (!%p354_p3), 8  }
   0xc   : > { %vm726_vm0 = vcmask 1040384   ;;  %v2742_v0 = vmov 0.0   ;;  %vm913_vm1 = vcmask 1046528   ;;  %s3768_s26 = smov (!%p448_p4, %s2732_s26), 1  ;;  %v2833_v10 = vld [vmem:[%s3757_s3] ss:$0 sm:$0xff] }
   0xd   : > { %v2808_v1 = vrot.slane %v2742_v0, 7  ;;  %s2419_s29 = sshll.u32 %s3768_s26, 7  ;;  %vm1112_vm2 = vcmask 1045504   ;;  %v2847_v19 = vld [vmem:[%s3758_s4] ss:$0 sm:$0xff]  ;;  %vm1311_vm3 = vcmask 31744  }
   0xe   : > { %s2828_s10 = scalar_lea.vmem %s3755_s1, %s2419_s29  ;;  %vm1348_vm4 = vcmask 64512   ;;  %vm1506_vm5 = vcmask 97280   ;;  %s3417_s14 = scalar_lea.vmem %s3761_s7, %s2419_s29  ;;  %vm2130_vm6 = vcmask 27648   ;;  %vm2096_vm7 = vcmask 25600  }
   0xf   : > { %v2814_v2 = vsel %vm726_vm0, 0.0, %v2808_v1  ;;  %v853_v3 = vsel %vm726_vm0, %v2808_v1, 0.0  ;;  %v915_v4 = vrot.slane %v2808_v1, 1  ;;  %v1114_v5 = vrot.slane %v2808_v1, 2  ;;  %v2490_v13 = vld [vmem:[%s2828_s10 + $0x8] sm:$0xff]   ;;  %v2427_v14 = vld [vmem:[%s2828_s10] sm:$0xff]  }
  0x10   : > { %v914_v6 = vrot.slane %v2814_v2, 1  ;;  %v917_v7 = vrot.slane %v853_v3, 1  ;;  %v1113_v8 = vrot.slane %v2814_v2, 2  ;;  %v1116_v9 = vrot.slane %v853_v3, 2  ;;  %v2491_v17 = vld [vmem:[%s2828_s10 + $0x10] sm:$0xff]   ;;  %v2501_v22 = vld [vmem:[%s2828_s10 + $0x60] sm:$0xff]  }
  0x11   : > { %v2432_v20 = vunpack.c.l.bf16 %v2490_v13  ;;  %v2433_v21 = vunpack.c.h.bf16 %v2490_v13  ;;  %v2428_v23 = vunpack.c.l.bf16 %v2427_v14  ;;  %v2429_v24 = vunpack.c.h.bf16 %v2427_v14  ;;  %s2355_s29 = sshll.u32 %s3768_s26, 1 }
  0x12   : > { %v916_v11 = vsel %vm913_vm1, %v914_v6, %v915_v4  ;;  %v918_v12 = vsel %vm913_vm1, %v915_v4, %v917_v7  ;;  %v1115_v15 = vsel %vm1112_vm2, %v1113_v8, %v1114_v5  ;;  %v1117_v16 = vsel %vm1112_vm2, %v1114_v5, %v1116_v9  ;;  %s492_s17 = scalar_lea.vmem %s3762_s8, %s2355_s29 }
  0x13   : > { %v2842_v18 = vpack.i.bf16 %v918_v12, %v916_v11  ;;  %v2850_v25 = vpack.i.bf16 %v1117_v16, %v1115_v15  ;;  %v578_v26 = vmul.f32 %v2833_v10, %v2432_v20  ;;  %v579_v27 = vmul.f32 %v2833_v10, %v2433_v21 }
  0x14   : > { %v2436_v28 = vunpack.c.l.bf16 %v2491_v17  ;;  %v2437_v29 = vunpack.c.h.bf16 %v2491_v17  ;;  %v576_v30 = vmul.f32 %v2833_v10, %v2428_v23  ;;  %v577_v31 = vmul.f32 %v2833_v10, %v2429_v24 }
  0x15   : > { %2536 = vrot.lane.b32.xlu1 %v2842_v18, %s2743_s15  ;;  %2556 = vrot.lane.b32.xlu2 %v2850_v25, %s2744_s16  ;;  %v2476_v32 = vunpack.c.l.bf16 %v2501_v22  ;;  %v2477_v33 = vunpack.c.h.bf16 %v2501_v22  ;;  %v610_v34 = vadd.f32 %v2847_v19, %v578_v26  ;;  %v611_v35 = vadd.f32 %v2847_v19, %v579_v27 }
  0x16   : > { %v580_v36 = vmul.f32 %v2833_v10, %v2436_v28  ;;  %v581_v37 = vmul.f32 %v2833_v10, %v2437_v29  ;;  %v608_v38 = vadd.f32 %v2847_v19, %v576_v30  ;;  %v609_v39 = vadd.f32 %v2847_v19, %v577_v31 }
  0x17   : > { %v600_v40 = vmul.f32 %v2833_v10, %v2476_v32  ;;  %v601_v41 = vmul.f32 %v2833_v10, %v2477_v33  ;;  %v642_v42 = vmax.f32 %v610_v34, 0.0  ;;  %v643_v43 = vmax.f32 %v611_v35, 0.0 }
  0x18   : > { %v612_v44 = vadd.f32 %v2847_v19, %v580_v36  ;;  %v613_v45 = vadd.f32 %v2847_v19, %v581_v37  ;;  %v640_v46 = vmax.f32 %v608_v38, 0.0  ;;  %v641_v47 = vmax.f32 %v609_v39, 0.0 }
  0x19   : > { %v632_v48 = vadd.f32 %v2847_v19, %v600_v40  ;;  %v633_v49 = vadd.f32 %v2847_v19, %v601_v41  ;;  %v733_v50 = vrot.slane %v642_v42, 7  ;;  %v734_v51 = vrot.slane %v643_v43, 7 }
  0x1a   : > { %v644_v52 = vmax.f32 %v612_v44, 0.0  ;;  %v645_v53 = vmax.f32 %v613_v45, 0.0  ;;  %v730_v54 = vrot.slane %v640_v46, 7  ;;  %v731_v55 = vrot.slane %v641_v47, 7  ;;  %v2492_v44 = vld [vmem:[%s2828_s10 + $0x18] sm:$0xff]  }
  0x1b   : > { %v664_v56 = vmax.f32 %v632_v48, 0.0  ;;  %v665_v57 = vmax.f32 %v633_v49, 0.0  ;;  %v2873_v58 = vsel %vm726_vm0, %v733_v50, %v734_v51  ;;  %v2876_v59 = vsel %vm726_vm0, 0.0, %v733_v50  ;;  %v2502_v49 = vld [vmem:[%s2828_s10 + $0x68] sm:$0xff]  }
  0x1c   : > { %v855_v60 = vsel %vm726_vm0, %v734_v51, 0.0  ;;  %v736_v61 = vrot.slane %v644_v52, 7  ;;  %v924_v62 = vrot.slane %v2876_v59, 1  ;;  %v925_v63 = vrot.slane %v2873_v58, 1 }
  0x1d   : > { %v927_v0 = vrot.slane %v855_v60, 1  ;;  %v1126_v3 = vrot.slane %v855_v60, 2  ;;  %v2882_v4 = vsel %vm726_vm0, %v730_v54, %v731_v55  ;;  %v2885_v5 = vsel %vm726_vm0, 0.0, %v730_v54 }
  0x1e   : > { %v854_v6 = vsel %vm726_vm0, %v731_v55, 0.0  ;;  %v1123_v7 = vrot.slane %v2876_v59, 2  ;;  %v926_v8 = vsel %vm913_vm1, %v924_v62, %v925_v63  ;;  %v919_v11 = vrot.slane %v2885_v5, 1 }
  0x1f   : > { %v928_v9 = vsel %vm913_vm1, %v925_v63, %v927_v0  ;;  %v920_v12 = vrot.slane %v2882_v4, 1  ;;  %v922_v14 = vrot.slane %v854_v6, 1  ;;  %v1124_v15 = vrot.slane %v2873_v58, 2  ;;  %v2493_v0 = vld [vmem:[%s2828_s10 + $0x20] sm:$0xff]  }
  0x20   : > { %v2540_v13 = vpack.i.bf16 %v928_v9, %v926_v8  ;;  %v737_v16 = vrot.slane %v645_v53, 7  ;;  %v2896_v20 = vsel %vm726_vm0, 0.0, %v736_v61  ;;  %v766_v21 = vrot.slane %v664_v56, 7 }
  0x21   : > { %v921_v17 = vsel %vm913_vm1, %v919_v11, %v920_v12  ;;  %v767_v22 = vrot.slane %v665_v57, 7  ;;  %v923_v23 = vsel %vm913_vm1, %v920_v12, %v922_v14  ;;  %v1125_v24 = vsel %vm1112_vm2, %v1123_v7, %v1124_v15 }
  0x22   : > { %2541 = vrot.lane.b32.xlu0 %v2540_v13, %s2743_s15  ;;  %v1127_v26 = vsel %vm1112_vm2, %v1124_v15, %v1126_v3  ;;  %v2903_v27 = vsel %vm726_vm0, %v736_v61, %v737_v16  ;;  %v2550_v28 = vpack.i.bf16 %v923_v23, %v921_v17  ;;  %v856_v30 = vsel %vm726_vm0, %v737_v16, 0.0 }
  0x23   : > { %v2545_v29 = vpack.i.bf16 %v1127_v26, %v1125_v24  ;;  %v929_v31 = vrot.slane %v2896_v20, 1  ;;  %v930_v32 = vrot.slane %v2903_v27, 1  ;;  %v932_v33 = vrot.slane %v856_v30, 1 }
  0x24   : > { %v2909_v34 = vsel %vm726_vm0, %v766_v21, %v767_v22  ;;  %v2912_v35 = vsel %vm726_vm0, 0.0, %v766_v21  ;;  %2551 = vrot.lane.b32.xlu1 %v2550_v28, %s2743_s15  ;;  %v866_v36 = vsel %vm726_vm0, %v767_v22, 0.0  ;;  %v1118_v48 = vrot.slane %v2885_v5, 2  ;;  %v2503_v21 = vld [vmem:[%s2828_s10 + $0x70] sm:$0xff]  }
  0x25   : > { %v979_v37 = vrot.slane %v2912_v35, 1  ;;  %v980_v38 = vrot.slane %v2909_v34, 1  ;;  %v1178_v39 = vrot.slane %v2912_v35, 2  ;;  %v931_v40 = vsel %vm913_vm1, %v929_v31, %v930_v32 }
  0x26   : > { %v933_v41 = vsel %vm913_vm1, %v930_v32, %v932_v33  ;;  %v982_v42 = vrot.slane %v866_v36, 1  ;;  %v1179_v43 = vrot.slane %v2909_v34, 2  ;;  %v1181_v47 = vrot.slane %v866_v36, 2 }
  0x27   : > { %v2565_v45 = vpack.i.bf16 %v933_v41, %v931_v40  ;;  %v981_v46 = vsel %vm913_vm1, %v979_v37, %v980_v38  ;;  %v1119_v52 = vrot.slane %v2882_v4, 2  ;;  %v1121_v53 = vrot.slane %v854_v6, 2 }
  0x28   : > { %v983_v50 = vsel %vm913_vm1, %v980_v38, %v982_v42  ;;  %v2928_v51 = vsel %vm1112_vm2, %v1178_v39, %v1179_v43  ;;  %v2932_v55 = vsel %vm1112_vm2, %v1179_v43, %v1181_v47  ;;  %v2440_v56 = vunpack.c.l.bf16 %v2492_v44 }
  0x29   : > { %v2570_v54 = vpack.i.bf16 %v983_v50, %v981_v46  ;;  %v2441_v57 = vunpack.c.h.bf16 %v2492_v44  ;;  %v2580_v60 = vpack.i.bf16 %v2932_v55, %v2928_v51  ;;  %v1120_v61 = vsel %vm1112_vm2, %v1118_v48, %v1119_v52 }
  0x2a   : > { %2546 = vrot.lane.b32.xlu0 %v2545_v29, %s2744_s16  ;;  %v1122_v62 = vsel %vm1112_vm2, %v1119_v52, %v1121_v53  ;;  %v2480_v63 = vunpack.c.l.bf16 %v2502_v49  ;;  %v582_v6 = vmul.f32 %v2833_v10, %v2440_v56  ;;  %v2481_v8 = vunpack.c.h.bf16 %v2502_v49 }
  0x2b   : > { %v2560_v3 = vpack.i.bf16 %v1122_v62, %v1120_v61  ;;  %v583_v7 = vmul.f32 %v2833_v10, %v2441_v57  ;;  %v1128_v11 = vrot.slane %v2896_v20, 2  ;;  %v1129_v12 = vrot.slane %v2903_v27, 2 }
  0x2c   : > { %v602_v9 = vmul.f32 %v2833_v10, %v2480_v63  ;;  %v1131_v13 = vrot.slane %v856_v30, 2  ;;  %2571 = vrot.lane.b32.xlu1 %v2570_v54, %s2743_s15  ;;  %v614_v14 = vadd.f32 %v2847_v19, %v582_v6  ;;  %v603_v16 = vmul.f32 %v2833_v10, %v2481_v8 }
  0x2d   : > { %2561 = vrot.lane.b32.xlu2 %v2560_v3, %s2744_s16  ;;  %v615_v15 = vadd.f32 %v2847_v19, %v583_v7  ;;  %v2444_v17 = vunpack.c.l.bf16 %v2493_v0  ;;  %v1130_v23 = vsel %vm1112_vm2, %v1128_v11, %v1129_v12  ;;  %v2445_v26 = vunpack.c.h.bf16 %v2493_v0 }
  0x2e   : > { %v634_v22 = vadd.f32 %v2847_v19, %v602_v9  ;;  %v1132_v24 = vsel %vm1112_vm2, %v1129_v12, %v1131_v13  ;;  %v646_v28 = vmax.f32 %v614_v14, 0.0  ;;  %v635_v30 = vadd.f32 %v2847_v19, %v603_v16 }
  0x2f   : > { %v647_v29 = vmax.f32 %v615_v15, 0.0  ;;  %v2575_v31 = vpack.i.bf16 %v1132_v24, %v1130_v23  ;;  %v584_v33 = vmul.f32 %v2833_v10, %v2444_v17  ;;  %v585_v36 = vmul.f32 %v2833_v10, %v2445_v26 }
  0x30   : > { %v666_v32 = vmax.f32 %v634_v22, 0.0  ;;  %v2484_v37 = vunpack.c.l.bf16 %v2503_v21  ;;  %v739_v38 = vrot.slane %v646_v28, 7  ;;  %v667_v40 = vmax.f32 %v635_v30, 0.0 }
  0x31   : > { %v740_v39 = vrot.slane %v647_v29, 7  ;;  %v2485_v41 = vunpack.c.h.bf16 %v2503_v21  ;;  %v616_v43 = vadd.f32 %v2847_v19, %v584_v33  ;;  %v617_v44 = vadd.f32 %v2847_v19, %v585_v36  ;;  %v2494_v33 = vld [vmem:[%s2828_s10 + $0x28] sm:$0xff]  }
  0x32   : > { %2566 = vrot.lane.b32.xlu0 %v2565_v45, %s2743_s15  ;;  %v769_v42 = vrot.slane %v666_v32, 7  ;;  %v604_v46 = vmul.f32 %v2833_v10, %v2484_v37  ;;  %v2965_v48 = vsel %vm726_vm0, 0.0, %v739_v38  ;;  %v770_v50 = vrot.slane %v667_v40, 7 }
  0x33   : > { %v2962_v47 = vsel %vm726_vm0, %v739_v38, %v740_v39  ;;  %v857_v49 = vsel %vm726_vm0, %v740_v39, 0.0  ;;  %v934_v52 = vrot.slane %v2965_v48, 1  ;;  %v1133_v54 = vrot.slane %v2965_v48, 2 }
  0x34   : > { %v935_v45 = vrot.slane %v2962_v47, 1  ;;  %v937_v53 = vrot.slane %v857_v49, 1  ;;  %v1134_v56 = vrot.slane %v2962_v47, 2  ;;  %v1136_v57 = vrot.slane %v857_v49, 2 }
  0x35   : > { %v2973_v61 = vsel %vm726_vm0, %v769_v42, %v770_v50  ;;  %v2976_v62 = vsel %vm726_vm0, 0.0, %v769_v42  ;;  %2576 = vrot.lane.b32.xlu2 %v2575_v31, %s2744_s16  ;;  %v867_v3 = vsel %vm726_vm0, %v770_v50, 0.0  ;;  %v648_v14 = vmax.f32 %v616_v43, 0.0 }
  0x36   : > { %v936_v63 = vsel %vm913_vm1, %v934_v52, %v935_v45  ;;  %v938_v0 = vsel %vm913_vm1, %v935_v45, %v937_v53  ;;  %v1183_v6 = vrot.slane %v2976_v62, 2  ;;  %v1135_v8 = vsel %vm1112_vm2, %v1133_v54, %v1134_v56 }
  0x37   : > { %v2585_v7 = vpack.i.bf16 %v938_v0, %v936_v63  ;;  %v1137_v9 = vsel %vm1112_vm2, %v1134_v56, %v1136_v57  ;;  %v1184_v11 = vrot.slane %v2973_v61, 2  ;;  %v1186_v13 = vrot.slane %v867_v3, 2 }
  0x38   : > { %v2595_v12 = vpack.i.bf16 %v1137_v9, %v1135_v8  ;;  %v649_v15 = vmax.f32 %v617_v44, 0.0  ;;  %v605_v17 = vmul.f32 %v2833_v10, %v2485_v41  ;;  %v636_v21 = vadd.f32 %v2847_v19, %v604_v46  ;;  %v2504_v46 = vld [vmem:[%s2828_s10 + $0x78] sm:$0xff]  }
  0x39   : > { %2586 = vrot.lane.b32.xlu1 %v2585_v7, %s2743_s15  ;;  %v1185_v16 = vsel %vm1112_vm2, %v1183_v6, %v1184_v11  ;;  %v984_v22 = vrot.slane %v2976_v62, 1  ;;  %v1187_v23 = vsel %vm1112_vm2, %v1184_v11, %v1186_v13  ;;  %v742_v24 = vrot.slane %v648_v14, 7 }
  0x3a   : > { %2581 = vrot.lane.b32.xlu0 %v2580_v60, %s2744_s16  ;;  %v743_v26 = vrot.slane %v649_v15, 7  ;;  %v985_v28 = vrot.slane %v2973_v61, 1  ;;  %v2600_v29 = vpack.i.bf16 %v1187_v23, %v1185_v16  ;;  %v637_v30 = vadd.f32 %v2847_v19, %v605_v17 }
  0x3b   : > { %v668_v31 = vmax.f32 %v636_v21, 0.0  ;;  %v987_v32 = vrot.slane %v867_v3, 1  ;;  %v3003_v37 = vsel %vm726_vm0, 0.0, %v742_v24  ;;  %v2448_v43 = vunpack.c.l.bf16 %v2494_v33 }
  0x3c   : > { %v3000_v36 = vsel %vm726_vm0, %v742_v24, %v743_v26  ;;  %v858_v51 = vsel %vm726_vm0, %v743_v26, 0.0  ;;  %v986_v55 = vsel %vm913_vm1, %v984_v22, %v985_v28  ;;  %v1138_v60 = vrot.slane %v3003_v37, 2 }
  0x3d   : > { %v1139_v38 = vrot.slane %v3000_v36, 2  ;;  %v1141_v39 = vrot.slane %v858_v51, 2  ;;  %v669_v40 = vmax.f32 %v637_v30, 0.0  ;;  %v772_v41 = vrot.slane %v668_v31, 7 }
  0x3e   : > { %v988_v42 = vsel %vm913_vm1, %v985_v28, %v987_v32  ;;  %v2449_v44 = vunpack.c.h.bf16 %v2494_v33  ;;  %v586_v56 = vmul.f32 %v2833_v10, %v2448_v43  ;;  %v2488_v6 = vunpack.c.l.bf16 %v2504_v46 }
  0x3f   : > { %v1140_v49 = vsel %vm1112_vm2, %v1138_v60, %v1139_v38  ;;  %v1142_v50 = vsel %vm1112_vm2, %v1139_v38, %v1141_v39  ;;  %v773_v52 = vrot.slane %v669_v40, 7  ;;  %v2590_v45 = vpack.i.bf16 %v988_v42, %v986_v55 }
  0x40   : > { %v2615_v53 = vpack.i.bf16 %v1142_v50, %v1140_v49  ;;  %v3014_v54 = vsel %vm726_vm0, 0.0, %v772_v41  ;;  %v587_v57 = vmul.f32 %v2833_v10, %v2449_v44  ;;  %v618_v9 = vadd.f32 %v2847_v19, %v586_v56  ;;  %v2495_v49 = vld [vmem:[%s2828_s10 + $0x30] sm:$0xff]  }
  0x41   : > { %2601 = vrot.lane.b32.xlu1 %v2600_v29, %s2744_s16  ;;  %v3020_v63 = vsel %vm726_vm0, %v772_v41, %v773_v52  ;;  %v868_v0 = vsel %vm726_vm0, %v773_v52, 0.0  ;;  %v989_v3 = vrot.slane %v3014_v54, 1  ;;  %2591 = vrot.lane.b32.xlu2 %v2590_v45, %s2743_s15  ;;  %v2489_v13 = vunpack.c.h.bf16 %v2504_v46 }
  0x42   : > { %2596 = vrot.lane.b32.xlu0 %v2595_v12, %s2744_s16  ;;  %v990_v7 = vrot.slane %v3020_v63, 1  ;;  %v992_v8 = vrot.slane %v868_v0, 1  ;;  %v619_v11 = vadd.f32 %v2847_v19, %v587_v57  ;;  %v606_v14 = vmul.f32 %v2833_v10, %v2488_v6 }
  0x43   : > { %v939_v15 = vrot.slane %v3003_v37, 1  ;;  %v940_v16 = vrot.slane %v3000_v36, 1  ;;  %v650_v22 = vmax.f32 %v618_v9, 0.0  ;;  %v607_v24 = vmul.f32 %v2833_v10, %v2489_v13  ;;  %v2500_v9 = vld [vmem:[%s2828_s10 + $0x58] sm:$0xff]  }
  0x44   : > { %v991_v17 = vsel %vm913_vm1, %v989_v3, %v990_v7  ;;  %v993_v21 = vsel %vm913_vm1, %v990_v7, %v992_v8  ;;  %v651_v12 = vmax.f32 %v619_v11, 0.0  ;;  %v638_v26 = vadd.f32 %v2847_v19, %v606_v14 }
  0x45   : > { %v2610_v23 = vpack.i.bf16 %v993_v21, %v991_v17  ;;  %v941_v28 = vsel %vm913_vm1, %v939_v15, %v940_v16  ;;  %v745_v29 = vrot.slane %v650_v22, 7  ;;  %v942_v31 = vrot.slane %v858_v51, 1 }
  0x46   : > { %v746_v30 = vrot.slane %v651_v12, 7  ;;  %v1188_v32 = vrot.slane %v3014_v54, 2  ;;  %v639_v33 = vadd.f32 %v2847_v19, %v607_v24  ;;  %v670_v55 = vmax.f32 %v638_v26, 0.0 }
  0x47   : > { %v1189_v60 = vrot.slane %v3020_v63, 2  ;;  %v1191_v38 = vrot.slane %v868_v0, 2  ;;  %v3044_v40 = vsel %vm726_vm0, 0.0, %v745_v29  ;;  %v943_v42 = vsel %vm913_vm1, %v940_v16, %v942_v31 }
  0x48   : > { %v3041_v39 = vsel %vm726_vm0, %v745_v29, %v746_v30  ;;  %v859_v41 = vsel %vm726_vm0, %v746_v30, 0.0  ;;  %v944_v51 = vrot.slane %v3044_v40, 1  ;;  %v671_v46 = vmax.f32 %v639_v33, 0.0 }
  0x49   : > { %2616 = vrot.lane.b32.xlu1 %v2615_v53, %s2744_s16  ;;  %v945_v43 = vrot.slane %v3041_v39, 1  ;;  %v947_v44 = vrot.slane %v859_v41, 1  ;;  %v775_v50 = vrot.slane %v670_v55, 7  ;;  %v2605_v52 = vpack.i.bf16 %v943_v42, %v941_v28 }
  0x4a   : > { %2611 = vrot.lane.b32.xlu0 %v2610_v23, %s2743_s15  ;;  %v1190_v45 = vsel %vm1112_vm2, %v1188_v32, %v1189_v60  ;;  %v776_v0 = vrot.slane %v671_v46, 7  ;;  %v1192_v53 = vsel %vm1112_vm2, %v1189_v60, %v1191_v38  ;;  %v2452_v7 = vunpack.c.l.bf16 %v2495_v49 }
  0x4b   : > { %v946_v56 = vsel %vm913_vm1, %v944_v51, %v945_v43  ;;  %v948_v57 = vsel %vm913_vm1, %v945_v43, %v947_v44  ;;  %v3058_v6 = vsel %vm726_vm0, 0.0, %v775_v50  ;;  %2606 = vrot.lane.b32.xlu2 %v2605_v52, %s2743_s15  ;;  %v2453_v8 = vunpack.c.h.bf16 %v2495_v49 }
  0x4c   : > { %v2625_v3 = vpack.i.bf16 %v948_v57, %v946_v56  ;;  %v3063_v11 = vsel %vm726_vm0, %v775_v50, %v776_v0  ;;  %v869_v13 = vsel %vm726_vm0, %v776_v0, 0.0  ;;  %v994_v14 = vrot.slane %v3058_v6, 1 }
  0x4d   : > { %v1193_v15 = vrot.slane %v3058_v6, 2  ;;  %v995_v16 = vrot.slane %v3063_v11, 1  ;;  %v997_v17 = vrot.slane %v869_v13, 1  ;;  %v1194_v21 = vrot.slane %v3063_v11, 2 }
  0x4e   : > { %v1196_v22 = vrot.slane %v869_v13, 2  ;;  %v588_v12 = vmul.f32 %v2833_v10, %v2452_v7  ;;  %v589_v23 = vmul.f32 %v2833_v10, %v2453_v8  ;;  %v2472_v24 = vunpack.c.l.bf16 %v2500_v9 }
  0x4f   : > { %v2473_v26 = vunpack.c.h.bf16 %v2500_v9  ;;  %v996_v28 = vsel %vm913_vm1, %v994_v14, %v995_v16  ;;  %v998_v29 = vsel %vm913_vm1, %v995_v16, %v997_v17  ;;  %v2620_v30 = vpack.i.bf16 %v1192_v53, %v1190_v45 }
  0x50   : > { %v2630_v31 = vpack.i.bf16 %v998_v29, %v996_v28  ;;  %v1195_v32 = vsel %vm1112_vm2, %v1193_v15, %v1194_v21  ;;  %v620_v33 = vadd.f32 %v2847_v19, %v588_v12  ;;  %v621_v55 = vadd.f32 %v2847_v19, %v589_v23 }
  0x51   : > { %v598_v60 = vmul.f32 %v2833_v10, %v2472_v24  ;;  %v599_v38 = vmul.f32 %v2833_v10, %v2473_v26  ;;  %v1143_v42 = vrot.slane %v3044_v40, 2  ;;  %v1144_v51 = vrot.slane %v3041_v39, 2 }
  0x52   : > { %2626 = vrot.lane.b32.xlu0 %v2625_v3, %s2743_s15  ;;  %2631 = vrot.lane.b32.xlu1 %v2630_v31, %s2743_s15  ;;  %v1197_v43 = vsel %vm1112_vm2, %v1194_v21, %v1196_v22  ;;  %v652_v44 = vmax.f32 %v620_v33, 0.0  ;;  %v653_v46 = vmax.f32 %v621_v55, 0.0  ;;  %v1146_v49 = vrot.slane %v859_v41, 2 }
  0x53   : > { %2621 = vrot.lane.b32.xlu2 %v2620_v30, %s2744_s16  ;;  %v630_v50 = vadd.f32 %v2847_v19, %v598_v60  ;;  %v631_v52 = vadd.f32 %v2847_v19, %v599_v38  ;;  %v1145_v45 = vsel %vm1112_vm2, %v1143_v42, %v1144_v51  ;;  %v2640_v53 = vpack.i.bf16 %v1197_v43, %v1195_v32  ;;  %v2496_v60 = vld [vmem:[%s2828_s10 + $0x38] sm:$0xff]  }
  0x54   : > { %v748_v56 = vrot.slane %v652_v44, 7  ;;  %v749_v57 = vrot.slane %v653_v46, 7  ;;  %v1147_v0 = vsel %vm1112_vm2, %v1144_v51, %v1146_v49  ;;  %v2456_v51 = vunpack.c.l.bf16 %v2496_v60 }
  0x55   : > { %v662_v3 = vmax.f32 %v630_v50, 0.0  ;;  %v663_v7 = vmax.f32 %v631_v52, 0.0  ;;  %v2635_v13 = vpack.i.bf16 %v1147_v0, %v1145_v45  ;;  %v2457_v43 = vunpack.c.h.bf16 %v2496_v60 }
  0x56   : > { %v3090_v8 = vsel %vm726_vm0, %v748_v56, %v749_v57  ;;  %v3093_v41 = vsel %vm726_vm0, 0.0, %v748_v56  ;;  %v860_v9 = vsel %vm726_vm0, %v749_v57, 0.0  ;;  %v590_v50 = vmul.f32 %v2833_v10, %v2456_v51 }
  0x57   : > { %v949_v14 = vrot.slane %v3093_v41, 1  ;;  %v950_v15 = vrot.slane %v3090_v8, 1  ;;  %v952_v16 = vrot.slane %v860_v9, 1  ;;  %v1148_v17 = vrot.slane %v3093_v41, 2 }
  0x58   : > { %v1149_v21 = vrot.slane %v3090_v8, 2  ;;  %v1151_v22 = vrot.slane %v860_v9, 2  ;;  %v763_v12 = vrot.slane %v662_v3, 7  ;;  %v764_v23 = vrot.slane %v663_v7, 7 }
  0x59   : > { %v951_v24 = vsel %vm913_vm1, %v949_v14, %v950_v15  ;;  %v953_v26 = vsel %vm913_vm1, %v950_v15, %v952_v16  ;;  %v591_v52 = vmul.f32 %v2833_v10, %v2457_v43  ;;  %v622_v56 = vadd.f32 %v2847_v19, %v590_v50 }
  0x5a   : > { %2641 = vrot.lane.b32.xlu0 %v2640_v53, %s2744_s16  ;;  %v2645_v28 = vpack.i.bf16 %v953_v26, %v951_v24  ;;  %v1150_v29 = vsel %vm1112_vm2, %v1148_v17, %v1149_v21  ;;  %v1152_v30 = vsel %vm1112_vm2, %v1149_v21, %v1151_v22  ;;  %v3106_v31 = vsel %vm726_vm0, %v763_v12, %v764_v23 }
  0x5b   : > { %v3109_v32 = vsel %vm726_vm0, 0.0, %v763_v12  ;;  %v865_v33 = vsel %vm726_vm0, %v764_v23, 0.0  ;;  %v1174_v55 = vrot.slane %v3106_v31, 2  ;;  %2636 = vrot.lane.b32.xlu2 %v2635_v13, %s2744_s16  ;;  %v2655_v44 = vpack.i.bf16 %v1152_v30, %v1150_v29  ;;  %v2378_v12 = vld [vmem:[%s3759_s5] sm:$0xf] }
  0x5c   : > { %2646 = vrot.lane.b32.xlu1 %v2645_v28, %s2743_s15  ;;  %v1173_v38 = vrot.slane %v3109_v32, 2  ;;  %v1176_v42 = vrot.slane %v865_v33, 2  ;;  %v623_v57 = vadd.f32 %v2847_v19, %v591_v52  ;;  %v654_v0 = vmax.f32 %v622_v56, 0.0  ;;  %v2423_v23 = vld [vmem:[%s3759_s5] sm:$0x30] }
  0x5d   : > { %v2379_v26 = vor.u32 %v2423_v23, %v2378_v12  ;;  %v2497_v28 = vld [vmem:[%s2828_s10 + $0x40] sm:$0xff]   ;;  %v975_v51 = vrot.slane %v3106_v31, 1  ;;  %v977_v43 = vrot.slane %v865_v33, 1  ;;  %v2358_v12 = vld [vmem:[%s3759_s5 + $0x8] sm:$0xf] }
  0x5e   : > { %v1175_v46 = vsel %vm1112_vm2, %v1173_v38, %v1174_v55  ;;  %v1177_v49 = vsel %vm1112_vm2, %v1174_v55, %v1176_v42  ;;  %v655_v53 = vmax.f32 %v623_v57, 0.0  ;;  %v751_v3 = vrot.slane %v654_v0, 7  ;;  %v2424_v23 = vld [vmem:[%s3759_s5 + $0x8] sm:$0x30] }
  0x5f   : > { %v2660_v45 = vpack.i.bf16 %v1177_v49, %v1175_v46  ;;  %v2460_v29 = vunpack.c.l.bf16 %v2497_v28  ;;  %v2461_v30 = vunpack.c.h.bf16 %v2497_v28  ;;  %v1661_v55 = vsel %vm1112_vm2, %v2379_v26, 0 }
  0x60   : > { %v752_v7 = vrot.slane %v655_v53, 7  ;;  %v3129_v13 = vsel %vm726_vm0, 0.0, %v751_v3  ;;  %1670 = vmatpush.bf16.msra.mxu1 %v1661_v55  ;;  %v974_v42 = vrot.slane %v3109_v32, 1  ;;  %v978_v50 = vsel %vm913_vm1, %v975_v51, %v977_v43 }
  0x61   : > { %v1153_v15 = vrot.slane %v3129_v13, 2  ;;  %v592_v60 = vmul.f32 %v2833_v10, %v2460_v29  ;;  %v593_v38 = vmul.f32 %v2833_v10, %v2461_v30  ;;  %v2359_v26 = vor.u32 %v2424_v23, %v2358_v12 }
  0x62   : > { %2656 = vrot.lane.b32.xlu0 %v2655_v44, %s2744_s16  ;;  %v3126_v9 = vsel %vm726_vm0, %v751_v3, %v752_v7  ;;  %v861_v14 = vsel %vm726_vm0, %v752_v7, 0.0  ;;  %v976_v49 = vsel %vm913_vm1, %v974_v42, %v975_v51  ;;  %v954_v42 = vrot.slane %v3129_v13, 1 }
  0x63   : > { %v1154_v16 = vrot.slane %v3126_v9, 2  ;;  %v1156_v17 = vrot.slane %v861_v14, 2  ;;  %v624_v44 = vadd.f32 %v2847_v19, %v592_v60  ;;  %v625_v46 = vadd.f32 %v2847_v19, %v593_v38 }
  0x64   : > { %2661 = vrot.lane.b32.xlu1 %v2660_v45, %s2744_s16  ;;  %v2650_v52 = vpack.i.bf16 %v978_v50, %v976_v49  ;;  %v1556_v30 = vsel %vm1112_vm2, %v2359_v26, 0  ;;  %v955_v51 = vrot.slane %v3126_v9, 1  ;;  %v957_v43 = vrot.slane %v861_v14, 1  ;;  %v2425_v14 = vld [vmem:[%s3759_s5 + $0x10] sm:$0x30] }
  0x65   : > { %v1155_v21 = vsel %vm1112_vm2, %v1153_v15, %v1154_v16  ;;  %v1157_v22 = vsel %vm1112_vm2, %v1154_v16, %v1156_v17  ;;  %v656_v45 = vmax.f32 %v624_v44, 0.0  ;;  %v657_v56 = vmax.f32 %v625_v46, 0.0  ;;  %1565 = vmatpush.bf16.msra.mxu0 %v1556_v30  ;;  %2505 = vmatpush.bf16.msra.mxu3 %v1556_v30 }
  0x66   : > { %v2670_v24 = vpack.i.bf16 %v1157_v22, %v1155_v21  ;;  %2651 = vrot.lane.b32.xlu2 %v2650_v52, %s2743_s15  ;;  %v956_v49 = vsel %vm913_vm1, %v954_v42, %v955_v51  ;;  %v958_v50 = vsel %vm913_vm1, %v955_v51, %v957_v43 }
  0x67   : > { %v754_v57 = vrot.slane %v656_v45, 7  ;;  %v755_v0 = vrot.slane %v657_v56, 7  ;;  %v2665_v45 = vpack.i.bf16 %v958_v50, %v956_v49  ;;  %v2398_v56 = vld [vmem:[%s3759_s5 + $0x10] sm:$0xf] }
  0x69   : > { %v3155_v53 = vsel %vm726_vm0, %v754_v57, %v755_v0  ;;  %v3158_v33 = vsel %vm726_vm0, 0.0, %v754_v57  ;;  %v3161_v3 = vsel %vm726_vm0, %v755_v0, 0.0  ;;  %2506 = vmatpush.bf16.msrb.mxu3 %v1661_v55 }
  0x6a   : > { %2671 = vrot.lane.b32.xlu0 %v2670_v24, %s2744_s16  ;;  %v959_v7 = vrot.slane %v3158_v33, 1  ;;  %v960_v15 = vrot.slane %v3155_v53, 1  ;;  %v962_v16 = vrot.slane %v3161_v3, 1  ;;  %v2498_v24 = vld [vmem:[%s2828_s10 + $0x48] sm:$0xff]  }
  0x6b   : > { %v2464_v28 = vunpack.c.l.bf16 %v2498_v24  ;;  %v2465_v29 = vunpack.c.h.bf16 %v2498_v24 }
  0x6c   : > { %v961_v17 = vsel %vm913_vm1, %v959_v7, %v960_v15  ;;  %v963_v21 = vsel %vm913_vm1, %v960_v15, %v962_v16  ;;  %v2399_v7 = vor.u32 %v2425_v14, %v2398_v56 }
  0x6d   : > { %v2675_v22 = vpack.i.bf16 %v963_v21, %v961_v17  ;;  %v594_v60 = vmul.f32 %v2833_v10, %v2464_v28  ;;  %v595_v38 = vmul.f32 %v2833_v10, %v2465_v29 }
  0x6e   : > { %2666 = vrot.lane.b32.xlu2 %v2665_v45, %s2743_s15  ;;  %v3193_v17 = vsel %vm1112_vm2, %v2399_v7, 0  ;;  %v2499_v7 = vld [vmem:[%s2828_s10 + $0x50] sm:$0xff]  }
  0x6f   : > { %2676 = vrot.lane.b32.xlu1 %v2675_v22, %s2743_s15  ;;  %v626_v44 = vadd.f32 %v2847_v19, %v594_v60  ;;  %v627_v46 = vadd.f32 %v2847_v19, %v595_v38  ;;  %v2557_v52 = vpop.permute.xlu2 %2556  ;;  %1775 = vmatpush.bf16.msra.mxu2 %v3193_v17 }
  0x70   : > { %v2559_v16 = vunpack.i.h.bf16 %v2557_v52  ;;  %v2558_v22 = vunpack.i.l.bf16 %v2557_v52 }
  0x71   : > { %v658_v57 = vmax.f32 %v626_v44, 0.0  ;;  %v659_v0 = vmax.f32 %v627_v46, 0.0 }
  0x73   : > { %v757_v55 = vrot.slane %v658_v57, 7  ;;  %v758_v15 = vrot.slane %v659_v0, 7 }
  0x75   : > { %v3197_v12 = vsel %vm726_vm0, %v757_v55, %v758_v15  ;;  %v3200_v23 = vsel %vm726_vm0, 0.0, %v757_v55  ;;  %v863_v24 = vsel %vm726_vm0, %v758_v15, 0.0 }
  0x76   : > { %v964_v29 = vrot.slane %v3200_v23, 1  ;;  %v965_v30 = vrot.slane %v3197_v12, 1  ;;  %v967_v60 = vrot.slane %v863_v24, 1  ;;  %v1163_v38 = vrot.slane %v3200_v23, 2 }
  0x77   : > { %v1164_v44 = vrot.slane %v3197_v12, 2  ;;  %v1166_v52 = vrot.slane %v863_v24, 2 }
  0x78   : > { %v966_v43 = vsel %vm913_vm1, %v964_v29, %v965_v30  ;;  %v968_v50 = vsel %vm913_vm1, %v965_v30, %v967_v60  ;;  %v1159_v29 = vrot.slane %v3155_v53, 2  ;;  %v1161_v30 = vrot.slane %v3161_v3, 2 }
  0x79   : > { %v2685_v14 = vpack.i.bf16 %v968_v50, %v966_v43  ;;  %v1165_v57 = vsel %vm1112_vm2, %v1163_v38, %v1164_v44  ;;  %v1167_v0 = vsel %vm1112_vm2, %v1164_v44, %v1166_v52 }
  0x7b   : > { %2686 = vrot.lane.b32.xlu0 %v2685_v14, %s2743_s15 }
  0x87   : > { %v2537_v21 = vpop.permute.xlu1 %2536 }
  0x88   : > { %v2539_v26 = vunpack.i.h.bf16 %v2537_v21  ;;  %v2538_v28 = vunpack.i.l.bf16 %v2537_v21  ;;  %v2690_v21 = vpack.i.bf16 %v1167_v0, %v1165_v57 }
  0x8a   : > { %v1313_v42 = vsel %vm1311_vm3, %v2808_v1, %v2539_v26  ;;  %v1312_v51 = vsel %vm1311_vm3, %v2814_v2, %v2538_v28  ;;  %v2468_v26 = vunpack.c.l.bf16 %v2499_v7  ;;  %2691 = vrot.lane.b32.xlu1 %v2690_v21, %s2744_s16  ;;  %v1158_v28 = vrot.slane %v3158_v33, 2 }
  0x8b   : > { %v1349_v46 = vsel %vm1348_vm4, %v1312_v51, %v2558_v22  ;;  %v1350_v49 = vsel %vm1348_vm4, %v1313_v42, %v2559_v16  ;;  %v2469_v22 = vunpack.c.h.bf16 %v2499_v7  ;;  %v1162_v51 = vsel %vm1112_vm2, %v1159_v29, %v1161_v30 }
  0x8c   : > { %v1385_v45 = vpack.c.bf16 %v1349_v46, %v1349_v46  ;;  %v1386_v56 = vpack.c.bf16 %v1350_v49, %v1350_v49  ;;  %v596_v24 = vmul.f32 %v2833_v10, %v2468_v26  ;;  %v1160_v42 = vsel %vm1112_vm2, %v1158_v28, %v1159_v29  ;;  %v2562_v49 = vpop.permute.xlu2 %2561 }
  0x8d   : > { %v597_v60 = vmul.f32 %v2833_v10, %v2469_v22  ;;  %v2680_v50 = vpack.i.bf16 %v1162_v51, %v1160_v42  ;;  %v2564_v3 = vunpack.i.h.bf16 %v2562_v49  ;;  %v2563_v14 = vunpack.i.l.bf16 %v2562_v49 }
  0x8e   : > { %v1649_v55 = vunpack.c.l.b16 %v1385_v45  ;;  %v1650_v15 = vunpack.c.l.b16 %v1386_v56  ;;  %v628_v38 = vadd.f32 %v2847_v19, %v596_v24 }
  0x8f   : > { %v629_v43 = vadd.f32 %v2847_v19, %v597_v60  ;;  %2681 = vrot.lane.b32.xlu2 %v2680_v50, %s2744_s16 }
  0x90   : > { %v1651_v16 = vpack.c.b16 %v1650_v15, %v1649_v55  ;;  %v660_v44 = vmax.f32 %v628_v38, 0.0 }
  0x91   : > { %v661_v52 = vmax.f32 %v629_v43, 0.0 }
  0x92   : > { %2380 = vmatmul.msk.bf16.vlgmr.msra.gmra.mxu1 %vm1506_vm5, %v1651_v16  ;;  %v760_v45 = vrot.slane %v660_v44, 7  ;;  %2706 = vrot.lane.b32.xlu1 %v2842_v18, %s2743_s15 }
  0x93   : > { %v761_v10 = vrot.slane %v661_v52, 7 }
  0x94   : > { %v2542_v46 = vpop.permute.xlu0 %2541  ;;  %v3232_v57 = vsel %vm726_vm0, 0.0, %v760_v45 }
  0x95   : > { %v1168_v7 = vrot.slane %v3232_v57, 2  ;;  %v2544_v55 = vunpack.i.h.bf16 %v2542_v46  ;;  %v2543_v15 = vunpack.i.l.bf16 %v2542_v46  ;;  %v3238_v21 = vsel %vm726_vm0, %v760_v45, %v761_v10 }
  0x96   : > { %v2552_v56 = vpop.permute.xlu1 %2551  ;;  %v3241_v26 = vsel %vm726_vm0, %v761_v10, 0.0  ;;  %v1169_v18 = vrot.slane %v3238_v21, 2  ;;  %v2577_v10 = vpop.permute.xlu2 %2576 }
  0x97   : > { %v2554_v0 = vunpack.i.h.bf16 %v2552_v56  ;;  %v2553_v19 = vunpack.i.l.bf16 %v2552_v56  ;;  %v1171_v24 = vrot.slane %v3241_v26, 2  ;;  %v1316_v46 = vsel %vm1311_vm3, %v2876_v59, %v2543_v15 }
  0x98   : > { %v1170_v42 = vsel %vm1112_vm2, %v1168_v7, %v1169_v18  ;;  %v2579_v7 = vunpack.i.h.bf16 %v2577_v10 }
  0x99   : > { %v1315_v22 = vsel %vm1311_vm3, %v2882_v4, %v2554_v0  ;;  %v1314_v16 = vsel %vm1311_vm3, %v2885_v5, %v2553_v19  ;;  %v1172_v51 = vsel %vm1112_vm2, %v1169_v18, %v1171_v24  ;;  %v1317_v5 = vsel %vm1311_vm3, %v2873_v58, %v2544_v55 }
  0x9a   : > { %v1351_v28 = vsel %vm1348_vm4, %v1314_v16, %v2563_v14  ;;  %v1352_v29 = vsel %vm1348_vm4, %v1315_v22, %v2564_v3  ;;  %v2700_v44 = vpack.i.bf16 %v1172_v51, %v1170_v42  ;;  %v2578_v55 = vunpack.i.l.bf16 %v2577_v10 }
  0x9b   : > { %v1387_v60 = vpack.c.bf16 %v1351_v28, %v1351_v28  ;;  %v1388_v38 = vpack.c.bf16 %v1352_v29, %v1352_v29  ;;  %v969_v10 = vrot.slane %v3232_v57, 1 }
  0x9c   : > { %v2547_v30 = vpop.permute.xlu0 %2546  ;;  %2701 = vrot.lane.b32.xlu0 %v2700_v44, %s2744_s16 }
  0x9d   : > { %v2549_v43 = vunpack.i.h.bf16 %v2547_v30  ;;  %v2548_v4 = vunpack.i.l.bf16 %v2547_v30  ;;  %v1453_v49 = vunpack.c.l.b16 %v1387_v60  ;;  %v1454_v50 = vunpack.c.l.b16 %v1388_v38 }
  0x9e   : > { %v2572_v0 = vpop.permute.xlu1 %2571 }
  0x9f   : > { %v1353_v52 = vsel %vm1348_vm4, %v1316_v46, %v2548_v4  ;;  %v1354_v45 = vsel %vm1348_vm4, %v1317_v5, %v2549_v43  ;;  %v1485_v56 = vpack.c.b16 %v1454_v50, %v1453_v49  ;;  %v2574_v30 = vunpack.i.h.bf16 %v2572_v0  ;;  %v2592_v43 = vpop.permute.xlu2 %2591 }
  0xa0   : > { %v1389_v3 = vpack.c.bf16 %v1353_v52, %v1353_v52  ;;  %v1390_v14 = vpack.c.bf16 %v1354_v45, %v1354_v45  ;;  %v2573_v60 = vunpack.i.l.bf16 %v2572_v0  ;;  %v2593_v49 = vunpack.i.l.bf16 %v2592_v43 }
  0xa1   : > { %2360 = vmatmul.msk.bf16.vlgmr.msra.gmra.mxu0 %vm1506_vm5, %v1485_v56  ;;  %v1339_v4 = vsel %vm1311_vm3, %v2909_v34, %v2574_v30  ;;  %v970_v34 = vrot.slane %v3238_v21, 1 }
  0xa2   : > { %2381 = vmatmul.msk.bf16.gmra.mxu1 %vm1506_vm5, %v1485_v56  ;;  %v1455_v58 = vunpack.c.l.b16 %v1389_v3  ;;  %v1456_v19 = vunpack.c.l.b16 %v1390_v14  ;;  %v1338_v44 = vsel %vm1311_vm3, %v2912_v35, %v2573_v60  ;;  %v972_v35 = vrot.slane %v3241_v26, 1 }
  0xa4   : > { %v2567_v59 = vpop.permute.xlu0 %2566  ;;  %v1486_v15 = vpack.c.b16 %v1456_v19, %v1455_v58 }
  0xa5   : > { %v2569_v22 = vunpack.i.h.bf16 %v2567_v59  ;;  %v2568_v16 = vunpack.i.l.bf16 %v2567_v59 }
  0xa6   : > { %2400 = vmatmul.msk.bf16.vlgmr.msra.gmra.mxu2 %vm1506_vm5, %v1486_v15 }
  0xa7   : > { %v1319_v18 = vsel %vm1311_vm3, %v2903_v27, %v2569_v22  ;;  %v1318_v24 = vsel %vm1311_vm3, %v2896_v20, %v2568_v16  ;;  %v2594_v20 = vunpack.i.h.bf16 %v2592_v43  ;;  %v1340_v16 = vsel %vm1311_vm3, %v2976_v62, %v2593_v49  ;;  %v2607_v62 = vpop.permute.xlu2 %2606 }
  0xa8   : > { %v1356_v28 = vsel %vm1348_vm4, %v1319_v18, %v2579_v7  ;;  %v1355_v29 = vsel %vm1348_vm4, %v1318_v24, %v2578_v55  ;;  %v971_v7 = vsel %vm913_vm1, %v969_v10, %v970_v34  ;;  %v973_v24 = vsel %vm913_vm1, %v970_v34, %v972_v35 }
  0xa9   : > { %v1391_v42 = vpack.c.bf16 %v1355_v29, %v1355_v29  ;;  %v1392_v51 = vpack.c.bf16 %v1356_v28, %v1356_v28  ;;  %v1341_v22 = vsel %vm1311_vm3, %v2973_v61, %v2594_v20  ;;  %v2695_v30 = vpack.i.bf16 %v973_v24, %v971_v7 }
  0xab   : > { %v2587_v38 = vpop.permute.xlu1 %2586  ;;  %v1457_v45 = vunpack.c.l.b16 %v1391_v42  ;;  %v1458_v56 = vunpack.c.l.b16 %v1392_v51  ;;  %2696 = vrot.lane.b32.xlu2 %v2695_v30, %s2743_s15 }
  0xac   : > { %v2582_v27 = vpop.permute.xlu0 %2581  ;;  %v2589_v0 = vunpack.i.h.bf16 %v2587_v38  ;;  %v2588_v58 = vunpack.i.l.bf16 %v2587_v38 }
  0xad   : > { %v2584_v5 = vunpack.i.h.bf16 %v2582_v27  ;;  %v2583_v46 = vunpack.i.l.bf16 %v2582_v27  ;;  %v1487_v55 = vpack.c.b16 %v1458_v56, %v1457_v45 }
  0xae   : > { %v1321_v42 = vsel %vm1311_vm3, %v2962_v47, %v2589_v0  ;;  %v1320_v61 = vsel %vm1311_vm3, %v2965_v48, %v2588_v58 }
  0xaf   : > { %v1375_v50 = vsel %vm1348_vm4, %v1338_v44, %v2583_v46  ;;  %v1376_v52 = vsel %vm1348_vm4, %v1339_v4, %v2584_v5 }
  0xb0   : > { %v1411_v3 = vpack.c.bf16 %v1375_v50, %v1375_v50  ;;  %v1412_v14 = vpack.c.bf16 %v1376_v52, %v1376_v52 }
  0xb1   : > { %2361 = vmatmul.msk.bf16.gmra.mxu0 %vm1506_vm5, %v1486_v15 }
  0xb2   : > { %2382 = vmatmul.msk.bf16.gmra.mxu1 %vm1506_vm5, %v1486_v15  ;;  %v1477_v19 = vunpack.c.l.b16 %v1411_v3  ;;  %v1478_v59 = vunpack.c.l.b16 %v1412_v14  ;;  %v2622_v3 = vpop.permute.xlu2 %2621  ;;  %v2608_v14 = vunpack.i.l.bf16 %v2607_v62 }
  0xb3   : > { %v2602_v18 = vpop.permute.xlu1 %2601  ;;  %2711 = vrot.lane.b32.xlu2 %v2850_v25, %s2744_s16  ;;  %v2624_v0 = vunpack.i.h.bf16 %v2622_v3  ;;  %v2623_v35 = vunpack.i.l.bf16 %v2622_v3 }
  0xb4   : > { %v2597_v26 = vpop.permute.xlu0 %2596  ;;  %v3286_v28 = vpack.c.b16 %v1478_v59, %v1477_v19  ;;  %v2604_v29 = vunpack.i.h.bf16 %v2602_v18  ;;  %v2603_v15 = vunpack.i.l.bf16 %v2602_v18 }
  0xb5   : > { %v2599_v60 = vunpack.i.h.bf16 %v2597_v26  ;;  %v2598_v38 = vunpack.i.l.bf16 %v2597_v26 }
  0xb6   : > { %2372 = vmatmul.msk.bf16.vlgmr.msra.gmra.mxu3 %vm1506_vm5, %v3286_v28  ;;  %2401 = vmatmul.msk.bf16.gmra.mxu2 %vm1506_vm5, %v1487_v55  ;;  %v1378_v51 = vsel %vm1348_vm4, %v1341_v22, %v2604_v29  ;;  %v1377_v43 = vsel %vm1348_vm4, %v1340_v16, %v2603_v15 }
  0xb7   : > { %2507 = vmatpush.bf16.msra.mxu3 %v3193_v17  ;;  %v1357_v4 = vsel %vm1348_vm4, %v1320_v61, %v2598_v38  ;;  %v1358_v47 = vsel %vm1348_vm4, %v1321_v42, %v2599_v60  ;;  %v1413_v44 = vpack.c.bf16 %v1377_v43, %v1377_v43  ;;  %v1414_v48 = vpack.c.bf16 %v1378_v51, %v1378_v51 }
  0xb8   : > { %v1393_v27 = vpack.c.bf16 %v1357_v4, %v1357_v4  ;;  %v1394_v5 = vpack.c.bf16 %v1358_v47, %v1358_v47  ;;  %v2609_v17 = vunpack.i.h.bf16 %v2607_v62 }
  0xb9   : > { %v1479_v20 = vunpack.c.l.b16 %v1413_v44  ;;  %v1480_v49 = vunpack.c.l.b16 %v1414_v48 }
  0xba   : > { %v1459_v50 = vunpack.c.l.b16 %v1393_v27  ;;  %v1460_v52 = vunpack.c.l.b16 %v1394_v5  ;;  %v1323_v22 = vsel %vm1311_vm3, %v3000_v36, %v2609_v17  ;;  %v2637_v47 = vpop.permute.xlu2 %2636 }
  0xbb   : > { %v2617_v10 = vpop.permute.xlu1 %2616  ;;  %v3305_v34 = vpack.c.b16 %v1480_v49, %v1479_v20  ;;  %v2639_v49 = vunpack.i.h.bf16 %v2637_v47 }
  0xbc   : > { %v2612_v46 = vpop.permute.xlu0 %2611  ;;  %v1488_v58 = vpack.c.b16 %v1460_v52, %v1459_v50  ;;  %v2619_v59 = vunpack.i.h.bf16 %v2617_v10  ;;  %v2618_v7 = vunpack.i.l.bf16 %v2617_v10  ;;  %v2638_v50 = vunpack.i.l.bf16 %v2637_v47 }
  0xbd   : > { %v2614_v45 = vunpack.i.h.bf16 %v2612_v46  ;;  %v2613_v56 = vunpack.i.l.bf16 %v2612_v46 }
  0xbf   : > { %v1343_v25 = vsel %vm1311_vm3, %v3020_v63, %v2614_v45  ;;  %v1342_v19 = vsel %vm1311_vm3, %v3014_v54, %v2613_v56  ;;  %v1360_v54 = vsel %vm1348_vm4, %v1323_v22, %v2619_v59 }
  0xc0   : > { %v1380_v18 = vsel %vm1348_vm4, %v1343_v25, %v2624_v0  ;;  %v1379_v63 = vsel %vm1348_vm4, %v1342_v19, %v2623_v35  ;;  %v1396_v15 = vpack.c.bf16 %v1360_v54, %v1360_v54 }
  0xc1   : > { %2362 = vmatmul.msk.bf16.gmra.mxu0 %vm1506_vm5, %v1487_v55  ;;  %v1415_v26 = vpack.c.bf16 %v1379_v63, %v1379_v63  ;;  %v1416_v29 = vpack.c.bf16 %v1380_v18, %v1380_v18 }
  0xc2   : > { %2383 = vmatmul.msk.bf16.gmra.mxu1 %vm1506_vm5, %v1487_v55  ;;  %v1322_v55 = vsel %vm1311_vm3, %v3003_v37, %v2608_v14  ;;  %v1462_v42 = vunpack.c.l.b16 %v1396_v15  ;;  %v2652_v35 = vpop.permute.xlu2 %2651 }
  0xc3   : > { %v1359_v24 = vsel %vm1348_vm4, %v1322_v55, %v2618_v7  ;;  %v1481_v37 = vunpack.c.l.b16 %v1415_v26  ;;  %v1482_v60 = vunpack.c.l.b16 %v1416_v29  ;;  %v2654_v59 = vunpack.i.h.bf16 %v2652_v35 }
  0xc4   : > { %v2627_v16 = vpop.permute.xlu0 %2626  ;;  %v1395_v36 = vpack.c.bf16 %v1359_v24, %v1359_v24  ;;  %v2632_v30 = vpop.permute.xlu1 %2631  ;;  %v2653_v7 = vunpack.i.l.bf16 %v2652_v35 }
  0xc5   : > { %v2634_v61 = vunpack.i.h.bf16 %v2632_v30  ;;  %v2633_v62 = vunpack.i.l.bf16 %v2632_v30  ;;  %v2629_v43 = vunpack.i.h.bf16 %v2627_v16  ;;  %v2628_v4 = vunpack.i.l.bf16 %v2627_v16 }
  0xc6   : > { %2373 = vmatmul.msk.bf16.gmra.mxu3 %vm1506_vm5, %v3305_v34  ;;  %2402 = vmatmul.msk.bf16.gmra.mxu2 %vm1506_vm5, %v1488_v58  ;;  %v1461_v38 = vunpack.c.l.b16 %v1395_v36  ;;  %v3324_v44 = vpack.c.b16 %v1482_v60, %v1481_v37  ;;  %v1337_v29 = vsel %vm1311_vm3, %v3106_v31, %v2654_v59  ;;  %v1336_v36 = vsel %vm1311_vm3, %v3109_v32, %v2653_v7 }
  0xc7   : > { %v1345_v46 = vsel %vm1311_vm3, %v3063_v11, %v2634_v61  ;;  %v1344_v20 = vsel %vm1311_vm3, %v3058_v6, %v2633_v62  ;;  %v1325_v52 = vsel %vm1311_vm3, %v3041_v39, %v2629_v43  ;;  %v1324_v45 = vsel %vm1311_vm3, %v3044_v40, %v2628_v4 }
  0xc8   : > { %v1489_v5 = vpack.c.b16 %v1462_v42, %v1461_v38  ;;  %v1362_v6 = vsel %vm1348_vm4, %v1325_v52, %v2639_v49  ;;  %v1361_v17 = vsel %vm1348_vm4, %v1324_v45, %v2638_v50 }
  0xc9   : > { %v1397_v39 = vpack.c.bf16 %v1361_v17, %v1361_v17  ;;  %v1398_v0 = vpack.c.bf16 %v1362_v6, %v1362_v6 }
  0xca   : > { %v2667_v43 = vpop.permute.xlu2 %2666 }
  0xcb   : > { %v1463_v25 = vunpack.c.l.b16 %v1397_v39  ;;  %v1464_v19 = vunpack.c.l.b16 %v1398_v0 }
  0xcc   : > { %v2642_v51 = vpop.permute.xlu0 %2641 }
  0xcd   : > { %v2644_v48 = vunpack.i.h.bf16 %v2642_v51  ;;  %v2643_v27 = vunpack.i.l.bf16 %v2642_v51  ;;  %v1490_v26 = vpack.c.b16 %v1464_v19, %v1463_v25 }
  0xce   : > { %v2647_v56 = vpop.permute.xlu1 %2646 }
  0xcf   : > { %v1381_v3 = vsel %vm1348_vm4, %v1344_v20, %v2643_v27  ;;  %v1382_v11 = vsel %vm1348_vm4, %v1345_v46, %v2644_v48  ;;  %v2649_v55 = vunpack.i.h.bf16 %v2647_v56  ;;  %v2648_v16 = vunpack.i.l.bf16 %v2647_v56 }
  0xd0   : > { %v1417_v14 = vpack.c.bf16 %v1381_v3, %v1381_v3  ;;  %v1418_v10 = vpack.c.bf16 %v1382_v11, %v1382_v11  ;;  %v2669_v27 = vunpack.i.h.bf16 %v2667_v43 }
  0xd1   : > { %2363 = vmatmul.msk.bf16.gmra.mxu0 %vm1506_vm5, %v1488_v58  ;;  %v1327_v37 = vsel %vm1311_vm3, %v3090_v8, %v2649_v55  ;;  %v1326_v60 = vsel %vm1311_vm3, %v3093_v41, %v2648_v16 }
  0xd2   : > { %2384 = vmatmul.msk.bf16.gmra.mxu1 %vm1506_vm5, %v1488_v58  ;;  %v1483_v40 = vunpack.c.l.b16 %v1417_v14  ;;  %v1484_v58 = vunpack.c.l.b16 %v1418_v10  ;;  %v1329_v45 = vsel %vm1311_vm3, %v3126_v9, %v2669_v27 }
  0xd4   : > { %v2657_v18 = vpop.permute.xlu0 %2656  ;;  %v3343_v63 = vpack.c.b16 %v1484_v58, %v1483_v40 }
  0xd5   : > { %v2659_v15 = vunpack.i.h.bf16 %v2657_v18  ;;  %v2658_v30 = vunpack.i.l.bf16 %v2657_v18 }
  0xd6   : > { %2374 = vmatmul.msk.bf16.gmra.mxu3 %vm1506_vm5, %v3324_v44  ;;  %2403 = vmatmul.msk.bf16.gmra.mxu2 %vm1506_vm5, %v1489_v5  ;;  %v2662_v22 = vpop.permute.xlu1 %2661 }
  0xd7   : > { %v2664_v54 = vunpack.i.h.bf16 %v2662_v22  ;;  %v2663_v24 = vunpack.i.l.bf16 %v2662_v22  ;;  %v1363_v42 = vsel %vm1348_vm4, %v1326_v60, %v2658_v30  ;;  %v1364_v32 = vsel %vm1348_vm4, %v1327_v37, %v2659_v15 }
  0xd8   : > { %v1399_v51 = vpack.c.bf16 %v1363_v42, %v1363_v42  ;;  %v1400_v8 = vpack.c.bf16 %v1364_v32, %v1364_v32 }
  0xd9   : > { %v1374_v38 = vsel %vm1348_vm4, %v1337_v29, %v2664_v54  ;;  %v1373_v31 = vsel %vm1348_vm4, %v1336_v36, %v2663_v24 }
  0xda   : > { %v1410_v61 = vpack.c.bf16 %v1374_v38, %v1374_v38  ;;  %v1409_v62 = vpack.c.bf16 %v1373_v31, %v1373_v31  ;;  %v1465_v47 = vunpack.c.l.b16 %v1399_v51  ;;  %v1466_v48 = vunpack.c.l.b16 %v1400_v8 }
  0xdc   : > { %v1476_v4 = vunpack.c.l.b16 %v1410_v61  ;;  %v1475_v41 = vunpack.c.l.b16 %v1409_v62  ;;  %v2672_v46 = vpop.permute.xlu0 %2671  ;;  %v1491_v52 = vpack.c.b16 %v1466_v48, %v1465_v47 }
  0xdd   : > { %v2674_v49 = vunpack.i.h.bf16 %v2672_v46  ;;  %v2673_v50 = vunpack.i.l.bf16 %v2672_v46 }
  0xde   : > { %v3362_v20 = vpack.c.b16 %v1476_v4, %v1475_v41 }
  0xdf   : > { %v1366_v11 = vsel %vm1348_vm4, %v1329_v45, %v2674_v49 }
  0xe0   : > { %v1402_v17 = vpack.c.bf16 %v1366_v11, %v1366_v11 }
  0xe1   : > { %2364 = vmatmul.msk.bf16.gmra.mxu0 %vm1506_vm5, %v1489_v5  ;;  %v2677_v14 = vpop.permute.xlu1 %2676 }
  0xe2   : > { %2385 = vmatmul.msk.bf16.gmra.mxu1 %vm1506_vm5, %v1489_v5  ;;  %v2668_v5 = vunpack.i.l.bf16 %v2667_v43  ;;  %v1468_v39 = vunpack.c.l.b16 %v1402_v17  ;;  %v2679_v0 = vunpack.i.h.bf16 %v2677_v14  ;;  %v2678_v35 = vunpack.i.l.bf16 %v2677_v14 }
  0xe4   : > { %v1328_v56 = vsel %vm1311_vm3, %v3129_v13, %v2668_v5  ;;  %v1331_v25 = vsel %vm1311_vm3, %v3155_v53, %v2679_v0  ;;  %v1330_v19 = vsel %vm1311_vm3, %v3158_v33, %v2678_v35 }
  0xe5   : > { %v1365_v3 = vsel %vm1348_vm4, %v1328_v56, %v2673_v50  ;;  %v3409_v56 = vld [vmem:[%s3760_s6] ss:$0 sm:$0xff] }
  0xe6   : > { %2375 = vmatmul.msk.bf16.gmra.mxu3 %vm1506_vm5, %v3343_v63  ;;  %2404 = vmatmul.msk.bf16.gmra.mxu2 %vm1506_vm5, %v1490_v26  ;;  %v1401_v6 = vpack.c.bf16 %v1365_v3, %v1365_v3 }
  0xe8   : > { %v1467_v10 = vunpack.c.l.b16 %v1401_v6 }
  0xe9   : > { %v2682_v9 = vpop.permute.xlu2 %2681 }
  0xea   : > { %v1492_v13 = vpack.c.b16 %v1468_v39, %v1467_v10  ;;  %v2684_v40 = vunpack.i.h.bf16 %v2682_v9  ;;  %v2683_v58 = vunpack.i.l.bf16 %v2682_v9 }
  0xec   : > { %v1367_v59 = vsel %vm1348_vm4, %v1330_v19, %v2683_v58  ;;  %v1368_v7 = vsel %vm1348_vm4, %v1331_v25, %v2684_v40 }
  0xed   : > { %v1403_v22 = vpack.c.bf16 %v1367_v59, %v1367_v59  ;;  %v1404_v55 = vpack.c.bf16 %v1368_v7, %v1368_v7  ;;  %v2687_v16 = vpop.permute.xlu0 %2686 }
  0xee   : > { %v2688_v53 = vunpack.i.l.bf16 %v2687_v16 }
  0xef   : > { %v1469_v54 = vunpack.c.l.b16 %v1403_v22  ;;  %v1470_v24 = vunpack.c.l.b16 %v1404_v55 }
  0xf0   : > { %v1332_v37 = vsel %vm1311_vm3, %v3200_v23, %v2688_v53 }
  0xf1   : > { %2365 = vmatmul.msk.bf16.gmra.mxu0 %vm1506_vm5, %v1490_v26  ;;  %v1493_v33 = vpack.c.b16 %v1470_v24, %v1469_v54 }
  0xf2   : > { %2386 = vmatmul.msk.bf16.gmra.mxu1 %vm1506_vm5, %v1490_v26  ;;  %v2689_v26 = vunpack.i.h.bf16 %v2687_v16 }
  0xf4   : > { %v1333_v30 = vsel %vm1311_vm3, %v3197_v12, %v2689_v26 }
  0xf6   : > { %2392 = vmatmul.msk.bf16.vlgmr.msrb.gmra.mxu3 %vm1506_vm5, %v3362_v20  ;;  %2405 = vmatmul.msk.bf16.gmra.mxu2 %vm1506_vm5, %v1491_v52 }
  0xfc   : > { %v2692_v29 = vpop.permute.xlu1 %2691 }
  0xfd   : > { %v2694_v36 = vunpack.i.h.bf16 %v2692_v29  ;;  %v2693_v15 = vunpack.i.l.bf16 %v2692_v29 }
  0xff   : > { %v1370_v38 = vsel %vm1348_vm4, %v1333_v30, %v2694_v36  ;;  %v1369_v31 = vsel %vm1348_vm4, %v1332_v37, %v2693_v15 }
 0x100   : > { %v1405_v42 = vpack.c.bf16 %v1369_v31, %v1369_v31  ;;  %v1406_v32 = vpack.c.bf16 %v1370_v38, %v1370_v38 }
 0x101   : > { %2366 = vmatmul.msk.bf16.gmra.mxu0 %vm1506_vm5, %v1491_v52 }
 0x102   : > { %2387 = vmatmul.msk.bf16.gmra.mxu1 %vm1506_vm5, %v1491_v52  ;;  %v1471_v62 = vunpack.c.l.b16 %v1405_v42  ;;  %v1472_v51 = vunpack.c.l.b16 %v1406_v32 }
 0x104   : > { %v1494_v41 = vpack.c.b16 %v1472_v51, %v1471_v62 }
 0x105   : > { %v2697_v61 = vpop.permute.xlu2 %2696 }
 0x106   : > { %2393 = vmatmul.msk.bf16.gmra.mxu3 %vm1506_vm5, %v3286_v28  ;;  %2406 = vmatmul.msk.bf16.gmra.mxu2 %vm1506_vm5, %v1492_v13  ;;  %v2699_v43 = vunpack.i.h.bf16 %v2697_v61  ;;  %v2698_v4 = vunpack.i.l.bf16 %v2697_v61 }
 0x108   : > { %v1335_v27 = vsel %vm1311_vm3, %v3238_v21, %v2699_v43  ;;  %v1334_v5 = vsel %vm1311_vm3, %v3232_v57, %v2698_v4 }
 0x10e   : > { %v2702_v23 = vpop.permute.xlu0 %2701 }
 0x10f   : > { %v1672_v18 = vpop.f32.mrf.mxu1  ;;  %v2704_v47 = vunpack.i.h.bf16 %v2702_v23  ;;  %v2703_v48 = vunpack.i.l.bf16 %v2702_v23 }
 0x111   : > { %2367 = vmatmul.msk.bf16.gmra.mxu0 %vm1506_vm5, %v1492_v13  ;;  %v1371_v50 = vsel %vm1348_vm4, %v1334_v5, %v2703_v48  ;;  %v1372_v52 = vsel %vm1348_vm4, %v1335_v27, %v2704_v47 }
 0x112   : > { %2388 = vmatmul.msk.bf16.gmra.mxu1 %vm1506_vm5, %v1492_v13  ;;  %v1407_v57 = vpack.c.bf16 %v1371_v50, %v1371_v50  ;;  %v1408_v11 = vpack.c.bf16 %v1372_v52, %v1372_v52 }
 0x114   : > { %v1473_v14 = vunpack.c.l.b16 %v1407_v57  ;;  %v1474_v10 = vunpack.c.l.b16 %v1408_v11  ;;  %v2712_v11 = vpop.permute.xlu2 %2711 }
 0x116   : > { %2394 = vmatmul.msk.bf16.gmra.mxu3 %vm1506_vm5, %v3305_v34  ;;  %2407 = vmatmul.msk.bf16.gmra.mxu2 %vm1506_vm5, %v1493_v33  ;;  %v1495_v40 = vpack.c.b16 %v1474_v10, %v1473_v14 }
 0x117   : > { %v1674_v60 = vpop.f32.mrf.mxu1 }
 0x11e   : > { %v1567_v8 = vpop.f32.mrf.mxu0 }
 0x11f   : > { %v1677_v12 = vpop.f32.mrf.mxu1  ;;  %v1673_v45 = vadd.f32 %v1672_v18, %v1567_v8 }
 0x121   : > { %2368 = vmatmul.msk.bf16.gmra.mxu0 %vm1506_vm5, %v1493_v33 }
 0x122   : > { %2389 = vmatmul.msk.bf16.gmra.mxu1 %vm1506_vm5, %v1493_v33 }
 0x126   : > { %2395 = vmatmul.msk.bf16.gmra.mxu3 %vm1506_vm5, %v3324_v44  ;;  %2408 = vmatmul.msk.bf16.gmra.mxu2 %vm1506_vm5, %v1494_v41  ;;  %v1569_v46 = vpop.f32.mrf.mxu0 }
 0x127   : > { %v1679_v49 = vpop.f32.mrf.mxu1  ;;  %v1675_v35 = vadd.f32 %v1674_v60, %v1569_v46 }
 0x129   : > { %v1777_v21 = vpop.f32.mrf.mxu2 }
 0x12a   : > { %v1857_v3 = vadd.f32 %v1777_v21, %v1673_v45  ;;  %v2707_v21 = vpop.permute.xlu1 %2706 }
 0x12b   : > { %v2709_v10 = vunpack.i.h.bf16 %v2707_v21 }
 0x12c   : > { %v1893_v6 = vadd.f32 %v3409_v56, %v1857_v3 }
 0x12e   : > { %v2098_v17 = vpack.c.bf16 %v1893_v6, %v1893_v6  ;;  %v1572_v39 = vpop.f32.mrf.mxu0  ;;  %v1994_v58 = vmul.f32 %v1893_v6, %v1893_v6  ;;  %v1925_v19 = vsel %vm1311_vm3, %v1893_v6, 0.0 }
 0x12f   : > { %v1682_v0 = vpop.f32.mrf.mxu1  ;;  %v1678_v24 = vadd.f32 %v1677_v12, %v1572_v39 }
 0x130   : > { %2131 = vst.msk [vmem:[%s3417_s14] sm:$0xf] %vm2130_vm6, %v2098_v17  ;;  %v2026_v54 = vsel %vm1311_vm3, %v1994_v58, 0.0 }
 0x131   : > { %v1779_v9 = vpop.f32.mrf.mxu2  ;;  %2369 = vmatmul.msk.bf16.gmra.mxu0 %vm1506_vm5, %v1494_v41 }
 0x132   : > { %2390 = vmatmul.msk.bf16.gmra.mxu1 %vm1506_vm5, %v1494_v41  ;;  %v1858_v13 = vadd.f32 %v1779_v9, %v1675_v35  ;;  %v2708_v35 = vunpack.i.l.bf16 %v2707_v21 }
 0x134   : > { %v1894_v25 = vadd.f32 %v3409_v56, %v1858_v13 }
 0x136   : > { %v1926_v59 = vsel %vm1311_vm3, %v1894_v25, 0.0  ;;  %v1995_v7 = vmul.f32 %v1894_v25, %v1894_v25  ;;  %v2099_v22 = vpack.c.bf16 %v1894_v25, %v1894_v25  ;;  %2409 = vmatmul.msk.bf16.gmra.mxu2 %vm1506_vm5, %v1495_v40  ;;  %2412 = vmatmul.msk.bf16.vlgmr.msra.gmra.mxu3 %vm1506_vm5, %v3305_v34  ;;  %v1574_v16 = vpop.f32.mrf.mxu0  ;;  %v2714_v25 = vunpack.i.h.bf16 %v2712_v11 }
 0x137   : > { %v1927_v55 = vadd.f32 %v1926_v59, %v1925_v19  ;;  %v1684_v18 = vpop.f32.mrf.mxu1  ;;  %v1680_v42 = vadd.f32 %v1679_v49, %v1574_v16  ;;  %v1347_v19 = vsel %vm1311_vm3, %v2808_v1, %v2709_v10  ;;  %v2713_v59 = vunpack.i.l.bf16 %v2712_v11 }
 0x138   : > { %v2027_v26 = vsel %vm1311_vm3, %v1995_v7, 0.0  ;;  %2132 = vst.msk [vmem:[%s3417_s14 + $0x4] sm:$0xf] %vm2130_vm6, %v2099_v22  ;;  %v1346_v22 = vsel %vm1311_vm3, %v2814_v2, %v2708_v35 }
 0x139   : > { %v2028_v53 = vadd.f32 %v2027_v26, %v2026_v54  ;;  %v3433_v29 = vpop.f32.mrf.mxu3  ;;  %v1782_v33 = vpop.f32.mrf.mxu2  ;;  %v1383_v26 = vsel %vm1348_vm4, %v1346_v22, %v2713_v59 }
 0x13a   : > { %v1859_v36 = vadd.f32 %v1782_v33, %v1678_v24 }
 0x13c   : > { %v1895_v15 = vadd.f32 %v3409_v56, %v1859_v36 }
 0x13e   : > { %v1928_v34 = vsel %vm1311_vm3, %v1895_v15, 0.0  ;;  %v1996_v30 = vmul.f32 %v1895_v15, %v1895_v15  ;;  %v2100_v37 = vpack.c.bf16 %v1895_v15, %v1895_v15  ;;  %v1577_v38 = vpop.f32.mrf.mxu0 }
 0x13f   : > { %v1929_v60 = vadd.f32 %v1928_v34, %v1927_v55  ;;  %v1687_v31 = vpop.f32.mrf.mxu1  ;;  %v1683_v27 = vadd.f32 %v1682_v0, %v1577_v38 }
 0x140   : > { %v2029_v32 = vsel %vm1311_vm3, %v1996_v30, 0.0  ;;  %2133 = vst.msk [vmem:[%s3417_s14 + $0x8] sm:$0xf] %vm2130_vm6, %v2100_v37 }
 0x141   : > { %v2030_v61 = vadd.f32 %v2029_v32, %v2028_v53  ;;  %v3440_v62 = vpop.f32.mrf.mxu3  ;;  %v1784_v51 = vpop.f32.mrf.mxu2  ;;  %2370 = vmatmul.msk.bf16.gmra.mxu0 %vm1506_vm5, %v1495_v40 }
 0x142   : > { %2391 = vmatmul.msk.bf16.gmra.mxu1 %vm1506_vm5, %v1495_v40  ;;  %v1860_v8 = vadd.f32 %v1784_v51, %v1680_v42 }
 0x144   : > { %v1896_v12 = vadd.f32 %v3409_v56, %v1860_v8 }
 0x146   : > { %v1930_v43 = vsel %vm1311_vm3, %v1896_v12, 0.0  ;;  %v1997_v4 = vmul.f32 %v1896_v12, %v1896_v12  ;;  %v2101_v23 = vpack.c.bf16 %v1896_v12, %v1896_v12  ;;  %2410 = vmatmul.msk.bf16.gmra.mxu2 %vm1506_vm5, %v3362_v20  ;;  %2413 = vmatmul.msk.bf16.gmra.mxu3 %vm1506_vm5, %v3324_v44  ;;  %v1579_v47 = vpop.f32.mrf.mxu0 }
 0x147   : > { %v1931_v41 = vadd.f32 %v1930_v43, %v1929_v60  ;;  %v1689_v48 = vpop.f32.mrf.mxu1  ;;  %v1685_v39 = vadd.f32 %v1684_v18, %v1579_v47 }
 0x148   : > { %v2031_v5 = vsel %vm1311_vm3, %v1997_v4, 0.0  ;;  %2134 = vst.msk [vmem:[%s3417_s14 + $0xc] sm:$0xf] %vm2130_vm6, %v2101_v23 }
 0x149   : > { %v2032_v46 = vadd.f32 %v2031_v5, %v2030_v61  ;;  %v3453_v49 = vpop.f32.mrf.mxu3  ;;  %v1787_v50 = vpop.f32.mrf.mxu2 }
 0x14a   : > { %v1861_v52 = vadd.f32 %v1787_v50, %v1683_v27 }
 0x14c   : > { %v1897_v45 = vadd.f32 %v3409_v56, %v1861_v52 }
 0x14e   : > { %v1932_v3 = vsel %vm1311_vm3, %v1897_v45, 0.0  ;;  %v1998_v44 = vmul.f32 %v1897_v45, %v1897_v45  ;;  %v2102_v57 = vpack.c.bf16 %v1897_v45, %v1897_v45  ;;  %v1582_v17 = vpop.f32.mrf.mxu0 }
 0x14f   : > { %v1933_v6 = vadd.f32 %v1932_v3, %v1931_v41  ;;  %v1692_v14 = vpop.f32.mrf.mxu1  ;;  %v1688_v53 = vadd.f32 %v1687_v31, %v1582_v17 }
 0x150   : > { %v2033_v0 = vsel %vm1311_vm3, %v1998_v44, 0.0  ;;  %2135 = vst.msk [vmem:[%s3417_s14 + $0x10] sm:$0xf] %vm2130_vm6, %v2102_v57 }
 0x151   : > { %v2034_v9 = vadd.f32 %v2033_v0, %v2032_v46  ;;  %v3460_v13 = vpop.f32.mrf.mxu3  ;;  %v1789_v40 = vpop.f32.mrf.mxu2  ;;  %2371 = vmatmul.msk.bf16.gmra.mxu0 %vm1506_vm5, %v3362_v20  ;;  %v1384_v20 = vsel %vm1348_vm4, %v1347_v19, %v2714_v25 }
 0x152   : > { %v1862_v58 = vadd.f32 %v1789_v40, %v1685_v39  ;;  %v1420_v15 = vpack.c.bf16 %v1384_v20, %v1384_v20 }
 0x154   : > { %v1898_v7 = vadd.f32 %v3409_v56, %v1862_v58  ;;  %v1755_v37 = vunpack.c.l.b16 %v1420_v15 }
 0x156   : > { %v1934_v55 = vsel %vm1311_vm3, %v1898_v7, 0.0  ;;  %v1999_v16 = vmul.f32 %v1898_v7, %v1898_v7  ;;  %v2103_v18 = vpack.c.bf16 %v1898_v7, %v1898_v7  ;;  %2411 = vmatmul.msk.bf16.gmra.mxu2 %vm1506_vm5, %v3286_v28  ;;  %2414 = vmatmul.msk.bf16.gmra.mxu3 %vm1506_vm5, %v3343_v63  ;;  %v1584_v54 = vpop.f32.mrf.mxu0  ;;  %v1419_v63 = vpack.c.bf16 %v1383_v26, %v1383_v26 }
 0x157   : > { %v1935_v1 = vadd.f32 %v1934_v55, %v1933_v6  ;;  %v1694_v24 = vpop.f32.mrf.mxu1  ;;  %v1690_v8 = vadd.f32 %v1689_v48, %v1584_v54 }
 0x158   : > { %v2035_v2 = vsel %vm1311_vm3, %v1999_v16, 0.0  ;;  %2136 = vst.msk [vmem:[%s3417_s14 + $0x14] sm:$0xf] %vm2130_vm6, %v2103_v18  ;;  %v1754_v31 = vunpack.c.l.b16 %v1419_v63 }
 0x159   : > { %v2036_v33 = vadd.f32 %v2035_v2, %v2034_v9  ;;  %v3479_v36 = vpop.f32.mrf.mxu3  ;;  %v1792_v28 = vpop.f32.mrf.mxu2 }
 0x15a   : > { %v1863_v34 = vadd.f32 %v1792_v28, %v1688_v53  ;;  %v1756_v47 = vpack.c.b16 %v1755_v37, %v1754_v31 }
 0x15c   : > { %v1899_v30 = vadd.f32 %v3409_v56, %v1863_v34 }
 0x15e   : > { %v1936_v60 = vsel %vm1311_vm3, %v1899_v30, 0.0  ;;  %v2000_v38 = vmul.f32 %v1899_v30, %v1899_v30  ;;  %v2104_v42 = vpack.c.bf16 %v1899_v30, %v1899_v30  ;;  %v1587_v61 = vpop.f32.mrf.mxu0 }
 0x15f   : > { %v1937_v32 = vadd.f32 %v1936_v60, %v1935_v1  ;;  %v1697_v51 = vpop.f32.mrf.mxu1  ;;  %v1693_v21 = vadd.f32 %v1692_v14, %v1587_v61 }
 0x160   : > { %v2037_v12 = vsel %vm1311_vm3, %v2000_v38, 0.0  ;;  %2137 = vst.msk [vmem:[%s3417_s14 + $0x18] sm:$0xf] %vm2130_vm6, %v2104_v42 }
 0x161   : > { %v2038_v43 = vadd.f32 %v2037_v12, %v2036_v33  ;;  %v3486_v4 = vpop.f32.mrf.mxu3  ;;  %v1794_v23 = vpop.f32.mrf.mxu2 }
 0x162   : > { %v1864_v41 = vadd.f32 %v1794_v23, %v1690_v8 }
 0x164   : > { %v1900_v27 = vadd.f32 %v3409_v56, %v1864_v41 }
 0x166   : > { %v1938_v5 = vsel %vm1311_vm3, %v1900_v27, 0.0  ;;  %v2001_v46 = vmul.f32 %v1900_v27, %v1900_v27  ;;  %v2105_v50 = vpack.c.bf16 %v1900_v27, %v1900_v27  ;;  %2415 = vmatmul.msk.bf16.gmra.mxu3 %vm1506_vm5, %v1756_v47  ;;  %v1589_v52 = vpop.f32.mrf.mxu0 }
 0x167   : > { %v1939_v48 = vadd.f32 %v1938_v5, %v1937_v32  ;;  %v1699_v45 = vpop.f32.mrf.mxu1  ;;  %v1695_v40 = vadd.f32 %v1694_v24, %v1589_v52 }
 0x168   : > { %v2039_v3 = vsel %vm1311_vm3, %v2001_v46, 0.0  ;;  %2138 = vst.msk [vmem:[%s3417_s14 + $0x1c] sm:$0xf] %vm2130_vm6, %v2105_v50 }
 0x169   : > { %v2040_v44 = vadd.f32 %v2039_v3, %v2038_v43  ;;  %v3494_v57 = vpop.f32.mrf.mxu3  ;;  %v1797_v11 = vpop.f32.mrf.mxu2 }
 0x16a   : > { %v1865_v6 = vadd.f32 %v1797_v11, %v1693_v21 }
 0x16c   : > { %v1901_v17 = vadd.f32 %v3409_v56, %v1865_v6 }
 0x16e   : > { %v1940_v10 = vsel %vm1311_vm3, %v1901_v17, 0.0  ;;  %v2002_v39 = vmul.f32 %v1901_v17, %v1901_v17  ;;  %v2106_v0 = vpack.c.bf16 %v1901_v17, %v1901_v17  ;;  %v1592_v9 = vpop.f32.mrf.mxu0 }
 0x16f   : > { %v1941_v35 = vadd.f32 %v1940_v10, %v1939_v48  ;;  %v1702_v58 = vpop.f32.mrf.mxu1  ;;  %v1698_v54 = vadd.f32 %v1697_v51, %v1592_v9 }
 0x170   : > { %v2041_v14 = vsel %vm1311_vm3, %v2002_v39, 0.0  ;;  %2139 = vst.msk [vmem:[%s3417_s14 + $0x20] sm:$0xf] %vm2130_vm6, %v2106_v0 }
 0x171   : > { %v2042_v25 = vadd.f32 %v2041_v14, %v2040_v44  ;;  %v3501_v19 = vpop.f32.mrf.mxu3  ;;  %v1799_v59 = vpop.f32.mrf.mxu2 }
 0x172   : > { %v1866_v7 = vadd.f32 %v1799_v59, %v1695_v40 }
 0x174   : > { %v1902_v22 = vadd.f32 %v3409_v56, %v1866_v7 }
 0x176   : > { %v1942_v55 = vsel %vm1311_vm3, %v1902_v22, 0.0  ;;  %v2003_v16 = vmul.f32 %v1902_v22, %v1902_v22  ;;  %v2107_v18 = vpack.c.bf16 %v1902_v22, %v1902_v22  ;;  %v1594_v1 = vpop.f32.mrf.mxu0 }
 0x177   : > { %v1943_v20 = vadd.f32 %v1942_v55, %v1941_v35  ;;  %v1704_v33 = vpop.f32.mrf.mxu1  ;;  %v1700_v38 = vadd.f32 %v1699_v45, %v1594_v1 }
 0x178   : > { %v2043_v24 = vsel %vm1311_vm3, %v2003_v16, 0.0  ;;  %2140 = vst.msk [vmem:[%s3417_s14 + $0x24] sm:$0xf] %vm2130_vm6, %v2107_v18 }
 0x179   : > { %v2044_v26 = vadd.f32 %v2043_v24, %v2042_v25  ;;  %v3508_v53 = vpop.f32.mrf.mxu3  ;;  %v1802_v2 = vpop.f32.mrf.mxu2 }
 0x17a   : > { %v1867_v28 = vadd.f32 %v1802_v2, %v1698_v54 }
 0x17c   : > { %v1903_v15 = vadd.f32 %v3409_v56, %v1867_v28 }
 0x17e   : > { %v1944_v34 = vsel %vm1311_vm3, %v1903_v15, 0.0  ;;  %v2004_v63 = vmul.f32 %v1903_v15, %v1903_v15  ;;  %v2108_v30 = vpack.c.bf16 %v1903_v15, %v1903_v15  ;;  %v1597_v60 = vpop.f32.mrf.mxu0 }
 0x17f   : > { %v1945_v37 = vadd.f32 %v1944_v34, %v1943_v20  ;;  %v1707_v8 = vpop.f32.mrf.mxu1  ;;  %v1703_v5 = vadd.f32 %v1702_v58, %v1597_v60 }
 0x180   : > { %v2045_v42 = vsel %vm1311_vm3, %v2004_v63, 0.0  ;;  %2141 = vst.msk [vmem:[%s3417_s14 + $0x28] sm:$0xf] %vm2130_vm6, %v2108_v30 }
 0x181   : > { %v2046_v31 = vadd.f32 %v2045_v42, %v2044_v26  ;;  %v3515_v32 = vpop.f32.mrf.mxu3  ;;  %v1804_v61 = vpop.f32.mrf.mxu2 }
 0x182   : > { %v1868_v51 = vadd.f32 %v1804_v61, %v1700_v38 }
 0x184   : > { %v1904_v12 = vadd.f32 %v3409_v56, %v1868_v51 }
 0x186   : > { %v1946_v43 = vsel %vm1311_vm3, %v1904_v12, 0.0  ;;  %v2005_v23 = vmul.f32 %v1904_v12, %v1904_v12  ;;  %v2109_v41 = vpack.c.bf16 %v1904_v12, %v1904_v12  ;;  %v1599_v27 = vpop.f32.mrf.mxu0 }
 0x187   : > { %v1947_v47 = vadd.f32 %v1946_v43, %v1945_v37  ;;  %v1709_v3 = vpop.f32.mrf.mxu1  ;;  %v1705_v39 = vadd.f32 %v1704_v33, %v1599_v27 }
 0x188   : > { %v2047_v46 = vsel %vm1311_vm3, %v2005_v23, 0.0  ;;  %2142 = vst.msk [vmem:[%s3417_s14 + $0x2c] sm:$0xf] %vm2130_vm6, %v2109_v41 }
 0x189   : > { %v2048_v50 = vadd.f32 %v2047_v46, %v2046_v31  ;;  %v3522_v48 = vpop.f32.mrf.mxu3  ;;  %v1807_v52 = vpop.f32.mrf.mxu2  ;;  %v1733_v46 = vadd.f32 %v3508_v53, %v3433_v29 }
 0x18a   : > { %v1869_v45 = vadd.f32 %v1807_v52, %v1703_v5 }
 0x18c   : > { %v1905_v21 = vadd.f32 %v3409_v56, %v1869_v45 }
 0x18e   : > { %v1948_v44 = vsel %vm1311_vm3, %v1905_v21, 0.0  ;;  %v2006_v11 = vmul.f32 %v1905_v21, %v1905_v21  ;;  %v2110_v6 = vpack.c.bf16 %v1905_v21, %v1905_v21  ;;  %v1602_v10 = vpop.f32.mrf.mxu0 }
 0x18f   : > { %v3526_v17 = vadd.f32 %v1948_v44, %v1947_v47  ;;  %v1708_v7 = vadd.f32 %v1707_v8, %v1602_v10  ;;  %v1712_v22 = vpop.f32.mrf.mxu1  ;;  %v1735_v10 = vadd.f32 %v3515_v32, %v3440_v62 }
 0x190   : > { %v2049_v0 = vsel %vm1311_vm3, %v2006_v11, 0.0  ;;  %2143 = vst.msk [vmem:[%s3417_s14 + $0x30] sm:$0xf] %vm2130_vm6, %v2110_v6 }
 0x191   : > { %v3531_v35 = vadd.f32 %v2049_v0, %v2048_v50  ;;  %v3533_v9 = vpop.f32.mrf.mxu3  ;;  %v1809_v40 = vpop.f32.mrf.mxu2 }
 0x192   : > { %v1870_v14 = vadd.f32 %v1809_v40, %v1705_v39 }
 0x194   : > { %v3536_v58 = vadd.f32 %v3409_v56, %v1870_v14 }
 0x196   : > { %v2111_v25 = vpack.c.bf16 %v3536_v58, %v3536_v58  ;;  %v1604_v59 = vpop.f32.mrf.mxu0 }
 0x197   : > { %v1710_v24 = vadd.f32 %v1709_v3, %v1604_v59  ;;  %v1714_v33 = vpop.f32.mrf.mxu1 }
 0x198   : > { %2144 = vst.msk [vmem:[%s3417_s14 + $0x34] sm:$0xf] %vm2130_vm6, %v2111_v25 }
 0x199   : > { %v3542_v55 = vpop.f32.mrf.mxu3  ;;  %v1812_v16 = vpop.f32.mrf.mxu2 }
 0x19a   : > { %v1871_v18 = vadd.f32 %v1812_v16, %v1708_v7  ;;  %v1738_v16 = vadd.f32 %v3522_v48, %v3453_v49  ;;  %v2007_v49 = vmul.f32 %v3536_v58, %v3536_v58 }
 0x19c   : > { %v3545_v20 = vadd.f32 %v3409_v56, %v1871_v18 }
 0x19e   : > { %v2112_v1 = vpack.c.bf16 %v3545_v20, %v3545_v20  ;;  %v1607_v54 = vpop.f32.mrf.mxu0 }
 0x19f   : > { %v1713_v30 = vadd.f32 %v1712_v22, %v1607_v54  ;;  %v1717_v42 = vpop.f32.mrf.mxu1 }
 0x1a0   : > { %2145 = vst.msk [vmem:[%s3417_s14 + $0x38] sm:$0xf] %vm2130_vm6, %v2112_v1 }
 0x1a1   : > { %v3551_v26 = vpop.f32.mrf.mxu3  ;;  %v1814_v2 = vpop.f32.mrf.mxu2 }
 0x1a2   : > { %v1872_v28 = vadd.f32 %v1814_v2, %v1710_v24 }
 0x1a4   : > { %v3554_v15 = vadd.f32 %v3409_v56, %v1872_v28 }
 0x1a6   : > { %v2113_v34 = vpack.c.bf16 %v3554_v15, %v3554_v15  ;;  %v1609_v63 = vpop.f32.mrf.mxu0 }
 0x1a7   : > { %v1715_v8 = vadd.f32 %v1714_v33, %v1609_v63  ;;  %v1719_v47 = vpop.f32.mrf.mxu1 }
 0x1a8   : > { %2146 = vst.msk [vmem:[%s3417_s14 + $0x3c] sm:$0xf] %vm2130_vm6, %v2113_v34 }
 0x1a9   : > { %v3560_v37 = vpop.f32.mrf.mxu3  ;;  %v1817_v60 = vpop.f32.mrf.mxu2 }
 0x1aa   : > { %v1873_v38 = vadd.f32 %v1817_v60, %v1713_v30  ;;  %v2008_v30 = vmul.f32 %v3545_v20, %v3545_v20 }
 0x1ac   : > { %v3563_v31 = vadd.f32 %v3409_v56, %v1873_v38  ;;  %v1740_v38 = vadd.f32 %v3533_v9, %v3460_v13 }
 0x1ae   : > { %v2114_v61 = vpack.c.bf16 %v3563_v31, %v3563_v31  ;;  %v1612_v51 = vpop.f32.mrf.mxu0 }
 0x1af   : > { %v1718_v50 = vadd.f32 %v1717_v42, %v1612_v51  ;;  %v1722_v39 = vpop.f32.mrf.mxu1  ;;  %v1950_v42 = vsel %vm1311_vm3, %v3536_v58, 0.0  ;;  %v2051_v51 = vsel %vm1311_vm3, %v2007_v49, 0.0  ;;  %v2053_v58 = vsel %vm1311_vm3, %v2008_v30, 0.0 }
 0x1b0   : > { %2147 = vst.msk [vmem:[%s3417_s14 + $0x40] sm:$0xf] %vm2130_vm6, %v2114_v61  ;;  %v1951_v9 = vadd.f32 %v1950_v42, %v3526_v17 }
 0x1b1   : > { %v3569_v12 = vpop.f32.mrf.mxu3  ;;  %v1819_v43 = vpop.f32.mrf.mxu2 }
 0x1b2   : > { %v1874_v23 = vadd.f32 %v1819_v43, %v1715_v8 }
 0x1b4   : > { %v3572_v41 = vadd.f32 %v3409_v56, %v1874_v23  ;;  %v1952_v23 = vsel %vm1311_vm3, %v3545_v20, 0.0 }
 0x1b6   : > { %v2115_v27 = vpack.c.bf16 %v3572_v41, %v3572_v41  ;;  %v1614_v5 = vpop.f32.mrf.mxu0  ;;  %v2011_v17 = vmul.f32 %v3572_v41, %v3572_v41 }
 0x1b7   : > { %v1720_v0 = vadd.f32 %v1719_v47, %v1614_v5  ;;  %v1724_v28 = vpop.f32.mrf.mxu1  ;;  %v2009_v47 = vmul.f32 %v3554_v15, %v3554_v15 }
 0x1b8   : > { %2148 = vst.msk [vmem:[%s3417_s14 + $0x44] sm:$0xf] %vm2130_vm6, %v2115_v27 }
 0x1b9   : > { %v1822_v52 = vpop.f32.mrf.mxu2  ;;  %v1837_v45 = vpop.f32.mrf.mxu3 }
 0x1ba   : > { %v1875_v21 = vadd.f32 %v1822_v52, %v1718_v50  ;;  %v1881_v3 = vadd.f32 %v1837_v45, %v1733_v46  ;;  %v1954_v46 = vsel %vm1311_vm3, %v3554_v15, 0.0  ;;  %v2010_v50 = vmul.f32 %v3563_v31, %v3563_v31 }
 0x1bb   : > { %v2052_v45 = vadd.f32 %v2051_v51, %v3531_v35  ;;  %v1956_v15 = vsel %vm1311_vm3, %v3563_v31, 0.0 }
 0x1bc   : > { %v3581_v44 = vadd.f32 %v3409_v56, %v1875_v21  ;;  %v3584_v11 = vadd.f32 %v3409_v56, %v1881_v3  ;;  %v1953_v21 = vadd.f32 %v1952_v23, %v1951_v9 }
 0x1be   : > { %v2116_v6 = vpack.c.bf16 %v3581_v44, %v3581_v44  ;;  %v2122_v29 = vpack.c.bf16 %v3584_v11, %v3584_v11  ;;  %v1617_v53 = vpop.f32.mrf.mxu0 }
 0x1bf   : > { %v1723_v18 = vadd.f32 %v1722_v39, %v1617_v53  ;;  %v1727_v3 = vpop.f32.mrf.mxu1  ;;  %v2054_v53 = vadd.f32 %v2053_v58, %v2052_v45  ;;  %v2012_v39 = vmul.f32 %v3581_v44, %v3581_v44 }
 0x1c0   : > { %2149 = vst.msk [vmem:[%s3417_s14 + $0x48] sm:$0xf] %vm2130_vm6, %v2116_v6  ;;  %v2055_v6 = vsel %vm1311_vm3, %v2009_v47, 0.0 }
 0x1c1   : > { %2155 = vst.msk [vmem:[%s3417_s14 + $0x60] sm:$0xf] %vm2130_vm6, %v2122_v29  ;;  %v1824_v40 = vpop.f32.mrf.mxu2  ;;  %v1839_v14 = vpop.f32.mrf.mxu3  ;;  %v2056_v31 = vadd.f32 %v2055_v6, %v2054_v53  ;;  %v2018_v53 = vmul.f32 %v3584_v11, %v3584_v11 }
 0x1c2   : > { %v1876_v25 = vadd.f32 %v1824_v40, %v1720_v0  ;;  %v1882_v59 = vadd.f32 %v1839_v14, %v1735_v10  ;;  %v1955_v10 = vadd.f32 %v1954_v46, %v1953_v21  ;;  %v1743_v0 = vadd.f32 %v3542_v55, %v3479_v36 }
 0x1c3   : > { %v2057_v40 = vsel %vm1311_vm3, %v2010_v50, 0.0  ;;  %v1958_v14 = vsel %vm1311_vm3, %v3572_v41, 0.0 }
 0x1c4   : > { %v3597_v7 = vadd.f32 %v3409_v56, %v1876_v25  ;;  %v3600_v22 = vadd.f32 %v3409_v56, %v1882_v59  ;;  %v1957_v59 = vadd.f32 %v1956_v15, %v1955_v10  ;;  %v2058_v41 = vadd.f32 %v2057_v40, %v2056_v31 }
 0x1c5   : > { %v1972_v31 = vsel %vm1311_vm3, %v3584_v11, 0.0 }
 0x1c6   : > { %v2117_v62 = vpack.c.bf16 %v3597_v7, %v3597_v7  ;;  %v2123_v32 = vpack.c.bf16 %v3600_v22, %v3600_v22  ;;  %v1619_v1 = vpop.f32.mrf.mxu0  ;;  %v2013_v36 = vmul.f32 %v3597_v7, %v3597_v7 }
 0x1c7   : > { %v1725_v61 = vadd.f32 %v1724_v28, %v1619_v1 }
 0x1c8   : > { %2150 = vst.msk [vmem:[%s3417_s14 + $0x4c] sm:$0xf] %vm2130_vm6, %v2117_v62  ;;  %v2059_v62 = vsel %vm1311_vm3, %v2011_v17, 0.0 }
 0x1c9   : > { %2156 = vst.msk [vmem:[%s3417_s14 + $0x64] sm:$0xf] %vm2130_vm6, %v2123_v32  ;;  %v1827_v54 = vpop.f32.mrf.mxu2  ;;  %v1842_v24 = vpop.f32.mrf.mxu3 }
 0x1ca   : > { %v1877_v2 = vadd.f32 %v1827_v54, %v1723_v18  ;;  %v1883_v33 = vadd.f32 %v1842_v24, %v1738_v16  ;;  %v1960_v18 = vsel %vm1311_vm3, %v3581_v44, 0.0  ;;  %v1959_v54 = vadd.f32 %v1958_v14, %v1957_v59 }
 0x1cb   : > { %v2061_v24 = vsel %vm1311_vm3, %v2012_v39, 0.0  ;;  %v2019_v59 = vmul.f32 %v3600_v22, %v3600_v22 }
 0x1cc   : > { %v1913_v34 = vadd.f32 %v3409_v56, %v1877_v2  ;;  %v3614_v63 = vadd.f32 %v3409_v56, %v1883_v33  ;;  %v1962_v2 = vsel %vm1311_vm3, %v3597_v7, 0.0  ;;  %v1961_v44 = vadd.f32 %v1960_v18, %v1959_v54 }
 0x1cd   : > { %v1745_v7 = vadd.f32 %v3551_v26, %v3486_v4 }
 0x1ce   : > { %v2118_v48 = vpack.c.bf16 %v1913_v34, %v1913_v34  ;;  %v2124_v60 = vpack.c.bf16 %v3614_v63, %v3614_v63  ;;  %v1622_v5 = vpop.f32.mrf.mxu0  ;;  %v2014_v33 = vmul.f32 %v1913_v34, %v1913_v34  ;;  %v1976_v54 = vsel %vm1311_vm3, %v3614_v63, 0.0 }
 0x1cf   : > { %v1728_v25 = vadd.f32 %v1727_v3, %v1622_v5 }
 0x1d0   : > { %2151 = vst.msk [vmem:[%s3417_s14 + $0x50] sm:$0xf] %vm2130_vm6, %v2118_v48  ;;  %v2060_v48 = vadd.f32 %v2059_v62, %v2058_v41  ;;  %v2065_v47 = vsel %vm1311_vm3, %v2014_v33, 0.0  ;;  %v2075_v41 = vsel %vm1311_vm3, %v2019_v59, 0.0 }
 0x1d1   : > { %2157 = vst.msk [vmem:[%s3417_s14 + $0x68] sm:$0xf] %vm2130_vm6, %v2124_v60  ;;  %v1829_v8 = vpop.f32.mrf.mxu2  ;;  %v1844_v43 = vpop.f32.mrf.mxu3  ;;  %v2063_v60 = vsel %vm1311_vm3, %v2013_v36, 0.0  ;;  %v2073_v36 = vsel %vm1311_vm3, %v2018_v53, 0.0 }
 0x1d2   : > { %v1878_v27 = vadd.f32 %v1829_v8, %v1725_v61  ;;  %v1884_v13 = vadd.f32 %v1844_v43, %v1740_v38  ;;  %v1964_v38 = vsel %vm1311_vm3, %v1913_v34, 0.0  ;;  %v2062_v51 = vadd.f32 %v2061_v24, %v2060_v48  ;;  %v1729_v43 = vpop.f32.mrf.mxu1 }
 0x1d3   : > { %v1963_v8 = vadd.f32 %v1962_v2, %v1961_v44 }
 0x1d4   : > { %v1914_v52 = vadd.f32 %v3409_v56, %v1878_v27  ;;  %v3643_v20 = vadd.f32 %v3409_v56, %v1884_v13  ;;  %v2064_v34 = vadd.f32 %v2063_v60, %v2062_v51 }
 0x1d5   : > { %v1965_v58 = vadd.f32 %v1964_v38, %v1963_v8 }
 0x1d6   : > { %v2119_v29 = vpack.c.bf16 %v1914_v52, %v1914_v52  ;;  %v2125_v35 = vpack.c.bf16 %v3643_v20, %v3643_v20  ;;  %v1624_v30 = vpop.f32.mrf.mxu0  ;;  %v2015_v42 = vmul.f32 %v1914_v52, %v1914_v52  ;;  %v1966_v27 = vsel %vm1311_vm3, %v1914_v52, 0.0 }
 0x1d7   : > { %v1730_v13 = vadd.f32 %v1729_v43, %v1624_v30  ;;  %v2066_v21 = vadd.f32 %v2065_v47, %v2064_v34  ;;  %v1967_v17 = vadd.f32 %v1966_v27, %v1965_v58  ;;  %v2021_v24 = vmul.f32 %v3643_v20, %v3643_v20 }
 0x1d8   : > { %2152 = vst.msk [vmem:[%s3417_s14 + $0x54] sm:$0xf] %vm2130_vm6, %v2119_v29  ;;  %v2067_v26 = vsel %vm1311_vm3, %v2015_v42, 0.0  ;;  %v1978_v48 = vsel %vm1311_vm3, %v3643_v20, 0.0 }
 0x1d9   : > { %2158 = vst.msk [vmem:[%s3417_s14 + $0x6c] sm:$0xf] %vm2130_vm6, %v2125_v35  ;;  %v1832_v32 = vpop.f32.mrf.mxu2  ;;  %v1847_v16 = vpop.f32.mrf.mxu3  ;;  %v2068_v15 = vadd.f32 %v2067_v26, %v2066_v21  ;;  %v2079_v42 = vsel %vm1311_vm3, %v2021_v24, 0.0 }
 0x1da   : > { %v1879_v55 = vadd.f32 %v1832_v32, %v1728_v25  ;;  %v1885_v1 = vadd.f32 %v1847_v16, %v1743_v0  ;;  %v1748_v25 = vadd.f32 %v3560_v37, %v3494_v57  ;;  %v1974_v57 = vsel %vm1311_vm3, %v3600_v22, 0.0 }
 0x1db   : > { %v2020_v37 = vmul.f32 %v3614_v63, %v3614_v63  ;;  %v1750_v63 = vadd.f32 %v3569_v12, %v3501_v19 }
 0x1dc   : > { %v1915_v28 = vadd.f32 %v3409_v56, %v1879_v55  ;;  %v3674_v49 = vadd.f32 %v3409_v56, %v1885_v1 }
 0x1dd   : > { %v2077_v22 = vsel %vm1311_vm3, %v2020_v37, 0.0 }
 0x1de   : > { %v2120_v61 = vpack.c.bf16 %v1915_v28, %v1915_v28  ;;  %v2126_v23 = vpack.c.bf16 %v3674_v49, %v3674_v49  ;;  %v2016_v9 = vmul.f32 %v1915_v28, %v1915_v28  ;;  %v1968_v46 = vsel %vm1311_vm3, %v1915_v28, 0.0 }
 0x1df   : > { %v1969_v29 = vadd.f32 %v1968_v46, %v1967_v17  ;;  %v2022_v44 = vmul.f32 %v3674_v49, %v3674_v49 }
 0x1e0   : > { %2153 = vst.msk [vmem:[%s3417_s14 + $0x58] sm:$0xf] %vm2130_vm6, %v2120_v61  ;;  %v2069_v52 = vsel %vm1311_vm3, %v2016_v9, 0.0  ;;  %v1980_v61 = vsel %vm1311_vm3, %v3674_v49, 0.0 }
 0x1e1   : > { %2159 = vst.msk [vmem:[%s3417_s14 + $0x70] sm:$0xf] %vm2130_vm6, %v2126_v23  ;;  %v1834_v5 = vpop.f32.mrf.mxu2  ;;  %v1849_v4 = vpop.f32.mrf.mxu3  ;;  %v2070_v0 = vadd.f32 %v2069_v52, %v2068_v15  ;;  %v2081_v43 = vsel %vm1311_vm3, %v2022_v44, 0.0 }
 0x1e2   : > { %v1880_v50 = vadd.f32 %v1834_v5, %v1730_v13  ;;  %v1886_v45 = vadd.f32 %v1849_v4, %v1745_v7 }
 0x1e4   : > { %v1916_v3 = vadd.f32 %v3409_v56, %v1880_v50  ;;  %v1922_v6 = vadd.f32 %v3409_v56, %v1886_v45 }
 0x1e6   : > { %v1970_v10 = vsel %vm1311_vm3, %v1916_v3, 0.0  ;;  %v2017_v39 = vmul.f32 %v1916_v3, %v1916_v3  ;;  %v2121_v35 = vpack.c.bf16 %v1916_v3, %v1916_v3  ;;  %v2127_v14 = vpack.c.bf16 %v1922_v6, %v1922_v6 }
 0x1e7   : > { %v1971_v40 = vadd.f32 %v1970_v10, %v1969_v29  ;;  %v2023_v7 = vmul.f32 %v1922_v6, %v1922_v6  ;;  %v1982_v23 = vsel %vm1311_vm3, %v1922_v6, 0.0 }
 0x1e8   : > { %v2071_v62 = vsel %vm1311_vm3, %v2017_v39, 0.0  ;;  %2154 = vst.msk [vmem:[%s3417_s14 + $0x5c] sm:$0xf] %vm2130_vm6, %v2121_v35 }
 0x1e9   : > { %v1973_v32 = vadd.f32 %v1972_v31, %v1971_v40  ;;  %v2072_v16 = vadd.f32 %v2071_v62, %v2070_v0  ;;  %2160 = vst.msk [vmem:[%s3417_s14 + $0x74] sm:$0xf] %vm2130_vm6, %v2127_v14  ;;  %v1852_v18 = vpop.f32.mrf.mxu3  ;;  %v2083_v12 = vsel %vm1311_vm3, %v2023_v7, 0.0 }
 0x1ea   : > { %v1887_v11 = vadd.f32 %v1852_v18, %v1748_v25 }
 0x1eb   : > { %v1975_v55 = vadd.f32 %v1974_v57, %v1973_v32  ;;  %v2074_v1 = vadd.f32 %v2073_v36, %v2072_v16 }
 0x1ec   : > { %v1923_v2 = vadd.f32 %v3409_v56, %v1887_v11 }
 0x1ed   : > { %v2076_v33 = vadd.f32 %v2075_v41, %v2074_v1  ;;  %v1977_v28 = vadd.f32 %v1976_v54, %v1975_v55 }
 0x1ee   : > { %v2128_v30 = vpack.c.bf16 %v1923_v2, %v1923_v2  ;;  %v2024_v47 = vmul.f32 %v1923_v2, %v1923_v2  ;;  %v1984_v9 = vsel %vm1311_vm3, %v1923_v2, 0.0 }
 0x1ef   : > { %v1979_v60 = vadd.f32 %v1978_v48, %v1977_v28  ;;  %v2078_v38 = vadd.f32 %v2077_v22, %v2076_v33 }
 0x1f0   : > { %2161 = vst.msk [vmem:[%s3417_s14 + $0x78] sm:$0xf] %vm2130_vm6, %v2128_v30  ;;  %v2085_v5 = vsel %vm1311_vm3, %v2024_v47, 0.0 }
 0x1f1   : > { %v1981_v51 = vadd.f32 %v1980_v61, %v1979_v60  ;;  %v2080_v8 = vadd.f32 %v2079_v42, %v2078_v38  ;;  %v1854_v20 = vpop.f32.mrf.mxu3 }
 0x1f2   : > { %v1888_v27 = vadd.f32 %v1854_v20, %v1750_v63 }
 0x1f3   : > { %v1983_v13 = vadd.f32 %v1982_v23, %v1981_v51  ;;  %v2082_v19 = vadd.f32 %v2081_v43, %v2080_v8 }
 0x1f4   : > { %v1924_v49 = vadd.f32 %v3409_v56, %v1888_v27 }
 0x1f5   : > { %v2084_v34 = vadd.f32 %v2083_v12, %v2082_v19  ;;  %v1985_v58 = vadd.f32 %v1984_v9, %v1983_v13 }
 0x1f6   : > { %v1986_v4 = vsel %vm1311_vm3, %v1924_v49, 0.0  ;;  %v2025_v26 = vmul.f32 %v1924_v49, %v1924_v49  ;;  %v2129_v46 = vpack.c.bf16 %v1924_v49, %v1924_v49 }
 0x1f7   : > { %v2086_v50 = vadd.f32 %v2085_v5, %v2084_v34  ;;  %v1987_v45 = vadd.f32 %v1986_v4, %v1985_v58 }
 0x1f8   : > { %v2087_v21 = vsel %vm1311_vm3, %v2025_v26, 0.0  ;;  %2162 = vst.msk [vmem:[%s3417_s14 + $0x7c] sm:$0xf] %vm2130_vm6, %v2129_v46 }
 0x1f9   : > { %v1988_v17 = vrot.slane %v1987_v45, 4  ;;  %v2088_v52 = vadd.f32 %v2087_v21, %v2086_v50 }
 0x1fb   : > { %v1989_v3 = vadd.f32 %v1988_v17, %v1987_v45  ;;  %v2089_v6 = vrot.slane %v2088_v52, 4 }
 0x1fd   : > { %v1990_v56 = vrot.slane %v1989_v3, 2  ;;  %v2090_v15 = vadd.f32 %v2089_v6, %v2088_v52 }
 0x1ff   : > { %v1991_v29 = vadd.f32 %v1990_v56, %v1989_v3  ;;  %v2091_v53 = vrot.slane %v2090_v15, 2 }
 0x201   : > { %v1992_v10 = vrot.slane %v1991_v29, 1  ;;  %v2092_v39 = vadd.f32 %v2091_v53, %v2090_v15 }
 0x203   : > { %v2093_v35 = vrot.slane %v2092_v39, 1  ;;  %v1993_v0 = vadd.f32 %v1992_v10, %v1991_v29 }
 0x205   : > { %v2094_v40 = vadd.f32 %v2093_v35, %v2092_v39 }
 0x207   : > { %v2095_v14 = vsel %vm726_vm0, %v1993_v0, %v2094_v40 }
 0x208   : > { %2097 = vst.msk [vmem:[%s492_s17] sm:$0x3] %vm2096_vm7, %v2095_v14 }
 0x209 PF: > { %s19_s27 = sadd.s32 1, %s2740_s27   ;;  %s3763_s26 = smov %s2736_s2 }
 0x20a   : > { %p16_p5 = scmp.ge.s32.totalorder %s19_s27, 4   ;;  %s3764_s2 = smov %s3766_s28 }
 0x20c   :  { %18 = sbr.rel (!%p16_p5) target bundleno = 2 (0x2), region = 96 }

// kernel: upscale_forward.3
= control target key start
LH: loop header
LB: loop body
LE: loop exit
PB: predicated region body
PF: predicated region fallthrough
CT: control target
= control target key end

     0   :  { %s2492_s26 = smov 0   ;;  %s2494_s27 = smov 0   ;;  %s3620_s0 = inlined_call_operand.vmem [shape: f32[2,8,8,8], index: 0, kind: input, shape index: {}, may-alias: {0,1}]   ;;  %s3621_s1 = inlined_call_operand.vmem [shape: f32[2,8,8,8], index: 1, kind: input, shape index: {}, may-alias: {0,1}]   ;;  %s3622_s2 = inlined_call_operand.vmem [shape: bf16[8,4], index: 2, kind: input, shape index: {}]   ;;  %s3623_s3 = inlined_call_operand.vmem [shape: bf16[16,4], index: 3, kind: input, shape index: {}]   ;;  %s3624_s4 = inlined_call_operand.vmem [shape: bf16[16,4], index: 4, kind: input, shape index: {}]   ;;  %s3625_s5 = inlined_call_operand.vmem [shape: bf16[32,4], index: 5, kind: input, shape index: {}]   ;;  %s3626_s6 = inlined_call_operand.vmem [shape: f32[1,4], index: 6, kind: input, shape index: {}]   ;;  %s3627_s7 = inlined_call_operand.vmem [shape: bf16[2,16,16,4], index: 7, kind: output, shape index: {0}]   ;;  %s3628_s8 = inlined_call_operand.vmem [shape: f32[2,1,2,4], index: 8, kind: output, shape index: {1}]  }
   0x1   :  { %s2496_s28 = smov 0  }
   0x2 LB: > { %s31_s29 = sadd.s32 1, %s2436_s27  ;;  %p2337_p0 = scmp.ge.s32.totalorder %s2440_s28, 1  ;;  %s2440_s28 = sphi %s2496_s28, %s19_s28   ;;  %s2436_s27 = sphi %s2494_s27, %s3644_s27   ;;  %s2432_s26 = sphi %s2492_s26, %s3643_s26  }
   0x3   : > { %p33_p1 = scmp.ge.s32.totalorder %s31_s29, 2  ;;  %p319_p2 = scmp.lt.s32.totalorder %s2440_s28, 3 }
   0x5   : > { %s3646_s29 = smov (%p33_p1, %s31_s29), 0  ;;  %p320_p3 = pnand %p2337_p0, %p319_p2 }
   0x6   : > { %p382_p4 = scmp.lt.s32.totalorder (!%p320_p3), %s2432_s26, 1  ;;  %s2443_s12 = smov (!%p320_p3), 8  }
   0x7   : > { %323 = sbr.rel (%p320_p3) target bundleno = 474 (0x1da), region = 48  ;;  %s2444_s13 = smov (!%p320_p3), 16  }
   0x8   : > { %s2445_s16 = smov (!%p320_p3), 24  }
   0xc   : > { %s3648_s26 = smov (!%p382_p4, %s2432_s26), 1  ;;  %v2442_v0 = vmov 0.0   ;;  %vm457_vm0 = vcmask 1046528   ;;  %v498_v44 = vld [vmem:[%s3622_s2] sm:$0xf]  ;;  %vm535_vm1 = vcmask 1043456  }
   0xd   : > { %s2379_s30 = sshll.u32 %s3648_s26, 6  ;;  %v2518_v1 = vrot.slane %v2442_v0, 1  ;;  %v537_v45 = vsel %vm535_vm1, %v498_v44, 0  ;;  %vm522_vm2 = vcmask 64512   ;;  %v2383_v51 = vld [vmem:[%s3623_s3] sm:$0xff]  ;;  %vm616_vm3 = vcmask 130048  }
   0xe   : > { %s2516_s11 = scalar_lea.vmem %s3620_s0, %s2379_s30  ;;  %546 = vmatpush.bf16.msra.mxu0 %v537_v45  ;;  %v2384_v52 = vld [vmem:[%s3624_s4] sm:$0xff]  ;;  %632 = vmatpush.bf16.msra.mxu1 %v2383_v51  ;;  %vm763_vm4 = vcmask 195584   ;;  %vm788_vm5 = vcmask 261120   ;;  %vm877_vm6 = vcmask 1040384   ;;  %vm826_vm7 = vcmask 31744   ;;  %s2382_s30 = sshll.u32 %s3648_s26, 7 }
   0xf   : > { %v426_v2 = vld [vmem:[%s2516_s11] sm:$0xff]  ;;  %v427_v3 = vld [vmem:[%s2516_s11 + $0x8] sm:$0xff]  ;;  %v428_v4 = vld [vmem:[%s2516_s11 + $0x10] sm:$0xff]  ;;  %691 = vmatpush.bf16.msra.mxu2 %v2384_v52  ;;  %v496_v44 = vpack.c.bf16 %v2518_v1, %v2518_v1  ;;  %vm2148_vm8 = vcmask 27648   ;;  %s2344_s14 = sshll.u32 %s3648_s26, 1  ;;  %vm1035_vm9 = vcmask 25600  }
  0x10   : > { %v440_v5 = vpack.c.bf16 %v426_v2, %v426_v2  ;;  %v441_v6 = vpack.c.bf16 %v427_v3, %v427_v3  ;;  %v458_v7 = vrot.slane %v426_v2, 1  ;;  %v461_v8 = vrot.slane %v427_v3, 1  ;;  %v429_v9 = vld [vmem:[%s2516_s11 + $0x18] sm:$0xff]  ;;  %v430_v32 = vld [vmem:[%s2516_s11 + $0x20] sm:$0xff]  ;;  %v431_v36 = vld [vmem:[%s2516_s11 + $0x28] sm:$0xff] }
  0x11   : > { %v463_v10 = vrot.slane %v428_v4, 1  ;;  %v442_v11 = vpack.c.bf16 %v428_v4, %v428_v4  ;;  %v443_v12 = vpack.c.bf16 %v429_v9, %v429_v9  ;;  %v465_v20 = vrot.slane %v429_v9, 1  ;;  %v432_v41 = vld [vmem:[%s2516_s11 + $0x30] sm:$0xff]  ;;  %v433_v53 = vld [vmem:[%s2516_s11 + $0x38] sm:$0xff]  ;;  %s3091_s11 = scalar_lea.vmem %s3627_s7, %s2382_s30 }
  0x12   : > { %v510_v13 = vunpack.c.l.b16 %v440_v5  ;;  %v511_v14 = vunpack.c.l.b16 %v441_v6  ;;  %v460_v15 = vsel %vm457_vm0, %v458_v7, %v2518_v1  ;;  %v462_v16 = vsel %vm457_vm0, %v461_v8, %v2518_v1 }
  0x13   : > { %v464_v17 = vsel %vm457_vm0, %v463_v10, %v2518_v1  ;;  %v483_v18 = vpack.c.bf16 %v460_v15, %v460_v15  ;;  %v484_v19 = vpack.c.bf16 %v462_v16, %v462_v16  ;;  %v512_v23 = vunpack.c.l.b16 %v442_v11  ;;  %v2385_v15 = vld [vmem:[%s3625_s5] sm:$0xff] }
  0x14   : > { %v518_v21 = vpack.c.b16 %v511_v14, %v510_v13  ;;  %v485_v22 = vpack.c.bf16 %v464_v17, %v464_v17  ;;  %v513_v24 = vunpack.c.l.b16 %v443_v12  ;;  %v466_v30 = vsel %vm457_vm0, %v465_v20, %v2518_v1 }
  0x15   : > { %v576_v25 = vunpack.c.l.b16 %v483_v18  ;;  %v2530_v26 = vunpack.c.l.b16 %v484_v19  ;;  %v444_v33 = vpack.c.bf16 %v430_v32, %v430_v32  ;;  %v2549_v34 = vpack.c.b16 %v512_v23, %v511_v14  ;;  %v2386_v14 = vld [vmem:[%s3625_s5 + $0x8] sm:$0xff] }
  0x16   : > { %588 = vrot.lane.b32.xlu0 %v518_v21, %s2443_s12  ;;  %v2533_v27 = vunpack.c.l.b16 %v485_v22  ;;  %v2535_v28 = vpack.c.b16 %v513_v24, %v512_v23  ;;  %v486_v35 = vpack.c.bf16 %v466_v30, %v466_v30  ;;  %v445_v38 = vpack.c.bf16 %v431_v36, %v431_v36  ;;  %2345 = vmatmul.msk.bf16.vlgmr.msra.gmra.mxu0 %vm522_vm2, %v518_v21 }
  0x17   : > { %v2538_v29 = vpack.c.b16 %v2530_v26, %v576_v25  ;;  %v514_v37 = vunpack.c.l.b16 %v444_v33  ;;  %v469_v42 = vrot.slane %v431_v36, 1  ;;  %v467_v43 = vrot.slane %v430_v32, 1  ;;  %803 = vmatpush.bf16.msra.mxu3 %v2386_v14 }
  0x18   : > { %v715_v31 = vpack.c.b16 %v2533_v27, %v2530_v26  ;;  %590 = vrot.lane.b32.xlu2 %v2535_v28, %s2443_s12  ;;  %v2556_v40 = vunpack.c.l.b16 %v486_v35  ;;  %v446_v46 = vpack.c.bf16 %v432_v41, %v432_v41  ;;  %v515_v48 = vunpack.c.l.b16 %v445_v38 }
  0x19   : > { %727 = vrot.lane.b32.xlu1 %v2538_v29, %s2444_s13  ;;  %v2552_v39 = vpack.c.b16 %v514_v37, %v513_v24  ;;  %v468_v49 = vsel %vm457_vm0, %v467_v43, %v2518_v1  ;;  %v470_v50 = vsel %vm457_vm0, %v469_v42, %v2518_v1  ;;  %v471_v55 = vrot.slane %v432_v41, 1 }
  0x1a   : > { %v2567_v47 = vpack.c.b16 %v2556_v40, %v2533_v27  ;;  %v520_v54 = vpack.c.b16 %v515_v48, %v514_v37  ;;  %v487_v56 = vpack.c.bf16 %v468_v49, %v468_v49  ;;  %v488_v57 = vpack.c.bf16 %v470_v50, %v470_v50 }
  0x1b   : > { %v473_v58 = vrot.slane %v433_v53, 1  ;;  %v516_v59 = vunpack.c.l.b16 %v446_v46  ;;  %v472_v62 = vsel %vm457_vm0, %v471_v55, %v2518_v1  ;;  %v447_v2 = vpack.c.bf16 %v433_v53, %v433_v53  ;;  %804 = vmatpush.bf16.msra.mxu3 %v2385_v15 }
  0x1c   : > { %v580_v60 = vunpack.c.l.b16 %v487_v56  ;;  %v2586_v61 = vunpack.c.l.b16 %v488_v57  ;;  %v489_v3 = vpack.c.bf16 %v472_v62, %v472_v62  ;;  %v2446_v9 = vmov 0.0|0.0  }
  0x1d   : > { %v474_v63 = vsel %vm457_vm0, %v473_v58, %v2518_v1  ;;  %v658_v0 = vpack.c.b16 %v516_v59, %v515_v48  ;;  %v517_v6 = vunpack.c.l.b16 %v447_v2  ;;  %v655_v10 = vunpack.c.l.b16 %v2446_v9 }
  0x1e   : > { %719 = vrot.lane.b32.xlu0 %v2549_v34, %s2443_s12  ;;  %v490_v4 = vpack.c.bf16 %v474_v63, %v474_v63  ;;  %v586_v5 = vpack.c.b16 %v2586_v61, %v580_v60  ;;  %v582_v7 = vunpack.c.l.b16 %v489_v3  ;;  %v716_v30 = vpack.c.b16 %v580_v60, %v2556_v40 }
  0x1f   : > { %v521_v11 = vpack.c.b16 %v517_v6, %v516_v59  ;;  %v659_v13 = vpack.c.b16 %v655_v10, %v517_v6  ;;  %v2662_v59 = vld [vmem:[%s3626_s6] ss:$0 sm:$0xff] }
  0x20   : > { %721 = vrot.lane.b32.xlu2 %v2552_v39, %s2443_s12  ;;  %v2595_v8 = vunpack.c.l.b16 %v490_v4  ;;  %v717_v38 = vpack.c.b16 %v582_v7, %v2586_v61 }
  0x21   : > { %735 = vrot.lane.b32.xlu1 %v518_v21, %s2445_s16 }
  0x22   : > { %v587_v12 = vpack.c.b16 %v2595_v8, %v582_v7 }
  0x26   : > { %729 = vrot.lane.b32.xlu0 %v2567_v47, %s2444_s13  ;;  %2346 = vmatmul.msk.bf16.gmra.mxu0 %vm522_vm2, %v2535_v28 }
  0x28   : > { %592 = vrot.lane.b32.xlu2 %v520_v54, %s2443_s12 }
  0x29   : > { %737 = vrot.lane.b32.xlu1 %v2535_v28, %s2445_s16 }
  0x2e   : > { %723 = vrot.lane.b32.xlu0 %v658_v0, %s2443_s12 }
  0x30   : > { %739 = vrot.lane.b32.xlu2 %v520_v54, %s2445_s16 }
  0x31   : > { %731 = vrot.lane.b32.xlu1 %v586_v5, %s2444_s13 }
  0x36   : > { %594 = vrot.lane.b32.xlu0 %v521_v11, %s2443_s12  ;;  %2347 = vmatmul.msk.bf16.gmra.mxu0 %vm522_vm2, %v520_v54 }
  0x38   : > { %733 = vrot.lane.b32.xlu2 %v587_v12, %s2444_s13 }
  0x39   : > { %725 = vrot.lane.b32.xlu1 %v659_v13, %s2443_s12 }
  0x3e   : > { %741 = vrot.lane.b32.xlu0 %v521_v11, %s2445_s16  ;;  %s424_s16 = scalar_lea.vmem %s3628_s8, %s2344_s14 }
  0x46   : > { %2348 = vmatmul.msk.bf16.gmra.mxu0 %vm522_vm2, %v521_v11 }
  0x72   : > { %v591_v20 = vpop.permute.xlu2 %590 }
  0x73   : > { %v601_v28 = vsel %vm522_vm2, %v2567_v47, %v591_v20  ;;  %v714_v47 = vunpack.c.l.b16 %v496_v44 }
  0x75   : > { %v718_v50 = vpack.c.b16 %v714_v47, %v2595_v8 }
  0x7a   : > { %v722_v26 = vpop.permute.xlu2 %721 }
  0x7b   : > { %v748_v27 = vsel %vm522_vm2, %v716_v30, %v722_v26 }
  0x82   : > { %v593_v35 = vpop.permute.xlu2 %592 }
  0x83   : > { %v604_v36 = vsel %vm522_vm2, %v586_v5, %v593_v35  ;;  %v665_v37 = vsel %vm522_vm2, %v658_v0, %v593_v35 }
  0x88   : > { %v589_v16 = vpop.permute.xlu0 %588 }
  0x89   : > { %v598_v17 = vsel %vm522_vm2, %v2538_v29, %v589_v16  ;;  %v661_v18 = vsel %vm522_vm2, %v2549_v34, %v589_v16  ;;  %v663_v29 = vsel %vm522_vm2, %v2552_v39, %v591_v20 }
  0x8a   : > { %2353 = vmatmul.msk.bf16.vlgmr.msra.gmra.mxu1 %vm616_vm3, %v598_v17  ;;  %2361 = vmatmul.msk.bf16.vlgmr.msra.gmra.mxu2 %vm616_vm3, %v661_v18  ;;  %v740_v43 = vpop.permute.xlu2 %739 }
  0x8b   : > { %v728_v19 = vpop.permute.xlu1 %727 }
  0x90   : > { %v720_v21 = vpop.permute.xlu0 %719 }
  0x91   : > { %v745_v22 = vsel %vm522_vm2, %v715_v31, %v720_v21 }
  0x92   : > { %v756_v23 = vsel %vm616_vm3, %v745_v22, %v728_v19  ;;  %v734_v1 = vpop.permute.xlu2 %733 }
  0x93   : > { %v736_v24 = vpop.permute.xlu1 %735  ;;  %v548_v56 = vpop.f32.mrf.mxu0 }
  0x94   : > { %v765_v25 = vsel %vm763_vm4, %v756_v23, %v736_v24  ;;  %v549_v60 = vadd.f32 %v2662_v59, %v548_v56 }
  0x95   : > { %2373 = vmatmul.msk.bf16.vlgmr.msra.gmra.mxu3 %vm788_vm5, %v765_v25 }
  0x96   : > { %v1045_v63 = vrot.slane %v549_v60, 1  ;;  %v1046_v0 = vrot.slane %v549_v60, 2  ;;  %v1047_v2 = vrot.slane %v549_v60, 3  ;;  %v1048_v3 = vrot.slane %v549_v60, 4 }
  0x97   : > { %v1049_v11 = vrot.slane %v549_v60, 5  ;;  %v1050_v19 = vrot.slane %v549_v60, 6  ;;  %v1051_v24 = vrot.slane %v549_v60, 7 }
  0x98   : > { %v730_v31 = vpop.permute.xlu0 %729 }
  0x99   : > { %v758_v32 = vsel %vm616_vm3, %v748_v27, %v730_v31 }
  0x9a   : > { %2354 = vmatmul.msk.bf16.gmra.mxu1 %vm616_vm3, %v601_v28  ;;  %2362 = vmatmul.msk.bf16.gmra.mxu2 %vm616_vm3, %v663_v29 }
  0x9b   : > { %v738_v33 = vpop.permute.xlu1 %737  ;;  %v550_v57 = vpop.f32.mrf.mxu0 }
  0x9c   : > { %v767_v34 = vsel %vm763_vm4, %v758_v32, %v738_v33 }
  0xa0   : > { %v724_v39 = vpop.permute.xlu0 %723 }
  0xa1   : > { %v751_v40 = vsel %vm522_vm2, %v717_v38, %v724_v39 }
  0xa3   : > { %v732_v41 = vpop.permute.xlu1 %731  ;;  %v2657_v58 = vpop.f32.mrf.mxu0 }
  0xa4   : > { %v760_v42 = vsel %vm616_vm3, %v751_v40, %v732_v41  ;;  %v2685_v40 = vadd.f32 %v2662_v59, %v550_v57 }
  0xa5   : > { %2374 = vmatmul.msk.bf16.gmra.mxu3 %vm788_vm5, %v767_v34  ;;  %v769_v45 = vsel %vm763_vm4, %v760_v42, %v740_v43 }
  0xa6   : > { %v828_v47 = vsel %vm826_vm7, %v2685_v40, 0.0  ;;  %v1052_v57 = vrot.slane %v2685_v40, 1 }
  0xa8   : > { %v595_v46 = vpop.permute.xlu0 %594 }
  0xa9   : > { %v607_v48 = vsel %vm522_vm2, %v587_v12, %v595_v46  ;;  %v667_v49 = vsel %vm522_vm2, %v659_v13, %v595_v46  ;;  %v848_v46 = vmul.f32 %v549_v60, %v549_v60 }
  0xaa   : > { %2355 = vmatmul.msk.bf16.gmra.mxu1 %vm616_vm3, %v604_v36  ;;  %2363 = vmatmul.msk.bf16.gmra.mxu2 %vm616_vm3, %v665_v37 }
  0xab   : > { %v726_v51 = vpop.permute.xlu1 %725  ;;  %v2666_v6 = vpop.f32.mrf.mxu0 }
  0xac   : > { %v754_v52 = vsel %vm522_vm2, %v718_v50, %v726_v51  ;;  %v849_v50 = vmul.f32 %v2685_v40, %v2685_v40  ;;  %v2699_v51 = vadd.f32 %v2662_v59, %v2657_v58 }
  0xad   : > { %v762_v53 = vsel %vm616_vm3, %v754_v52, %v734_v1 }
  0xb0   : > { %v742_v54 = vpop.permute.xlu0 %741 }
  0xb1   : > { %v771_v55 = vsel %vm763_vm4, %v762_v53, %v742_v54  ;;  %v856_v54 = vsel %vm826_vm7, %v848_v46, 0.0 }
  0xb3   : > { %v558_v38 = vpop.f32.mrf.mxu0 }
  0xb5   : > { %2375 = vmatmul.msk.bf16.gmra.mxu3 %vm788_vm5, %v769_v45  ;;  %v827_v45 = vsel %vm826_vm7, %v549_v60, 0.0 }
  0xb6   : > { %v829_v52 = vadd.f32 %v828_v47, %v827_v45 }
  0xba   : > { %2356 = vmatmul.msk.bf16.gmra.mxu1 %vm616_vm3, %v607_v48  ;;  %2364 = vmatmul.msk.bf16.gmra.mxu2 %vm616_vm3, %v667_v49 }
  0xc5   : > { %2376 = vmatmul.msk.bf16.gmra.mxu3 %vm788_vm5, %v771_v55  ;;  %v830_v55 = vsel %vm826_vm7, %v2699_v51, 0.0 }
 0x107   : > { %v634_v61 = vpop.f32.mrf.mxu1 }
 0x108   : > { %v635_v62 = vadd.f32 %v2662_v59, %v634_v61 }
 0x10a   : > { %v1165_v4 = vrot.slane %v635_v62, 1  ;;  %v1166_v5 = vrot.slane %v635_v62, 2  ;;  %v1167_v7 = vrot.slane %v635_v62, 3  ;;  %v1168_v8 = vrot.slane %v635_v62, 4 }
 0x10b   : > { %v1169_v9 = vrot.slane %v635_v62, 5  ;;  %v1170_v10 = vrot.slane %v635_v62, 6  ;;  %v1171_v12 = vrot.slane %v635_v62, 7  ;;  %v1221_v13 = vperm.slane %v635_v62, 0 }
 0x10c   : > { %v1222_v14 = vperm.slane %v1165_v4, 0  ;;  %v1223_v15 = vperm.slane %v1166_v5, 0  ;;  %v1224_v16 = vperm.slane %v1167_v7, 0  ;;  %v1225_v17 = vperm.slane %v1168_v8, 0  ;;  %v560_v5 = vpop.f32.mrf.mxu0 }
 0x10d   : > { %v1226_v18 = vperm.slane %v1169_v9, 0  ;;  %v1227_v20 = vperm.slane %v1170_v10, 0  ;;  %v1349_v21 = vsel %vm877_vm6, %v549_v60, %v1221_v13  ;;  %v693_v23 = vpop.f32.mrf.mxu2  ;;  %v1228_v25 = vperm.slane %v1171_v12, 0 }
 0x10e   : > { %v1350_v22 = vsel %vm877_vm6, %v1045_v63, %v1222_v14  ;;  %v1351_v28 = vsel %vm877_vm6, %v1046_v0, %v1223_v15  ;;  %v1352_v29 = vsel %vm877_vm6, %v1047_v2, %v1224_v16  ;;  %1917 = vst [vmem:[#allocation1] ss:$4 sm:$0xff] %v1349_v21  ;;  %v1353_v26 = vsel %vm877_vm6, %v1048_v3, %v1225_v17 }
 0x10f   : > { %v636_v30 = vpop.f32.mrf.mxu1  ;;  %1919 = vst [vmem:[#allocation1 + $0x1] ss:$4 sm:$0xff] %v1350_v22  ;;  %v1354_v31 = vsel %vm877_vm6, %v1049_v11, %v1226_v18  ;;  %v900_v32 = vmul.f32 %v635_v62, %v635_v62  ;;  %v1355_v33 = vsel %vm877_vm6, %v1050_v19, %v1227_v20  ;;  %v1356_v34 = vsel %vm877_vm6, %v1051_v24, %v1228_v25 }
 0x110   : > { %v2674_v27 = vadd.f32 %v2662_v59, %v636_v30  ;;  %1921 = vst [vmem:[#allocation1 + $0x2] ss:$4 sm:$0xff] %v1351_v28  ;;  %v879_v35 = vsel %vm826_vm7, %v635_v62, 0.0  ;;  %v2690_v43 = vadd.f32 %v2662_v59, %v693_v23  ;;  %v857_v62 = vsel %vm826_vm7, %v849_v50, 0.0 }
 0x111   : > { %1923 = vst [vmem:[#allocation1 + $0x3] ss:$4 sm:$0xff] %v1352_v29  ;;  %v908_v41 = vsel %vm826_vm7, %v900_v32, 0.0  ;;  %v1053_v63 = vrot.slane %v2685_v40, 2  ;;  %v2723_v0 = vadd.f32 %v2662_v59, %v2666_v6  ;;  %v831_v3 = vadd.f32 %v830_v55, %v829_v52 }
 0x112   : > { %1925 = vst [vmem:[#allocation1 + $0x20] ss:$4 sm:$0xff] %v1353_v26  ;;  %v880_v36 = vsel %vm826_vm7, %v2674_v27, 0.0  ;;  %v901_v37 = vmul.f32 %v2674_v27, %v2674_v27  ;;  %v952_v1 = vmul.f32 %v2690_v43, %v2690_v43  ;;  %v931_v58 = vsel %vm826_vm7, %v2690_v43, 0.0 }
 0x113   : > { %1927 = vst [vmem:[#allocation1 + $0x21] ss:$4 sm:$0xff] %v1354_v31  ;;  %v881_v39 = vadd.f32 %v880_v36, %v879_v35  ;;  %v850_v4 = vmul.f32 %v2699_v51, %v2699_v51  ;;  %v832_v9 = vsel %vm826_vm7, %v2723_v0, 0.0  ;;  %v1054_v12 = vrot.slane %v2685_v40, 3 }
 0x114   : > { %1929 = vst [vmem:[#allocation1 + $0x22] ss:$4 sm:$0xff] %v1355_v33  ;;  %v909_v42 = vsel %vm826_vm7, %v901_v37, 0.0  ;;  %v960_v7 = vsel %vm826_vm7, %v952_v1, 0.0  ;;  %v1055_v13 = vrot.slane %v2685_v40, 4  ;;  %v1056_v14 = vrot.slane %v2685_v40, 5 }
 0x115   : > { %1931 = vst [vmem:[#allocation1 + $0x23] ss:$4 sm:$0xff] %v1356_v34  ;;  %v910_v44 = vadd.f32 %v909_v42, %v908_v41  ;;  %v695_v48 = vpop.f32.mrf.mxu2  ;;  %v858_v17 = vadd.f32 %v857_v62, %v856_v54  ;;  %v1057_v18 = vrot.slane %v2685_v40, 6  ;;  %v2746_v19 = vadd.f32 %v2662_v59, %v558_v38 }
 0x116   : > { %v2704_v53 = vadd.f32 %v2662_v59, %v695_v48  ;;  %v859_v21 = vsel %vm826_vm7, %v850_v4, 0.0  ;;  %v833_v22 = vadd.f32 %v832_v9, %v831_v3  ;;  %v851_v23 = vmul.f32 %v2723_v0, %v2723_v0  ;;  %v563_v48 = vpop.f32.mrf.mxu0 }
 0x117   : > { %v639_v49 = vpop.f32.mrf.mxu1  ;;  %v1058_v25 = vrot.slane %v2685_v40, 7  ;;  %v1059_v28 = vrot.slane %v2699_v51, 1  ;;  %v834_v29 = vsel %vm826_vm7, %v2746_v19, 0.0  ;;  %v1060_v26 = vrot.slane %v2699_v51, 2 }
 0x118   : > { %v2710_v56 = vadd.f32 %v2662_v59, %v639_v49  ;;  %v932_v60 = vsel %vm826_vm7, %v2704_v53, 0.0  ;;  %v953_v61 = vmul.f32 %v2704_v53, %v2704_v53  ;;  %v806_v16 = vpop.f32.mrf.mxu3  ;;  %v1061_v31 = vrot.slane %v2699_v51, 3 }
 0x119   : > { %v2725_v2 = vadd.f32 %v932_v60, %v931_v58  ;;  %v2759_v30 = vadd.f32 %v2662_v59, %v806_v16  ;;  %v1062_v32 = vrot.slane %v2699_v51, 4  ;;  %v1063_v33 = vrot.slane %v2699_v51, 5 }
 0x11a   : > { %v961_v8 = vsel %vm826_vm7, %v953_v61, 0.0  ;;  %v882_v6 = vsel %vm826_vm7, %v2710_v56, 0.0  ;;  %v902_v11 = vmul.f32 %v2710_v56, %v2710_v56  ;;  %v860_v34 = vadd.f32 %v859_v21, %v858_v17 }
 0x11b   : > { %v2733_v10 = vadd.f32 %v961_v8, %v960_v7  ;;  %v2742_v15 = vadd.f32 %v882_v6, %v881_v39  ;;  %v1064_v35 = vrot.slane %v2699_v51, 6  ;;  %v1065_v36 = vrot.slane %v2699_v51, 7  ;;  %v2785_v7 = vld.sshfl [vmem:[#allocation1] sm:$0xff pattern:$0x73625140] }
 0x11c   : > { %v911_v20 = vsel %vm826_vm7, %v902_v11, 0.0  ;;  %v1066_v37 = vrot.slane %v2723_v0, 1  ;;  %v861_v38 = vsel %vm826_vm7, %v851_v23, 0.0  ;;  %v835_v39 = vadd.f32 %v834_v29, %v833_v22 }
 0x11d   : > { %v2752_v24 = vadd.f32 %v911_v20, %v910_v44  ;;  %v852_v41 = vmul.f32 %v2746_v19, %v2746_v19  ;;  %v2772_v42 = vadd.f32 %v2662_v59, %v560_v5  ;;  %v1421_v44 = vrot.slane %v2690_v43, 1  ;;  %v698_v5 = vpop.f32.mrf.mxu2 }
 0x11e   : > { %v1422_v45 = vrot.slane %v2690_v43, 2  ;;  %v1541_v46 = vrot.slane %v2759_v30, 1  ;;  %v1542_v47 = vrot.slane %v2759_v30, 2  ;;  %v1543_v49 = vrot.slane %v2759_v30, 3 }
 0x11f   : > { %v1544_v50 = vrot.slane %v2759_v30, 4  ;;  %v1545_v52 = vrot.slane %v2759_v30, 5  ;;  %v1546_v1 = vrot.slane %v2759_v30, 6  ;;  %v1423_v54 = vrot.slane %v2690_v43, 3 }
 0x120   : > { %v1547_v55 = vrot.slane %v2759_v30, 7  ;;  %v1597_v58 = vperm.slane %v2759_v30, 0  ;;  %v1598_v60 = vperm.slane %v1541_v46, 0  ;;  %v1599_v61 = vperm.slane %v1542_v47, 0 }
 0x121   : > { %v1600_v62 = vperm.slane %v1543_v49, 0  ;;  %v1601_v3 = vperm.slane %v1544_v50, 0  ;;  %v1602_v4 = vperm.slane %v1545_v52, 0  ;;  %v1424_v8 = vrot.slane %v2690_v43, 4 }
 0x122   : > { %v1603_v9 = vperm.slane %v1546_v1, 0  ;;  %v1725_v6 = vsel %vm877_vm6, %v2690_v43, %v1597_v58  ;;  %v1726_v11 = vsel %vm877_vm6, %v1421_v44, %v1598_v60  ;;  %v1425_v16 = vrot.slane %v2690_v43, 5  ;;  %v2807_v52 = vld.sshfl [vmem:[#allocation1 + $0x20] sm:$0xff pattern:$0x73625140] }
 0x123   : > { %v1604_v17 = vperm.slane %v1547_v55, 0  ;;  %v1727_v20 = vsel %vm877_vm6, %v1422_v45, %v1599_v61  ;;  %v1728_v21 = vsel %vm877_vm6, %v1423_v54, %v1600_v62  ;;  %1934 = vst [vmem:[#allocation1] ss:$4 sm:$0xff] %v1725_v6  ;;  %v836_v22 = vsel %vm826_vm7, %v2772_v42, 0.0 }
 0x124   : > { %v1426_v23 = vrot.slane %v2690_v43, 6  ;;  %v1729_v29 = vsel %vm877_vm6, %v1424_v8, %v1601_v3  ;;  %1935 = vst [vmem:[#allocation1 + $0x1] ss:$4 sm:$0xff] %v1726_v11  ;;  %v2799_v46 = vadd.f32 %v2662_v59, %v698_v5  ;;  %v1427_v44 = vrot.slane %v2690_v43, 7  ;;  %v808_v3 = vpop.f32.mrf.mxu3  ;;  %v565_v8 = vpop.f32.mrf.mxu0 }
 0x125   : > { %v2803_v47 = vadd.f32 %v2662_v59, %v563_v48  ;;  %v1172_v45 = vrot.slane %v2674_v27, 1  ;;  %v1730_v49 = vsel %vm877_vm6, %v1425_v16, %v1602_v4  ;;  %1936 = vst [vmem:[#allocation1 + $0x2] ss:$4 sm:$0xff] %v1727_v20  ;;  %v862_v50 = vadd.f32 %v861_v38, %v860_v34 }
 0x126   : > { %v1731_v1 = vsel %vm877_vm6, %v1426_v23, %v1603_v9  ;;  %1937 = vst [vmem:[#allocation1 + $0x3] ss:$4 sm:$0xff] %v1728_v21  ;;  %v934_v54 = vsel %vm826_vm7, %v2799_v46, 0.0  ;;  %v954_v43 = vmul.f32 %v2799_v46, %v2799_v46  ;;  %v863_v48 = vsel %vm826_vm7, %v852_v41, 0.0 }
 0x127   : > { %v1173_v55 = vrot.slane %v2674_v27, 2  ;;  %v1732_v58 = vsel %vm877_vm6, %v1427_v44, %v1604_v17  ;;  %1938 = vst [vmem:[#allocation1 + $0x20] ss:$4 sm:$0xff] %v1729_v29  ;;  %v2818_v34 = vadd.f32 %v934_v54, %v2725_v2  ;;  %v837_v38 = vadd.f32 %v836_v22, %v835_v39 }
 0x128   : > { %v853_v60 = vmul.f32 %v2772_v42, %v2772_v42  ;;  %v1174_v61 = vrot.slane %v2674_v27, 3  ;;  %1939 = vst [vmem:[#allocation1 + $0x21] ss:$4 sm:$0xff] %v1730_v49  ;;  %v963_v62 = vsel %vm826_vm7, %v954_v43, 0.0  ;;  %v854_v41 = vmul.f32 %v2803_v47, %v2803_v47 }
 0x129   : > { %v1175_v4 = vrot.slane %v2674_v27, 4  ;;  %v1229_v5 = vperm.slane %v2674_v27, 0  ;;  %1940 = vst [vmem:[#allocation1 + $0x22] ss:$4 sm:$0xff] %v1731_v1  ;;  %v2829_v2 = vadd.f32 %v963_v62, %v2733_v10  ;;  %v1067_v39 = vrot.slane %v2723_v0, 2 }
 0x12a   : > { %v838_v9 = vsel %vm826_vm7, %v2803_v47, 0.0  ;;  %v1176_v6 = vrot.slane %v2674_v27, 5  ;;  %v1230_v11 = vperm.slane %v1172_v45, 0  ;;  %1941 = vst [vmem:[#allocation1 + $0x23] ss:$4 sm:$0xff] %v1732_v58  ;;  %v864_v16 = vadd.f32 %v863_v48, %v862_v50 }
 0x12b   : > { %v1177_v17 = vrot.slane %v2674_v27, 6  ;;  %v1231_v20 = vperm.slane %v1173_v55, 0  ;;  %v2837_v21 = vadd.f32 %v2662_v59, %v808_v3  ;;  %v865_v22 = vsel %vm826_vm7, %v853_v60, 0.0 }
 0x12c   : > { %v1178_v10 = vrot.slane %v2674_v27, 7  ;;  %v1232_v23 = vperm.slane %v1174_v61, 0  ;;  %v2842_v29 = vadd.f32 %v2662_v59, %v565_v8  ;;  %v839_v44 = vadd.f32 %v838_v9, %v837_v38 }
 0x12d   : > { %v867_v49 = vsel %vm826_vm7, %v854_v41, 0.0  ;;  %v1233_v45 = vperm.slane %v1175_v4, 0  ;;  %v1357_v50 = vsel %vm877_vm6, %v2685_v40, %v1229_v5  ;;  %v2847_v1 = vld.sshfl [vmem:[#allocation1] sm:$0xff pattern:$0x73625140]  ;;  %v1234_v54 = vperm.slane %v1176_v6, 0 }
 0x12e   : > { %v1358_v43 = vsel %vm877_vm6, %v1052_v57, %v1230_v11  ;;  %v840_v27 = vsel %vm826_vm7, %v2842_v29, 0.0  ;;  %v1004_v48 = vmul.f32 %v2759_v30, %v2759_v30  ;;  %1944 = vst [vmem:[#allocation1] ss:$4 sm:$0xff] %v1357_v50  ;;  %v1235_v55 = vperm.slane %v1177_v17, 0 }
 0x12f   : > { %v1359_v58 = vsel %vm877_vm6, %v1053_v63, %v1231_v20  ;;  %v983_v38 = vsel %vm826_vm7, %v2759_v30, 0.0  ;;  %1945 = vst [vmem:[#allocation1 + $0x1] ss:$4 sm:$0xff] %v1358_v43  ;;  %v984_v60 = vsel %vm826_vm7, %v2837_v21, 0.0  ;;  %v1236_v57 = vperm.slane %v1178_v10, 0 }
 0x130   : > { %v1360_v61 = vsel %vm877_vm6, %v1054_v12, %v1232_v23  ;;  %1946 = vst [vmem:[#allocation1 + $0x2] ss:$4 sm:$0xff] %v1359_v58  ;;  %v2866_v62 = vadd.f32 %v984_v60, %v983_v38  ;;  %v1005_v3 = vmul.f32 %v2837_v21, %v2837_v21  ;;  %v866_v41 = vadd.f32 %v865_v22, %v864_v16  ;;  %v811_v58 = vpop.f32.mrf.mxu3 }
 0x131   : > { %v1361_v63 = vsel %vm877_vm6, %v1055_v13, %v1233_v45  ;;  %v855_v30 = vmul.f32 %v2842_v29, %v2842_v29  ;;  %v2875_v4 = vld.sshfl [vmem:[#allocation1 + $0x20] sm:$0xff pattern:$0x73625140]  ;;  %1947 = vst [vmem:[#allocation1 + $0x3] ss:$4 sm:$0xff] %v1360_v61  ;;  %v1548_v5 = vrot.slane %v2837_v21, 1  ;;  %v1362_v12 = vsel %vm877_vm6, %v1056_v14, %v1234_v54 }
 0x132   : > { %v1012_v8 = vsel %vm826_vm7, %v1004_v48, 0.0  ;;  %1948 = vst [vmem:[#allocation1 + $0x20] ss:$4 sm:$0xff] %v1361_v63  ;;  %v1013_v9 = vsel %vm826_vm7, %v1005_v3, 0.0  ;;  %v1549_v6 = vrot.slane %v2837_v21, 2  ;;  %v1068_v13 = vrot.slane %v2723_v0, 3 }
 0x133   : > { %v1363_v11 = vsel %vm877_vm6, %v1057_v18, %v1235_v55  ;;  %1949 = vst [vmem:[#allocation1 + $0x21] ss:$4 sm:$0xff] %v1362_v12  ;;  %v2888_v16 = vadd.f32 %v1013_v9, %v1012_v8  ;;  %v1550_v17 = vrot.slane %v2837_v21, 3  ;;  %v1364_v14 = vsel %vm877_vm6, %v1058_v25, %v1236_v57 }
 0x134   : > { %v841_v20 = vadd.f32 %v840_v27, %v839_v44  ;;  %1950 = vst [vmem:[#allocation1 + $0x22] ss:$4 sm:$0xff] %v1363_v11  ;;  %v1551_v22 = vrot.slane %v2837_v21, 4  ;;  %v1605_v10 = vperm.slane %v2837_v21, 0  ;;  %v1069_v23 = vrot.slane %v2723_v0, 4 }
 0x135   : > { %v868_v45 = vadd.f32 %v867_v49, %v866_v41  ;;  %1951 = vst [vmem:[#allocation1 + $0x23] ss:$4 sm:$0xff] %v1364_v14  ;;  %v1552_v18 = vrot.slane %v2837_v21, 5  ;;  %v1606_v50 = vperm.slane %v1548_v5, 0  ;;  %v1070_v54 = vrot.slane %v2723_v0, 5 }
 0x136   : > { %v869_v43 = vsel %vm826_vm7, %v855_v30, 0.0  ;;  %v1553_v40 = vrot.slane %v2837_v21, 6  ;;  %v1607_v25 = vperm.slane %v1549_v6, 0  ;;  %v1071_v44 = vrot.slane %v2723_v0, 6 }
 0x137   : > { %v1428_v27 = vrot.slane %v2704_v53, 1  ;;  %v1554_v48 = vrot.slane %v2837_v21, 7  ;;  %v1608_v55 = vperm.slane %v1550_v17, 0  ;;  %v1429_v49 = vrot.slane %v2704_v53, 2 }
 0x138   : > { %v842_v38 = vrot.slane %v841_v20, 4  ;;  %v2905_v60 = vld.sshfl [vmem:[#allocation1] sm:$0xff pattern:$0x73625140]  ;;  %v1609_v57 = vperm.slane %v1551_v22, 0  ;;  %v1733_v61 = vsel %vm877_vm6, %v2704_v53, %v1605_v10  ;;  %v1430_v3 = vrot.slane %v2704_v53, 3 }
 0x139   : > { %v870_v41 = vadd.f32 %v869_v43, %v868_v45  ;;  %v1610_v63 = vperm.slane %v1552_v18, 0  ;;  %v1734_v30 = vsel %vm877_vm6, %v1428_v27, %v1606_v50  ;;  %1954 = vst [vmem:[#allocation1] ss:$4 sm:$0xff] %v1733_v61  ;;  %v1431_v21 = vrot.slane %v2704_v53, 4 }
 0x13a   : > { %v1611_v5 = vperm.slane %v1553_v40, 0  ;;  %v1735_v12 = vsel %vm877_vm6, %v1429_v49, %v1607_v25  ;;  %1955 = vst [vmem:[#allocation1 + $0x1] ss:$4 sm:$0xff] %v1734_v30  ;;  %v2914_v8 = vadd.f32 %v2662_v59, %v811_v58  ;;  %v1432_v9 = vrot.slane %v2704_v53, 5 }
 0x13b   : > { %v1433_v6 = vrot.slane %v2704_v53, 6  ;;  %v1612_v11 = vperm.slane %v1554_v48, 0  ;;  %v1736_v17 = vsel %vm877_vm6, %v1430_v3, %v1608_v55  ;;  %1956 = vst [vmem:[#allocation1 + $0x2] ss:$4 sm:$0xff] %v1735_v12  ;;  %v1179_v14 = vrot.slane %v2710_v56, 1 }
 0x13c   : > { %v2920_v22 = vld.sshfl [vmem:[#allocation1 + $0x20] sm:$0xff pattern:$0x73625140]  ;;  %v1737_v10 = vsel %vm877_vm6, %v1431_v21, %v1609_v57  ;;  %1957 = vst [vmem:[#allocation1 + $0x3] ss:$4 sm:$0xff] %v1736_v17  ;;  %v1434_v45 = vrot.slane %v2704_v53, 7  ;;  %v1738_v43 = vsel %vm877_vm6, %v1432_v9, %v1610_v63  ;;  %v1006_v48 = vmul.f32 %v2914_v8, %v2914_v8 }
 0x13d   : > { %v871_v18 = vrot.slane %v870_v41, 4  ;;  %v1180_v50 = vrot.slane %v2710_v56, 2  ;;  %1958 = vst [vmem:[#allocation1 + $0x20] ss:$4 sm:$0xff] %v1737_v10  ;;  %v1072_v40 = vrot.slane %v2723_v0, 7  ;;  %v1181_v25 = vrot.slane %v2710_v56, 3 }
 0x13e   : > { %v1739_v27 = vsel %vm877_vm6, %v1433_v6, %v1611_v5  ;;  %1959 = vst [vmem:[#allocation1 + $0x21] ss:$4 sm:$0xff] %v1738_v43  ;;  %v1182_v53 = vrot.slane %v2710_v56, 4  ;;  %v1237_v58 = vperm.slane %v2710_v56, 0  ;;  %v1740_v49 = vsel %vm877_vm6, %v1434_v45, %v1612_v11 }
 0x13f   : > { %1960 = vst [vmem:[#allocation1 + $0x22] ss:$4 sm:$0xff] %v1739_v27  ;;  %v1183_v3 = vrot.slane %v2710_v56, 5  ;;  %v1238_v63 = vperm.slane %v1179_v14, 0  ;;  %v843_v30 = vadd.f32 %v842_v38, %v841_v20  ;;  %v872_v21 = vadd.f32 %v871_v18, %v870_v41 }
 0x140   : > { %1961 = vst [vmem:[#allocation1 + $0x23] ss:$4 sm:$0xff] %v1740_v49  ;;  %v1184_v5 = vrot.slane %v2710_v56, 6  ;;  %v1239_v12 = vperm.slane %v1180_v50, 0  ;;  %v1185_v9 = vrot.slane %v2710_v56, 7  ;;  %v1240_v6 = vperm.slane %v1181_v25, 0  ;;  %v641_v49 = vpop.f32.mrf.mxu1 }
 0x141   : > { %v986_v11 = vsel %vm826_vm7, %v2914_v8, 0.0  ;;  %v1015_v17 = vsel %vm826_vm7, %v1006_v48, 0.0  ;;  %v1241_v10 = vperm.slane %v1182_v53, 0  ;;  %v1365_v45 = vsel %vm877_vm6, %v2699_v51, %v1237_v58 }
 0x142   : > { %v2948_v20 = vadd.f32 %v986_v11, %v2866_v62  ;;  %v2951_v38 = vadd.f32 %v1015_v17, %v2888_v16  ;;  %v1242_v14 = vperm.slane %v1183_v3, 0  ;;  %v1366_v18 = vsel %vm877_vm6, %v1059_v28, %v1238_v63 }
 0x143   : > { %v2945_v43 = vld.sshfl [vmem:[#allocation1] sm:$0xff pattern:$0x73625140]  ;;  %v844_v25 = vrot.slane %v843_v30, 2  ;;  %v1243_v27 = vperm.slane %v1184_v5, 0  ;;  %v1367_v62 = vsel %vm877_vm6, %v1060_v26, %v1239_v12  ;;  %v873_v48 = vrot.slane %v872_v21, 2 }
 0x144   : > { %1964 = vst [vmem:[#allocation1] ss:$4 sm:$0xff] %v1365_v45  ;;  %v1244_v53 = vperm.slane %v1185_v9, 0  ;;  %v1368_v58 = vsel %vm877_vm6, %v1061_v31, %v1240_v6  ;;  %v1369_v28 = vsel %vm877_vm6, %v1062_v32, %v1241_v10  ;;  %v1555_v26 = vrot.slane %v2914_v8, 1 }
 0x145   : > { %1965 = vst [vmem:[#allocation1 + $0x1] ss:$4 sm:$0xff] %v1366_v18  ;;  %v1370_v12 = vsel %vm877_vm6, %v1063_v33, %v1242_v14  ;;  %v1556_v31 = vrot.slane %v2914_v8, 2  ;;  %v845_v32 = vadd.f32 %v844_v25, %v843_v30  ;;  %v1371_v6 = vsel %vm877_vm6, %v1064_v35, %v1243_v27 }
 0x146   : > { %1966 = vst [vmem:[#allocation1 + $0x2] ss:$4 sm:$0xff] %v1367_v62  ;;  %v1557_v11 = vrot.slane %v2914_v8, 3  ;;  %v1372_v10 = vsel %vm877_vm6, %v1065_v36, %v1244_v53  ;;  %v1558_v33 = vrot.slane %v2914_v8, 4  ;;  %v1613_v45 = vperm.slane %v2914_v8, 0 }
 0x147   : > { %v2969_v3 = vld.sshfl [vmem:[#allocation1 + $0x20] sm:$0xff pattern:$0x73625140]  ;;  %1967 = vst [vmem:[#allocation1 + $0x3] ss:$4 sm:$0xff] %v1368_v58  ;;  %v874_v14 = vadd.f32 %v873_v48, %v872_v21  ;;  %v1435_v30 = vrot.slane %v2799_v46, 1  ;;  %v642_v48 = vadd.f32 %v2662_v59, %v641_v49 }
 0x148   : > { %1968 = vst [vmem:[#allocation1 + $0x20] ss:$4 sm:$0xff] %v1369_v28  ;;  %v1559_v35 = vrot.slane %v2914_v8, 5  ;;  %v1614_v18 = vperm.slane %v1555_v26, 0  ;;  %v1436_v27 = vrot.slane %v2799_v46, 2  ;;  %v1560_v51 = vrot.slane %v2914_v8, 6  ;;  %v644_v16 = vpop.f32.mrf.mxu1 }
 0x149   : > { %1969 = vst [vmem:[#allocation1 + $0x21] ss:$4 sm:$0xff] %v1370_v12  ;;  %v1615_v62 = vperm.slane %v1556_v31, 0  ;;  %v846_v36 = vrot.slane %v845_v32, 1  ;;  %v1437_v53 = vrot.slane %v2799_v46, 3  ;;  %v1561_v58 = vrot.slane %v2914_v8, 7  ;;  %v700_v31 = vpop.f32.mrf.mxu2 }
 0x14a   : > { %1970 = vst [vmem:[#allocation1 + $0x22] ss:$4 sm:$0xff] %v1371_v6  ;;  %v1616_v28 = vperm.slane %v1557_v11, 0  ;;  %v1438_v21 = vrot.slane %v2799_v46, 4  ;;  %v1617_v26 = vperm.slane %v1558_v33, 0  ;;  %v1741_v6 = vsel %vm877_vm6, %v2799_v46, %v1613_v45 }
 0x14b   : > { %1971 = vst [vmem:[#allocation1 + $0x23] ss:$4 sm:$0xff] %v1372_v10  ;;  %v875_v10 = vrot.slane %v874_v14, 1  ;;  %v1439_v25 = vrot.slane %v2799_v46, 5  ;;  %v1618_v17 = vperm.slane %v1559_v35, 0  ;;  %v1742_v9 = vsel %vm877_vm6, %v1435_v30, %v1614_v18 }
 0x14c   : > { %v1440_v8 = vrot.slane %v2799_v46, 6  ;;  %v1441_v11 = vrot.slane %v2799_v46, 7  ;;  %v1619_v5 = vperm.slane %v1560_v51, 0  ;;  %v1743_v49 = vsel %vm877_vm6, %v1436_v27, %v1615_v62 }
 0x14d   : > { %v1186_v33 = vrot.slane %v642_v48, 1  ;;  %v1187_v63 = vrot.slane %v642_v48, 2  ;;  %v1620_v45 = vperm.slane %v1561_v58, 0  ;;  %v1744_v50 = vsel %vm877_vm6, %v1437_v53, %v1616_v28 }
 0x14e   : > { %v2998_v12 = vld.sshfl [vmem:[#allocation1] sm:$0xff pattern:$0x73625140]  ;;  %v903_v41 = vmul.f32 %v642_v48, %v642_v48  ;;  %v1188_v35 = vrot.slane %v642_v48, 3  ;;  %v3011_v30 = vadd.f32 %v2662_v59, %v700_v31  ;;  %v1745_v46 = vsel %vm877_vm6, %v1438_v21, %v1617_v26 }
 0x14f   : > { %1974 = vst [vmem:[#allocation1] ss:$4 sm:$0xff] %v1741_v6  ;;  %v1189_v18 = vrot.slane %v642_v48, 4  ;;  %v1190_v27 = vrot.slane %v642_v48, 5  ;;  %v1746_v51 = vsel %vm877_vm6, %v1439_v25, %v1618_v17  ;;  %v847_v53 = vadd.f32 %v846_v36, %v845_v32  ;;  %v813_v25 = vpop.f32.mrf.mxu3 }
 0x150   : > { %1975 = vst [vmem:[#allocation1 + $0x1] ss:$4 sm:$0xff] %v1742_v9  ;;  %v1191_v9 = vrot.slane %v642_v48, 6  ;;  %v876_v58 = vadd.f32 %v875_v10, %v874_v14  ;;  %v1747_v28 = vsel %vm877_vm6, %v1440_v8, %v1619_v5  ;;  %v884_v6 = vsel %vm826_vm7, %v642_v48, 0.0 }
 0x151   : > { %1976 = vst [vmem:[#allocation1 + $0x2] ss:$4 sm:$0xff] %v1743_v49  ;;  %v1192_v31 = vrot.slane %v642_v48, 7  ;;  %v1245_v49 = vperm.slane %v642_v48, 0  ;;  %v1748_v21 = vsel %vm877_vm6, %v1441_v11, %v1620_v45  ;;  %v1246_v26 = vperm.slane %v1186_v33, 0 }
 0x152   : > { %v3008_v56 = vld.sshfl [vmem:[#allocation1 + $0x20] sm:$0xff pattern:$0x73625140]  ;;  %1977 = vst [vmem:[#allocation1 + $0x3] ss:$4 sm:$0xff] %v1744_v50  ;;  %v913_v50 = vsel %vm826_vm7, %v903_v41, 0.0  ;;  %v955_v5 = vmul.f32 %v3011_v30, %v3011_v30  ;;  %v3024_v48 = vsel %vm877_vm6, %v847_v53, %v876_v58  ;;  %v3027_v10 = vadd.f32 %v884_v6, %v2742_v15 }
 0x153   : > { %1978 = vst [vmem:[#allocation1 + $0x20] ss:$4 sm:$0xff] %v1745_v46  ;;  %v1247_v61 = vperm.slane %v1187_v63, 0  ;;  %v1248_v17 = vperm.slane %v1188_v35, 0  ;;  %v1249_v46 = vperm.slane %v1189_v18, 0  ;;  %v1250_v32 = vperm.slane %v1190_v27, 0 }
 0x154   : > { %1979 = vst [vmem:[#allocation1 + $0x21] ss:$4 sm:$0xff] %v1746_v51  ;;  %v1251_v14 = vperm.slane %v1191_v9, 0  ;;  %v3030_v41 = vadd.f32 %v2662_v59, %v644_v16  ;;  %v3033_v63 = vadd.f32 %v913_v50, %v2752_v24  ;;  %v1252_v8 = vperm.slane %v1192_v31, 0 }
 0x155   : > { %1980 = vst [vmem:[#allocation1 + $0x22] ss:$4 sm:$0xff] %v1747_v28  ;;  %v1373_v11 = vsel %vm877_vm6, %v2723_v0, %v1245_v49  ;;  %v3040_v45 = vadd.f32 %v2662_v59, %v813_v25  ;;  %v1374_v15 = vsel %vm877_vm6, %v1066_v37, %v1246_v26  ;;  %v1375_v16 = vsel %vm877_vm6, %v1067_v39, %v1247_v61 }
 0x156   : > { %1981 = vst [vmem:[#allocation1 + $0x23] ss:$4 sm:$0xff] %v1748_v21  ;;  %v1376_v24 = vsel %vm877_vm6, %v1068_v13, %v1248_v17  ;;  %v936_v35 = vsel %vm826_vm7, %v3011_v30, 0.0  ;;  %v1377_v18 = vsel %vm877_vm6, %v1069_v23, %v1249_v46  ;;  %v1378_v37 = vsel %vm877_vm6, %v1070_v54, %v1250_v32  ;;  %v3066_v13 = vpop.f32.mrf.mxu1 }
 0x157   : > { %v1379_v39 = vsel %vm877_vm6, %v1071_v44, %v1251_v14  ;;  %v3064_v61 = vsel %vm826_vm7, %v955_v5, 0.0  ;;  %v1442_v27 = vrot.slane %v3011_v30, 1  ;;  %v1443_v9 = vrot.slane %v3011_v30, 2 }
 0x158   : > { %v1444_v23 = vrot.slane %v3011_v30, 3  ;;  %v1445_v51 = vrot.slane %v3011_v30, 4  ;;  %v1380_v54 = vsel %vm877_vm6, %v1072_v40, %v1252_v8  ;;  %v3076_v44 = vadd.f32 %v936_v35, %v2818_v34 }
 0x159   : > { %v3037_v33 = vld.sshfl [vmem:[#allocation1] sm:$0xff pattern:$0x73625140]  ;;  %v904_v53 = vmul.f32 %v3030_v41, %v3030_v41  ;;  %v1562_v28 = vrot.slane %v3040_v45, 1  ;;  %v1446_v6 = vrot.slane %v3011_v30, 5  ;;  %v1447_v31 = vrot.slane %v3011_v30, 6 }
 0x15a   : > { %1984 = vst [vmem:[#allocation1] ss:$4 sm:$0xff] %v1373_v11  ;;  %v1563_v0 = vrot.slane %v3040_v45, 2  ;;  %v2116_v40 = vpack.c.bf16 %v2785_v7, %v2785_v7  ;;  %v1448_v34 = vrot.slane %v3011_v30, 7  ;;  %v1564_v49 = vrot.slane %v3040_v45, 3 }
 0x15b   : > { %1985 = vst [vmem:[#allocation1 + $0x1] ss:$4 sm:$0xff] %v1374_v15  ;;  %v2117_v21 = vpack.c.bf16 %v2807_v52, %v2807_v52  ;;  %v886_v50 = vsel %vm826_vm7, %v3030_v41, 0.0  ;;  %v1565_v7 = vrot.slane %v3040_v45, 4  ;;  %v1621_v26 = vperm.slane %v3040_v45, 0  ;;  %v703_v52 = vpop.f32.mrf.mxu2 }
 0x15c   : > { %1986 = vst [vmem:[#allocation1 + $0x2] ss:$4 sm:$0xff] %v1375_v16  ;;  %v2118_v17 = vpack.c.bf16 %v2847_v1, %v2847_v1  ;;  %v915_v25 = vsel %vm826_vm7, %v904_v53, 0.0  ;;  %v1193_v46 = vrot.slane %v3030_v41, 1  ;;  %v1566_v32 = vrot.slane %v3040_v45, 5 }
 0x15d   : > { %v3080_v58 = vld.sshfl [vmem:[#allocation1 + $0x20] sm:$0xff pattern:$0x73625140]  ;;  %1987 = vst [vmem:[#allocation1 + $0x3] ss:$4 sm:$0xff] %v1376_v24  ;;  %v1622_v14 = vperm.slane %v1562_v28, 0  ;;  %v1749_v53 = vsel %vm877_vm6, %v3011_v30, %v1621_v26 }
 0x15e   : > { %1988 = vst [vmem:[#allocation1 + $0x20] ss:$4 sm:$0xff] %v1377_v18  ;;  %v1194_v5 = vrot.slane %v3030_v41, 2  ;;  %v1195_v8 = vrot.slane %v3030_v41, 3  ;;  %v1567_v11 = vrot.slane %v3040_v45, 6  ;;  %v1623_v15 = vperm.slane %v1563_v0, 0 }
 0x15f   : > { %1989 = vst [vmem:[#allocation1 + $0x21] ss:$4 sm:$0xff] %v1378_v37  ;;  %v1196_v1 = vrot.slane %v3030_v41, 4  ;;  %v1197_v16 = vrot.slane %v3030_v41, 5  ;;  %v1568_v24 = vrot.slane %v3040_v45, 7  ;;  %v1624_v35 = vperm.slane %v1564_v49, 0 }
 0x160   : > { %1990 = vst [vmem:[#allocation1 + $0x22] ss:$4 sm:$0xff] %v1379_v39  ;;  %v2120_v18 = vpack.c.bf16 %v2905_v60, %v2905_v60  ;;  %v3121_v39 = vadd.f32 %v2662_v59, %v703_v52  ;;  %v1198_v28 = vrot.slane %v3030_v41, 6  ;;  %v1199_v0 = vrot.slane %v3030_v41, 7  ;;  %v649_v60 = vpop.f32.mrf.mxu1  ;;  %v3175_v30 = vld [vmem:[%s3626_s6] ss:$0 sm:$0xff] }
 0x161   : > { %1991 = vst [vmem:[#allocation1 + $0x23] ss:$4 sm:$0xff] %v1380_v54  ;;  %v1625_v54 = vperm.slane %v1565_v7, 0  ;;  %v1750_v49 = vsel %vm877_vm6, %v1442_v27, %v1622_v14  ;;  %v1254_v36 = vperm.slane %v1193_v46, 0  ;;  %v1627_v52 = vperm.slane %v1567_v11, 0 }
 0x162   : > { %2149 = vst.msk [vmem:[%s3091_s11] sm:$0xf] %vm2148_vm8, %v2116_v40  ;;  %v1626_v40 = vperm.slane %v1566_v32, 0  ;;  %v1751_v7 = vsel %vm877_vm6, %v1443_v9, %v1623_v15  ;;  %v1255_v62 = vperm.slane %v1194_v5, 0  ;;  %v1256_v26 = vperm.slane %v1195_v8, 0 }
 0x163   : > { %2150 = vst.msk [vmem:[%s3091_s11 + $0x4] sm:$0xf] %vm2148_vm8, %v2117_v21  ;;  %v1253_v21 = vperm.slane %v3030_v41, 0  ;;  %v1628_v57 = vperm.slane %v1568_v24, 0  ;;  %v966_v32 = vadd.f32 %v3064_v61, %v2829_v2  ;;  %v1257_v55 = vperm.slane %v1196_v1, 0 }
 0x164   : > { %v3118_v37 = vld.sshfl [vmem:[#allocation1] sm:$0xff pattern:$0x73625140]  ;;  %2151 = vst.msk [vmem:[%s3091_s11 + $0x8] sm:$0xf] %vm2148_vm8, %v2118_v17  ;;  %v1752_v17 = vsel %vm877_vm6, %v1444_v23, %v1624_v35  ;;  %v3139_v41 = vadd.f32 %v2662_v59, %v3066_v13  ;;  %v1753_v9 = vsel %vm877_vm6, %v1445_v51, %v1625_v54  ;;  %v1258_v46 = vperm.slane %v1197_v16, 0 }
 0x165   : > { %1994 = vst [vmem:[#allocation1] ss:$4 sm:$0xff] %v1749_v53  ;;  %v1259_v14 = vperm.slane %v1198_v28, 0  ;;  %v1754_v23 = vsel %vm877_vm6, %v1446_v6, %v1626_v40  ;;  %v2119_v2 = vpack.c.bf16 %v2875_v4, %v2875_v4  ;;  %v2121_v61 = vpack.c.bf16 %v2920_v22, %v2920_v22  ;;  %v3200_v53 = vpop.f32.mrf.mxu2 }
 0x166   : > { %1995 = vst [vmem:[#allocation1 + $0x1] ss:$4 sm:$0xff] %v1750_v49  ;;  %v887_v59 = vadd.f32 %v886_v50, %v3027_v10  ;;  %v916_v13 = vadd.f32 %v915_v25, %v3033_v63  ;;  %v1755_v51 = vsel %vm877_vm6, %v1447_v31, %v1627_v52  ;;  %v1260_v5 = vperm.slane %v1199_v0, 0 }
 0x167   : > { %1996 = vst [vmem:[#allocation1 + $0x2] ss:$4 sm:$0xff] %v1751_v7  ;;  %v1381_v6 = vsel %vm877_vm6, %v2746_v19, %v1253_v21  ;;  %v956_v4 = vmul.f32 %v3121_v39, %v3121_v39  ;;  %v1756_v22 = vsel %vm877_vm6, %v1448_v34, %v1628_v57  ;;  %v3629_v10 = vrot.slane %v2746_v19, 1 }
 0x168   : > { %v3135_v27 = vld.sshfl [vmem:[#allocation1 + $0x20] sm:$0xff pattern:$0x73625140]  ;;  %1997 = vst [vmem:[#allocation1 + $0x3] ss:$4 sm:$0xff] %v1752_v17  ;;  %v3630_v31 = vrot.slane %v2746_v19, 2  ;;  %v3178_v57 = vadd.f32 %v3175_v30, %v649_v60  ;;  %v905_v16 = vmul.f32 %v3139_v41, %v3139_v41  ;;  %v2122_v28 = vpack.c.bf16 %v2945_v43, %v2945_v43  ;;  %v651_v52 = vpop.f32.mrf.mxu1 }
 0x169   : > { %1998 = vst [vmem:[#allocation1 + $0x20] ss:$4 sm:$0xff] %v1753_v9  ;;  %v1382_v63 = vsel %vm877_vm6, %v3629_v10, %v1254_v36  ;;  %v3631_v25 = vrot.slane %v2746_v19, 3  ;;  %v3632_v34 = vrot.slane %v2746_v19, 4  ;;  %v3633_v11 = vrot.slane %v2746_v19, 5 }
 0x16a   : > { %1999 = vst [vmem:[#allocation1 + $0x21] ss:$4 sm:$0xff] %v1754_v23  ;;  %v1383_v50 = vsel %vm877_vm6, %v3630_v31, %v1255_v62  ;;  %v3634_v15 = vrot.slane %v2746_v19, 6  ;;  %v938_v24 = vsel %vm826_vm7, %v3121_v39, 0.0  ;;  %v1449_v35 = vrot.slane %v3121_v39, 1 }
 0x16b   : > { %2000 = vst [vmem:[#allocation1 + $0x22] ss:$4 sm:$0xff] %v1755_v51  ;;  %v1384_v8 = vsel %vm877_vm6, %v3631_v25, %v1256_v26  ;;  %v1385_v36 = vsel %vm877_vm6, %v3632_v34, %v1257_v55  ;;  %v1386_v62 = vsel %vm877_vm6, %v3633_v11, %v1258_v46  ;;  %v1450_v55 = vrot.slane %v3121_v39, 2 }
 0x16c   : > { %2001 = vst [vmem:[#allocation1 + $0x23] ss:$4 sm:$0xff] %v1756_v22  ;;  %v1387_v1 = vsel %vm877_vm6, %v3634_v15, %v1259_v14  ;;  %v1451_v54 = vrot.slane %v3121_v39, 3  ;;  %v2123_v0 = vpack.c.bf16 %v2969_v3, %v2969_v3  ;;  %v3635_v40 = vrot.slane %v2746_v19, 7 }
 0x16d   : > { %2152 = vst.msk [vmem:[%s3091_s11 + $0xc] sm:$0xf] %vm2148_vm8, %v2119_v2  ;;  %v967_v60 = vsel %vm826_vm7, %v956_v4, 0.0  ;;  %v1453_v7 = vrot.slane %v3121_v39, 5  ;;  %v888_v43 = vsel %vm826_vm7, %v3139_v41, 0.0  ;;  %v906_v19 = vmul.f32 %v3178_v57, %v3178_v57  ;;  %v816_v2 = vpop.f32.mrf.mxu3 }
 0x16e   : > { %2153 = vst.msk [vmem:[%s3091_s11 + $0x10] sm:$0xf] %vm2148_vm8, %v2120_v18  ;;  %v1388_v49 = vsel %vm877_vm6, %v3635_v40, %v1260_v5  ;;  %v1452_v18 = vrot.slane %v3121_v39, 4  ;;  %v1454_v3 = vrot.slane %v3121_v39, 6  ;;  %v1455_v26 = vrot.slane %v3121_v39, 7 }
 0x16f   : > { %v3210_v21 = vld.sshfl [vmem:[#allocation1] sm:$0xff pattern:$0x73625140]  ;;  %2154 = vst.msk [vmem:[%s3091_s11 + $0x14] sm:$0xf] %vm2148_vm8, %v2121_v61  ;;  %v917_v17 = vsel %vm826_vm7, %v905_v16, 0.0  ;;  %v3229_v61 = vadd.f32 %v3175_v30, %v651_v52  ;;  %v3232_v51 = vadd.f32 %v938_v24, %v3076_v44  ;;  %v3234_v5 = vadd.f32 %v967_v60, %v966_v32  ;;  %v708_v24 = vpop.f32.mrf.mxu2 }
 0x170   : > { %2004 = vst [vmem:[#allocation1] ss:$4 sm:$0xff] %v1381_v6  ;;  %v1200_v9 = vrot.slane %v3139_v41, 1  ;;  %v1201_v46 = vrot.slane %v3139_v41, 2  ;;  %v1202_v14 = vrot.slane %v3139_v41, 3  ;;  %v890_v23 = vsel %vm826_vm7, %v3178_v57, 0.0 }
 0x171   : > { %2005 = vst [vmem:[#allocation1 + $0x1] ss:$4 sm:$0xff] %v1382_v63  ;;  %v889_v6 = vadd.f32 %v888_v43, %v887_v59  ;;  %v1203_v4 = vrot.slane %v3139_v41, 4  ;;  %v2124_v10 = vpack.c.bf16 %v2998_v12, %v2998_v12  ;;  %v918_v63 = vadd.f32 %v917_v17, %v916_v13 }
 0x172   : > { %2006 = vst [vmem:[#allocation1 + $0x2] ss:$4 sm:$0xff] %v1383_v50  ;;  %v1204_v31 = vrot.slane %v3139_v41, 5  ;;  %v919_v50 = vsel %vm826_vm7, %v906_v19, 0.0  ;;  %v1205_v44 = vrot.slane %v3139_v41, 6  ;;  %v1206_v32 = vrot.slane %v3139_v41, 7 }
 0x173   : > { %v3237_v22 = vld.sshfl [vmem:[#allocation1 + $0x20] sm:$0xff pattern:$0x73625140]  ;;  %2007 = vst [vmem:[#allocation1 + $0x3] ss:$4 sm:$0xff] %v1384_v8  ;;  %v1261_v59 = vperm.slane %v3139_v41, 0  ;;  %v891_v25 = vadd.f32 %v890_v23, %v889_v6  ;;  %v907_v13 = vmul.f32 %v3229_v61, %v3229_v61  ;;  %v920_v15 = vadd.f32 %v919_v50, %v918_v63 }
 0x174   : > { %2008 = vst [vmem:[#allocation1 + $0x20] ss:$4 sm:$0xff] %v1385_v36  ;;  %v1262_v34 = vperm.slane %v1200_v9, 0  ;;  %v1263_v8 = vperm.slane %v1201_v46, 0  ;;  %v892_v12 = vsel %vm826_vm7, %v3229_v61, 0.0  ;;  %v2125_v36 = vpack.c.bf16 %v3008_v56, %v3008_v56 }
 0x175   : > { %2009 = vst [vmem:[#allocation1 + $0x21] ss:$4 sm:$0xff] %v1386_v62  ;;  %v1264_v11 = vperm.slane %v1202_v14, 0  ;;  %v893_v41 = vadd.f32 %v892_v12, %v891_v25  ;;  %v2126_v62 = vpack.c.bf16 %v3037_v33, %v3037_v33  ;;  %v1265_v16 = vperm.slane %v1203_v4, 0  ;;  %v818_v4 = vpop.f32.mrf.mxu3 }
 0x176   : > { %2010 = vst [vmem:[#allocation1 + $0x22] ss:$4 sm:$0xff] %v1387_v1  ;;  %v1266_v1 = vperm.slane %v1204_v31, 0  ;;  %v921_v40 = vsel %vm826_vm7, %v907_v13, 0.0  ;;  %v2127_v60 = vpack.c.bf16 %v3080_v58, %v3080_v58  ;;  %v1267_v56 = vperm.slane %v1205_v44, 0 }
 0x177   : > { %2011 = vst [vmem:[#allocation1 + $0x23] ss:$4 sm:$0xff] %v1388_v49  ;;  %v894_v49 = vrot.slane %v893_v41, 4  ;;  %v922_v52 = vadd.f32 %v921_v40, %v920_v15  ;;  %v2128_v33 = vpack.c.bf16 %v3118_v37, %v3118_v37  ;;  %v3263_v43 = vperm.slane %v1206_v32, 0 }
 0x178   : > { %2155 = vst.msk [vmem:[%s3091_s11 + $0x18] sm:$0xf] %vm2148_vm8, %v2122_v28  ;;  %v3267_v28 = vsel %vm877_vm6, %v2772_v42, %v1261_v59  ;;  %v3272_v58 = vadd.f32 %v3175_v30, %v816_v2  ;;  %v3636_v19 = vrot.slane %v2772_v42, 1  ;;  %v3637_v14 = vrot.slane %v2772_v42, 2 }
 0x179   : > { %2156 = vst.msk [vmem:[%s3091_s11 + $0x1c] sm:$0xf] %vm2148_vm8, %v2123_v0  ;;  %v2129_v0 = vpack.c.bf16 %v3135_v27, %v3135_v27  ;;  %v895_v9 = vadd.f32 %v894_v49, %v893_v41  ;;  %v923_v46 = vrot.slane %v922_v52, 4  ;;  %v2130_v2 = vpack.c.bf16 %v3210_v21, %v3210_v21 }
 0x17a   : > { %2157 = vst.msk [vmem:[%s3091_s11 + $0x20] sm:$0xf] %vm2148_vm8, %v2124_v10  ;;  %v3279_v17 = vsel %vm877_vm6, %v3636_v19, %v1262_v34  ;;  %v2012_v37 = vld.sshfl [vmem:[#allocation1] sm:$0xff pattern:$0x73625140]  ;;  %v3286_v23 = vsel %vm877_vm6, %v3637_v14, %v1263_v8  ;;  %v1569_v27 = vrot.slane %v3272_v58, 1  ;;  %v2131_v10 = vpack.c.bf16 %v3237_v22, %v3237_v22 }
 0x17b   : > { %2158 = vst.msk [vmem:[%s3091_s11 + $0x24] sm:$0xf] %vm2148_vm8, %v2125_v36  ;;  %v1570_v6 = vrot.slane %v3272_v58, 2  ;;  %v1571_v63 = vrot.slane %v3272_v58, 3  ;;  %v896_v31 = vrot.slane %v895_v9, 2  ;;  %v924_v50 = vadd.f32 %v923_v46, %v922_v52 }
 0x17c   : > { %2159 = vst.msk [vmem:[%s3091_s11 + $0x28] sm:$0xf] %vm2148_vm8, %v2126_v62  ;;  %v3638_v21 = vrot.slane %v2772_v42, 3  ;;  %v2132_v59 = vpack.c.bf16 %v2012_v37, %v2012_v37  ;;  %v3308_v22 = vadd.f32 %v3175_v30, %v3200_v53  ;;  %v1572_v25 = vrot.slane %v3272_v58, 4  ;;  %v710_v37 = vpop.f32.mrf.mxu2 }
 0x17d   : > { %2160 = vst.msk [vmem:[%s3091_s11 + $0x2c] sm:$0xf] %vm2148_vm8, %v2127_v60  ;;  %v1629_v8 = vperm.slane %v3272_v58, 0  ;;  %v897_v12 = vadd.f32 %v896_v31, %v895_v9  ;;  %v925_v13 = vrot.slane %v924_v50, 2  ;;  %v3639_v36 = vrot.slane %v2772_v42, 4 }
 0x17e   : > { %v3302_v44 = vsel %vm877_vm6, %v3638_v21, %v1264_v11  ;;  %v2013_v32 = vld.sshfl [vmem:[#allocation1 + $0x20] sm:$0xff pattern:$0x73625140]  ;;  %2161 = vst.msk [vmem:[%s3091_s11 + $0x30] sm:$0xf] %vm2148_vm8, %v2128_v33  ;;  %v3640_v15 = vrot.slane %v2772_v42, 5  ;;  %v3336_v52 = vadd.f32 %v3175_v30, %v708_v24  ;;  %v957_v9 = vmul.f32 %v3308_v22, %v3308_v22 }
 0x17f   : > { %v2133_v34 = vpack.c.bf16 %v2013_v32, %v2013_v32  ;;  %2162 = vst.msk [vmem:[%s3091_s11 + $0x34] sm:$0xf] %vm2148_vm8, %v2129_v0  ;;  %v3317_v11 = vsel %vm877_vm6, %v3639_v36, %v1265_v16  ;;  %v1573_v41 = vrot.slane %v3272_v58, 5  ;;  %v1630_v62 = vperm.slane %v1569_v27, 0 }
 0x180   : > { %v3322_v53 = vsel %vm877_vm6, %v3640_v15, %v1266_v1  ;;  %2163 = vst.msk [vmem:[%s3091_s11 + $0x38] sm:$0xf] %vm2148_vm8, %v2130_v2  ;;  %v3641_v40 = vrot.slane %v2772_v42, 6  ;;  %v1574_v16 = vrot.slane %v3272_v58, 6  ;;  %v1631_v49 = vperm.slane %v1570_v6, 0 }
 0x181   : > { %2164 = vst.msk [vmem:[%s3091_s11 + $0x3c] sm:$0xf] %vm2148_vm8, %v2131_v10  ;;  %v1575_v1 = vrot.slane %v3272_v58, 7  ;;  %v1632_v33 = vperm.slane %v1571_v63, 0  ;;  %v898_v0 = vrot.slane %v897_v12, 1  ;;  %v926_v19 = vadd.f32 %v925_v13, %v924_v50 }
 0x182   : > { %v3330_v60 = vsel %vm877_vm6, %v3641_v40, %v1267_v56  ;;  %2165 = vst.msk [vmem:[%s3091_s11 + $0x40] sm:$0xf] %vm2148_vm8, %v2132_v59  ;;  %v988_v56 = vsel %vm826_vm7, %v3040_v45, 0.0  ;;  %v1633_v46 = vperm.slane %v1572_v25, 0  ;;  %v1757_v24 = vsel %vm877_vm6, %v3121_v39, %v1629_v8  ;;  %v821_v59 = vpop.f32.mrf.mxu3 }
 0x183   : > { %2166 = vst.msk [vmem:[%s3091_s11 + $0x44] sm:$0xf] %vm2148_vm8, %v2133_v34  ;;  %v1007_v14 = vmul.f32 %v3040_v45, %v3040_v45  ;;  %v1634_v2 = vperm.slane %v1573_v41, 0  ;;  %v1758_v27 = vsel %vm877_vm6, %v1449_v35, %v1630_v62  ;;  %v927_v6 = vrot.slane %v926_v19, 1 }
 0x184   : > { %2014 = vst [vmem:[#allocation1] ss:$4 sm:$0xff] %v1757_v24  ;;  %v1635_v10 = vperm.slane %v1574_v16, 0  ;;  %v1759_v63 = vsel %vm877_vm6, %v1450_v55, %v1631_v49  ;;  %v958_v31 = vmul.f32 %v3336_v52, %v3336_v52  ;;  %v3360_v50 = vadd.f32 %v3175_v30, %v710_v37 }
 0x185   : > { %2015 = vst [vmem:[#allocation1 + $0x1] ss:$4 sm:$0xff] %v1758_v27  ;;  %v1636_v45 = vperm.slane %v1575_v1, 0  ;;  %v1760_v21 = vsel %vm877_vm6, %v1451_v54, %v1632_v33  ;;  %v899_v35 = vadd.f32 %v898_v0, %v897_v12  ;;  %v928_v32 = vadd.f32 %v927_v6, %v926_v19 }
 0x186   : > { %2016 = vst [vmem:[#allocation1 + $0x2] ss:$4 sm:$0xff] %v1759_v63  ;;  %v940_v25 = vsel %vm826_vm7, %v3308_v22, 0.0  ;;  %v969_v55 = vsel %vm826_vm7, %v957_v9, 0.0  ;;  %v1761_v34 = vsel %vm877_vm6, %v1452_v18, %v1633_v46  ;;  %v3372_v8 = vadd.f32 %v3175_v30, %v818_v4 }
 0x187   : > { %2017 = vst [vmem:[#allocation1 + $0x3] ss:$4 sm:$0xff] %v1760_v21  ;;  %v1017_v13 = vsel %vm826_vm7, %v1007_v14, 0.0  ;;  %v1008_v54 = vmul.f32 %v3272_v58, %v3272_v58  ;;  %v1762_v12 = vsel %vm877_vm6, %v1453_v7, %v1634_v2  ;;  %v3381_v36 = vsel %vm877_vm6, %v899_v35, %v928_v32 }
 0x188   : > { %2018 = vst [vmem:[#allocation1 + $0x20] ss:$4 sm:$0xff] %v1761_v34  ;;  %v1763_v18 = vsel %vm877_vm6, %v1454_v3, %v1635_v10  ;;  %v942_v4 = vsel %vm826_vm7, %v3336_v52, 0.0  ;;  %v971_v15 = vsel %vm826_vm7, %v958_v31, 0.0  ;;  %v959_v41 = vmul.f32 %v3360_v50, %v3360_v50 }
 0x189   : > { %2019 = vst [vmem:[#allocation1 + $0x21] ss:$4 sm:$0xff] %v1762_v12  ;;  %v3642_v7 = vrot.slane %v2772_v42, 7  ;;  %v941_v40 = vadd.f32 %v940_v25, %v3232_v51  ;;  %v970_v16 = vadd.f32 %v969_v55, %v3234_v5  ;;  %v1764_v3 = vsel %vm877_vm6, %v1455_v26, %v1636_v45 }
 0x18a   : > { %2020 = vst [vmem:[#allocation1 + $0x22] ss:$4 sm:$0xff] %v1763_v18  ;;  %v989_v49 = vadd.f32 %v988_v56, %v2948_v20  ;;  %v1018_v1 = vadd.f32 %v1017_v13, %v2951_v38  ;;  %v1456_v33 = vrot.slane %v3308_v22, 1  ;;  %v1009_v42 = vmul.f32 %v3372_v8, %v3372_v8  ;;  %v823_v31 = vpop.f32.mrf.mxu3 }
 0x18b   : > { %v1396_v62 = vsel %vm877_vm6, %v3642_v7, %v3263_v43  ;;  %2021 = vst [vmem:[#allocation1 + $0x23] ss:$4 sm:$0xff] %v1764_v3  ;;  %v1457_v43 = vrot.slane %v3308_v22, 2  ;;  %v990_v51 = vsel %vm826_vm7, %v3272_v58, 0.0  ;;  %v943_v5 = vadd.f32 %v942_v4, %v941_v40 }
 0x18c   : > { %v972_v39 = vadd.f32 %v971_v15, %v970_v16  ;;  %v1458_v26 = vrot.slane %v3308_v22, 3  ;;  %v1019_v0 = vsel %vm826_vm7, %v1008_v54, 0.0  ;;  %v944_v20 = vsel %vm826_vm7, %v3360_v50, 0.0 }
 0x18d   : > { %v973_v38 = vsel %vm826_vm7, %v959_v41, 0.0  ;;  %v992_v37 = vsel %vm826_vm7, %v3372_v8, 0.0  ;;  %v945_v56 = vadd.f32 %v944_v20, %v943_v5  ;;  %v3416_v46 = vadd.f32 %v3175_v30, %v821_v59 }
 0x18e   : > { %v2022_v19 = vld.sshfl [vmem:[#allocation1] sm:$0xff pattern:$0x73625140]  ;;  %v974_v9 = vadd.f32 %v973_v38, %v972_v39  ;;  %v1459_v58 = vrot.slane %v3308_v22, 4  ;;  %v1460_v24 = vrot.slane %v3308_v22, 5  ;;  %v991_v14 = vadd.f32 %v990_v51, %v989_v49 }
 0x18f   : > { %2024 = vst [vmem:[#allocation1] ss:$4 sm:$0xff] %v3267_v28  ;;  %v1021_v2 = vsel %vm826_vm7, %v1009_v42, 0.0  ;;  %v1461_v27 = vrot.slane %v3308_v22, 6  ;;  %v1020_v6 = vadd.f32 %v1019_v0, %v1018_v1  ;;  %v946_v10 = vrot.slane %v945_v56, 4 }
 0x190   : > { %2025 = vst [vmem:[#allocation1 + $0x1] ss:$4 sm:$0xff] %v3279_v17  ;;  %v975_v63 = vrot.slane %v974_v9, 4  ;;  %v1462_v45 = vrot.slane %v3308_v22, 7  ;;  %v1207_v21 = vrot.slane %v3178_v57, 1  ;;  %v993_v35 = vadd.f32 %v992_v37, %v991_v14 }
 0x191   : > { %2026 = vst [vmem:[#allocation1 + $0x2] ss:$4 sm:$0xff] %v3286_v23  ;;  %v1576_v32 = vrot.slane %v3372_v8, 1  ;;  %v1022_v59 = vadd.f32 %v1021_v2, %v1020_v6  ;;  %v947_v25 = vadd.f32 %v946_v10, %v945_v56  ;;  %v1010_v17 = vmul.f32 %v3416_v46, %v3416_v46 }
 0x192   : > { %v2023_v28 = vld.sshfl [vmem:[#allocation1 + $0x20] sm:$0xff pattern:$0x73625140]  ;;  %2027 = vst [vmem:[#allocation1 + $0x3] ss:$4 sm:$0xff] %v3302_v44  ;;  %v976_v55 = vadd.f32 %v975_v63, %v974_v9  ;;  %v2134_v34 = vpack.c.bf16 %v2022_v19, %v2022_v19  ;;  %v1577_v13 = vrot.slane %v3372_v8, 2  ;;  %v3435_v23 = vadd.f32 %v3175_v30, %v823_v31 }
 0x193   : > { %2028 = vst [vmem:[#allocation1 + $0x20] ss:$4 sm:$0xff] %v3317_v11  ;;  %v1578_v54 = vrot.slane %v3372_v8, 3  ;;  %v2135_v44 = vpack.c.bf16 %v2023_v28, %v2023_v28  ;;  %v1579_v12 = vrot.slane %v3372_v8, 4  ;;  %v948_v18 = vrot.slane %v947_v25, 2 }
 0x194   : > { %2029 = vst [vmem:[#allocation1 + $0x21] ss:$4 sm:$0xff] %v3322_v53  ;;  %v977_v4 = vrot.slane %v976_v55, 2  ;;  %v1580_v11 = vrot.slane %v3372_v8, 5  ;;  %v1637_v15 = vperm.slane %v3372_v8, 0  ;;  %v1638_v41 = vperm.slane %v1576_v32, 0 }
 0x195   : > { %2030 = vst [vmem:[#allocation1 + $0x22] ss:$4 sm:$0xff] %v3330_v60  ;;  %v994_v30 = vsel %vm826_vm7, %v3416_v46, 0.0  ;;  %v1581_v7 = vrot.slane %v3372_v8, 6  ;;  %v949_v53 = vadd.f32 %v948_v18, %v947_v25  ;;  %v1023_v16 = vsel %vm826_vm7, %v1010_v17, 0.0 }
 0x196   : > { %2031 = vst [vmem:[#allocation1 + $0x23] ss:$4 sm:$0xff] %v1396_v62  ;;  %v978_v40 = vadd.f32 %v977_v4, %v976_v55  ;;  %v1582_v3 = vrot.slane %v3372_v8, 7  ;;  %v1639_v60 = vperm.slane %v1577_v13, 0  ;;  %v1640_v49 = vperm.slane %v1578_v54, 0 }
 0x197   : > { %2167 = vst.msk [vmem:[%s3091_s11 + $0x48] sm:$0xf] %vm2148_vm8, %v2134_v34  ;;  %v1011_v1 = vmul.f32 %v3435_v23, %v3435_v23  ;;  %v1641_v42 = vperm.slane %v1579_v12, 0  ;;  %v950_v51 = vrot.slane %v949_v53, 1  ;;  %v995_v5 = vadd.f32 %v994_v30, %v993_v35 }
 0x198   : > { %2168 = vst.msk [vmem:[%s3091_s11 + $0x4c] sm:$0xf] %vm2148_vm8, %v2135_v44  ;;  %v979_v62 = vrot.slane %v978_v40, 1  ;;  %v1765_v0 = vsel %vm877_vm6, %v3308_v22, %v1637_v15  ;;  %v1766_v8 = vsel %vm877_vm6, %v1456_v33, %v1638_v41  ;;  %v1024_v20 = vadd.f32 %v1023_v16, %v1022_v59 }
 0x199   : > { %v2032_v39 = vld.sshfl [vmem:[#allocation1] sm:$0xff pattern:$0x73625140]  ;;  %v996_v38 = vsel %vm826_vm7, %v3435_v23, 0.0  ;;  %v951_v37 = vadd.f32 %v950_v51, %v949_v53  ;;  %v930_v14 = vadd.f32 %v3381_v36, %v3024_v48  ;;  %v1642_v2 = vperm.slane %v1580_v11, 0 }
 0x19a   : > { %v2136_v19 = vpack.c.bf16 %v2032_v39, %v2032_v39  ;;  %2034 = vst [vmem:[#allocation1] ss:$4 sm:$0xff] %v1765_v0  ;;  %v980_v56 = vadd.f32 %v979_v62, %v978_v40  ;;  %v997_v9 = vadd.f32 %v996_v38, %v995_v5  ;;  %v1643_v6 = vperm.slane %v1581_v7, 0 }
 0x19b   : > { %2035 = vst [vmem:[#allocation1 + $0x1] ss:$4 sm:$0xff] %v1766_v8  ;;  %v1025_v10 = vsel %vm826_vm7, %v1011_v1, 0.0  ;;  %v1767_v33 = vsel %vm877_vm6, %v1457_v43, %v1639_v60  ;;  %v1644_v28 = vperm.slane %v1582_v3, 0  ;;  %v1768_v48 = vsel %vm877_vm6, %v1458_v26, %v1640_v49 }
 0x19c   : > { %2169 = vst.msk [vmem:[%s3091_s11 + $0x50] sm:$0xf] %vm2148_vm8, %v2136_v19  ;;  %v981_v63 = vsel %vm877_vm6, %v951_v37, %v980_v56  ;;  %v998_v31 = vrot.slane %v997_v9, 4  ;;  %v1026_v35 = vadd.f32 %v1025_v10, %v1024_v20  ;;  %v1769_v25 = vsel %vm877_vm6, %v1459_v58, %v1641_v42 }
 0x19d   : > { %v2033_v32 = vld.sshfl [vmem:[#allocation1 + $0x20] sm:$0xff pattern:$0x73625140]  ;;  %2036 = vst [vmem:[#allocation1 + $0x2] ss:$4 sm:$0xff] %v1767_v33  ;;  %v3472_v36 = vadd.f32 %v981_v63, %v930_v14  ;;  %v1087_v17 = vrot.slane %v2803_v47, 1  ;;  %v1770_v26 = vsel %vm877_vm6, %v1460_v24, %v1642_v2  ;;  %v1771_v4 = vsel %vm877_vm6, %v1461_v27, %v1643_v6 }
 0x19e   : > { %v2137_v59 = vpack.c.bf16 %v2033_v32, %v2033_v32  ;;  %2037 = vst [vmem:[#allocation1 + $0x3] ss:$4 sm:$0xff] %v1768_v48  ;;  %v999_v43 = vadd.f32 %v998_v31, %v997_v9  ;;  %v1027_v55 = vrot.slane %v1026_v35, 4  ;;  %v1208_v34 = vrot.slane %v3178_v57, 2 }
 0x19f   : > { %2038 = vst [vmem:[#allocation1 + $0x20] ss:$4 sm:$0xff] %v1769_v25  ;;  %v1209_v13 = vrot.slane %v3178_v57, 3  ;;  %v1088_v58 = vrot.slane %v2803_v47, 2  ;;  %v1210_v12 = vrot.slane %v3178_v57, 4  ;;  %v1269_v18 = vperm.slane %v3178_v57, 0 }
 0x1a0   : > { %2170 = vst.msk [vmem:[%s3091_s11 + $0x54] sm:$0xf] %vm2148_vm8, %v2137_v59  ;;  %v1000_v54 = vrot.slane %v999_v43, 2  ;;  %v1028_v44 = vadd.f32 %v1027_v55, %v1026_v35  ;;  %v1270_v11 = vperm.slane %v1207_v21, 0  ;;  %v1772_v24 = vsel %vm877_vm6, %v1462_v45, %v1644_v28 }
 0x1a1   : > { %2039 = vst [vmem:[#allocation1 + $0x21] ss:$4 sm:$0xff] %v1770_v26  ;;  %v1089_v30 = vrot.slane %v2803_v47, 3  ;;  %v1211_v7 = vrot.slane %v3178_v57, 5  ;;  %v1212_v53 = vrot.slane %v3178_v57, 6  ;;  %v1271_v40 = vperm.slane %v1208_v34, 0 }
 0x1a2   : > { %2040 = vst [vmem:[#allocation1 + $0x22] ss:$4 sm:$0xff] %v1771_v4  ;;  %v1001_v15 = vadd.f32 %v1000_v54, %v999_v43  ;;  %v1029_v41 = vrot.slane %v1028_v44, 2  ;;  %v1213_v27 = vrot.slane %v3178_v57, 7  ;;  %v1272_v16 = vperm.slane %v1209_v13, 0 }
 0x1a3   : > { %2041 = vst [vmem:[#allocation1 + $0x23] ss:$4 sm:$0xff] %v1772_v24  ;;  %v1090_v22 = vrot.slane %v2803_v47, 4  ;;  %v1091_v45 = vrot.slane %v2803_v47, 5  ;;  %v1092_v60 = vrot.slane %v2803_v47, 6  ;;  %v1397_v49 = vsel %vm877_vm6, %v2803_v47, %v1269_v18 }
 0x1a4   : > { %v1002_v3 = vrot.slane %v1001_v15, 1  ;;  %v1030_v21 = vadd.f32 %v1029_v41, %v1028_v44  ;;  %v1273_v42 = vperm.slane %v1210_v12, 0  ;;  %v1398_v51 = vsel %vm877_vm6, %v1087_v17, %v1270_v11 }
 0x1a5   : > { %v2042_v1 = vld.sshfl [vmem:[#allocation1] sm:$0xff pattern:$0x73625140]  ;;  %v1093_v5 = vrot.slane %v2803_v47, 7  ;;  %v1274_v39 = vperm.slane %v1211_v7, 0  ;;  %v1275_v0 = vperm.slane %v1212_v53, 0  ;;  %v1399_v8 = vsel %vm877_vm6, %v1088_v58, %v1271_v40 }
 0x1a6   : > { %2044 = vst [vmem:[#allocation1] ss:$4 sm:$0xff] %v1397_v49  ;;  %v2138_v62 = vpack.c.bf16 %v2042_v1, %v2042_v1  ;;  %v1031_v57 = vrot.slane %v1030_v21, 1  ;;  %v1276_v20 = vperm.slane %v1213_v27, 0  ;;  %v1400_v38 = vsel %vm877_vm6, %v1089_v30, %v1272_v16 }
 0x1a7   : > { %2045 = vst [vmem:[#allocation1 + $0x1] ss:$4 sm:$0xff] %v1398_v51  ;;  %v1003_v19 = vadd.f32 %v1002_v3, %v1001_v15  ;;  %v1583_v56 = vrot.slane %v3416_v46, 1  ;;  %v1401_v9 = vsel %vm877_vm6, %v1090_v22, %v1273_v42  ;;  %v1584_v47 = vrot.slane %v3416_v46, 2 }
 0x1a8   : > { %2046 = vst [vmem:[#allocation1 + $0x2] ss:$4 sm:$0xff] %v1399_v8  ;;  %v1032_v37 = vadd.f32 %v1031_v57, %v1030_v21  ;;  %v1402_v6 = vsel %vm877_vm6, %v1091_v45, %v1274_v39  ;;  %v1585_v33 = vrot.slane %v3416_v46, 3  ;;  %v1403_v31 = vsel %vm877_vm6, %v1092_v60, %v1275_v0 }
 0x1a9   : > { %2047 = vst [vmem:[#allocation1 + $0x3] ss:$4 sm:$0xff] %v1400_v38  ;;  %v1404_v35 = vsel %vm877_vm6, %v1093_v5, %v1276_v20  ;;  %v1645_v32 = vperm.slane %v3416_v46, 0  ;;  %v1463_v28 = vrot.slane %v3336_v52, 1  ;;  %v1586_v48 = vrot.slane %v3416_v46, 4 }
 0x1aa   : > { %v2043_v14 = vld.sshfl [vmem:[#allocation1 + $0x20] sm:$0xff pattern:$0x73625140]  ;;  %2171 = vst.msk [vmem:[%s3091_s11 + $0x58] sm:$0xf] %vm2148_vm8, %v2138_v62  ;;  %v1033_v2 = vsel %vm877_vm6, %v1003_v19, %v1032_v37  ;;  %v1646_v59 = vperm.slane %v1583_v56, 0 }
 0x1ab   : > { %2048 = vst [vmem:[#allocation1 + $0x20] ss:$4 sm:$0xff] %v1401_v9  ;;  %v2139_v10 = vpack.c.bf16 %v2043_v14, %v2043_v14  ;;  %v1034_v63 = vadd.f32 %v1033_v2, %v3472_v36  ;;  %v1464_v36 = vrot.slane %v3336_v52, 2  ;;  %v1587_v25 = vrot.slane %v3416_v46, 5 }
 0x1ac   : > { %2049 = vst [vmem:[#allocation1 + $0x21] ss:$4 sm:$0xff] %v1402_v6  ;;  %v1647_v43 = vperm.slane %v1584_v47, 0  ;;  %v1465_v55 = vrot.slane %v3336_v52, 3  ;;  %v1588_v17 = vrot.slane %v3416_v46, 6  ;;  %v1648_v34 = vperm.slane %v1585_v33, 0 }
 0x1ad   : > { %2050 = vst [vmem:[#allocation1 + $0x22] ss:$4 sm:$0xff] %v1403_v31  ;;  %v1589_v13 = vrot.slane %v3416_v46, 7  ;;  %v1773_v26 = vsel %vm877_vm6, %v3336_v52, %v1645_v32  ;;  %v1466_v44 = vrot.slane %v3336_v52, 4  ;;  %v1649_v58 = vperm.slane %v1586_v48, 0 }
 0x1ae   : > { %2051 = vst [vmem:[#allocation1 + $0x23] ss:$4 sm:$0xff] %v1404_v35  ;;  %v1774_v12 = vsel %vm877_vm6, %v1463_v28, %v1646_v59  ;;  %v1467_v4 = vrot.slane %v3336_v52, 5  ;;  %v1650_v11 = vperm.slane %v1587_v25, 0  ;;  %v1775_v24 = vsel %vm877_vm6, %v1464_v36, %v1647_v43 }
 0x1af   : > { %2172 = vst.msk [vmem:[%s3091_s11 + $0x5c] sm:$0xf] %vm2148_vm8, %v2139_v10  ;;  %v1468_v46 = vrot.slane %v3336_v52, 6  ;;  %v1651_v15 = vperm.slane %v1588_v17, 0  ;;  %v1776_v41 = vsel %vm877_vm6, %v1465_v55, %v1648_v34  ;;  %v1469_v30 = vrot.slane %v3336_v52, 7 }
 0x1b0   : > { %v2052_v54 = vld.sshfl [vmem:[#allocation1] sm:$0xff pattern:$0x73625140]  ;;  %1036 = vst.msk [vmem:[%s424_s16] sm:$0x3] %vm1035_vm9, %v1034_v63  ;;  %v1214_v7 = vrot.slane %v3229_v61, 1  ;;  %v1777_v27 = vsel %vm877_vm6, %v1466_v44, %v1649_v58  ;;  %v1778_v21 = vsel %vm877_vm6, %v1467_v4, %v1650_v11 }
 0x1b1   : > { %2054 = vst [vmem:[#allocation1] ss:$4 sm:$0xff] %v1773_v26  ;;  %v2140_v18 = vpack.c.bf16 %v2052_v54, %v2052_v54  ;;  %v1652_v53 = vperm.slane %v1589_v13, 0  ;;  %v1215_v40 = vrot.slane %v3229_v61, 2  ;;  %v1216_v3 = vrot.slane %v3229_v61, 3 }
 0x1b2   : > { %2055 = vst [vmem:[#allocation1 + $0x1] ss:$4 sm:$0xff] %v1774_v12  ;;  %v1277_v52 = vperm.slane %v3229_v61, 0  ;;  %v1779_v45 = vsel %vm877_vm6, %v1468_v46, %v1651_v15  ;;  %v1094_v60 = vrot.slane %v2842_v29, 1  ;;  %v1217_v49 = vrot.slane %v3229_v61, 4 }
 0x1b3   : > { %2056 = vst [vmem:[#allocation1 + $0x2] ss:$4 sm:$0xff] %v1775_v24  ;;  %v1278_v1 = vperm.slane %v1214_v7, 0  ;;  %v1780_v42 = vsel %vm877_vm6, %v1469_v30, %v1652_v53  ;;  %v1095_v51 = vrot.slane %v2842_v29, 2  ;;  %v1218_v62 = vrot.slane %v3229_v61, 5 }
 0x1b4   : > { %2057 = vst [vmem:[#allocation1 + $0x3] ss:$4 sm:$0xff] %v1776_v41  ;;  %v1279_v57 = vperm.slane %v1215_v40, 0  ;;  %v1096_v5 = vrot.slane %v2842_v29, 3  ;;  %v1219_v39 = vrot.slane %v3229_v61, 6  ;;  %v1280_v0 = vperm.slane %v1216_v3, 0 }
 0x1b5   : > { %v2053_v16 = vld.sshfl [vmem:[#allocation1 + $0x20] sm:$0xff pattern:$0x73625140]  ;;  %2173 = vst.msk [vmem:[%s3091_s11 + $0x60] sm:$0xf] %vm2148_vm8, %v2140_v18  ;;  %v1220_v8 = vrot.slane %v3229_v61, 7  ;;  %v1405_v20 = vsel %vm877_vm6, %v2842_v29, %v1277_v52  ;;  %v1406_v56 = vsel %vm877_vm6, %v1094_v60, %v1278_v1 }
 0x1b6   : > { %2058 = vst [vmem:[#allocation1 + $0x20] ss:$4 sm:$0xff] %v1777_v27  ;;  %v2141_v22 = vpack.c.bf16 %v2053_v16, %v2053_v16  ;;  %v1097_v19 = vrot.slane %v2842_v29, 4  ;;  %v1281_v37 = vperm.slane %v1217_v49, 0  ;;  %v1098_v14 = vrot.slane %v2842_v29, 5 }
 0x1b7   : > { %2059 = vst [vmem:[#allocation1 + $0x21] ss:$4 sm:$0xff] %v1778_v21  ;;  %v1282_v47 = vperm.slane %v1218_v62, 0  ;;  %v1407_v2 = vsel %vm877_vm6, %v1095_v51, %v1279_v57  ;;  %v1099_v61 = vrot.slane %v2842_v29, 6  ;;  %v1283_v6 = vperm.slane %v1219_v39, 0 }
 0x1b8   : > { %2060 = vst [vmem:[#allocation1 + $0x22] ss:$4 sm:$0xff] %v1779_v45  ;;  %v1408_v10 = vsel %vm877_vm6, %v1096_v5, %v1280_v0  ;;  %v1100_v33 = vrot.slane %v2842_v29, 7  ;;  %v1284_v63 = vperm.slane %v1220_v8, 0  ;;  %v1590_v31 = vrot.slane %v3435_v23, 1 }
 0x1b9   : > { %2061 = vst [vmem:[#allocation1 + $0x23] ss:$4 sm:$0xff] %v1780_v42  ;;  %v1409_v35 = vsel %vm877_vm6, %v1097_v19, %v1281_v37  ;;  %v1591_v28 = vrot.slane %v3435_v23, 2  ;;  %v1410_v48 = vsel %vm877_vm6, %v1098_v14, %v1282_v47  ;;  %v1592_v36 = vrot.slane %v3435_v23, 3 }
 0x1ba   : > { %2174 = vst.msk [vmem:[%s3091_s11 + $0x64] sm:$0xf] %vm2148_vm8, %v2141_v22  ;;  %v1411_v29 = vsel %vm877_vm6, %v1099_v61, %v1283_v6  ;;  %v1653_v25 = vperm.slane %v3435_v23, 0  ;;  %v1412_v43 = vsel %vm877_vm6, %v1100_v33, %v1284_v63  ;;  %v1470_v55 = vrot.slane %v3360_v50, 1 }
 0x1bb   : > { %v2062_v38 = vld.sshfl [vmem:[#allocation1] sm:$0xff pattern:$0x73625140]  ;;  %v1593_v17 = vrot.slane %v3435_v23, 4  ;;  %v1654_v34 = vperm.slane %v1590_v31, 0  ;;  %v1471_v13 = vrot.slane %v3360_v50, 2 }
 0x1bc   : > { %2064 = vst [vmem:[#allocation1] ss:$4 sm:$0xff] %v1405_v20  ;;  %v2142_v9 = vpack.c.bf16 %v2062_v38, %v2062_v38  ;;  %v1594_v26 = vrot.slane %v3435_v23, 5  ;;  %v1655_v54 = vperm.slane %v1591_v28, 0  ;;  %v1472_v44 = vrot.slane %v3360_v50, 3 }
 0x1bd   : > { %2065 = vst [vmem:[#allocation1 + $0x1] ss:$4 sm:$0xff] %v1406_v56  ;;  %v1595_v58 = vrot.slane %v3435_v23, 6  ;;  %v1656_v12 = vperm.slane %v1592_v36, 0  ;;  %v1596_v18 = vrot.slane %v3435_v23, 7  ;;  %v1781_v4 = vsel %vm877_vm6, %v3360_v50, %v1653_v25 }
 0x1be   : > { %2066 = vst [vmem:[#allocation1 + $0x2] ss:$4 sm:$0xff] %v1407_v2  ;;  %v1473_v24 = vrot.slane %v3360_v50, 4  ;;  %v1657_v46 = vperm.slane %v1593_v17, 0  ;;  %v1782_v15 = vsel %vm877_vm6, %v1470_v55, %v1654_v34  ;;  %v1474_v30 = vrot.slane %v3360_v50, 5 }
 0x1bf   : > { %2067 = vst [vmem:[#allocation1 + $0x3] ss:$4 sm:$0xff] %v1408_v10  ;;  %v1658_v7 = vperm.slane %v1594_v26, 0  ;;  %v1783_v53 = vsel %vm877_vm6, %v1471_v13, %v1655_v54  ;;  %v1475_v23 = vrot.slane %v3360_v50, 6  ;;  %v1659_v40 = vperm.slane %v1595_v58, 0 }
 0x1c0   : > { %v2063_v32 = vld.sshfl [vmem:[#allocation1 + $0x20] sm:$0xff pattern:$0x73625140]  ;;  %2175 = vst.msk [vmem:[%s3091_s11 + $0x68] sm:$0xf] %vm2148_vm8, %v2142_v9  ;;  %v1784_v27 = vsel %vm877_vm6, %v1472_v44, %v1656_v12  ;;  %v1476_v16 = vrot.slane %v3360_v50, 7  ;;  %v1785_v21 = vsel %vm877_vm6, %v1473_v24, %v1657_v46 }
 0x1c1   : > { %2068 = vst [vmem:[#allocation1 + $0x20] ss:$4 sm:$0xff] %v1409_v35  ;;  %v2143_v59 = vpack.c.bf16 %v2063_v32, %v2063_v32  ;;  %v1660_v3 = vperm.slane %v1596_v18, 0  ;;  %v1786_v52 = vsel %vm877_vm6, %v1474_v30, %v1658_v7  ;;  %v1787_v60 = vsel %vm877_vm6, %v1475_v23, %v1659_v40 }
 0x1c2   : > { %2069 = vst [vmem:[#allocation1 + $0x21] ss:$4 sm:$0xff] %v1410_v48 }
 0x1c3   : > { %2070 = vst [vmem:[#allocation1 + $0x22] ss:$4 sm:$0xff] %v1411_v29  ;;  %v1788_v49 = vsel %vm877_vm6, %v1476_v16, %v1660_v3 }
 0x1c4   : > { %2071 = vst [vmem:[#allocation1 + $0x23] ss:$4 sm:$0xff] %v1412_v43 }
 0x1c5   : > { %2176 = vst.msk [vmem:[%s3091_s11 + $0x6c] sm:$0xf] %vm2148_vm8, %v2143_v59 }
 0x1c6   : > { %v2072_v11 = vld.sshfl [vmem:[#allocation1] sm:$0xff pattern:$0x73625140] }
 0x1c7   : > { %2074 = vst [vmem:[#allocation1] ss:$4 sm:$0xff] %v1781_v4  ;;  %v2144_v41 = vpack.c.bf16 %v2072_v11, %v2072_v11 }
 0x1c8   : > { %2075 = vst [vmem:[#allocation1 + $0x1] ss:$4 sm:$0xff] %v1782_v15 }
 0x1c9   : > { %2076 = vst [vmem:[#allocation1 + $0x2] ss:$4 sm:$0xff] %v1783_v53 }
 0x1ca   : > { %2077 = vst [vmem:[#allocation1 + $0x3] ss:$4 sm:$0xff] %v1784_v27 }
 0x1cb   : > { %v2073_v22 = vld.sshfl [vmem:[#allocation1 + $0x20] sm:$0xff pattern:$0x73625140]  ;;  %2177 = vst.msk [vmem:[%s3091_s11 + $0x70] sm:$0xf] %vm2148_vm8, %v2144_v41 }
 0x1cc   : > { %2078 = vst [vmem:[#allocation1 + $0x20] ss:$4 sm:$0xff] %v1785_v21  ;;  %v2145_v45 = vpack.c.bf16 %v2073_v22, %v2073_v22 }
 0x1cd   : > { %2079 = vst [vmem:[#allocation1 + $0x21] ss:$4 sm:$0xff] %v1786_v52 }
 0x1ce   : > { %2080 = vst [vmem:[#allocation1 + $0x22] ss:$4 sm:$0xff] %v1787_v60 }
 0x1cf   : > { %2081 = vst [vmem:[#allocation1 + $0x23] ss:$4 sm:$0xff] %v1788_v49 }
 0x1d0   : > { %2178 = vst.msk [vmem:[%s3091_s11 + $0x74] sm:$0xf] %vm2148_vm8, %v2145_v45 }
 0x1d1   : > { %v2082_v50 = vld.sshfl [vmem:[#allocation1] sm:$0xff pattern:$0x73625140] }
 0x1d2   : > { %v2146_v1 = vpack.c.bf16 %v2082_v50, %v2082_v50 }
 0x1d4   : > { %2179 = vst.msk [vmem:[%s3091_s11 + $0x78] sm:$0xf] %vm2148_vm8, %v2146_v1 }
 0x1d6   : > { %v2083_v42 = vld.sshfl [vmem:[#allocation1 + $0x20] sm:$0xff pattern:$0x73625140] }
 0x1d7   : > { %v2147_v51 = vpack.c.bf16 %v2083_v42, %v2083_v42 }
 0x1d9   : > { %2180 = vst.msk [vmem:[%s3091_s11 + $0x7c] sm:$0xf] %vm2148_vm8, %v2147_v51 }
 0x1da PF: > { %s19_s28 = sadd.s32 1, %s2440_s28   ;;  %s3643_s26 = smov %s2436_s27 }
 0x1db   : > { %p16_p5 = scmp.ge.s32.totalorder %s19_s28, 4   ;;  %s3644_s27 = smov %s3646_s29 }
 0x1dd   :  { %18 = sbr.rel (!%p16_p5) target bundleno = 2 (0x2), region = 100 }

// kernel: upscale_forward.4
= control target key start
LH: loop header
LB: loop body
LE: loop exit
PB: predicated region body
PF: predicated region fallthrough
CT: control target
= control target key end

     0   :  { %s4777_s17 = smov 0   ;;  %s4779_s18 = smov 0   ;;  %s6359_s0 = inlined_call_operand.vmem [shape: bf16[2,16,16,4], index: 0, kind: input, shape index: {}, may-alias: {0,1,2}]   ;;  %s6360_s1 = inlined_call_operand.vmem [shape: bf16[2,16,16,4], index: 1, kind: input, shape index: {}, may-alias: {0,1,2}]   ;;  %s6361_s2 = inlined_call_operand.vmem [shape: bf16[2,16,16,4], index: 2, kind: input, shape index: {}, may-alias: {0,1,2}]   ;;  %s6362_s3 = inlined_call_operand.vmem [shape: bf16[2,16,16,4], index: 3, kind: input, shape index: {}, may-alias: {3,4,5}]   ;;  %s6363_s4 = inlined_call_operand.vmem [shape: bf16[2,16,16,4], index: 4, kind: input, shape index: {}, may-alias: {3,4,5}]   ;;  %s6364_s5 = inlined_call_operand.vmem [shape: bf16[2,16,16,4], index: 5, kind: input, shape index: {}, may-alias: {3,4,5}]   ;;  %s6365_s6 = inlined_call_operand.vmem [shape: f32[1,1,4], index: 6, kind: input, shape index: {}]   ;;  %s6366_s7 = inlined_call_operand.vmem [shape: f32[1,1,4], index: 7, kind: input, shape index: {}]   ;;  %s6367_s8 = inlined_call_operand.vmem [shape: bf16[3,12,4], index: 8, kind: input, shape index: {}]   ;;  %s6368_s9 = inlined_call_operand.vmem [shape: bf16[3,12,4], index: 9, kind: input, shape index: {}]   ;;  %s6369_s10 = inlined_call_operand.vmem [shape: f32[1,4], index: 10, kind: input, shape index: {}]   ;;  %s6370_s11 = inlined_call_operand.vmem [shape: bf16[2,16,16,4], index: 11, kind: output, shape index: {0}]   ;;  %s6371_s12 = inlined_call_operand.vmem [shape: f32[2,1,2,4], index: 12, kind: output, shape index: {1}]  }
   0x1   :  { %s4781_s19 = smov 0  }
   0x2 LB: > { %s35_s20 = sadd.s32 1, %s4703_s18  ;;  %p3981_p0 = scmp.ge.s32.totalorder %s4707_s19, 1  ;;  %s4707_s19 = sphi %s4781_s19, %s23_s19   ;;  %s4703_s18 = sphi %s4779_s18, %s6406_s18   ;;  %s4699_s17 = sphi %s4777_s17, %s6405_s17  }
   0x3   : > { %p37_p1 = scmp.ge.s32.totalorder %s35_s20, 2  ;;  %p535_p2 = scmp.lt.s32.totalorder %s4707_s19, 3 }
   0x5   : > { %s6408_s20 = smov (%p37_p1, %s35_s20), 0  ;;  %p536_p3 = pnand %p3981_p0, %p535_p2 }
   0x7   : > { %539 = sbr.rel (%p536_p3) target bundleno = 705 (0x2c1), region = 64 }
   0xc   : > { %p674_p4 = scmp.lt.s32.totalorder %s4699_s17, 1  ;;  %v4709_v0 = vmov 0.0   ;;  %vm997_vm0 = vcmask 1040384   ;;  %vm1440_vm1 = vcmask 1046528   ;;  %vm1639_vm2 = vcmask 1045504   ;;  %s4710_s28 = smov 4  }
   0xd   : > { %v4797_v1 = vrot.slane %v4709_v0, 7  ;;  %v4811_v2 = vld [vmem:[%s6365_s6] ss:$0 sm:$0xff]  ;;  %s4711_s29 = smov 8   ;;  %vm1838_vm3 = vcmask 31744   ;;  %vm1875_vm4 = vcmask 64512  }
   0xe   : > { %s6410_s17 = smov (!%p674_p4, %s4699_s17), 1  ;;  %v4828_v13 = vld [vmem:[%s6366_s7] ss:$0 sm:$0xff]  ;;  %vm2033_vm5 = vcmask 97280   ;;  %vm3702_vm6 = vcmask 27648   ;;  %vm3668_vm7 = vcmask 25600  }
   0xf   : > { %6379 = vst [vmem:[#allocation2_spill] sm:$0xff] %v4797_v1  ;;  %s4800_s21 = sshll.u32 %s6410_s17, 7  ;;  %v4815_v3 = vsel %vm997_vm0, 0.0, %v4797_v1  ;;  %v1124_v4 = vsel %vm997_vm0, %v4797_v1, 0.0  ;;  %v1641_v5 = vrot.slane %v4797_v1, 2  ;;  %v1442_v6 = vrot.slane %v4797_v1, 1 }
  0x10   : > { %s4806_s24 = scalar_lea.vmem %s6360_s1, %s4800_s21  ;;  %6380 = vst [vmem:[#allocation3_spill] sm:$0xff] %v4815_v3  ;;  %v1640_v9 = vrot.slane %v4815_v3, 2  ;;  %v1643_v10 = vrot.slane %v1124_v4, 2  ;;  %v1441_v11 = vrot.slane %v4815_v3, 1  ;;  %v1444_v12 = vrot.slane %v1124_v4, 1  ;;  %s5204_s13 = scalar_lea.vmem %s6363_s4, %s4800_s21 }
  0x11   : > { %v4269_v7 = vld [vmem:[%s4806_s24 + $0x40] sm:$0xff]   ;;  %v4268_v8 = vld [vmem:[%s4806_s24 + $0x38] sm:$0xff]   ;;  %v4270_v27 = vld [vmem:[%s4806_s24 + $0x48] sm:$0xff]   ;;  %s6044_s0 = scalar_lea.vmem %s6370_s11, %s4800_s21  ;;  %s3996_s2 = sshll.u32 %s6410_s17, 1 }
  0x12   : > { %v4168_v14 = vunpack.c.l.bf16 %v4269_v7  ;;  %v4169_v15 = vunpack.c.h.bf16 %v4269_v7  ;;  %v4164_v16 = vunpack.c.l.bf16 %v4268_v8  ;;  %v4165_v17 = vunpack.c.h.bf16 %v4268_v8  ;;  %v4135_v18 = vld [vmem:[%s4806_s24] sm:$0xff]   ;;  %s763_s15 = scalar_lea.vmem %s6371_s12, %s3996_s2 }
  0x13   : > { %v1642_v19 = vsel %vm1639_vm2, %v1640_v9, %v1641_v5  ;;  %v1644_v20 = vsel %vm1639_vm2, %v1641_v5, %v1643_v10  ;;  %v1443_v21 = vsel %vm1440_vm1, %v1441_v11, %v1442_v6  ;;  %v1445_v22 = vsel %vm1440_vm1, %v1442_v6, %v1444_v12 }
  0x14   : > { %v863_v23 = vmul.f32 %v4811_v2, %v4168_v14  ;;  %v864_v24 = vmul.f32 %v4811_v2, %v4169_v15  ;;  %v861_v25 = vmul.f32 %v4811_v2, %v4164_v16  ;;  %v862_v26 = vmul.f32 %v4811_v2, %v4165_v17 }
  0x15   : > { %v4840_v28 = vpack.i.bf16 %v1644_v20, %v1642_v19  ;;  %v4842_v29 = vpack.i.bf16 %v1445_v22, %v1443_v21  ;;  %v4136_v30 = vunpack.c.l.bf16 %v4135_v18  ;;  %v4137_v31 = vunpack.c.h.bf16 %v4135_v18 }
  0x16   : > { %v895_v32 = vadd.f32 %v4828_v13, %v863_v23  ;;  %v896_v33 = vadd.f32 %v4828_v13, %v864_v24  ;;  %v893_v34 = vadd.f32 %v4828_v13, %v861_v25  ;;  %v894_v35 = vadd.f32 %v4828_v13, %v862_v26 }
  0x17   : > { %6381 = vst [vmem:[#allocation4_spill] sm:$0xff] %v4842_v29  ;;  %v847_v36 = vmul.f32 %v4811_v2, %v4136_v30  ;;  %v848_v37 = vmul.f32 %v4811_v2, %v4137_v31  ;;  %v4172_v38 = vunpack.c.l.bf16 %v4270_v27  ;;  %v4173_v39 = vunpack.c.h.bf16 %v4270_v27  ;;  %v4262_v30 = vld [vmem:[%s4806_s24 + $0x8] sm:$0xff]  }
  0x18   : > { %v927_v40 = vmax.f32 %v895_v32, 0.0  ;;  %v928_v41 = vmax.f32 %v896_v33, 0.0  ;;  %v925_v42 = vmax.f32 %v893_v34, 0.0  ;;  %v926_v43 = vmax.f32 %v894_v35, 0.0 }
  0x19   : > { %v879_v44 = vadd.f32 %v4828_v13, %v847_v36  ;;  %v880_v45 = vadd.f32 %v4828_v13, %v848_v37  ;;  %v865_v46 = vmul.f32 %v4811_v2, %v4172_v38  ;;  %v866_v47 = vmul.f32 %v4811_v2, %v4173_v39 }
  0x1a   : > { %v1025_v48 = vrot.slane %v927_v40, 7  ;;  %v1026_v49 = vrot.slane %v928_v41, 7  ;;  %v1022_v50 = vrot.slane %v925_v42, 7  ;;  %v1023_v51 = vrot.slane %v926_v43, 7  ;;  %v4271_v43 = vld [vmem:[%s4806_s24 + $0x50] sm:$0xff]  }
  0x1b   : > { %v911_v52 = vmax.f32 %v879_v44, 0.0  ;;  %v912_v53 = vmax.f32 %v880_v45, 0.0  ;;  %v897_v54 = vadd.f32 %v4828_v13, %v865_v46  ;;  %v898_v55 = vadd.f32 %v4828_v13, %v866_v47 }
  0x1c   : > { %v4857_v56 = vsel %vm997_vm0, %v1025_v48, %v1026_v49  ;;  %v4860_v57 = vsel %vm997_vm0, 0.0, %v1025_v48  ;;  %v1133_v58 = vsel %vm997_vm0, %v1026_v49, 0.0  ;;  %v4864_v59 = vsel %vm997_vm0, %v1022_v50, %v1023_v51 }
  0x1d   : > { %v1486_v60 = vrot.slane %v4860_v57, 1  ;;  %v1487_v61 = vrot.slane %v4857_v56, 1  ;;  %v1489_v62 = vrot.slane %v1133_v58, 1  ;;  %v1688_v63 = vrot.slane %v1133_v58, 2  ;;  %v4263_v58 = vld [vmem:[%s4806_s24 + $0x10] sm:$0xff]  }
  0x1e   : > { %v4869_v0 = vsel %vm997_vm0, 0.0, %v1022_v50  ;;  %v1132_v4 = vsel %vm997_vm0, %v1023_v51, 0.0  ;;  %v1482_v5 = vrot.slane %v4864_v59, 1  ;;  %v1685_v6 = vrot.slane %v4860_v57, 2 }
  0x1f   : > { %v1488_v7 = vsel %vm1440_vm1, %v1486_v60, %v1487_v61  ;;  %v1490_v8 = vsel %vm1440_vm1, %v1487_v61, %v1489_v62  ;;  %v1481_v9 = vrot.slane %v4869_v0, 1  ;;  %v1484_v10 = vrot.slane %v1132_v4, 1 }
  0x20   : > { %v4336_v11 = vpack.i.bf16 %v1490_v8, %v1488_v7  ;;  %v1683_v12 = vrot.slane %v1132_v4, 2  ;;  %v1686_v14 = vrot.slane %v4857_v56, 2  ;;  %v1680_v15 = vrot.slane %v4869_v0, 2 }
  0x21   : > { %v1483_v16 = vsel %vm1440_vm1, %v1481_v9, %v1482_v5  ;;  %v1485_v17 = vsel %vm1440_vm1, %v1482_v5, %v1484_v10  ;;  %v1681_v18 = vrot.slane %v4864_v59, 2  ;;  %v1001_v19 = vrot.slane %v911_v52, 7 }
  0x22   : > { %4337 = vrot.lane.b32.xlu1 %v4336_v11, %s4710_s28  ;;  %v4321_v20 = vpack.i.bf16 %v1485_v17, %v1483_v16  ;;  %v1687_v21 = vsel %vm1639_vm2, %v1685_v6, %v1686_v14  ;;  %v1689_v22 = vsel %vm1639_vm2, %v1686_v14, %v1688_v63  ;;  %v1002_v23 = vrot.slane %v912_v53, 7 }
  0x23   : > { %v4341_v24 = vpack.i.bf16 %v1689_v22, %v1687_v21  ;;  %v1682_v25 = vsel %vm1639_vm2, %v1680_v15, %v1681_v18  ;;  %v1684_v26 = vsel %vm1639_vm2, %v1681_v18, %v1683_v12  ;;  %v4888_v27 = vsel %vm997_vm0, 0.0, %v1001_v19 }
  0x24   : > { %4322 = vrot.lane.b32.xlu0 %v4321_v20, %s4710_s28  ;;  %v4326_v31 = vpack.i.bf16 %v1684_v26, %v1682_v25  ;;  %v4893_v32 = vsel %vm997_vm0, %v1001_v19, %v1002_v23  ;;  %v1125_v33 = vsel %vm997_vm0, %v1002_v23, 0.0  ;;  %v1446_v34 = vrot.slane %v4888_v27, 1 }
  0x25   : > { %v1447_v35 = vrot.slane %v4893_v32, 1  ;;  %v1449_v36 = vrot.slane %v1125_v33, 1  ;;  %v1648_v37 = vrot.slane %v1125_v33, 2  ;;  %v929_v38 = vmax.f32 %v897_v54, 0.0 }
  0x26   : > { %v930_v39 = vmax.f32 %v898_v55, 0.0  ;;  %v4140_v40 = vunpack.c.l.bf16 %v4262_v30  ;;  %v4141_v41 = vunpack.c.h.bf16 %v4262_v30  ;;  %v1645_v42 = vrot.slane %v4888_v27, 2 }
  0x27   : > { %v1448_v44 = vsel %vm1440_vm1, %v1446_v34, %v1447_v35  ;;  %v1450_v45 = vsel %vm1440_vm1, %v1447_v35, %v1449_v36  ;;  %v1028_v46 = vrot.slane %v929_v38, 7  ;;  %v1646_v47 = vrot.slane %v4893_v32, 2 }
  0x28   : > { %v4351_v48 = vpack.i.bf16 %v1450_v45, %v1448_v44  ;;  %v1029_v49 = vrot.slane %v930_v39, 7  ;;  %v849_v50 = vmul.f32 %v4811_v2, %v4140_v40  ;;  %v850_v51 = vmul.f32 %v4811_v2, %v4141_v41 }
  0x29   : > { %v4906_v52 = vsel %vm997_vm0, 0.0, %v1028_v46  ;;  %v1647_v53 = vsel %vm1639_vm2, %v1645_v42, %v1646_v47  ;;  %v1649_v54 = vsel %vm1639_vm2, %v1646_v47, %v1648_v37  ;;  %v4176_v55 = vunpack.c.l.bf16 %v4271_v43 }
  0x2a   : > { %4342 = vrot.lane.b32.xlu1 %v4341_v24, %s4711_s29  ;;  %4352 = vrot.lane.b32.xlu2 %v4351_v48, %s4710_s28  ;;  %v4914_v60 = vsel %vm997_vm0, %v1028_v46, %v1029_v49  ;;  %v1134_v61 = vsel %vm997_vm0, %v1029_v49, 0.0  ;;  %v1690_v62 = vrot.slane %v4906_v52, 2  ;;  %v881_v63 = vadd.f32 %v4828_v13, %v849_v50 }
  0x2b   : > { %v1691_v4 = vrot.slane %v4914_v60, 2  ;;  %v1693_v5 = vrot.slane %v1134_v61, 2  ;;  %v882_v6 = vadd.f32 %v4828_v13, %v850_v51  ;;  %v4356_v7 = vpack.i.bf16 %v1649_v54, %v1647_v53  ;;  %v4272_v54 = vld [vmem:[%s4806_s24 + $0x58] sm:$0xff]  }
  0x2c   : > { %4327 = vrot.lane.b32.xlu0 %v4326_v31, %s4711_s29  ;;  %v913_v8 = vmax.f32 %v881_v63, 0.0  ;;  %v4177_v9 = vunpack.c.h.bf16 %v4271_v43  ;;  %v867_v10 = vmul.f32 %v4811_v2, %v4176_v55  ;;  %v4144_v11 = vunpack.c.l.bf16 %v4263_v58 }
  0x2d   : > { %v4924_v12 = vsel %vm1639_vm2, %v1690_v62, %v1691_v4  ;;  %v4927_v14 = vsel %vm1639_vm2, %v1691_v4, %v1693_v5  ;;  %v914_v15 = vmax.f32 %v882_v6, 0.0  ;;  %v4145_v16 = vunpack.c.h.bf16 %v4263_v58 }
  0x2e   : > { %v4366_v17 = vpack.i.bf16 %v4927_v14, %v4924_v12  ;;  %v1004_v18 = vrot.slane %v913_v8, 7  ;;  %v868_v19 = vmul.f32 %v4811_v2, %v4177_v9  ;;  %v899_v20 = vadd.f32 %v4828_v13, %v867_v10 }
  0x2f   : > { %v1005_v21 = vrot.slane %v914_v15, 7  ;;  %v851_v22 = vmul.f32 %v4811_v2, %v4144_v11  ;;  %v852_v23 = vmul.f32 %v4811_v2, %v4145_v16  ;;  %v1491_v24 = vrot.slane %v4906_v52, 1 }
  0x30   : > { %v4937_v25 = vsel %vm997_vm0, 0.0, %v1004_v18  ;;  %v900_v26 = vadd.f32 %v4828_v13, %v868_v19  ;;  %v931_v30 = vmax.f32 %v899_v20, 0.0  ;;  %v1492_v31 = vrot.slane %v4914_v60, 1 }
  0x31   : > { %v4942_v33 = vsel %vm997_vm0, %v1004_v18, %v1005_v21  ;;  %v4945_v34 = vsel %vm997_vm0, %v1005_v21, 0.0  ;;  %v1451_v35 = vrot.slane %v4937_v25, 1  ;;  %v883_v36 = vadd.f32 %v4828_v13, %v851_v22  ;;  %v4264_v21 = vld [vmem:[%s4806_s24 + $0x18] sm:$0xff]  }
  0x32   : > { %4347 = vrot.lane.b32.xlu1 %v4840_v28, %s4711_s29  ;;  %v1452_v37 = vrot.slane %v4942_v33, 1  ;;  %v1454_v38 = vrot.slane %v4945_v34, 1  ;;  %4357 = vrot.lane.b32.xlu2 %v4356_v7, %s4711_s29  ;;  %v932_v39 = vmax.f32 %v900_v26, 0.0  ;;  %v1031_v40 = vrot.slane %v931_v30, 7 }
  0x33   : > { %v884_v41 = vadd.f32 %v4828_v13, %v852_v23  ;;  %v915_v42 = vmax.f32 %v883_v36, 0.0  ;;  %v1493_v43 = vsel %vm1440_vm1, %v1491_v24, %v1492_v31  ;;  %v1494_v44 = vrot.slane %v1134_v61, 1 }
  0x34   : > { %4332 = vrot.lane.b32.xlu0 %v4842_v29, %s4710_s28  ;;  %v1453_v45 = vsel %vm1440_vm1, %v1451_v35, %v1452_v37  ;;  %v1455_v46 = vsel %vm1440_vm1, %v1452_v37, %v1454_v38  ;;  %v1032_v47 = vrot.slane %v932_v39, 7  ;;  %v4961_v48 = vsel %vm997_vm0, 0.0, %v1031_v40 }
  0x35   : > { %v4371_v49 = vpack.i.bf16 %v1455_v46, %v1453_v45  ;;  %v1496_v50 = vrot.slane %v4961_v48, 1  ;;  %v1695_v51 = vrot.slane %v4961_v48, 2  ;;  %v916_v53 = vmax.f32 %v884_v41, 0.0 }
  0x36   : > { %v4967_v55 = vsel %vm997_vm0, %v1031_v40, %v1032_v47  ;;  %v1135_v58 = vsel %vm997_vm0, %v1032_v47, 0.0  ;;  %v1007_v61 = vrot.slane %v915_v42, 7  ;;  %v1495_v62 = vsel %vm1440_vm1, %v1492_v31, %v1494_v44 }
  0x37   : > { %v1497_v63 = vrot.slane %v4967_v55, 1  ;;  %v1499_v4 = vrot.slane %v1135_v58, 1  ;;  %v1696_v5 = vrot.slane %v4967_v55, 2  ;;  %v1698_v6 = vrot.slane %v1135_v58, 2 }
  0x38   : > { %v1008_v7 = vrot.slane %v916_v53, 7  ;;  %v4974_v8 = vsel %vm997_vm0, 0.0, %v1007_v61  ;;  %v4361_v9 = vpack.i.bf16 %v1495_v62, %v1493_v43  ;;  %v4180_v10 = vunpack.c.l.bf16 %v4272_v54 }
  0x39   : > { %v1498_v11 = vsel %vm1440_vm1, %v1496_v50, %v1497_v63  ;;  %v1500_v12 = vsel %vm1440_vm1, %v1497_v63, %v1499_v4  ;;  %v1697_v14 = vsel %vm1639_vm2, %v1695_v51, %v1696_v5  ;;  %v1699_v15 = vsel %vm1639_vm2, %v1696_v5, %v1698_v6  ;;  %v4265_v63 = vld [vmem:[%s4806_s24 + $0x20] sm:$0xff]  }
  0x3a   : > { %4372 = vrot.lane.b32.xlu1 %v4371_v49, %s4710_s28  ;;  %v4381_v16 = vpack.i.bf16 %v1500_v12, %v1498_v11  ;;  %v4386_v18 = vpack.i.bf16 %v1699_v15, %v1697_v14  ;;  %v4982_v19 = vsel %vm997_vm0, %v1007_v61, %v1008_v7  ;;  %v1127_v20 = vsel %vm997_vm0, %v1008_v7, 0.0  ;;  %4362 = vrot.lane.b32.xlu2 %v4361_v9, %s4710_s28 }
  0x3b   : > { %v1655_v22 = vrot.slane %v4974_v8, 2  ;;  %v1656_v23 = vrot.slane %v4982_v19, 2  ;;  %v1658_v24 = vrot.slane %v1127_v20, 2  ;;  %v4181_v26 = vunpack.c.h.bf16 %v4272_v54 }
  0x3c   : > { %4367 = vrot.lane.b32.xlu0 %v4366_v17, %s4711_s29  ;;  %v869_v30 = vmul.f32 %v4811_v2, %v4180_v10  ;;  %v1650_v31 = vrot.slane %v4937_v25, 2  ;;  %v1651_v35 = vrot.slane %v4942_v33, 2  ;;  %v1653_v36 = vrot.slane %v4945_v34, 2  ;;  %v4273_v34 = vld [vmem:[%s4806_s24 + $0x60] sm:$0xff]  }
  0x3d   : > { %v4995_v37 = vsel %vm1639_vm2, %v1655_v22, %v1656_v23  ;;  %v4998_v38 = vsel %vm1639_vm2, %v1656_v23, %v1658_v24  ;;  %v870_v39 = vmul.f32 %v4811_v2, %v4181_v26  ;;  %v4148_v40 = vunpack.c.l.bf16 %v4264_v21 }
  0x3e   : > { %v4396_v17 = vpack.i.bf16 %v4998_v38, %v4995_v37  ;;  %v901_v41 = vadd.f32 %v4828_v13, %v869_v30  ;;  %v1652_v42 = vsel %vm1639_vm2, %v1650_v31, %v1651_v35  ;;  %v1654_v43 = vsel %vm1639_vm2, %v1651_v35, %v1653_v36 }
  0x3f   : > { %v902_v44 = vadd.f32 %v4828_v13, %v870_v39  ;;  %v4376_v45 = vpack.i.bf16 %v1654_v43, %v1652_v42  ;;  %v4149_v46 = vunpack.c.h.bf16 %v4264_v21  ;;  %v853_v47 = vmul.f32 %v4811_v2, %v4148_v40 }
  0x40   : > { %v933_v49 = vmax.f32 %v901_v41, 0.0  ;;  %v1456_v50 = vrot.slane %v4974_v8, 1  ;;  %v1457_v51 = vrot.slane %v4982_v19, 1  ;;  %v1459_v53 = vrot.slane %v1127_v20, 1 }
  0x41   : > { %v934_v54 = vmax.f32 %v902_v44, 0.0  ;;  %v854_v58 = vmul.f32 %v4811_v2, %v4149_v46  ;;  %v885_v61 = vadd.f32 %v4828_v13, %v853_v47  ;;  %v4184_v62 = vunpack.c.l.bf16 %v4273_v34 }
  0x42   : > { %4387 = vrot.lane.b32.xlu1 %v4386_v18, %s4711_s29  ;;  %v1034_v4 = vrot.slane %v933_v49, 7  ;;  %4377 = vrot.lane.b32.xlu2 %v4376_v45, %s4711_s29  ;;  %v1458_v5 = vsel %vm1440_vm1, %v1456_v50, %v1457_v51  ;;  %v1460_v6 = vsel %vm1440_vm1, %v1457_v51, %v1459_v53  ;;  %v4185_v7 = vunpack.c.h.bf16 %v4273_v34 }
  0x43   : > { %v1035_v9 = vrot.slane %v934_v54, 7  ;;  %v886_v10 = vadd.f32 %v4828_v13, %v854_v58  ;;  %v917_v11 = vmax.f32 %v885_v61, 0.0  ;;  %v4391_v12 = vpack.i.bf16 %v1460_v6, %v1458_v5 }
  0x44   : > { %4382 = vrot.lane.b32.xlu0 %v4381_v16, %s4710_s28  ;;  %v5021_v14 = vsel %vm997_vm0, 0.0, %v1034_v4  ;;  %v871_v15 = vmul.f32 %v4811_v2, %v4184_v62  ;;  %v872_v18 = vmul.f32 %v4811_v2, %v4185_v7  ;;  %v4152_v20 = vunpack.c.l.bf16 %v4265_v63 }
  0x45   : > { %v5026_v21 = vsel %vm997_vm0, %v1034_v4, %v1035_v9  ;;  %v5029_v22 = vsel %vm997_vm0, %v1035_v9, 0.0  ;;  %v1501_v23 = vrot.slane %v5021_v14, 1  ;;  %v918_v24 = vmax.f32 %v886_v10, 0.0 }
  0x46   : > { %v1502_v26 = vrot.slane %v5026_v21, 1  ;;  %v1504_v16 = vrot.slane %v5029_v22, 1  ;;  %v1010_v30 = vrot.slane %v917_v11, 7  ;;  %v903_v31 = vadd.f32 %v4828_v13, %v871_v15 }
  0x47   : > { %v1011_v35 = vrot.slane %v918_v24, 7  ;;  %v904_v36 = vadd.f32 %v4828_v13, %v872_v18  ;;  %v4153_v39 = vunpack.c.h.bf16 %v4265_v63  ;;  %v855_v40 = vmul.f32 %v4811_v2, %v4152_v20 }
  0x48   : > { %v1503_v41 = vsel %vm1440_vm1, %v1501_v23, %v1502_v26  ;;  %v1505_v42 = vsel %vm1440_vm1, %v1502_v26, %v1504_v16  ;;  %v5040_v43 = vsel %vm997_vm0, 0.0, %v1010_v30  ;;  %v935_v34 = vmax.f32 %v903_v31, 0.0 }
  0x49   : > { %v4401_v44 = vpack.i.bf16 %v1505_v42, %v1503_v41  ;;  %v5043_v45 = vsel %vm997_vm0, %v1010_v30, %v1011_v35  ;;  %v1128_v46 = vsel %vm997_vm0, %v1011_v35, 0.0  ;;  %v1461_v47 = vrot.slane %v5040_v43, 1 }
  0x4a   : > { %v1462_v49 = vrot.slane %v5043_v45, 1  ;;  %v1464_v50 = vrot.slane %v1128_v46, 1  ;;  %v1660_v51 = vrot.slane %v5040_v43, 2  ;;  %v1661_v53 = vrot.slane %v5043_v45, 2  ;;  %4392 = vrot.lane.b32.xlu2 %v4391_v12, %s4710_s28 }
  0x4b   : > { %4402 = vrot.lane.b32.xlu1 %v4401_v44, %s4710_s28  ;;  %v1663_v54 = vrot.slane %v1128_v46, 2  ;;  %v936_v58 = vmax.f32 %v904_v36, 0.0  ;;  %v1037_v61 = vrot.slane %v935_v34, 7  ;;  %v856_v62 = vmul.f32 %v4811_v2, %v4153_v39  ;;  %v4266_v46 = vld [vmem:[%s4806_s24 + $0x28] sm:$0xff]  }
  0x4c   : > { %4397 = vrot.lane.b32.xlu0 %v4396_v17, %s4711_s29  ;;  %v1463_v63 = vsel %vm1440_vm1, %v1461_v47, %v1462_v49  ;;  %v1465_v4 = vsel %vm1440_vm1, %v1462_v49, %v1464_v50  ;;  %v1662_v5 = vsel %vm1639_vm2, %v1660_v51, %v1661_v53  ;;  %v887_v6 = vadd.f32 %v4828_v13, %v855_v40  ;;  %v4274_v17 = vld [vmem:[%s4806_s24 + $0x68] sm:$0xff]  }
  0x4d   : > { %v4411_v7 = vpack.i.bf16 %v1465_v4, %v1463_v63  ;;  %v1664_v9 = vsel %vm1639_vm2, %v1661_v53, %v1663_v54  ;;  %v1038_v10 = vrot.slane %v936_v58, 7  ;;  %v5063_v11 = vsel %vm997_vm0, 0.0, %v1037_v61 }
  0x4e   : > { %v4416_v12 = vpack.i.bf16 %v1664_v9, %v1662_v5  ;;  %v1705_v15 = vrot.slane %v5063_v11, 2  ;;  %v888_v37 = vadd.f32 %v4828_v13, %v856_v62  ;;  %v919_v38 = vmax.f32 %v887_v6, 0.0 }
  0x4f   : > { %v5069_v18 = vsel %vm997_vm0, %v1037_v61, %v1038_v10  ;;  %v1137_v20 = vsel %vm997_vm0, %v1038_v10, 0.0  ;;  %v1700_v23 = vrot.slane %v5021_v14, 2  ;;  %v1701_v24 = vrot.slane %v5026_v21, 2  ;;  %v4275_v10 = vld [vmem:[%s4806_s24 + $0x70] sm:$0xff]  }
  0x50   : > { %v1706_v26 = vrot.slane %v5069_v18, 2  ;;  %v1708_v16 = vrot.slane %v1137_v20, 2  ;;  %v920_v30 = vmax.f32 %v888_v37, 0.0  ;;  %v1013_v31 = vrot.slane %v919_v38, 7 }
  0x51   : > { %v1702_v35 = vsel %vm1639_vm2, %v1700_v23, %v1701_v24  ;;  %v1703_v36 = vrot.slane %v5029_v22, 2  ;;  %v4188_v39 = vunpack.c.l.bf16 %v4274_v17  ;;  %v4189_v40 = vunpack.c.h.bf16 %v4274_v17 }
  0x52   : > { %v1707_v41 = vsel %vm1639_vm2, %v1705_v15, %v1706_v26  ;;  %v1709_v42 = vsel %vm1639_vm2, %v1706_v26, %v1708_v16  ;;  %v1014_v34 = vrot.slane %v920_v30, 7  ;;  %v5080_v44 = vsel %vm997_vm0, 0.0, %v1013_v31 }
  0x53   : > { %4417 = vrot.lane.b32.xlu1 %v4416_v12, %s4711_s29  ;;  %v4426_v47 = vpack.i.bf16 %v1709_v42, %v1707_v41  ;;  %v1466_v49 = vrot.slane %v5080_v44, 1  ;;  %v1704_v50 = vsel %vm1639_vm2, %v1701_v24, %v1703_v36  ;;  %v873_v22 = vmul.f32 %v4811_v2, %v4188_v39 }
  0x54   : > { %4412 = vrot.lane.b32.xlu0 %v4411_v7, %s4710_s28  ;;  %v5089_v51 = vsel %vm997_vm0, %v1013_v31, %v1014_v34  ;;  %v5092_v53 = vsel %vm997_vm0, %v1014_v34, 0.0  ;;  %v4406_v54 = vpack.i.bf16 %v1704_v50, %v1702_v35  ;;  %v874_v58 = vmul.f32 %v4811_v2, %v4189_v40 }
  0x55   : > { %v1467_v61 = vrot.slane %v5089_v51, 1  ;;  %v1469_v62 = vrot.slane %v5092_v53, 1  ;;  %v905_v63 = vadd.f32 %v4828_v13, %v873_v22  ;;  %v4156_v4 = vunpack.c.l.bf16 %v4266_v46 }
  0x56   : > { %4407 = vrot.lane.b32.xlu2 %v4406_v54, %s4711_s29  ;;  %v906_v5 = vadd.f32 %v4828_v13, %v874_v58  ;;  %v4157_v6 = vunpack.c.h.bf16 %v4266_v46  ;;  %v1506_v7 = vrot.slane %v5063_v11, 1  ;;  %v1507_v9 = vrot.slane %v5069_v18, 1 }
  0x57   : > { %v1468_v12 = vsel %vm1440_vm1, %v1466_v49, %v1467_v61  ;;  %v1470_v15 = vsel %vm1440_vm1, %v1467_v61, %v1469_v62  ;;  %v937_v37 = vmax.f32 %v905_v63, 0.0  ;;  %v857_v38 = vmul.f32 %v4811_v2, %v4156_v4 }
  0x58   : > { %v4431_v17 = vpack.i.bf16 %v1470_v15, %v1468_v12  ;;  %v938_v23 = vmax.f32 %v906_v5, 0.0  ;;  %v858_v24 = vmul.f32 %v4811_v2, %v4157_v6  ;;  %v1508_v26 = vsel %vm1440_vm1, %v1506_v7, %v1507_v9  ;;  %v4267_v15 = vld [vmem:[%s4806_s24 + $0x30] sm:$0xff]  }
  0x59   : > { %v1040_v16 = vrot.slane %v937_v37, 7  ;;  %v889_v30 = vadd.f32 %v4828_v13, %v857_v38  ;;  %v1509_v31 = vrot.slane %v1137_v20, 1  ;;  %v4192_v35 = vunpack.c.l.bf16 %v4275_v10 }
  0x5a   : > { %v1041_v36 = vrot.slane %v938_v23, 7  ;;  %v890_v39 = vadd.f32 %v4828_v13, %v858_v24  ;;  %v4193_v40 = vunpack.c.h.bf16 %v4275_v10  ;;  %v1665_v41 = vrot.slane %v5080_v44, 2 }
  0x5b   : > { %4432 = vrot.lane.b32.xlu1 %v4431_v17, %s4710_s28  ;;  %v5113_v42 = vsel %vm997_vm0, 0.0, %v1040_v16  ;;  %v921_v34 = vmax.f32 %v889_v30, 0.0  ;;  %v1510_v46 = vsel %vm1440_vm1, %v1507_v9, %v1509_v31  ;;  %v875_v49 = vmul.f32 %v4811_v2, %v4192_v35 }
  0x5c   : > { %4427 = vrot.lane.b32.xlu0 %v4426_v47, %s4711_s29  ;;  %v5119_v20 = vsel %vm997_vm0, %v1040_v16, %v1041_v36  ;;  %v1138_v50 = vsel %vm997_vm0, %v1041_v36, 0.0  ;;  %v1511_v22 = vrot.slane %v5113_v42, 1  ;;  %v1710_v54 = vrot.slane %v5113_v42, 2 }
  0x5d   : > { %v1512_v58 = vrot.slane %v5119_v20, 1  ;;  %v1514_v61 = vrot.slane %v1138_v50, 1  ;;  %v1711_v62 = vrot.slane %v5119_v20, 2  ;;  %v1713_v63 = vrot.slane %v1138_v50, 2 }
  0x5e   : > { %v922_v4 = vmax.f32 %v890_v39, 0.0  ;;  %v1016_v5 = vrot.slane %v921_v34, 7  ;;  %v4421_v6 = vpack.i.bf16 %v1510_v46, %v1508_v26  ;;  %v876_v47 = vmul.f32 %v4811_v2, %v4193_v40 }
  0x5f   : > { %v1513_v7 = vsel %vm1440_vm1, %v1511_v22, %v1512_v58  ;;  %v1515_v9 = vsel %vm1440_vm1, %v1512_v58, %v1514_v61  ;;  %v1712_v10 = vsel %vm1639_vm2, %v1710_v54, %v1711_v62  ;;  %v1714_v12 = vsel %vm1639_vm2, %v1711_v62, %v1713_v63 }
  0x60   : > { %v4441_v37 = vpack.i.bf16 %v1515_v9, %v1513_v7  ;;  %v4446_v38 = vpack.i.bf16 %v1714_v12, %v1712_v10  ;;  %v1017_v17 = vrot.slane %v922_v4, 7  ;;  %v5133_v23 = vsel %vm997_vm0, 0.0, %v1016_v5  ;;  %4422 = vrot.lane.b32.xlu2 %v4421_v6, %s4710_s28 }
  0x61   : > { %v1670_v24 = vrot.slane %v5133_v23, 2  ;;  %v907_v26 = vadd.f32 %v4828_v13, %v875_v49  ;;  %v908_v16 = vadd.f32 %v4828_v13, %v876_v47  ;;  %v1666_v30 = vrot.slane %v5089_v51, 2 }
  0x62   : > { %v5141_v31 = vsel %vm997_vm0, %v1016_v5, %v1017_v17  ;;  %v1130_v35 = vsel %vm997_vm0, %v1017_v17, 0.0  ;;  %v1668_v36 = vrot.slane %v5092_v53, 2  ;;  %v4160_v39 = vunpack.c.l.bf16 %v4267_v15 }
  0x63   : > { %4447 = vrot.lane.b32.xlu1 %v4446_v38, %s4711_s29  ;;  %v1671_v40 = vrot.slane %v5141_v31, 2  ;;  %v1673_v34 = vrot.slane %v1130_v35, 2  ;;  %v939_v46 = vmax.f32 %v907_v26, 0.0  ;;  %v940_v50 = vmax.f32 %v908_v16, 0.0 }
  0x64   : > { %4442 = vrot.lane.b32.xlu0 %v4441_v37, %s4710_s28  ;;  %v1667_v49 = vsel %vm1639_vm2, %v1665_v41, %v1666_v30  ;;  %v1669_v22 = vsel %vm1639_vm2, %v1666_v30, %v1668_v36  ;;  %v4161_v54 = vunpack.c.h.bf16 %v4267_v15  ;;  %v859_v58 = vmul.f32 %v4811_v2, %v4160_v39 }
  0x65   : > { %v1672_v61 = vsel %vm1639_vm2, %v1670_v24, %v1671_v40  ;;  %v1674_v53 = vsel %vm1639_vm2, %v1671_v40, %v1673_v34  ;;  %v1043_v62 = vrot.slane %v939_v46, 7  ;;  %v1044_v63 = vrot.slane %v940_v50, 7  ;;  %v4276_v50 = vld [vmem:[%s4806_s24 + $0x78] sm:$0xff]  }
  0x66   : > { %v4436_v4 = vpack.i.bf16 %v1669_v22, %v1667_v49  ;;  %v860_v5 = vmul.f32 %v4811_v2, %v4161_v54  ;;  %v891_v6 = vadd.f32 %v4828_v13, %v859_v58  ;;  %v4456_v47 = vpack.i.bf16 %v1674_v53, %v1672_v61 }
  0x67   : > { %v5156_v7 = vsel %vm997_vm0, %v1043_v62, %v1044_v63  ;;  %v5159_v41 = vsel %vm997_vm0, 0.0, %v1043_v62  ;;  %v5162_v9 = vsel %vm997_vm0, %v1044_v63, 0.0  ;;  %v1471_v17 = vrot.slane %v5133_v23, 1 }
  0x68   : > { %v1516_v10 = vrot.slane %v5159_v41, 1  ;;  %v1517_v12 = vrot.slane %v5156_v7, 1  ;;  %v1519_v15 = vrot.slane %v5162_v9, 1  ;;  %4437 = vrot.lane.b32.xlu2 %v4436_v4, %s4711_s29  ;;  %v892_v37 = vadd.f32 %v4828_v13, %v860_v5 }
  0x69   : > { %v923_v38 = vmax.f32 %v891_v6, 0.0  ;;  %v1472_v24 = vrot.slane %v5141_v31, 1  ;;  %v1474_v26 = vrot.slane %v1130_v35, 1  ;;  %v4196_v54 = vunpack.c.l.bf16 %v4276_v50 }
  0x6a   : > { %v1518_v16 = vsel %vm1440_vm1, %v1516_v10, %v1517_v12  ;;  %v1520_v30 = vsel %vm1440_vm1, %v1517_v12, %v1519_v15  ;;  %v924_v36 = vmax.f32 %v892_v37, 0.0  ;;  %v4197_v58 = vunpack.c.h.bf16 %v4276_v50 }
  0x6b   : > { %v4461_v39 = vpack.i.bf16 %v1520_v30, %v1518_v16  ;;  %v1019_v40 = vrot.slane %v923_v38, 7  ;;  %v1473_v34 = vsel %vm1440_vm1, %v1471_v17, %v1472_v24  ;;  %v1475_v46 = vsel %vm1440_vm1, %v1472_v24, %v1474_v26 }
  0x6c   : > { %4457 = vrot.lane.b32.xlu0 %v4456_v47, %s4711_s29  ;;  %v1020_v49 = vrot.slane %v924_v36, 7  ;;  %v4451_v22 = vpack.i.bf16 %v1475_v46, %v1473_v34  ;;  %v877_v10 = vmul.f32 %v4811_v2, %v4196_v54  ;;  %v878_v12 = vmul.f32 %v4811_v2, %v4197_v58  ;;  %v3999_v54 = vld [vmem:[%s6367_s8 + $0x8] sm:$0xf]  ;;  %v4129_v58 = vld [vmem:[%s6367_s8 + $0x8] sm:$0x30] }
  0x6d   : > { %4462 = vrot.lane.b32.xlu1 %v4461_v39, %s4710_s28  ;;  %v5179_v35 = vsel %vm997_vm0, 0.0, %v1019_v40 }
  0x6e   : > { %v5182_v61 = vsel %vm997_vm0, %v1019_v40, %v1020_v49  ;;  %v1131_v53 = vsel %vm997_vm0, %v1020_v49, 0.0  ;;  %v1476_v62 = vrot.slane %v5179_v35, 1  ;;  %v1675_v63 = vrot.slane %v5179_v35, 2 }
  0x6f   : > { %v1477_v4 = vrot.slane %v5182_v61, 1  ;;  %v1479_v5 = vrot.slane %v1131_v53, 1  ;;  %v1676_v6 = vrot.slane %v5182_v61, 2  ;;  %v1678_v47 = vrot.slane %v1131_v53, 2  ;;  %v4199_v53 = vld [vmem:[%s5204_s13] sm:$0xff]  }
  0x70   : > { %4452 = vrot.lane.b32.xlu2 %v4451_v22, %s4710_s28  ;;  %v909_v16 = vadd.f32 %v4828_v13, %v877_v10  ;;  %v910_v30 = vadd.f32 %v4828_v13, %v878_v12 }
  0x71   : > { %v1478_v15 = vsel %vm1440_vm1, %v1476_v62, %v1477_v4  ;;  %v1480_v37 = vsel %vm1440_vm1, %v1477_v4, %v1479_v5  ;;  %v1677_v38 = vsel %vm1639_vm2, %v1675_v63, %v1676_v6  ;;  %v1679_v17 = vsel %vm1639_vm2, %v1676_v6, %v1678_v47 }
  0x72   : > { %v4471_v24 = vpack.i.bf16 %v1480_v37, %v1478_v15  ;;  %v4476_v26 = vpack.i.bf16 %v1679_v17, %v1677_v38  ;;  %v941_v36 = vmax.f32 %v909_v16, 0.0  ;;  %v942_v39 = vmax.f32 %v910_v30, 0.0 }
  0x73   : > { %v4000_v4 = vor.u32 %v4129_v58, %v3999_v54  ;;  %v4200_v5 = vunpack.c.l.bf16 %v4199_v53  ;;  %v4201_v47 = vunpack.c.h.bf16 %v4199_v53  ;;  %v1715_v37 = vrot.slane %v5159_v41, 2 }
  0x74   : > { %4472 = vrot.lane.b32.xlu0 %v4471_v24, %s4710_s28  ;;  %v1046_v2 = vrot.slane %v941_v36, 7  ;;  %v1047_v40 = vrot.slane %v942_v39, 7  ;;  %v1716_v38 = vrot.slane %v5156_v7, 2  ;;  %v1718_v17 = vrot.slane %v5162_v9, 2  ;;  %v4019_v39 = vld [vmem:[%s6367_s8] sm:$0xf] }
  0x75   : > { %4477 = vrot.lane.b32.xlu1 %v4476_v26, %s4711_s29  ;;  %v2083_v10 = vsel %vm1639_vm2, %v4000_v4, 0  ;;  %v1257_v12 = vrot.slane %v4200_v5, 7  ;;  %v1258_v15 = vrot.slane %v4201_v47, 7  ;;  %v4128_v9 = vld [vmem:[%s6367_s8] sm:$0x30] }
  0x76   : > { %v5207_v34 = vsel %vm997_vm0, %v1046_v2, %v1047_v40  ;;  %v5210_v46 = vsel %vm997_vm0, 0.0, %v1046_v2  ;;  %v5213_v13 = vsel %vm997_vm0, %v1047_v40, 0.0  ;;  %2092 = vmatpush.bf16.msra.mxu0 %v2083_v10  ;;  %4292 = vmatpush.bf16.msra.mxu2 %v2083_v10  ;;  %v1717_v30 = vsel %vm1639_vm2, %v1715_v37, %v1716_v38  ;;  %v4132_v47 = vld [vmem:[%s6368_s9 + $0x8] sm:$0x30]  ;;  %v4039_v10 = vld [vmem:[%s6367_s8 + $0x10] sm:$0xf] }
  0x77   : > { %v1720_v50 = vrot.slane %v5210_v46, 2  ;;  %v1721_v49 = vrot.slane %v5207_v34, 2  ;;  %v1723_v22 = vrot.slane %v5213_v13, 2  ;;  %v5233_v24 = vsel %vm997_vm0, %v1257_v12, %v1258_v15 }
  0x78   : > { %v5236_v26 = vsel %vm997_vm0, 0.0, %v1257_v12  ;;  %v5239_v16 = vsel %vm997_vm0, %v1258_v15, 0.0  ;;  %v1719_v36 = vsel %vm1639_vm2, %v1716_v38, %v1718_v17  ;;  %v2464_v40 = vrot.slane %v5233_v24, 1  ;;  %v4130_v15 = vld [vmem:[%s6367_s8 + $0x10] sm:$0x30]  ;;  %v4277_v17 = vld [vmem:[%s5204_s13 + $0x8] sm:$0xff]  }
  0x79   : > { %v1722_v62 = vsel %vm1639_vm2, %v1720_v50, %v1721_v49  ;;  %v1724_v63 = vsel %vm1639_vm2, %v1721_v49, %v1723_v22  ;;  %v2463_v2 = vrot.slane %v5236_v26, 1  ;;  %v4466_v50 = vpack.i.bf16 %v1719_v36, %v1717_v30 }
  0x7a   : > { %v4486_v6 = vpack.i.bf16 %v1724_v63, %v1722_v62  ;;  %v4020_v49 = vor.u32 %v4128_v9, %v4019_v39  ;;  %v2466_v22 = vrot.slane %v5239_v16, 1  ;;  %v4040_v38 = vor.u32 %v4130_v15, %v4039_v10 }
  0x7b   : > { %v2465_v54 = vsel %vm1440_vm1, %v2463_v2, %v2464_v40  ;;  %4467 = vrot.lane.b32.xlu2 %v4466_v50, %s4711_s29  ;;  %v4204_v9 = vunpack.c.l.bf16 %v4277_v17  ;;  %v4205_v2 = vunpack.c.h.bf16 %v4277_v17  ;;  %v4099_v17 = vld [vmem:[%s6368_s9 + $0x10] sm:$0xf] }
  0x7c   : > { %4487 = vrot.lane.b32.xlu0 %v4486_v6, %s4711_s29  ;;  %v2188_v53 = vsel %vm1639_vm2, %v4020_v49, 0  ;;  %v2467_v62 = vsel %vm1440_vm1, %v2464_v40, %v2466_v22  ;;  %v4059_v6 = vld [vmem:[%s6368_s9 + $0x8] sm:$0xf]  ;;  %v2293_v49 = vsel %vm1639_vm2, %v4040_v38, 0 }
  0x7d   : > { %4293 = vmatpush.bf16.msra.mxu3 %v2188_v53  ;;  %v4491_v63 = vpack.i.bf16 %v2467_v62, %v2465_v54  ;;  %2197 = vmatpush.bf16.msra.mxu1 %v2188_v53  ;;  %v4060_v12 = vor.u32 %v4132_v47, %v4059_v6  ;;  %v1261_v22 = vrot.slane %v4205_v2, 7  ;;  %v1522_v53 = vrot.slane %v5207_v34, 1  ;;  %v4079_v6 = vld [vmem:[%s6368_s9] sm:$0xf]  ;;  %v4131_v47 = vld [vmem:[%s6368_s9] sm:$0x30] }
  0x7e   : > { %2302 = vmatpush.bf16.msrb.mxu2 %v2293_v49  ;;  %v4080_v38 = vor.u32 %v4131_v47, %v4079_v6 }
  0x7f   : > { %4492 = vrot.lane.b32.xlu1 %v4491_v63, %s4710_s28  ;;  %v3096_v39 = vsel %vm1639_vm2, %v4060_v12, 0  ;;  %v5299_v15 = vsel %vm997_vm0, %v1261_v22, 0.0 }
  0x81   : > { %3105 = vmatpush.bf16.msrb.mxu3 %v3096_v39 }
  0x84   : > { %v4353_v58 = vpop.permute.xlu2 %4352  ;;  %4502 = vrot.lane.b32.xlu0 %v4842_v29, %s4710_s28 }
  0x85   : > { %v4355_v4 = vunpack.i.h.bf16 %v4353_v58  ;;  %v4354_v5 = vunpack.i.l.bf16 %v4353_v58 }
  0x87   : > { %v1842_v37 = vsel %vm1838_vm3, %v4893_v32, %v4355_v4  ;;  %v1841_v30 = vsel %vm1838_vm3, %v4888_v27, %v4354_v5  ;;  %v1260_v32 = vrot.slane %v4204_v9, 7  ;;  %4507 = vrot.lane.b32.xlu1 %v4840_v28, %s4711_s29  ;;  %v1521_v27 = vrot.slane %v5210_v46, 1 }
  0x88   : > { %v1524_v4 = vrot.slane %v5213_v13, 1 }
  0x89   : > { %v5286_v5 = vsel %vm997_vm0, %v1260_v32, %v1261_v22  ;;  %v1523_v10 = vsel %vm1440_vm1, %v1521_v27, %v1522_v53  ;;  %v5296_v12 = vsel %vm997_vm0, 0.0, %v1260_v32  ;;  %v3201_v32 = vsel %vm1639_vm2, %v4080_v38, 0 }
  0x8a   : > { %v2666_v2 = vrot.slane %v5296_v12, 2  ;;  %v2669_v22 = vrot.slane %v5299_v15, 2  ;;  %3210 = vmatpush.bf16.msrb.mxu0 %v3201_v32 }
  0x8c   : > { %v4358_v36 = vpop.permute.xlu2 %4357 }
  0x8d   : > { %v4360_v40 = vunpack.i.h.bf16 %v4358_v36  ;;  %v4359_v50 = vunpack.i.l.bf16 %v4358_v36  ;;  %v1525_v36 = vsel %vm1440_vm1, %v1522_v53, %v1524_v4 }
  0x8e   : > { %v4481_v9 = vpack.i.bf16 %v1525_v36, %v1523_v10  ;;  %v4278_v10 = vld [vmem:[%s5204_s13 + $0x10] sm:$0xff]  }
  0x8f   : > { %v1878_v54 = vsel %vm1875_vm4, %v1841_v30, %v4359_v50  ;;  %v1879_v58 = vsel %vm1875_vm4, %v1842_v37, %v4360_v40  ;;  %v4133_v30 = vld [vmem:[%s6368_s9 + $0x10] sm:$0x30]  ;;  %v2667_v40 = vrot.slane %v5286_v5, 2 }
  0x90   : > { %v1914_v62 = vpack.c.bf16 %v1878_v54, %v1878_v54  ;;  %v1915_v63 = vpack.c.bf16 %v1879_v58, %v1879_v58  ;;  %v4100_v39 = vor.u32 %v4133_v30, %v4099_v17  ;;  %4482 = vrot.lane.b32.xlu2 %v4481_v9, %s4710_s28 }
  0x91   : > { %v2668_v27 = vsel %vm1639_vm2, %v2666_v2, %v2667_v40  ;;  %v2670_v53 = vsel %vm1639_vm2, %v2667_v40, %v2669_v22 }
  0x92   : > { %v1980_v13 = vunpack.c.l.b16 %v1914_v62  ;;  %v1981_v37 = vunpack.c.l.b16 %v1915_v63  ;;  %v3306_v58 = vsel %vm1639_vm2, %v4100_v39, 0  ;;  %v4516_v62 = vpack.i.bf16 %v2670_v53, %v2668_v27 }
  0x93   : > { %3315 = vmatpush.bf16.msrb.mxu1 %v3306_v58 }
  0x94   : > { %v4338_v50 = vpop.permute.xlu1 %4337  ;;  %v5310_v49 = vpack.c.b16 %v1981_v37, %v1980_v13  ;;  %4517 = vrot.lane.b32.xlu0 %v4516_v62, %s4711_s29  ;;  %v4208_v13 = vunpack.c.l.bf16 %v4278_v10  ;;  %v4209_v37 = vunpack.c.h.bf16 %v4278_v10  ;;  %v5332_v27 = vpop.permute.xlu2 %4362 }
  0x95   : > { %v4340_v63 = vunpack.i.h.bf16 %v4338_v50  ;;  %v4339_v4 = vunpack.i.l.bf16 %v4338_v50 }
  0x96   : > { %v4323_v54 = vpop.permute.xlu0 %4322  ;;  %4001 = vmatmul.msk.bf16.vlgmr.msra.gmra.mxu0 %vm2033_vm5, %v5310_v49  ;;  %v1263_v50 = vrot.slane %v4208_v13, 7  ;;  %v1264_v32 = vrot.slane %v4209_v37, 7 }
  0x97   : > { %v4325_v6 = vunpack.i.h.bf16 %v4323_v54  ;;  %v4324_v47 = vunpack.i.l.bf16 %v4323_v54  ;;  %v1858_v17 = vsel %vm1838_vm3, %v4857_v56, %v4340_v63  ;;  %v1857_v30 = vsel %vm1838_vm3, %v4860_v57, %v4339_v4 }
  0x98   : > { %v5335_v62 = vsel %vm997_vm0, %v1263_v50, %v1264_v32  ;;  %v5343_v4 = vsel %vm997_vm0, %v1264_v32, 0.0 }
  0x99   : > { %v1856_v9 = vsel %vm1838_vm3, %v4864_v59, %v4325_v6  ;;  %v1855_v2 = vsel %vm1838_vm3, %v4869_v0, %v4324_v47  ;;  %v5338_v59 = vsel %vm997_vm0, 0.0, %v1263_v50  ;;  %v2664_v50 = vrot.slane %v5239_v16, 2 }
  0x9a   : > { %v2473_v6 = vrot.slane %v5338_v59, 1 }
  0x9c   : > { %v4343_v38 = vpop.permute.xlu1 %4342 }
  0x9d   : > { %v4345_v36 = vunpack.i.h.bf16 %v4343_v38  ;;  %v4344_v39 = vunpack.i.l.bf16 %v4343_v38  ;;  %v2474_v38 = vrot.slane %v5335_v62, 1 }
  0x9e   : > { %v4328_v40 = vpop.permute.xlu0 %4327 }
  0x9f   : > { %v1894_v22 = vsel %vm1875_vm4, %v1857_v30, %v4344_v39  ;;  %v1895_v54 = vsel %vm1875_vm4, %v1858_v17, %v4345_v36  ;;  %v4330_v58 = vunpack.i.h.bf16 %v4328_v40  ;;  %v4329_v56 = vunpack.i.l.bf16 %v4328_v40 }
  0xa0   : > { %v1930_v57 = vpack.c.bf16 %v1894_v22, %v1894_v22  ;;  %v1931_v53 = vpack.c.bf16 %v1895_v54, %v1895_v54  ;;  %v2476_v17 = vrot.slane %v5343_v4, 1  ;;  %v2661_v30 = vrot.slane %v5236_v26, 2 }
  0xa1   : > { %v1892_v0 = vsel %vm1875_vm4, %v1855_v2, %v4329_v56  ;;  %v1893_v63 = vsel %vm1875_vm4, %v1856_v9, %v4330_v58  ;;  %v2662_v36 = vrot.slane %v5233_v24, 2  ;;  %v2475_v56 = vsel %vm1440_vm1, %v2473_v6, %v2474_v38 }
  0xa2   : > { %v1996_v47 = vunpack.c.l.b16 %v1930_v57  ;;  %v1997_v10 = vunpack.c.l.b16 %v1931_v53  ;;  %v1928_v13 = vpack.c.bf16 %v1892_v0, %v1892_v0  ;;  %v1929_v37 = vpack.c.bf16 %v1893_v63, %v1893_v63 }
  0xa3   : > { %v2477_v57 = vsel %vm1440_vm1, %v2474_v38, %v2476_v17  ;;  %v2663_v53 = vsel %vm1639_vm2, %v2661_v30, %v2662_v36  ;;  %v4378_v17 = vpop.permute.xlu2 %4377 }
  0xa4   : > { %v4348_v39 = vpop.permute.xlu1 %4347  ;;  %v5350_v2 = vpack.c.b16 %v1997_v10, %v1996_v47  ;;  %v1994_v9 = vunpack.c.l.b16 %v1928_v13  ;;  %v1995_v40 = vunpack.c.l.b16 %v1929_v37  ;;  %v4365_v47 = vunpack.i.h.bf16 %v5332_v27 }
  0xa5   : > { %v4350_v32 = vunpack.i.h.bf16 %v4348_v39  ;;  %v4349_v22 = vunpack.i.l.bf16 %v4348_v39  ;;  %v4521_v16 = vpack.i.bf16 %v2477_v57, %v2475_v56  ;;  %v2665_v10 = vsel %vm1639_vm2, %v2662_v36, %v2664_v50 }
  0xa6   : > { %v4333_v54 = vpop.permute.xlu0 %4332  ;;  %4009 = vmatmul.msk.bf16.vlgmr.msra.gmra.mxu2 %vm2033_vm5, %v5350_v2  ;;  %v5355_v58 = vpack.c.b16 %v1995_v40, %v1994_v9  ;;  %v2468_v13 = vrot.slane %v5296_v12, 1  ;;  %v2469_v37 = vrot.slane %v5286_v5, 1  ;;  %v4496_v30 = vpack.i.bf16 %v2665_v10, %v2663_v53 }
  0xa7   : > { %v4335_v0 = vunpack.i.h.bf16 %v4333_v54  ;;  %v4334_v63 = vunpack.i.l.bf16 %v4333_v54  ;;  %v2471_v39 = vrot.slane %v5299_v15, 1  ;;  %v4364_v9 = vunpack.i.l.bf16 %v5332_v27  ;;  %4522 = vrot.lane.b32.xlu1 %v4521_v16, %s4710_s28  ;;  %v4279_v54 = vld [vmem:[%s5204_s13 + $0x18] sm:$0xff]  }
  0xa8   : > { %4029 = vmatmul.msk.bf16.vlgmr.msra.gmra.mxu3 %vm2033_vm5, %v5355_v58  ;;  %v2470_v50 = vsel %vm1440_vm1, %v2468_v13, %v2469_v37  ;;  %4497 = vrot.lane.b32.xlu2 %v4496_v30, %s4711_s29  ;;  %v4212_v53 = vunpack.c.l.bf16 %v4279_v54  ;;  %v1860_v15 = vsel %vm1838_vm3, %v4914_v60, %v4365_v47  ;;  %v4213_v10 = vunpack.c.h.bf16 %v4279_v54 }
  0xa9   : > { %v1840_v6 = vsel %vm1838_vm3, %v4797_v1, %v4335_v0  ;;  %v1839_v38 = vsel %vm1838_vm3, %v4815_v3, %v4334_v63  ;;  %v2472_v0 = vsel %vm1440_vm1, %v2469_v37, %v2471_v39  ;;  %v4380_v63 = vunpack.i.h.bf16 %v4378_v17 }
  0xaa   : > { %v1876_v40 = vsel %vm1875_vm4, %v1839_v38, %v4349_v22  ;;  %v1877_v36 = vsel %vm1875_vm4, %v1840_v6, %v4350_v32  ;;  %v4379_v22 = vunpack.i.l.bf16 %v4378_v17  ;;  %v1859_v13 = vsel %vm1838_vm3, %v4906_v52, %v4364_v9 }
  0xab   : > { %v1912_v56 = vpack.c.bf16 %v1876_v40, %v1876_v40  ;;  %v1913_v57 = vpack.c.bf16 %v1877_v36, %v1877_v36  ;;  %v4511_v36 = vpack.i.bf16 %v2472_v0, %v2470_v50  ;;  %v1266_v30 = vrot.slane %v4212_v53, 7 }
  0xac   : > { %v4373_v27 = vpop.permute.xlu1 %4372  ;;  %v1267_v29 = vrot.slane %v4213_v10, 7  ;;  %v4393_v10 = vpop.permute.xlu2 %4392 }
  0xad   : > { %v4375_v32 = vunpack.i.h.bf16 %v4373_v27  ;;  %v4374_v6 = vunpack.i.l.bf16 %v4373_v27  ;;  %v2176_v16 = vunpack.c.l.b16 %v1912_v56  ;;  %v2177_v38 = vunpack.c.l.b16 %v1913_v57 }
  0xae   : > { %v4368_v40 = vpop.permute.xlu0 %4367  ;;  %v5390_v57 = vsel %vm997_vm0, %v1266_v30, %v1267_v29 }
  0xaf   : > { %v4370_v37 = vunpack.i.h.bf16 %v4368_v40  ;;  %v4369_v39 = vunpack.i.l.bf16 %v4368_v40  ;;  %v1844_v60 = vsel %vm1838_vm3, %v4942_v33, %v4375_v32  ;;  %v1843_v47 = vsel %vm1838_vm3, %v4937_v25, %v4374_v6 }
  0xb0   : > { %v1881_v17 = vsel %vm1875_vm4, %v1844_v60, %v4380_v63  ;;  %v1880_v54 = vsel %vm1875_vm4, %v1843_v47, %v4379_v22  ;;  %v2178_v56 = vpack.c.b16 %v2177_v38, %v2176_v16  ;;  %4512 = vrot.lane.b32.xlu2 %v4511_v36, %s4710_s28  ;;  %v5397_v63 = vsel %vm997_vm0, 0.0, %v1266_v30 }
  0xb1   : > { %v1896_v52 = vsel %vm1875_vm4, %v1859_v13, %v4369_v39  ;;  %v1897_v9 = vsel %vm1875_vm4, %v1860_v15, %v4370_v37  ;;  %v1916_v50 = vpack.c.bf16 %v1880_v54, %v1880_v54  ;;  %v1917_v0 = vpack.c.bf16 %v1881_v17, %v1881_v17 }
  0xb2   : > { %4021 = vmatmul.msk.bf16.vlgmr.msra.gmra.mxu1 %vm2033_vm5, %v2178_v56  ;;  %v1932_v33 = vpack.c.bf16 %v1896_v52, %v1896_v52  ;;  %v1933_v53 = vpack.c.bf16 %v1897_v9, %v1897_v9  ;;  %v1384_v22 = vsel %vm997_vm0, %v1267_v29, 0.0  ;;  %v2478_v15 = vrot.slane %v5397_v63, 1 }
  0xb3   : > { %v1982_v27 = vunpack.c.l.b16 %v1916_v50  ;;  %v1983_v25 = vunpack.c.l.b16 %v1917_v0  ;;  %v2479_v38 = vrot.slane %v5390_v57, 1  ;;  %v2481_v39 = vrot.slane %v1384_v22, 1 }
  0xb4   : > { %v1998_v32 = vunpack.c.l.b16 %v1932_v33  ;;  %v1999_v6 = vunpack.c.l.b16 %v1933_v53  ;;  %v4388_v16 = vpop.permute.xlu1 %4387  ;;  %v2676_v30 = vrot.slane %v5397_v63, 2  ;;  %v2677_v29 = vrot.slane %v5390_v57, 2 }
  0xb5   : > { %v5402_v13 = vpack.c.b16 %v1983_v25, %v1982_v27  ;;  %v4390_v40 = vunpack.i.h.bf16 %v4388_v16  ;;  %v4389_v37 = vunpack.i.l.bf16 %v4388_v16  ;;  %v2480_v36 = vsel %vm1440_vm1, %v2478_v15, %v2479_v38 }
  0xb6   : > { %v4383_v60 = vpop.permute.xlu0 %4382  ;;  %v5404_v47 = vpack.c.b16 %v1999_v6, %v1998_v32  ;;  %v2482_v56 = vsel %vm1440_vm1, %v2479_v38, %v2481_v39  ;;  %v2679_v52 = vrot.slane %v1384_v22, 2  ;;  %v4395_v9 = vunpack.i.h.bf16 %v4393_v10  ;;  %v4408_v39 = vpop.permute.xlu2 %4407 }
  0xb7   : > { %v4385_v17 = vunpack.i.h.bf16 %v4383_v60  ;;  %v4384_v54 = vunpack.i.l.bf16 %v4383_v60  ;;  %4002 = vmatmul.msk.bf16.gmra.mxu0 %vm2033_vm5, %v5402_v13  ;;  %v4394_v50 = vunpack.i.l.bf16 %v4393_v10  ;;  %v4531_v0 = vpack.i.bf16 %v2482_v56, %v2480_v36 }
  0xb8   : > { %4010 = vmatmul.msk.bf16.gmra.mxu2 %vm2033_vm5, %v5404_v47  ;;  %4030 = vmatmul.msk.bf16.gmra.mxu3 %vm2033_vm5, %v5350_v2  ;;  %v2678_v33 = vsel %vm1639_vm2, %v2676_v30, %v2677_v29  ;;  %v2680_v25 = vsel %vm1639_vm2, %v2677_v29, %v2679_v52  ;;  %v2671_v22 = vrot.slane %v5338_v59, 2  ;;  %v2672_v16 = vrot.slane %v5335_v62, 2 }
  0xb9   : > { %v1862_v53 = vsel %vm1838_vm3, %v4967_v55, %v4385_v17  ;;  %v1861_v27 = vsel %vm1838_vm3, %v4961_v48, %v4384_v54  ;;  %4532 = vrot.lane.b32.xlu0 %v4531_v0, %s4710_s28  ;;  %v4536_v10 = vpack.i.bf16 %v2680_v25, %v2678_v33  ;;  %v4280_v55 = vld [vmem:[%s5204_s13 + $0x20] sm:$0xff]   ;;  %v2674_v60 = vrot.slane %v5343_v4, 2 }
  0xba   : > { %v1899_v32 = vsel %vm1875_vm4, %v1862_v53, %v4390_v40  ;;  %v1898_v6 = vsel %vm1875_vm4, %v1861_v27, %v4389_v37  ;;  %v2673_v48 = vsel %vm1639_vm2, %v2671_v22, %v2672_v16  ;;  %v4216_v36 = vunpack.c.l.bf16 %v4280_v55 }
  0xbb   : > { %v1934_v15 = vpack.c.bf16 %v1898_v6, %v1898_v6  ;;  %v1935_v38 = vpack.c.bf16 %v1899_v32, %v1899_v32  ;;  %4537 = vrot.lane.b32.xlu1 %v4536_v10, %s4711_s29  ;;  %v4217_v30 = vunpack.c.h.bf16 %v4280_v55  ;;  %v1846_v37 = vsel %vm1838_vm3, %v4982_v19, %v4395_v9 }
  0xbc   : > { %v1845_v29 = vsel %vm1838_vm3, %v4974_v8, %v4394_v50  ;;  %v2675_v54 = vsel %vm1639_vm2, %v2672_v16, %v2674_v60  ;;  %v1269_v56 = vrot.slane %v4216_v36, 7  ;;  %v4410_v50 = vunpack.i.h.bf16 %v4408_v39 }
  0xbd   : > { %v4403_v40 = vpop.permute.xlu1 %4402  ;;  %v4526_v33 = vpack.i.bf16 %v2675_v54, %v2673_v48  ;;  %v2000_v27 = vunpack.c.l.b16 %v1934_v15  ;;  %v2001_v25 = vunpack.c.l.b16 %v1935_v38  ;;  %v1270_v4 = vrot.slane %v4217_v30, 7 }
  0xbe   : > { %v4398_v17 = vpop.permute.xlu0 %4397  ;;  %v4405_v53 = vunpack.i.h.bf16 %v4403_v40  ;;  %v4404_v6 = vunpack.i.l.bf16 %v4403_v40  ;;  %v5442_v9 = vsel %vm997_vm0, 0.0, %v1269_v56  ;;  %v4409_v10 = vunpack.i.l.bf16 %v4408_v39  ;;  %v4423_v30 = vpop.permute.xlu2 %4422 }
  0xbf   : > { %v4400_v52 = vunpack.i.h.bf16 %v4398_v17  ;;  %v4399_v0 = vunpack.i.l.bf16 %v4398_v17  ;;  %4527 = vrot.lane.b32.xlu2 %v4526_v33, %s4711_s29  ;;  %v5445_v16 = vsel %vm997_vm0, %v1269_v56, %v1270_v4  ;;  %v5448_v15 = vsel %vm997_vm0, %v1270_v4, 0.0 }
  0xc0   : > { %v1864_v38 = vsel %vm1838_vm3, %v5026_v21, %v4405_v53  ;;  %v5452_v55 = vpack.c.b16 %v2001_v25, %v2000_v27  ;;  %v1863_v60 = vsel %vm1838_vm3, %v5021_v14, %v4404_v6  ;;  %v2681_v39 = vrot.slane %v5442_v9, 2  ;;  %v4281_v6 = vld [vmem:[%s5204_s13 + $0x28] sm:$0xff]  }
  0xc1   : > { %v1882_v22 = vsel %vm1875_vm4, %v1845_v29, %v4399_v0  ;;  %v1883_v32 = vsel %vm1875_vm4, %v1846_v37, %v4400_v52  ;;  %v2682_v40 = vrot.slane %v5445_v16, 2  ;;  %v2684_v37 = vrot.slane %v5448_v15, 2 }
  0xc2   : > { %4022 = vmatmul.msk.bf16.gmra.mxu1 %vm2033_vm5, %v5310_v49  ;;  %v1918_v8 = vpack.c.bf16 %v1882_v22, %v1882_v22  ;;  %v1919_v19 = vpack.c.bf16 %v1883_v32, %v1883_v32  ;;  %v1901_v33 = vsel %vm1875_vm4, %v1864_v38, %v4410_v50  ;;  %v1900_v53 = vsel %vm1875_vm4, %v1863_v60, %v4409_v10 }
  0xc3   : > { %v2683_v0 = vsel %vm1639_vm2, %v2681_v39, %v2682_v40  ;;  %v2685_v14 = vsel %vm1639_vm2, %v2682_v40, %v2684_v37  ;;  %v4220_v50 = vunpack.c.l.bf16 %v4281_v6  ;;  %v4221_v10 = vunpack.c.h.bf16 %v4281_v6 }
  0xc4   : > { %v1984_v48 = vunpack.c.l.b16 %v1918_v8  ;;  %v1985_v49 = vunpack.c.l.b16 %v1919_v19  ;;  %v4546_v27 = vpack.i.bf16 %v2685_v14, %v2683_v0  ;;  %v1936_v8 = vpack.c.bf16 %v1900_v53, %v1900_v53 }
  0xc5   : > { %v4418_v36 = vpop.permute.xlu1 %4417  ;;  %v1937_v19 = vpack.c.bf16 %v1901_v33, %v1901_v33  ;;  %v4424_v60 = vunpack.i.l.bf16 %v4423_v30  ;;  %v4425_v39 = vunpack.i.h.bf16 %v4423_v30 }
  0xc6   : > { %v5459_v29 = vpack.c.b16 %v1985_v49, %v1984_v48  ;;  %v4413_v17 = vpop.permute.xlu0 %4412  ;;  %v4420_v54 = vunpack.i.h.bf16 %v4418_v36  ;;  %v4419_v21 = vunpack.i.l.bf16 %v4418_v36  ;;  %4547 = vrot.lane.b32.xlu0 %v4546_v27, %s4711_s29  ;;  %v1272_v36 = vrot.slane %v4220_v50, 7 }
  0xc7   : > { %v4415_v56 = vunpack.i.h.bf16 %v4413_v17  ;;  %v4414_v52 = vunpack.i.l.bf16 %v4413_v17  ;;  %v2002_v40 = vunpack.c.l.b16 %v1936_v8  ;;  %v4438_v17 = vpop.permute.xlu2 %4437  ;;  %v1865_v30 = vsel %vm1838_vm3, %v5063_v11, %v4424_v60 }
  0xc8   : > { %4011 = vmatmul.msk.bf16.gmra.mxu2 %vm2033_vm5, %v5452_v55  ;;  %4031 = vmatmul.msk.bf16.gmra.mxu3 %vm2033_vm5, %v5404_v47  ;;  %v4440_v53 = vunpack.i.h.bf16 %v4438_v17  ;;  %v4439_v27 = vunpack.i.l.bf16 %v4438_v17  ;;  %v1866_v6 = vsel %vm1838_vm3, %v5069_v18, %v4425_v39  ;;  %v2486_v39 = vrot.slane %v5448_v15, 1 }
  0xc9   : > { %4003 = vmatmul.msk.bf16.gmra.mxu0 %vm2033_vm5, %v5459_v29  ;;  %v1848_v25 = vsel %vm1838_vm3, %v5043_v45, %v4415_v56  ;;  %v1847_v4 = vsel %vm1838_vm3, %v5040_v43, %v4414_v52  ;;  %v1273_v45 = vrot.slane %v4221_v10, 7  ;;  %v2003_v43 = vunpack.c.l.b16 %v1937_v19 }
  0xca   : > { %v1885_v22 = vsel %vm1875_vm4, %v1848_v25, %v4420_v54  ;;  %v1884_v32 = vsel %vm1875_vm4, %v1847_v4, %v4419_v21  ;;  %v5483_v52 = vsel %vm997_vm0, 0.0, %v1272_v36 }
  0xcb   : > { %v1920_v38 = vpack.c.bf16 %v1884_v32, %v1884_v32  ;;  %v1921_v48 = vpack.c.bf16 %v1885_v22, %v1885_v22  ;;  %v5480_v56 = vsel %vm997_vm0, %v1272_v36, %v1273_v45  ;;  %v5490_v4 = vsel %vm997_vm0, %v1273_v45, 0.0 }
  0xcc   : > { %v2488_v22 = vrot.slane %v5483_v52, 1  ;;  %v2489_v32 = vrot.slane %v5480_v56, 1  ;;  %v5496_v8 = vpack.c.b16 %v2003_v43, %v2002_v40  ;;  %v2483_v36 = vrot.slane %v5442_v9, 1 }
  0xcd   : > { %v4433_v49 = vpop.permute.xlu1 %4432  ;;  %v1986_v0 = vunpack.c.l.b16 %v1920_v38  ;;  %v1987_v14 = vunpack.c.l.b16 %v1921_v48  ;;  %v2491_v38 = vrot.slane %v5490_v4, 1  ;;  %v2484_v45 = vrot.slane %v5445_v16, 1 }
  0xce   : > { %v4428_v37 = vpop.permute.xlu0 %4427  ;;  %v4435_v54 = vunpack.i.h.bf16 %v4433_v49  ;;  %v4434_v21 = vunpack.i.l.bf16 %v4433_v49  ;;  %v2490_v10 = vsel %vm1440_vm1, %v2488_v22, %v2489_v32 }
  0xcf   : > { %v4429_v33 = vunpack.i.l.bf16 %v4428_v37  ;;  %v4430_v25 = vunpack.i.h.bf16 %v4428_v37  ;;  %v5502_v50 = vpack.c.b16 %v1987_v14, %v1986_v0  ;;  %v2485_v17 = vsel %vm1440_vm1, %v2483_v36, %v2484_v45 }
  0xd0   : > { %v1850_v19 = vsel %vm1838_vm3, %v5089_v51, %v4435_v54  ;;  %v1849_v11 = vsel %vm1838_vm3, %v5080_v44, %v4434_v21  ;;  %v2492_v51 = vsel %vm1440_vm1, %v2489_v32, %v2491_v38  ;;  %v2487_v54 = vsel %vm1440_vm1, %v2484_v45, %v2486_v39  ;;  %v4282_v21 = vld [vmem:[%s5204_s13 + $0x30] sm:$0xff]  }
  0xd1   : > { %v1902_v48 = vsel %vm1875_vm4, %v1865_v30, %v4429_v33  ;;  %v1903_v49 = vsel %vm1875_vm4, %v1866_v6, %v4430_v25  ;;  %v1887_v18 = vsel %vm1875_vm4, %v1850_v19, %v4440_v53  ;;  %v1886_v60 = vsel %vm1875_vm4, %v1849_v11, %v4439_v27  ;;  %v4453_v11 = vpop.permute.xlu2 %4452 }
  0xd2   : > { %4023 = vmatmul.msk.bf16.gmra.mxu1 %vm2033_vm5, %v5402_v13  ;;  %v4551_v44 = vpack.i.bf16 %v2492_v51, %v2490_v10  ;;  %v1938_v43 = vpack.c.bf16 %v1902_v48, %v1902_v48  ;;  %v1939_v37 = vpack.c.bf16 %v1903_v49, %v1903_v49  ;;  %v1922_v0 = vpack.c.bf16 %v1886_v60, %v1886_v60 }
  0xd3   : > { %v1923_v14 = vpack.c.bf16 %v1887_v18, %v1887_v18  ;;  %v4541_v30 = vpack.i.bf16 %v2487_v54, %v2485_v17  ;;  %v4224_v33 = vunpack.c.l.bf16 %v4282_v21  ;;  %v4225_v53 = vunpack.c.h.bf16 %v4282_v21 }
  0xd4   : > { %4552 = vrot.lane.b32.xlu1 %v4551_v44, %s4710_s28  ;;  %v2004_v27 = vunpack.c.l.b16 %v1938_v43  ;;  %v2005_v25 = vunpack.c.l.b16 %v1939_v37  ;;  %v1988_v32 = vunpack.c.l.b16 %v1922_v0  ;;  %v4455_v51 = vunpack.i.h.bf16 %v4453_v11 }
  0xd5   : > { %4542 = vrot.lane.b32.xlu2 %v4541_v30, %s4710_s28  ;;  %v1275_v15 = vrot.slane %v4224_v33, 7  ;;  %v1276_v22 = vrot.slane %v4225_v53, 7  ;;  %v1989_v6 = vunpack.c.l.b16 %v1923_v14  ;;  %v4448_v19 = vpop.permute.xlu1 %4447  ;;  %v4454_v44 = vunpack.i.l.bf16 %v4453_v11 }
  0xd6   : > { %v4443_v40 = vpop.permute.xlu0 %4442  ;;  %v5534_v60 = vpack.c.b16 %v2005_v25, %v2004_v27  ;;  %v4450_v45 = vunpack.i.h.bf16 %v4448_v19  ;;  %v4449_v17 = vunpack.i.l.bf16 %v4448_v19  ;;  %v1852_v25 = vsel %vm1838_vm3, %v5141_v31, %v4455_v51 }
  0xd7   : > { %v4445_v10 = vunpack.i.h.bf16 %v4443_v40  ;;  %v5526_v38 = vsel %vm997_vm0, %v1275_v15, %v1276_v22  ;;  %v4444_v48 = vunpack.i.l.bf16 %v4443_v40  ;;  %v5529_v49 = vsel %vm997_vm0, 0.0, %v1275_v15 }
  0xd8   : > { %4012 = vmatmul.msk.bf16.gmra.mxu2 %vm2033_vm5, %v5496_v8  ;;  %4032 = vmatmul.msk.bf16.gmra.mxu3 %vm2033_vm5, %v5452_v55  ;;  %v1387_v18 = vsel %vm997_vm0, %v1276_v22, 0.0  ;;  %v5536_v36 = vpack.c.b16 %v1989_v6, %v1988_v32  ;;  %v2493_v43 = vrot.slane %v5529_v49, 1  ;;  %v2494_v40 = vrot.slane %v5526_v38, 1 }
  0xd9   : > { %4004 = vmatmul.msk.bf16.gmra.mxu0 %vm2033_vm5, %v5502_v50  ;;  %v1868_v37 = vsel %vm1838_vm3, %v5119_v20, %v4445_v10  ;;  %v2496_v54 = vrot.slane %v1387_v18, 1  ;;  %v2691_v21 = vrot.slane %v5529_v49, 2  ;;  %v1867_v0 = vsel %vm1838_vm3, %v5113_v42, %v4444_v48 }
  0xda   : > { %v2495_v14 = vsel %vm1440_vm1, %v2493_v43, %v2494_v40  ;;  %v2692_v30 = vrot.slane %v5526_v38, 2  ;;  %v2694_v33 = vrot.slane %v1387_v18, 2  ;;  %v1851_v20 = vsel %vm1838_vm3, %v5133_v23, %v4454_v44 }
  0xdb   : > { %v2497_v27 = vsel %vm1440_vm1, %v2494_v40, %v2496_v54  ;;  %v1905_v42 = vsel %vm1875_vm4, %v1868_v37, %v4450_v45  ;;  %v1904_v6 = vsel %vm1875_vm4, %v1867_v0, %v4449_v17  ;;  %v2686_v48 = vrot.slane %v5483_v52, 2 }
  0xdc   : > { %v4561_v22 = vpack.i.bf16 %v2497_v27, %v2495_v14  ;;  %v2693_v32 = vsel %vm1639_vm2, %v2691_v21, %v2692_v30  ;;  %v2695_v19 = vsel %vm1639_vm2, %v2692_v30, %v2694_v33  ;;  %v2687_v18 = vrot.slane %v5480_v56, 2 }
  0xdd   : > { %v4566_v31 = vpack.i.bf16 %v2695_v19, %v2693_v32  ;;  %v1940_v51 = vpack.c.bf16 %v1904_v6, %v1904_v6  ;;  %v1941_v44 = vpack.c.bf16 %v1905_v42, %v1905_v42  ;;  %v2689_v45 = vrot.slane %v5490_v4, 2 }
  0xde   : > { %v4458_v39 = vpop.permute.xlu0 %4457  ;;  %4562 = vrot.lane.b32.xlu0 %v4561_v22, %s4710_s28  ;;  %v2688_v43 = vsel %vm1639_vm2, %v2686_v48, %v2687_v18 }
  0xdf   : > { %v4460_v53 = vunpack.i.h.bf16 %v4458_v39  ;;  %v4459_v15 = vunpack.i.l.bf16 %v4458_v39  ;;  %v4463_v23 = vpop.permute.xlu1 %4462  ;;  %4567 = vrot.lane.b32.xlu1 %v4566_v31, %s4711_s29  ;;  %v4283_v39 = vld [vmem:[%s5204_s13 + $0x38] sm:$0xff]   ;;  %v2690_v21 = vsel %vm1639_vm2, %v2687_v18, %v2689_v45  ;;  %v2006_v33 = vunpack.c.l.b16 %v1940_v51 }
  0xe0   : > { %v4228_v40 = vunpack.c.l.bf16 %v4283_v39  ;;  %v4229_v37 = vunpack.c.h.bf16 %v4283_v39  ;;  %v4556_v0 = vpack.i.bf16 %v2690_v21, %v2688_v43  ;;  %v4464_v27 = vunpack.i.l.bf16 %v4463_v23 }
  0xe1   : > { %v1888_v11 = vsel %vm1875_vm4, %v1851_v20, %v4459_v15  ;;  %v1889_v10 = vsel %vm1875_vm4, %v1852_v25, %v4460_v53  ;;  %v2007_v53 = vunpack.c.l.b16 %v1941_v44  ;;  %v4465_v15 = vunpack.i.h.bf16 %v4463_v23  ;;  %v4468_v20 = vpop.permute.xlu2 %4467 }
  0xe2   : > { %4024 = vmatmul.msk.bf16.gmra.mxu1 %vm2033_vm5, %v5459_v29  ;;  %v1924_v17 = vpack.c.bf16 %v1888_v11, %v1888_v11  ;;  %v1925_v54 = vpack.c.bf16 %v1889_v10, %v1889_v10  ;;  %v1278_v14 = vrot.slane %v4228_v40, 7  ;;  %v1279_v30 = vrot.slane %v4229_v37, 7  ;;  %4557 = vrot.lane.b32.xlu2 %v4556_v0, %s4711_s29 }
  0xe3   : > { %v5587_v11 = vpack.c.b16 %v2007_v53, %v2006_v33  ;;  %v4469_v18 = vunpack.i.l.bf16 %v4468_v20  ;;  %v1869_v44 = vsel %vm1838_vm3, %v5159_v41, %v4464_v27  ;;  %v4470_v45 = vunpack.i.h.bf16 %v4468_v20  ;;  %v4284_v33 = vld [vmem:[%s5204_s13 + $0x40] sm:$0xff]  }
  0xe4   : > { %v5574_v4 = vsel %vm997_vm0, %v1278_v14, %v1279_v30  ;;  %v5577_v22 = vsel %vm997_vm0, 0.0, %v1278_v14  ;;  %v1990_v32 = vunpack.c.l.b16 %v1924_v17  ;;  %v1991_v42 = vunpack.c.l.b16 %v1925_v54 }
  0xe5   : > { %v5580_v6 = vsel %vm997_vm0, %v1279_v30, 0.0  ;;  %v2696_v19 = vrot.slane %v5577_v22, 2  ;;  %v2697_v23 = vrot.slane %v5574_v4, 2  ;;  %v1870_v40 = vsel %vm1838_vm3, %v5156_v7, %v4465_v15 }
  0xe6   : > { %v4473_v25 = vpop.permute.xlu0 %4472  ;;  %v2699_v31 = vrot.slane %v5580_v6, 2  ;;  %v5595_v37 = vpack.c.b16 %v1991_v42, %v1990_v32  ;;  %v1906_v14 = vsel %vm1875_vm4, %v1869_v44, %v4469_v18  ;;  %v1907_v7 = vsel %vm1875_vm4, %v1870_v40, %v4470_v45 }
  0xe7   : > { %v4475_v10 = vunpack.i.h.bf16 %v4473_v25  ;;  %v4474_v48 = vunpack.i.l.bf16 %v4473_v25  ;;  %v4478_v51 = vpop.permute.xlu1 %4477  ;;  %v2698_v39 = vsel %vm1639_vm2, %v2696_v19, %v2697_v23  ;;  %v1943_v53 = vpack.c.bf16 %v1907_v7, %v1907_v7 }
  0xe8   : > { %4013 = vmatmul.msk.bf16.gmra.mxu2 %vm2033_vm5, %v5534_v60  ;;  %4033 = vmatmul.msk.bf16.gmra.mxu3 %vm2033_vm5, %v5496_v8  ;;  %v2700_v43 = vsel %vm1639_vm2, %v2697_v23, %v2699_v31  ;;  %v4480_v54 = vunpack.i.h.bf16 %v4478_v51  ;;  %v4479_v21 = vunpack.i.l.bf16 %v4478_v51  ;;  %v4232_v15 = vunpack.c.l.bf16 %v4284_v33 }
  0xe9   : > { %4005 = vmatmul.msk.bf16.gmra.mxu0 %vm2033_vm5, %v5536_v36  ;;  %v4576_v17 = vpack.i.bf16 %v2700_v43, %v2698_v39  ;;  %v1854_v0 = vsel %vm1838_vm3, %v5182_v61, %v4475_v10  ;;  %v1853_v41 = vsel %vm1838_vm3, %v5179_v35, %v4474_v48  ;;  %v1942_v35 = vpack.c.bf16 %v1906_v14, %v1906_v14 }
  0xea   : > { %v1891_v61 = vsel %vm1875_vm4, %v1854_v0, %v4480_v54  ;;  %v1890_v30 = vsel %vm1875_vm4, %v1853_v41, %v4479_v21  ;;  %v4233_v27 = vunpack.c.h.bf16 %v4284_v33  ;;  %v4483_v32 = vpop.permute.xlu2 %4482  ;;  %v1281_v42 = vrot.slane %v4232_v15, 7 }
  0xeb   : > { %4577 = vrot.lane.b32.xlu0 %v4576_v17, %s4711_s29  ;;  %v1926_v25 = vpack.c.bf16 %v1890_v30, %v1890_v30  ;;  %v1927_v20 = vpack.c.bf16 %v1891_v61, %v1891_v61  ;;  %v2008_v23 = vunpack.c.l.b16 %v1942_v35  ;;  %v2009_v31 = vunpack.c.l.b16 %v1943_v53 }
  0xec   : > { %v1282_v19 = vrot.slane %v4233_v27, 7  ;;  %v5617_v48 = vsel %vm997_vm0, 0.0, %v1281_v42  ;;  %v4485_v51 = vunpack.i.h.bf16 %v4483_v32  ;;  %v4484_v44 = vunpack.i.l.bf16 %v4483_v32 }
  0xed   : > { %v2503_v39 = vrot.slane %v5617_v48, 1  ;;  %v1992_v40 = vunpack.c.l.b16 %v1926_v25  ;;  %v1993_v17 = vunpack.c.l.b16 %v1927_v20  ;;  %v5629_v7 = vpack.c.b16 %v2009_v31, %v2008_v23 }
  0xee   : > { %v5614_v10 = vsel %vm997_vm0, %v1281_v42, %v1282_v19  ;;  %v5620_v18 = vsel %vm997_vm0, %v1282_v19, 0.0  ;;  %v4488_v45 = vpop.permute.xlu0 %4487  ;;  %v1872_v61 = vsel %vm1838_vm3, %v5207_v34, %v4485_v51  ;;  %v1871_v30 = vsel %vm1838_vm3, %v5210_v46, %v4484_v44  ;;  %v4285_v19 = vld [vmem:[%s5204_s13 + $0x48] sm:$0xff]  }
  0xef   : > { %v2504_v43 = vrot.slane %v5614_v10, 1  ;;  %v2506_v54 = vrot.slane %v5620_v18, 1  ;;  %v4490_v0 = vunpack.i.h.bf16 %v4488_v45  ;;  %v4489_v41 = vunpack.i.l.bf16 %v4488_v45 }
  0xf0   : > { %v5635_v33 = vpack.c.b16 %v1993_v17, %v1992_v40  ;;  %v2498_v34 = vrot.slane %v5577_v22, 1  ;;  %v2499_v46 = vrot.slane %v5574_v4, 1  ;;  %v2501_v25 = vrot.slane %v5580_v6, 1 }
  0xf1   : > { %v2505_v21 = vsel %vm1440_vm1, %v2503_v39, %v2504_v43  ;;  %v2507_v14 = vsel %vm1440_vm1, %v2504_v43, %v2506_v54  ;;  %v1908_v53 = vsel %vm1875_vm4, %v1871_v30, %v4489_v41  ;;  %v1909_v15 = vsel %vm1875_vm4, %v1872_v61, %v4490_v0  ;;  %v4493_v27 = vpop.permute.xlu1 %4492 }
  0xf2   : > { %4025 = vmatmul.msk.bf16.gmra.mxu1 %vm2033_vm5, %v5502_v50  ;;  %v4581_v35 = vpack.i.bf16 %v2507_v14, %v2505_v21  ;;  %v1944_v20 = vpack.c.bf16 %v1908_v53, %v1908_v53  ;;  %v1945_v32 = vpack.c.bf16 %v1909_v15, %v1909_v15  ;;  %v2500_v42 = vsel %vm1440_vm1, %v2498_v34, %v2499_v46 }
  0xf3   : > { %v2502_v23 = vsel %vm1440_vm1, %v2499_v46, %v2501_v25  ;;  %v4236_v31 = vunpack.c.l.bf16 %v4285_v19  ;;  %v4237_v44 = vunpack.c.h.bf16 %v4285_v19  ;;  %v4495_v21 = vunpack.i.h.bf16 %v4493_v27 }
  0xf4   : > { %4582 = vrot.lane.b32.xlu1 %v4581_v35, %s4710_s28  ;;  %v4571_v51 = vpack.i.bf16 %v2502_v23, %v2500_v42  ;;  %v2010_v39 = vunpack.c.l.b16 %v1944_v20  ;;  %v2011_v43 = vunpack.c.l.b16 %v1945_v32  ;;  %v4494_v14 = vunpack.i.l.bf16 %v4493_v27 }
  0xf5   : > { %v1284_v45 = vrot.slane %v4236_v31, 7  ;;  %v1285_v40 = vrot.slane %v4237_v44, 7  ;;  %v2857_v42 = vsel %vm1838_vm3, %v5233_v24, %v4495_v21 }
  0xf6   : > { %4572 = vrot.lane.b32.xlu2 %v4571_v51, %s4710_s28  ;;  %v4503_v17 = vpop.permute.xlu0 %4502  ;;  %v5664_v35 = vpack.c.b16 %v2011_v43, %v2010_v39  ;;  %v2856_v51 = vsel %vm1838_vm3, %v5236_v26, %v4494_v14  ;;  %v2701_v14 = vrot.slane %v5617_v48, 2 }
  0xf7   : > { %v5654_v6 = vsel %vm997_vm0, 0.0, %v1284_v45  ;;  %v5657_v0 = vsel %vm997_vm0, %v1284_v45, %v1285_v40  ;;  %v1390_v41 = vsel %vm997_vm0, %v1285_v40, 0.0  ;;  %v4505_v53 = vunpack.i.h.bf16 %v4503_v17 }
  0xf8   : > { %4014 = vmatmul.msk.bf16.gmra.mxu2 %vm2033_vm5, %v5587_v11  ;;  %4034 = vmatmul.msk.bf16.gmra.mxu3 %vm2033_vm5, %v5534_v60  ;;  %v2508_v61 = vrot.slane %v5654_v6, 1  ;;  %v2509_v30 = vrot.slane %v5657_v0, 1  ;;  %6382 = vst [vmem:[#allocation5_spill] sm:$0xff] %v5664_v35  ;;  %v2511_v15 = vrot.slane %v1390_v41, 1  ;;  %v2706_v34 = vrot.slane %v5654_v6, 2 }
  0xf9   : > { %4006 = vmatmul.msk.bf16.gmra.mxu0 %vm2033_vm5, %v5595_v37  ;;  %v4504_v46 = vunpack.i.l.bf16 %v4503_v17  ;;  %v4508_v25 = vpop.permute.xlu1 %4507  ;;  %v2707_v32 = vrot.slane %v5657_v0, 2  ;;  %v2709_v27 = vrot.slane %v1390_v41, 2  ;;  %v2855_v41 = vsel %vm1838_vm3, %v4797_v1, %v4505_v53 }
  0xfa   : > { %v2510_v20 = vsel %vm1440_vm1, %v2508_v61, %v2509_v30  ;;  %v2512_v31 = vsel %vm1440_vm1, %v2509_v30, %v2511_v15  ;;  %v4510_v43 = vunpack.i.h.bf16 %v4508_v25  ;;  %v4509_v40 = vunpack.i.l.bf16 %v4508_v25 }
  0xfb   : > { %v4591_v44 = vpack.i.bf16 %v2512_v31, %v2510_v20  ;;  %v2708_v45 = vsel %vm1639_vm2, %v2706_v34, %v2707_v32  ;;  %v2710_v39 = vsel %vm1639_vm2, %v2707_v32, %v2709_v27  ;;  %v2854_v24 = vsel %vm1838_vm3, %v4815_v3, %v4504_v46  ;;  %v4286_v32 = vld [vmem:[%s5204_s13 + $0x50] sm:$0xff]  }
  0xfc   : > { %v4596_v17 = vpack.i.bf16 %v2710_v39, %v2708_v45  ;;  %v2702_v61 = vrot.slane %v5614_v10, 2  ;;  %v2704_v30 = vrot.slane %v5620_v18, 2  ;;  %v2891_v53 = vsel %vm1875_vm4, %v2855_v41, %v4510_v43 }
  0xfd   : > { %4592 = vrot.lane.b32.xlu0 %v4591_v44, %s4710_s28  ;;  %v2890_v15 = vsel %vm1875_vm4, %v2854_v24, %v4509_v40  ;;  %v4240_v31 = vunpack.c.l.bf16 %v4286_v32  ;;  %v4241_v45 = vunpack.c.h.bf16 %v4286_v32 }
  0xfe   : > { %4597 = vrot.lane.b32.xlu1 %v4596_v17, %s4711_s29  ;;  %v2703_v25 = vsel %vm1639_vm2, %v2701_v14, %v2702_v61  ;;  %v2705_v20 = vsel %vm1639_vm2, %v2702_v61, %v2704_v30  ;;  %v2926_v44 = vpack.c.bf16 %v2890_v15, %v2890_v15 }
  0xff   : > { %v1287_v18 = vrot.slane %v4240_v31, 7  ;;  %v1288_v17 = vrot.slane %v4241_v45, 7 }
 0x100   : > { %v3189_v14 = vunpack.c.l.b16 %v2926_v44 }
 0x101   : > { %v5707_v61 = vsel %vm997_vm0, %v1287_v18, %v1288_v17  ;;  %v5710_v30 = vsel %vm997_vm0, %v1288_v17, 0.0 }
 0x102   : > { %4026 = vmatmul.msk.bf16.gmra.mxu1 %vm2033_vm5, %v5536_v36  ;;  %v4498_v54 = vpop.permute.xlu2 %4497  ;;  %v2712_v15 = vrot.slane %v5707_v61, 2 }
 0x103   : > { %v4500_v19 = vunpack.i.h.bf16 %v4498_v54  ;;  %v4499_v23 = vunpack.i.l.bf16 %v4498_v54 }
 0x105   : > { %v2893_v26 = vsel %vm1875_vm4, %v2857_v42, %v4500_v19  ;;  %v2892_v54 = vsel %vm1875_vm4, %v2856_v51, %v4499_v23  ;;  %v4586_v23 = vpack.i.bf16 %v2705_v20, %v2703_v25  ;;  %v2927_v51 = vpack.c.bf16 %v2891_v53, %v2891_v53 }
 0x106   : > { %v2929_v34 = vpack.c.bf16 %v2893_v26, %v2893_v26  ;;  %v2928_v46 = vpack.c.bf16 %v2892_v54, %v2892_v54  ;;  %v4518_v19 = vpop.permute.xlu0 %4517  ;;  %v5704_v54 = vsel %vm997_vm0, 0.0, %v1287_v18  ;;  %v4287_v18 = vld [vmem:[%s5204_s13 + $0x58] sm:$0xff]  }
 0x107   : > { %4587 = vrot.lane.b32.xlu2 %v4586_v23, %s4711_s29  ;;  %v4520_v43 = vunpack.i.h.bf16 %v4518_v19  ;;  %v4519_v40 = vunpack.i.l.bf16 %v4518_v19  ;;  %v4244_v17 = vunpack.c.l.bf16 %v4287_v18 }
 0x108   : > { %4015 = vmatmul.msk.bf16.gmra.mxu2 %vm2033_vm5, %v5629_v7  ;;  %4035 = vmatmul.msk.bf16.gmra.mxu3 %vm2033_vm5, %v5587_v11  ;;  %v2995_v39 = vunpack.c.l.b16 %v2929_v34  ;;  %v2994_v41 = vunpack.c.l.b16 %v2928_v46 }
 0x109   : > { %4007 = vmatmul.msk.bf16.gmra.mxu0 %vm2033_vm5, %v5635_v33 }
 0x10a   : > { %v4513_v21 = vpop.permute.xlu2 %4512  ;;  %v3026_v25 = vpack.c.b16 %v2995_v39, %v2994_v41  ;;  %v4245_v41 = vunpack.c.h.bf16 %v4287_v18 }
 0x10b   : > { %v4515_v27 = vunpack.i.h.bf16 %v4513_v21  ;;  %v4514_v42 = vunpack.i.l.bf16 %v4513_v21  ;;  %v3190_v21 = vunpack.c.l.b16 %v2927_v51 }
 0x10d   : > { %v2859_v24 = vsel %vm1838_vm3, %v5286_v5, %v4515_v27  ;;  %v2858_v26 = vsel %vm1838_vm3, %v5296_v12, %v4514_v42  ;;  %v2711_v5 = vrot.slane %v5704_v54, 2  ;;  %v2714_v12 = vrot.slane %v5710_v30, 2 }
 0x10e   : > { %v2894_v34 = vsel %vm1875_vm4, %v2858_v26, %v4519_v40  ;;  %v2895_v46 = vsel %vm1875_vm4, %v2859_v24, %v4520_v43  ;;  %v3191_v27 = vpack.c.b16 %v3190_v21, %v3189_v14  ;;  %v1290_v14 = vrot.slane %v4244_v17, 7 }
 0x10f   : > { %v2713_v20 = vsel %vm1639_vm2, %v2711_v5, %v2712_v15  ;;  %v2715_v32 = vsel %vm1639_vm2, %v2712_v15, %v2714_v12  ;;  %v2930_v19 = vpack.c.bf16 %v2894_v34, %v2894_v34  ;;  %v2931_v23 = vpack.c.bf16 %v2895_v46, %v2895_v46 }
 0x110   : > { %v4606_v42 = vpack.i.bf16 %v2715_v32, %v2713_v20 }
 0x111   : > { %v2996_v44 = vunpack.c.l.b16 %v2930_v19  ;;  %v2997_v45 = vunpack.c.l.b16 %v2931_v23 }
 0x112   : > { %4027 = vmatmul.msk.bf16.gmra.mxu1 %vm2033_vm5, %v5595_v37  ;;  %4607 = vrot.lane.b32.xlu0 %v4606_v42, %s4711_s29  ;;  %v5741_v42 = vsel %vm997_vm0, 0.0, %v1290_v14 }
 0x113   : > { %v2094_v53 = vpop.f32.mrf.mxu0  ;;  %v5729_v5 = vpack.c.b16 %v2997_v45, %v2996_v44 }
 0x118   : > { %4016 = vmatmul.msk.bf16.gmra.mxu2 %vm2033_vm5, %v5664_v35  ;;  %4036 = vmatmul.msk.bf16.gmra.mxu3 %vm2033_vm5, %v5629_v7 }
 0x119   : > { %4008 = vmatmul.msk.bf16.gmra.mxu0 %vm2033_vm5, %v5355_v58  ;;  %v4523_v31 = vpop.permute.xlu1 %4522  ;;  %v4528_v21 = vpop.permute.xlu2 %4527 }
 0x11a   : > { %v4525_v43 = vunpack.i.h.bf16 %v4523_v31  ;;  %v4524_v40 = vunpack.i.l.bf16 %v4523_v31  ;;  %v4530_v46 = vunpack.i.h.bf16 %v4528_v21  ;;  %v4529_v20 = vunpack.i.l.bf16 %v4528_v21 }
 0x11b   : > { %v2096_v24 = vpop.f32.mrf.mxu0  ;;  %v2518_v31 = vrot.slane %v5741_v42, 1 }
 0x11c   : > { %v2861_v12 = vsel %vm1838_vm3, %v5335_v62, %v4525_v43  ;;  %v2860_v34 = vsel %vm1838_vm3, %v5338_v59, %v4524_v40 }
 0x11d   : > { %v2896_v44 = vsel %vm1875_vm4, %v2860_v34, %v4529_v20  ;;  %v2516_v34 = vrot.slane %v5710_v30, 1 }
 0x11e   : > { %v2932_v17 = vpack.c.bf16 %v2896_v44, %v2896_v44 }
 0x122   : > { %4028 = vmatmul.msk.bf16.gmra.mxu1 %vm2033_vm5, %v5635_v33 }
 0x128   : > { %4041 = vmatmul.msk.bf16.vlgmr.msrb.gmra.mxu2 %vm2033_vm5, %v5402_v13  ;;  %4061 = vmatmul.msk.bf16.vlgmr.msrb.gmra.mxu3 %vm2033_vm5, %v3026_v25  ;;  %v1291_v13 = vrot.slane %v4245_v41, 7 }
 0x129   : > { %4081 = vmatmul.msk.bf16.vlgmr.msrb.gmra.mxu0 %vm2033_vm5, %v3191_v27  ;;  %v2134_v51 = vpop.f32.mrf.mxu2 }
 0x12a   : > { %v5738_v27 = vsel %vm997_vm0, %v1290_v14, %v1291_v13  ;;  %v5744_v19 = vsel %vm997_vm0, %v1291_v13, 0.0  ;;  %v2513_v13 = vrot.slane %v5704_v54, 1 }
 0x12b   : > { %v2239_v39 = vpop.f32.mrf.mxu3  ;;  %v2519_v62 = vrot.slane %v5738_v27, 1  ;;  %v2521_v59 = vrot.slane %v5744_v19, 1 }
 0x12c   : > { %v5727_v26 = vadd.f32 %v2239_v39, %v2134_v51  ;;  %v2897_v51 = vsel %vm1875_vm4, %v2861_v12, %v4530_v46  ;;  %v2514_v12 = vrot.slane %v5707_v61, 1  ;;  %v2998_v46 = vunpack.c.l.b16 %v2932_v17 }
 0x12d   : > { %v2520_v45 = vsel %vm1440_vm1, %v2518_v31, %v2519_v62  ;;  %v2522_v43 = vsel %vm1440_vm1, %v2519_v62, %v2521_v59  ;;  %v2933_v41 = vpack.c.bf16 %v2897_v51, %v2897_v51 }
 0x12e   : > { %6383 = vst [vmem:[#allocation6_spill] sm:$0xff] %v5727_v26  ;;  %v4611_v40 = vpack.i.bf16 %v2522_v43, %v2520_v45  ;;  %v2515_v62 = vsel %vm1440_vm1, %v2513_v13, %v2514_v12  ;;  %v4538_v43 = vpop.permute.xlu1 %4537 }
 0x12f   : > { %v2199_v15 = vpop.f32.mrf.mxu1  ;;  %v2999_v20 = vunpack.c.l.b16 %v2933_v41  ;;  %v4539_v13 = vunpack.i.l.bf16 %v4538_v43 }
 0x130   : > { %v5735_v32 = vadd.f32 %v2199_v15, %v2094_v53  ;;  %4612 = vrot.lane.b32.xlu1 %v4611_v40, %s4710_s28  ;;  %v4533_v15 = vpop.permute.xlu0 %4532 }
 0x131   : > { %v2136_v23 = vpop.f32.mrf.mxu2  ;;  %v4534_v45 = vunpack.i.l.bf16 %v4533_v15  ;;  %v5773_v17 = vpack.c.b16 %v2999_v20, %v2998_v46 }
 0x132   : > { %4101 = vmatmul.msk.bf16.vlgmr.msrb.gmra.mxu1 %vm2033_vm5, %v5729_v5 }
 0x133   : > { %v2241_v53 = vpop.f32.mrf.mxu3  ;;  %v2862_v46 = vsel %vm1838_vm3, %v5397_v63, %v4534_v45 }
 0x134   : > { %v5754_v18 = vadd.f32 %v2241_v53, %v2136_v23  ;;  %v2099_v39 = vpop.f32.mrf.mxu0  ;;  %v4288_v23 = vld [vmem:[%s5204_s13 + $0x60] sm:$0xff]   ;;  %v2898_v63 = vsel %vm1875_vm4, %v2862_v46, %v4539_v13  ;;  %v4543_v13 = vpop.permute.xlu2 %4542  ;;  %v2716_v46 = vrot.slane %v5741_v42, 2 }
 0x135   : > { %v4248_v59 = vunpack.c.l.bf16 %v4288_v23  ;;  %v4249_v53 = vunpack.c.h.bf16 %v4288_v23  ;;  %v2934_v26 = vpack.c.bf16 %v2898_v63, %v2898_v63 }
 0x136   : > { %6384 = vst [vmem:[#allocation7_spill] sm:$0xff] %v5754_v18  ;;  %v4540_v18 = vunpack.i.h.bf16 %v4538_v43 }
 0x137   : > { %v2201_v21 = vpop.f32.mrf.mxu1  ;;  %v1294_v30 = vrot.slane %v4249_v53, 7 }
 0x138   : > { %v5758_v14 = vadd.f32 %v2201_v21, %v2096_v24  ;;  %4042 = vmatmul.msk.bf16.gmra.mxu2 %vm2033_vm5, %v5459_v29  ;;  %4062 = vmatmul.msk.bf16.gmra.mxu3 %vm2033_vm5, %v5729_v5  ;;  %v2517_v29 = vsel %vm1440_vm1, %v2514_v12, %v2516_v34  ;;  %v1293_v21 = vrot.slane %v4248_v59, 7 }
 0x139   : > { %4082 = vmatmul.msk.bf16.gmra.mxu0 %vm2033_vm5, %v3026_v25  ;;  %v4535_v25 = vunpack.i.h.bf16 %v4533_v15  ;;  %v4601_v40 = vpack.i.bf16 %v2517_v29, %v2515_v62  ;;  %v1393_v20 = vsel %vm997_vm0, %v1294_v30, 0.0 }
 0x13a   : > { %v5777_v12 = vsel %vm997_vm0, %v1293_v21, %v1294_v30  ;;  %v5780_v34 = vsel %vm997_vm0, 0.0, %v1293_v21  ;;  %v2526_v62 = vrot.slane %v1393_v20, 1  ;;  %v2724_v59 = vrot.slane %v1393_v20, 2 }
 0x13b   : > { %v2139_v24 = vpop.f32.mrf.mxu2  ;;  %v2244_v31 = vpop.f32.mrf.mxu3  ;;  %4602 = vrot.lane.b32.xlu2 %v4601_v40, %s4710_s28  ;;  %v2863_v15 = vsel %vm1838_vm3, %v5390_v57, %v4535_v25  ;;  %v2721_v29 = vrot.slane %v5780_v34, 2 }
 0x13c   : > { %v5771_v51 = vadd.f32 %v2244_v31, %v2139_v24  ;;  %v2101_v44 = vpop.f32.mrf.mxu0  ;;  %v2523_v24 = vrot.slane %v5780_v34, 1  ;;  %v2524_v31 = vrot.slane %v5777_v12, 1  ;;  %v2899_v25 = vsel %vm1875_vm4, %v2863_v15, %v4540_v18 }
 0x13d   : > { %v2935_v20 = vpack.c.bf16 %v2899_v25, %v2899_v25  ;;  %v4289_v25 = vld [vmem:[%s5204_s13 + $0x68] sm:$0xff]  }
 0x13e   : > { %6385 = vst [vmem:[#allocation8_spill] sm:$0xff] %v5771_v51  ;;  %v2525_v45 = vsel %vm1440_vm1, %v2523_v24, %v2524_v31  ;;  %v2527_v43 = vsel %vm1440_vm1, %v2524_v31, %v2526_v62  ;;  %v2717_v24 = vrot.slane %v5738_v27, 2  ;;  %v3000_v31 = vunpack.c.l.b16 %v2934_v26 }
 0x13f   : > { %v2204_v41 = vpop.f32.mrf.mxu1  ;;  %v4621_v21 = vpack.i.bf16 %v2527_v43, %v2525_v45  ;;  %v3001_v62 = vunpack.c.l.b16 %v2935_v20  ;;  %v4252_v45 = vunpack.c.l.bf16 %v4289_v25  ;;  %v4253_v43 = vunpack.c.h.bf16 %v4289_v25 }
 0x140   : > { %v5782_v23 = vadd.f32 %v2204_v41, %v2099_v39  ;;  %v2722_v39 = vrot.slane %v5777_v12, 2 }
 0x141   : > { %4622 = vrot.lane.b32.xlu0 %v4621_v21, %s4710_s28  ;;  %v1296_v26 = vrot.slane %v4252_v45, 7 }
 0x142   : > { %4102 = vmatmul.msk.bf16.gmra.mxu1 %vm2033_vm5, %v5773_v17  ;;  %v2723_v30 = vsel %vm1639_vm2, %v2721_v29, %v2722_v39  ;;  %v2725_v41 = vsel %vm1639_vm2, %v2722_v39, %v2724_v59  ;;  %v4545_v39 = vunpack.i.h.bf16 %v4543_v13  ;;  %v4544_v59 = vunpack.i.l.bf16 %v4543_v13 }
 0x143   : > { %v2141_v53 = vpop.f32.mrf.mxu2  ;;  %v2246_v57 = vpop.f32.mrf.mxu3  ;;  %v4626_v35 = vpack.i.bf16 %v2725_v41, %v2723_v30  ;;  %v5821_v30 = vpack.c.b16 %v3001_v62, %v3000_v31  ;;  %v5834_v31 = vsel %vm997_vm0, 0.0, %v1296_v26 }
 0x144   : > { %v5799_v40 = vadd.f32 %v2246_v57, %v2141_v53  ;;  %v2718_v53 = vsel %vm1639_vm2, %v2716_v46, %v2717_v24  ;;  %v2865_v46 = vsel %vm1838_vm3, %v5445_v16, %v4545_v39 }
 0x145   : > { %4627 = vrot.lane.b32.xlu1 %v4626_v35, %s4711_s29  ;;  %v4548_v35 = vpop.permute.xlu0 %4547 }
 0x146   : > { %6386 = vst [vmem:[#allocation9_spill] sm:$0xff] %v5799_v40  ;;  %v2104_v51 = vpop.f32.mrf.mxu0  ;;  %v4550_v20 = vunpack.i.h.bf16 %v4548_v35 }
 0x147   : > { %v2206_v18 = vpop.f32.mrf.mxu1 }
 0x148   : > { %v5804_v15 = vadd.f32 %v2206_v18, %v2101_v44  ;;  %4043 = vmatmul.msk.bf16.gmra.mxu2 %vm2033_vm5, %v5502_v50  ;;  %4063 = vmatmul.msk.bf16.gmra.mxu3 %vm2033_vm5, %v5773_v17  ;;  %v2719_v44 = vrot.slane %v5744_v19, 2  ;;  %v1297_v19 = vrot.slane %v4253_v43, 7  ;;  %v4549_v18 = vunpack.i.l.bf16 %v4548_v35 }
 0x149   : > { %4083 = vmatmul.msk.bf16.gmra.mxu0 %vm2033_vm5, %v5729_v5 }
 0x14a   : > { %v2720_v57 = vsel %vm1639_vm2, %v2717_v24, %v2719_v44  ;;  %v2864_v24 = vsel %vm1838_vm3, %v5442_v9, %v4544_v59  ;;  %v5831_v44 = vsel %vm997_vm0, %v1296_v26, %v1297_v19  ;;  %v5837_v62 = vsel %vm997_vm0, %v1297_v19, 0.0 }
 0x14b   : > { %v2144_v29 = vpop.f32.mrf.mxu2  ;;  %v2249_v50 = vpop.f32.mrf.mxu3  ;;  %v4616_v63 = vpack.i.bf16 %v2720_v57, %v2718_v53  ;;  %v2729_v16 = vrot.slane %v5837_v62, 2  ;;  %v2900_v39 = vsel %vm1875_vm4, %v2864_v24, %v4549_v18  ;;  %v2901_v59 = vsel %vm1875_vm4, %v2865_v46, %v4550_v20  ;;  %v4290_v46 = vld [vmem:[%s5204_s13 + $0x70] sm:$0xff]  }
 0x14c   : > { %v5819_v5 = vadd.f32 %v2249_v50, %v2144_v29  ;;  %v2727_v29 = vrot.slane %v5831_v44, 2  ;;  %v2936_v45 = vpack.c.bf16 %v2900_v39, %v2900_v39  ;;  %v2937_v43 = vpack.c.bf16 %v2901_v59, %v2901_v59  ;;  %v4558_v39 = vpop.permute.xlu2 %4557 }
 0x14d   : > { %4617 = vrot.lane.b32.xlu2 %v4616_v63, %s4711_s29 }
 0x14e   : > { %6387 = vst [vmem:[#allocation10_spill] sm:$0xff] %v5819_v5  ;;  %v2106_v21 = vpop.f32.mrf.mxu0  ;;  %v2730_v25 = vsel %vm1639_vm2, %v2727_v29, %v2729_v16  ;;  %v3002_v20 = vunpack.c.l.b16 %v2936_v45  ;;  %v3003_v18 = vunpack.c.l.b16 %v2937_v43  ;;  %v4257_v16 = vunpack.c.h.bf16 %v4290_v46 }
 0x14f   : > { %v2209_v41 = vpop.f32.mrf.mxu1 }
 0x150   : > { %v5824_v13 = vadd.f32 %v2209_v41, %v2104_v51  ;;  %v2726_v51 = vrot.slane %v5834_v31, 2  ;;  %v4553_v41 = vpop.permute.xlu1 %4552  ;;  %v1300_v59 = vrot.slane %v4257_v16, 7 }
 0x152   : > { %4103 = vmatmul.msk.bf16.gmra.mxu1 %vm2033_vm5, %v5821_v30  ;;  %v2728_v57 = vsel %vm1639_vm2, %v2726_v51, %v2727_v29  ;;  %v4256_v29 = vunpack.c.l.bf16 %v4290_v46 }
 0x153   : > { %v2146_v50 = vpop.f32.mrf.mxu2  ;;  %v2251_v9 = vpop.f32.mrf.mxu3  ;;  %v4636_v35 = vpack.i.bf16 %v2730_v25, %v2728_v57  ;;  %v5862_v25 = vpack.c.b16 %v3003_v18, %v3002_v20  ;;  %v5877_v20 = vsel %vm997_vm0, %v1300_v59, 0.0 }
 0x154   : > { %v5846_v53 = vadd.f32 %v2251_v9, %v2146_v50  ;;  %v4554_v9 = vunpack.i.l.bf16 %v4553_v41 }
 0x155   : > { %4637 = vrot.lane.b32.xlu0 %v4636_v35, %s4711_s29 }
 0x156   : > { %6388 = vst [vmem:[#allocation11_spill] sm:$0xff] %v5846_v53  ;;  %v2109_v63 = vpop.f32.mrf.mxu0 }
 0x157   : > { %v2211_v26 = vpop.f32.mrf.mxu1 }
 0x158   : > { %v5851_v19 = vadd.f32 %v2211_v26, %v2106_v21  ;;  %4044 = vmatmul.msk.bf16.gmra.mxu2 %vm2033_vm5, %v5536_v36  ;;  %4064 = vmatmul.msk.bf16.gmra.mxu3 %vm2033_vm5, %v5821_v30  ;;  %v4555_v21 = vunpack.i.h.bf16 %v4553_v41  ;;  %v1299_v36 = vrot.slane %v4256_v29, 7  ;;  %v4559_v26 = vunpack.i.l.bf16 %v4558_v39 }
 0x159   : > { %4084 = vmatmul.msk.bf16.gmra.mxu0 %vm2033_vm5, %v5773_v17  ;;  %v4560_v17 = vunpack.i.h.bf16 %v4558_v39  ;;  %v2536_v29 = vrot.slane %v5877_v20, 1 }
 0x15a   : > { %v5865_v45 = vsel %vm997_vm0, %v1299_v36, %v1300_v59  ;;  %v5868_v43 = vsel %vm997_vm0, 0.0, %v1299_v36  ;;  %v2867_v41 = vsel %vm1838_vm3, %v5480_v56, %v4555_v21 }
 0x15b   : > { %v2149_v24 = vpop.f32.mrf.mxu2  ;;  %v2254_v51 = vpop.f32.mrf.mxu3  ;;  %v2533_v18 = vrot.slane %v5868_v43, 1  ;;  %v2903_v39 = vsel %vm1875_vm4, %v2867_v41, %v4560_v17  ;;  %v2529_v41 = vrot.slane %v5831_v44, 1 }
 0x15c   : > { %v5860_v50 = vadd.f32 %v2254_v51, %v2149_v24  ;;  %v2866_v24 = vsel %vm1838_vm3, %v5483_v52, %v4554_v9  ;;  %v2534_v51 = vrot.slane %v5865_v45, 1  ;;  %v4563_v17 = vpop.permute.xlu0 %4562 }
 0x15d   : > { %v2902_v56 = vsel %vm1875_vm4, %v2866_v24, %v4559_v26  ;;  %v2528_v26 = vrot.slane %v5834_v31, 1  ;;  %v2531_v24 = vrot.slane %v5837_v62, 1 }
 0x15e   : > { %6389 = vst [vmem:[#allocation12_spill] sm:$0xff] %v5860_v50  ;;  %v2111_v57 = vpop.f32.mrf.mxu0  ;;  %v2535_v52 = vsel %vm1440_vm1, %v2533_v18, %v2534_v51  ;;  %v2537_v9 = vsel %vm1440_vm1, %v2534_v51, %v2536_v29  ;;  %v2938_v50 = vpack.c.bf16 %v2902_v56, %v2902_v56  ;;  %v4291_v29 = vld [vmem:[%s5204_s13 + $0x78] sm:$0xff]   ;;  %v4564_v56 = vunpack.i.l.bf16 %v4563_v17 }
 0x15f   : > { %v2214_v35 = vpop.f32.mrf.mxu1  ;;  %v4641_v36 = vpack.i.bf16 %v2537_v9, %v2535_v52  ;;  %v4260_v9 = vunpack.c.l.bf16 %v4291_v29  ;;  %v4261_v62 = vunpack.c.h.bf16 %v4291_v29 }
 0x160   : > { %v5870_v46 = vadd.f32 %v2214_v35, %v2109_v63  ;;  %v2939_v35 = vpack.c.bf16 %v2903_v39, %v2903_v39  ;;  %v3004_v51 = vunpack.c.l.b16 %v2938_v50  ;;  %v4565_v39 = vunpack.i.h.bf16 %v4563_v17 }
 0x161   : > { %4642 = vrot.lane.b32.xlu1 %v4641_v36, %s4710_s28  ;;  %v2868_v17 = vsel %vm1838_vm3, %v5529_v49, %v4564_v56 }
 0x162   : > { %4104 = vmatmul.msk.bf16.gmra.mxu1 %vm2033_vm5, %v5862_v25  ;;  %v3005_v18 = vunpack.c.l.b16 %v2939_v35 }
 0x163   : > { %v2151_v63 = vpop.f32.mrf.mxu2  ;;  %v2256_v16 = vpop.f32.mrf.mxu3 }
 0x164   : > { %v5887_v21 = vadd.f32 %v2256_v16, %v2151_v63  ;;  %v5908_v50 = vpack.c.b16 %v3005_v18, %v3004_v51 }
 0x166   : > { %6390 = vst [vmem:[#allocation13_spill] sm:$0xff] %v5887_v21  ;;  %v2114_v59 = vpop.f32.mrf.mxu0 }
 0x167   : > { %v2216_v53 = vpop.f32.mrf.mxu1 }
 0x168   : > { %v5891_v5 = vadd.f32 %v2216_v53, %v2111_v57  ;;  %4045 = vmatmul.msk.bf16.gmra.mxu2 %vm2033_vm5, %v5595_v37  ;;  %4065 = vmatmul.msk.bf16.gmra.mxu3 %vm2033_vm5, %v5862_v25  ;;  %v4568_v53 = vpop.permute.xlu1 %4567  ;;  %v2530_v57 = vsel %vm1440_vm1, %v2528_v26, %v2529_v41  ;;  %v2532_v37 = vsel %vm1440_vm1, %v2529_v41, %v2531_v24  ;;  %v1303_v26 = vrot.slane %v4261_v62, 7 }
 0x169   : > { %4085 = vmatmul.msk.bf16.gmra.mxu0 %vm2033_vm5, %v5821_v30  ;;  %v4631_v52 = vpack.i.bf16 %v2532_v37, %v2530_v57  ;;  %v1302_v30 = vrot.slane %v4260_v9, 7  ;;  %v4570_v21 = vunpack.i.h.bf16 %v4568_v53  ;;  %v2869_v41 = vsel %vm1838_vm3, %v5526_v38, %v4565_v39 }
 0x16a   : > { %v4569_v24 = vunpack.i.l.bf16 %v4568_v53  ;;  %v1396_v18 = vsel %vm997_vm0, %v1303_v26, 0.0 }
 0x16b   : > { %v2154_v63 = vpop.f32.mrf.mxu2  ;;  %v2259_v16 = vpop.f32.mrf.mxu3  ;;  %4632 = vrot.lane.b32.xlu2 %v4631_v52, %s4710_s28  ;;  %v5915_v57 = vsel %vm997_vm0, 0.0, %v1302_v30  ;;  %v5920_v29 = vsel %vm997_vm0, %v1302_v30, %v1303_v26  ;;  %v2905_v49 = vsel %vm1875_vm4, %v2869_v41, %v4570_v21 }
 0x16c   : > { %v5905_v36 = vadd.f32 %v2259_v16, %v2154_v63  ;;  %v2538_v51 = vrot.slane %v5915_v57, 1  ;;  %v2539_v63 = vrot.slane %v5920_v29, 1  ;;  %v2541_v16 = vrot.slane %v1396_v18, 1 }
 0x16d   : > { %v2736_v38 = vrot.slane %v5915_v57, 2  ;;  %v2904_v56 = vsel %vm1875_vm4, %v2868_v17, %v4569_v24  ;;  %v2941_v1 = vpack.c.bf16 %v2905_v49, %v2905_v49 }
 0x16e   : > { %6391 = vst [vmem:[#allocation14_spill] sm:$0xff] %v5905_v36  ;;  %v2116_v35 = vpop.f32.mrf.mxu0  ;;  %v2540_v52 = vsel %vm1440_vm1, %v2538_v51, %v2539_v63  ;;  %v2542_v9 = vsel %vm1440_vm1, %v2539_v63, %v2541_v16  ;;  %v2940_v3 = vpack.c.bf16 %v2904_v56, %v2904_v56  ;;  %v2731_v63 = vrot.slane %v5868_v43, 2 }
 0x16f   : > { %v2219_v40 = vpop.f32.mrf.mxu1  ;;  %v4651_v30 = vpack.i.bf16 %v2542_v9, %v2540_v52  ;;  %v3007_v24 = vunpack.c.l.b16 %v2941_v1  ;;  %v2732_v16 = vrot.slane %v5865_v45, 2 }
 0x170   : > { %v5917_v37 = vadd.f32 %v2219_v40, %v2114_v59  ;;  %v2737_v40 = vrot.slane %v5920_v29, 2  ;;  %v2739_v59 = vrot.slane %v1396_v18, 2  ;;  %v3006_v51 = vunpack.c.l.b16 %v2940_v3 }
 0x171   : > { %4652 = vrot.lane.b32.xlu0 %v4651_v30, %s4710_s28  ;;  %v2733_v1 = vsel %vm1639_vm2, %v2731_v63, %v2732_v16 }
 0x172   : > { %4105 = vmatmul.msk.bf16.gmra.mxu1 %vm2033_vm5, %v5908_v50  ;;  %v2738_v26 = vsel %vm1639_vm2, %v2736_v38, %v2737_v40  ;;  %v2740_v36 = vsel %vm1639_vm2, %v2737_v40, %v2739_v59  ;;  %v2734_v38 = vrot.slane %v5877_v20, 2  ;;  %v3032_v56 = vpack.c.b16 %v3007_v24, %v3006_v51 }
 0x173   : > { %v2156_v53 = vpop.f32.mrf.mxu2  ;;  %v2261_v39 = vpop.f32.mrf.mxu3  ;;  %v4656_v21 = vpack.i.bf16 %v2740_v36, %v2738_v26 }
 0x174   : > { %v5933_v62 = vadd.f32 %v2261_v39, %v2156_v53  ;;  %v4573_v36 = vpop.permute.xlu2 %4572  ;;  %v4578_v53 = vpop.permute.xlu0 %4577  ;;  %v2735_v39 = vsel %vm1639_vm2, %v2732_v16, %v2734_v38 }
 0x175   : > { %4657 = vrot.lane.b32.xlu1 %v4656_v21, %s4711_s29  ;;  %v4574_v59 = vunpack.i.l.bf16 %v4573_v36  ;;  %v4646_v3 = vpack.i.bf16 %v2735_v39, %v2733_v1  ;;  %v4580_v9 = vunpack.i.h.bf16 %v4578_v53  ;;  %v4579_v20 = vunpack.i.l.bf16 %v4578_v53 }
 0x176   : > { %v2119_v41 = vpop.f32.mrf.mxu0 }
 0x177   : > { %v2221_v18 = vpop.f32.mrf.mxu1  ;;  %v2870_v21 = vsel %vm1838_vm3, %v5577_v22, %v4574_v59  ;;  %4647 = vrot.lane.b32.xlu2 %v4646_v3, %s4711_s29 }
 0x178   : > { %v5939_v17 = vadd.f32 %v2221_v18, %v2116_v35  ;;  %4046 = vmatmul.msk.bf16.gmra.mxu2 %vm2033_vm5, %v5635_v33  ;;  %4066 = vmatmul.msk.bf16.gmra.mxu3 %vm2033_vm5, %v5908_v50  ;;  %v4575_v33 = vunpack.i.h.bf16 %v4573_v36  ;;  %v2906_v36 = vsel %vm1875_vm4, %v2870_v21, %v4579_v20 }
 0x179   : > { %4086 = vmatmul.msk.bf16.gmra.mxu0 %vm2033_vm5, %v5862_v25  ;;  %4667 = vrot.lane.b32.xlu0 %v4840_v28, %s4711_s29 }
 0x17a   : > { %v2871_v26 = vsel %vm1838_vm3, %v5574_v4, %v4575_v33  ;;  %v2942_v4 = vpack.c.bf16 %v2906_v36, %v2906_v36 }
 0x17b   : > { %v2159_v35 = vpop.f32.mrf.mxu2  ;;  %v2264_v49 = vpop.f32.mrf.mxu3  ;;  %v2907_v51 = vsel %vm1875_vm4, %v2871_v26, %v4580_v9 }
 0x17c   : > { %v5950_v40 = vadd.f32 %v2264_v49, %v2159_v35  ;;  %v2943_v38 = vpack.c.bf16 %v2907_v51, %v2907_v51  ;;  %v4583_v49 = vpop.permute.xlu1 %4582  ;;  %v3008_v33 = vunpack.c.l.b16 %v2942_v4  ;;  %v4588_v9 = vpop.permute.xlu2 %4587 }
 0x17d   : > { %v4585_v3 = vunpack.i.h.bf16 %v4583_v49  ;;  %v4590_v21 = vunpack.i.h.bf16 %v4588_v9 }
 0x17e   : > { %v2121_v25 = vpop.f32.mrf.mxu0  ;;  %v3009_v59 = vunpack.c.l.b16 %v2943_v38 }
 0x17f   : > { %v2224_v52 = vpop.f32.mrf.mxu1 }
 0x180   : > { %v5956_v30 = vadd.f32 %v2224_v52, %v2119_v41  ;;  %v6392_v41 = vld [vmem:[#allocation4_spill] sm:$0xff]  ;;  %v4584_v52 = vunpack.i.l.bf16 %v4583_v49  ;;  %v3033_v20 = vpack.c.b16 %v3009_v59, %v3008_v33 }
 0x181   : > { %4672 = vrot.lane.b32.xlu1 %v6392_v41, %s4710_s28  ;;  %4662 = vrot.lane.b32.xlu2 %v6392_v41, %s4710_s28 }
 0x182   : > { %4106 = vmatmul.msk.bf16.gmra.mxu1 %vm2033_vm5, %v3032_v56 }
 0x183   : > { %v2161_v18 = vpop.f32.mrf.mxu2  ;;  %v2266_v24 = vpop.f32.mrf.mxu3 }
 0x184   : > { %v5966_v63 = vadd.f32 %v2266_v24, %v2161_v18  ;;  %v2872_v24 = vsel %vm1838_vm3, %v5617_v48, %v4584_v52  ;;  %v4593_v48 = vpop.permute.xlu0 %4592 }
 0x185   : > { %v4595_v41 = vunpack.i.h.bf16 %v4593_v48 }
 0x186   : > { %v2124_v16 = vpop.f32.mrf.mxu0 }
 0x187   : > { %v2226_v35 = vpop.f32.mrf.mxu1 }
 0x188   : > { %v5970_v22 = vadd.f32 %v2226_v35, %v2121_v25  ;;  %4047 = vmatmul.msk.bf16.gmra.mxu2 %vm2033_vm5, %v5355_v58  ;;  %4067 = vmatmul.msk.bf16.gmra.mxu3 %vm2033_vm5, %v3032_v56  ;;  %v4589_v58 = vunpack.i.l.bf16 %v4588_v9 }
 0x189   : > { %4087 = vmatmul.msk.bf16.gmra.mxu0 %vm2033_vm5, %v5908_v50  ;;  %v2873_v50 = vsel %vm1838_vm3, %v5614_v10, %v4585_v3  ;;  %4677 = vrot.lane.b32.xlu2 %v4840_v28, %s4711_s29 }
 0x18a   : > { %v2909_v4 = vsel %vm1875_vm4, %v2873_v50, %v4590_v21  ;;  %v2908_v38 = vsel %vm1875_vm4, %v2872_v24, %v4589_v58  ;;  %v4598_v21 = vpop.permute.xlu1 %4597 }
 0x18b   : > { %v2164_v53 = vpop.f32.mrf.mxu2  ;;  %v2269_v1 = vpop.f32.mrf.mxu3  ;;  %v2945_v49 = vpack.c.bf16 %v2909_v4, %v2909_v4  ;;  %v2944_v33 = vpack.c.bf16 %v2908_v38, %v2908_v38  ;;  %v4600_v50 = vunpack.i.h.bf16 %v4598_v21  ;;  %v4599_v24 = vunpack.i.l.bf16 %v4598_v21 }
 0x18c   : > { %v5977_v39 = vadd.f32 %v2269_v1, %v2164_v53 }
 0x18d   : > { %v3011_v53 = vunpack.c.l.b16 %v2945_v49  ;;  %v3010_v1 = vunpack.c.l.b16 %v2944_v33 }
 0x18e   : > { %v2126_v25 = vpop.f32.mrf.mxu0 }
 0x18f   : > { %v2229_v26 = vpop.f32.mrf.mxu1 }
 0x190   : > { %v5979_v18 = vadd.f32 %v2229_v26, %v2124_v16  ;;  %v4594_v26 = vunpack.i.l.bf16 %v4593_v48 }
 0x192   : > { %4107 = vmatmul.msk.bf16.gmra.mxu1 %vm2033_vm5, %v3033_v20 }
 0x193   : > { %v2166_v36 = vpop.f32.mrf.mxu2  ;;  %v2271_v51 = vpop.f32.mrf.mxu3 }
 0x194   : > { %v5988_v35 = vadd.f32 %v2271_v51, %v2166_v36  ;;  %v2875_v36 = vsel %vm1838_vm3, %v5657_v0, %v4595_v41  ;;  %v2874_v51 = vsel %vm1838_vm3, %v5654_v6, %v4594_v26 }
 0x195   : > { %v2911_v49 = vsel %vm1875_vm4, %v2875_v36, %v4600_v50  ;;  %v2910_v28 = vsel %vm1875_vm4, %v2874_v51, %v4599_v24  ;;  %v4603_v6 = vpop.permute.xlu2 %4602 }
 0x196   : > { %v2129_v16 = vpop.f32.mrf.mxu0  ;;  %v2946_v48 = vpack.c.bf16 %v2910_v28, %v2910_v28  ;;  %v4605_v21 = vunpack.i.h.bf16 %v4603_v6  ;;  %v6033_v28 = vld [vmem:[%s6369_s10] ss:$0 sm:$0xff] }
 0x197   : > { %v2231_v10 = vpop.f32.mrf.mxu1 }
 0x198   : > { %v5992_v59 = vadd.f32 %v2231_v10, %v2126_v25  ;;  %4048 = vmatmul.msk.bf16.gmra.mxu2 %vm2033_vm5, %v5350_v2  ;;  %4068 = vmatmul.msk.bf16.gmra.mxu3 %vm2033_vm5, %v3033_v20  ;;  %v6000_v25 = vpack.c.b16 %v3011_v53, %v3010_v1 }
 0x199   : > { %4088 = vmatmul.msk.bf16.gmra.mxu0 %vm2033_vm5, %v3032_v56 }
 0x19b   : > { %v2169_v3 = vpop.f32.mrf.mxu2  ;;  %v2274_v52 = vpop.f32.mrf.mxu3 }
 0x19c   : > { %v5998_v9 = vadd.f32 %v2274_v52, %v2169_v3  ;;  %v3012_v3 = vunpack.c.l.b16 %v2946_v48  ;;  %v4608_v52 = vpop.permute.xlu0 %4607 }
 0x19d   : > { %v4610_v36 = vunpack.i.h.bf16 %v4608_v52 }
 0x19e   : > { %v2131_v58 = vpop.f32.mrf.mxu0 }
 0x19f   : > { %v2234_v2 = vpop.f32.mrf.mxu1 }
 0x1a0   : > { %v6004_v56 = vadd.f32 %v2234_v2, %v2129_v16  ;;  %v2947_v16 = vpack.c.bf16 %v2911_v49, %v2911_v49  ;;  %v4604_v2 = vunpack.i.l.bf16 %v4603_v6 }
 0x1a2   : > { %4108 = vmatmul.msk.bf16.gmra.mxu1 %vm2033_vm5, %v6000_v25  ;;  %v3013_v0 = vunpack.c.l.b16 %v2947_v16 }
 0x1a3   : > { %v2171_v4 = vpop.f32.mrf.mxu2  ;;  %v2276_v38 = vpop.f32.mrf.mxu3 }
 0x1a4   : > { %v6014_v33 = vadd.f32 %v2276_v38, %v2171_v4  ;;  %v2877_v4 = vsel %vm1838_vm3, %v5707_v61, %v4605_v21 }
 0x1a5   : > { %v2913_v48 = vsel %vm1875_vm4, %v2877_v4, %v4610_v36 }
 0x1a6   : > { %v3212_v10 = vpop.f32.mrf.mxu0 }
 0x1a7   : > { %v2236_v53 = vpop.f32.mrf.mxu1 }
 0x1a8   : > { %v6016_v1 = vadd.f32 %v2236_v53, %v2131_v58  ;;  %4049 = vmatmul.msk.bf16.gmra.mxu2 %vm2033_vm5, %v5404_v47  ;;  %4069 = vmatmul.msk.bf16.gmra.mxu3 %vm2033_vm5, %v6000_v25  ;;  %v6023_v58 = vpack.c.b16 %v3013_v0, %v3012_v3  ;;  %v4609_v47 = vunpack.i.l.bf16 %v4608_v52  ;;  %v2949_v0 = vpack.c.bf16 %v2913_v48, %v2913_v48 }
 0x1a9   : > { %4089 = vmatmul.msk.bf16.gmra.mxu0 %vm2033_vm5, %v3033_v20  ;;  %v2876_v20 = vsel %vm1838_vm3, %v5704_v54, %v4604_v2  ;;  %v4613_v2 = vpop.permute.xlu1 %4612 }
 0x1aa   : > { %v2912_v16 = vsel %vm1875_vm4, %v2876_v20, %v4609_v47  ;;  %v4618_v47 = vpop.permute.xlu2 %4617  ;;  %v4615_v20 = vunpack.i.h.bf16 %v4613_v2 }
 0x1ab   : > { %v2304_v41 = vpop.f32.mrf.mxu2  ;;  %v3107_v26 = vpop.f32.mrf.mxu3  ;;  %v4619_v48 = vunpack.i.l.bf16 %v4618_v47 }
 0x1ac   : > { %v3213_v50 = vadd.f32 %v3212_v10, %v3107_v26  ;;  %v2384_v38 = vadd.f32 %v2304_v41, %v5735_v32  ;;  %v2948_v32 = vpack.c.bf16 %v2912_v16, %v2912_v16  ;;  %v4620_v16 = vunpack.i.h.bf16 %v4618_v47 }
 0x1ae   : > { %v3214_v24 = vpop.f32.mrf.mxu0 }
 0x1af   : > { %v3317_v51 = vpop.f32.mrf.mxu1 }
 0x1b0   : > { %v3397_v49 = vadd.f32 %v3317_v51, %v3213_v50  ;;  %v3014_v50 = vunpack.c.l.b16 %v2948_v32 }
 0x1b2   : > { %v3429_v10 = vadd.f32 %v3397_v49, %v2384_v38  ;;  %4109 = vmatmul.msk.bf16.gmra.mxu1 %vm2033_vm5, %v6023_v58  ;;  %v4614_v38 = vunpack.i.l.bf16 %v4613_v2 }
 0x1b3   : > { %v2306_v61 = vpop.f32.mrf.mxu2  ;;  %v3109_v53 = vpop.f32.mrf.mxu3 }
 0x1b4   : > { %v3465_v54 = vadd.f32 %v6033_v28, %v3429_v10  ;;  %v3215_v6 = vadd.f32 %v3214_v24, %v3109_v53  ;;  %v2385_v26 = vadd.f32 %v2306_v61, %v5758_v14  ;;  %v3015_v24 = vunpack.c.l.b16 %v2949_v0 }
 0x1b6   : > { %v3670_v3 = vpack.c.bf16 %v3465_v54, %v3465_v54  ;;  %v3217_v52 = vpop.f32.mrf.mxu0  ;;  %v3566_v14 = vmul.f32 %v3465_v54, %v3465_v54  ;;  %v6056_v10 = vpack.c.b16 %v3015_v24, %v3014_v50  ;;  %v3497_v61 = vsel %vm1838_vm3, %v3465_v54, 0.0 }
 0x1b7   : > { %v3319_v41 = vpop.f32.mrf.mxu1 }
 0x1b8   : > { %3703 = vst.msk [vmem:[%s6044_s0] sm:$0xf] %vm3702_vm6, %v3670_v3  ;;  %v3398_v21 = vadd.f32 %v3319_v41, %v3215_v6  ;;  %4050 = vmatmul.msk.bf16.gmra.mxu2 %vm2033_vm5, %v5452_v55  ;;  %4070 = vmatmul.msk.bf16.gmra.mxu3 %vm2033_vm5, %v6023_v58  ;;  %v2879_v41 = vsel %vm1838_vm3, %v5738_v27, %v4615_v20 }
 0x1b9   : > { %4090 = vmatmul.msk.bf16.gmra.mxu0 %vm2033_vm5, %v6000_v25  ;;  %v2915_v27 = vsel %vm1875_vm4, %v2879_v41, %v4620_v16 }
 0x1ba   : > { %v3430_v36 = vadd.f32 %v3398_v21, %v2385_v26  ;;  %v2878_v26 = vsel %vm1838_vm3, %v5741_v42, %v4614_v38  ;;  %v2951_v38 = vpack.c.bf16 %v2915_v27, %v2915_v27 }
 0x1bb   : > { %v2309_v51 = vpop.f32.mrf.mxu2  ;;  %v3112_v4 = vpop.f32.mrf.mxu3 }
 0x1bc   : > { %v3466_v49 = vadd.f32 %v6033_v28, %v3430_v36  ;;  %v3218_v55 = vadd.f32 %v3217_v52, %v3112_v4  ;;  %v3598_v52 = vsel %vm1838_vm3, %v3566_v14, 0.0  ;;  %v2386_v54 = vadd.f32 %v2309_v51, %v5782_v23 }
 0x1bd   : > { %v2914_v36 = vsel %vm1875_vm4, %v2878_v26, %v4619_v48  ;;  %v4628_v26 = vpop.permute.xlu1 %4627 }
 0x1be   : > { %v3498_v53 = vsel %vm1838_vm3, %v3466_v49, 0.0  ;;  %v3567_v25 = vmul.f32 %v3466_v49, %v3466_v49  ;;  %v3671_v6 = vpack.c.bf16 %v3466_v49, %v3466_v49  ;;  %v3219_v32 = vpop.f32.mrf.mxu0  ;;  %v2950_v14 = vpack.c.bf16 %v2914_v36, %v2914_v36 }
 0x1bf   : > { %v3499_v0 = vadd.f32 %v3498_v53, %v3497_v61  ;;  %v3322_v3 = vpop.f32.mrf.mxu1  ;;  %v4630_v27 = vunpack.i.h.bf16 %v4628_v26 }
 0x1c0   : > { %v3599_v21 = vsel %vm1838_vm3, %v3567_v25, 0.0  ;;  %3704 = vst.msk [vmem:[%s6044_s0 + $0x4] sm:$0xf] %vm3702_vm6, %v3671_v6  ;;  %v3399_v2 = vadd.f32 %v3322_v3, %v3218_v55  ;;  %v4623_v6 = vpop.permute.xlu0 %4622  ;;  %v3017_v3 = vunpack.c.l.b16 %v2951_v38  ;;  %v3016_v41 = vunpack.c.l.b16 %v2950_v14 }
 0x1c1   : > { %v3600_v50 = vadd.f32 %v3599_v21, %v3598_v52 }
 0x1c2   : > { %v3431_v24 = vadd.f32 %v3399_v2, %v2386_v54  ;;  %4110 = vmatmul.msk.bf16.gmra.mxu1 %vm2033_vm5, %v6056_v10  ;;  %v4625_v54 = vunpack.i.h.bf16 %v4623_v6 }
 0x1c3   : > { %v2311_v42 = vpop.f32.mrf.mxu2  ;;  %v3114_v47 = vpop.f32.mrf.mxu3 }
 0x1c4   : > { %v3467_v4 = vadd.f32 %v6033_v28, %v3431_v24  ;;  %v3220_v20 = vadd.f32 %v3219_v32, %v3114_v47  ;;  %v2387_v16 = vadd.f32 %v2311_v42, %v5804_v15  ;;  %v4624_v15 = vunpack.i.l.bf16 %v4623_v6 }
 0x1c5   : > { %v6086_v24 = vpack.c.b16 %v3017_v3, %v3016_v41  ;;  %v2881_v38 = vsel %vm1838_vm3, %v5777_v12, %v4625_v54 }
 0x1c6   : > { %v3500_v23 = vsel %vm1838_vm3, %v3467_v4, 0.0  ;;  %v3568_v51 = vmul.f32 %v3467_v4, %v3467_v4  ;;  %v3672_v49 = vpack.c.bf16 %v3467_v4, %v3467_v4  ;;  %v3222_v55 = vpop.f32.mrf.mxu0  ;;  %v4629_v4 = vunpack.i.l.bf16 %v4628_v26 }
 0x1c7   : > { %v3501_v61 = vadd.f32 %v3500_v23, %v3499_v0  ;;  %v3324_v53 = vpop.f32.mrf.mxu1  ;;  %v2880_v14 = vsel %vm1838_vm3, %v5780_v34, %v4624_v15 }
 0x1c8   : > { %v3601_v25 = vsel %vm1838_vm3, %v3568_v51, 0.0  ;;  %3705 = vst.msk [vmem:[%s6044_s0 + $0x8] sm:$0xf] %vm3702_vm6, %v3672_v49  ;;  %v3400_v48 = vadd.f32 %v3324_v53, %v3220_v20  ;;  %4051 = vmatmul.msk.bf16.gmra.mxu2 %vm2033_vm5, %v5496_v8  ;;  %4071 = vmatmul.msk.bf16.gmra.mxu3 %vm2033_vm5, %v6056_v10  ;;  %v2916_v12 = vsel %vm1875_vm4, %v2880_v14, %v4629_v4 }
 0x1c9   : > { %v3602_v32 = vadd.f32 %v3601_v25, %v3600_v50  ;;  %4091 = vmatmul.msk.bf16.gmra.mxu0 %vm2033_vm5, %v6023_v58  ;;  %v2952_v3 = vpack.c.bf16 %v2916_v12, %v2916_v12 }
 0x1ca   : > { %v3432_v0 = vadd.f32 %v3400_v48, %v2387_v16 }
 0x1cb   : > { %v2314_v52 = vpop.f32.mrf.mxu2  ;;  %v3117_v21 = vpop.f32.mrf.mxu3 }
 0x1cc   : > { %v3468_v2 = vadd.f32 %v6033_v28, %v3432_v0  ;;  %v3223_v8 = vadd.f32 %v3222_v55, %v3117_v21  ;;  %v2388_v51 = vadd.f32 %v2314_v52, %v5824_v13 }
 0x1ce   : > { %v3502_v50 = vsel %vm1838_vm3, %v3468_v2, 0.0  ;;  %v3569_v36 = vmul.f32 %v3468_v2, %v3468_v2  ;;  %v3673_v42 = vpack.c.bf16 %v3468_v2, %v3468_v2  ;;  %v3224_v47 = vpop.f32.mrf.mxu0  ;;  %v4633_v2 = vpop.permute.xlu2 %4632 }
 0x1cf   : > { %v3503_v58 = vadd.f32 %v3502_v50, %v3501_v61  ;;  %v3327_v20 = vpop.f32.mrf.mxu1  ;;  %v2917_v61 = vsel %vm1875_vm4, %v2881_v38, %v4630_v27  ;;  %v3018_v50 = vunpack.c.l.b16 %v2952_v3 }
 0x1d0   : > { %v3603_v23 = vsel %vm1838_vm3, %v3569_v36, 0.0  ;;  %3706 = vst.msk [vmem:[%s6044_s0 + $0xc] sm:$0xf] %vm3702_vm6, %v3673_v42  ;;  %v3401_v49 = vadd.f32 %v3327_v20, %v3223_v8  ;;  %v2953_v6 = vpack.c.bf16 %v2917_v61, %v2917_v61  ;;  %v4638_v42 = vpop.permute.xlu0 %4637 }
 0x1d1   : > { %v3604_v55 = vadd.f32 %v3603_v23, %v3602_v32  ;;  %v4640_v14 = vunpack.i.h.bf16 %v4638_v42 }
 0x1d2   : > { %v3433_v53 = vadd.f32 %v3401_v49, %v2388_v51  ;;  %4111 = vmatmul.msk.bf16.gmra.mxu1 %vm2033_vm5, %v6086_v24  ;;  %v3019_v27 = vunpack.c.l.b16 %v2953_v6 }
 0x1d3   : > { %v2316_v25 = vpop.f32.mrf.mxu2  ;;  %v3119_v16 = vpop.f32.mrf.mxu3 }
 0x1d4   : > { %v3469_v34 = vadd.f32 %v6033_v28, %v3433_v53  ;;  %v3225_v48 = vadd.f32 %v3224_v47, %v3119_v16  ;;  %v2389_v54 = vadd.f32 %v2316_v25, %v5851_v19  ;;  %v4634_v19 = vunpack.i.l.bf16 %v4633_v2 }
 0x1d5   : > { %v6114_v38 = vpack.c.b16 %v3019_v27, %v3018_v50  ;;  %v4639_v53 = vunpack.i.l.bf16 %v4638_v42  ;;  %v4643_v42 = vpop.permute.xlu1 %4642 }
 0x1d6   : > { %v3504_v13 = vsel %vm1838_vm3, %v3469_v34, 0.0  ;;  %v3570_v41 = vmul.f32 %v3469_v34, %v3469_v34  ;;  %v3674_v32 = vpack.c.bf16 %v3469_v34, %v3469_v34  ;;  %v3227_v0 = vpop.f32.mrf.mxu0  ;;  %v2882_v25 = vsel %vm1838_vm3, %v5834_v31, %v4634_v19 }
 0x1d7   : > { %v3505_v26 = vadd.f32 %v3504_v13, %v3503_v58  ;;  %v3329_v52 = vpop.f32.mrf.mxu1  ;;  %v4635_v58 = vunpack.i.h.bf16 %v4633_v2  ;;  %v2918_v13 = vsel %vm1875_vm4, %v2882_v25, %v4639_v53 }
 0x1d8   : > { %v3605_v21 = vsel %vm1838_vm3, %v3570_v41, 0.0  ;;  %3707 = vst.msk [vmem:[%s6044_s0 + $0x10] sm:$0xf] %vm3702_vm6, %v3674_v32  ;;  %v3402_v15 = vadd.f32 %v3329_v52, %v3225_v48  ;;  %4052 = vmatmul.msk.bf16.gmra.mxu2 %vm2033_vm5, %v5534_v60  ;;  %4072 = vmatmul.msk.bf16.gmra.mxu3 %vm2033_vm5, %v6086_v24 }
 0x1d9   : > { %v3606_v8 = vadd.f32 %v3605_v21, %v3604_v55  ;;  %4092 = vmatmul.msk.bf16.gmra.mxu0 %vm2033_vm5, %v6056_v10  ;;  %v2883_v12 = vsel %vm1838_vm3, %v5831_v44, %v4635_v58 }
 0x1da   : > { %v3434_v36 = vadd.f32 %v3402_v15, %v2389_v54  ;;  %v2919_v44 = vsel %vm1875_vm4, %v2883_v12, %v4640_v14 }
 0x1db   : > { %v2319_v47 = vpop.f32.mrf.mxu2  ;;  %v3122_v4 = vpop.f32.mrf.mxu3  ;;  %v2955_v52 = vpack.c.bf16 %v2919_v44, %v2919_v44 }
 0x1dc   : > { %v3470_v20 = vadd.f32 %v6033_v28, %v3434_v36  ;;  %v3228_v60 = vadd.f32 %v3227_v0, %v3122_v4  ;;  %v2390_v34 = vadd.f32 %v2319_v47, %v5870_v46 }
 0x1dd   : > { %v3021_v58 = vunpack.c.l.b16 %v2955_v52 }
 0x1de   : > { %v3506_v23 = vsel %vm1838_vm3, %v3470_v20, 0.0  ;;  %v3571_v51 = vmul.f32 %v3470_v20, %v3470_v20  ;;  %v3675_v49 = vpack.c.bf16 %v3470_v20, %v3470_v20  ;;  %v3229_v55 = vpop.f32.mrf.mxu0  ;;  %v4648_v20 = vpop.permute.xlu2 %4647 }
 0x1df   : > { %v3507_v10 = vadd.f32 %v3506_v23, %v3505_v26  ;;  %v3332_v61 = vpop.f32.mrf.mxu1  ;;  %v2954_v26 = vpack.c.bf16 %v2918_v13, %v2918_v13  ;;  %v4645_v23 = vunpack.i.h.bf16 %v4643_v42  ;;  %v4649_v25 = vunpack.i.l.bf16 %v4648_v20 }
 0x1e0   : > { %v3607_v16 = vsel %vm1838_vm3, %v3571_v51, 0.0  ;;  %3708 = vst.msk [vmem:[%s6044_s0 + $0x14] sm:$0xf] %vm3702_vm6, %v3675_v49  ;;  %v3403_v48 = vadd.f32 %v3332_v61, %v3228_v60 }
 0x1e1   : > { %v3608_v6 = vadd.f32 %v3607_v16, %v3606_v8  ;;  %v3020_v4 = vunpack.c.l.b16 %v2954_v26 }
 0x1e2   : > { %v3435_v3 = vadd.f32 %v3403_v48, %v2390_v34  ;;  %4112 = vmatmul.msk.bf16.gmra.mxu1 %vm2033_vm5, %v6114_v38  ;;  %v2885_v34 = vsel %vm1838_vm3, %v5865_v45, %v4645_v23 }
 0x1e3   : > { %v2321_v41 = vpop.f32.mrf.mxu2  ;;  %v3124_v32 = vpop.f32.mrf.mxu3  ;;  %v6142_v49 = vpack.c.b16 %v3021_v58, %v3020_v4 }
 0x1e4   : > { %v3471_v31 = vadd.f32 %v6033_v28, %v3435_v3  ;;  %v3230_v0 = vadd.f32 %v3229_v55, %v3124_v32  ;;  %v2391_v50 = vadd.f32 %v2321_v41, %v5891_v5  ;;  %v4644_v5 = vunpack.i.l.bf16 %v4643_v42 }
 0x1e5   : > { %v4650_v55 = vunpack.i.h.bf16 %v4648_v20 }
 0x1e6   : > { %v3508_v46 = vsel %vm1838_vm3, %v3471_v31, 0.0  ;;  %v3572_v21 = vmul.f32 %v3471_v31, %v3471_v31  ;;  %v3676_v54 = vpack.c.bf16 %v3471_v31, %v3471_v31  ;;  %v3232_v15 = vpop.f32.mrf.mxu0  ;;  %v2884_v48 = vsel %vm1838_vm3, %v5868_v43, %v4644_v5 }
 0x1e7   : > { %v3509_v2 = vadd.f32 %v3508_v46, %v3507_v10  ;;  %v3334_v8 = vpop.f32.mrf.mxu1  ;;  %v2921_v32 = vsel %vm1875_vm4, %v2885_v34, %v4650_v55  ;;  %v2920_v45 = vsel %vm1875_vm4, %v2884_v48, %v4649_v25  ;;  %v4658_v20 = vpop.permute.xlu1 %4657 }
 0x1e8   : > { %v3609_v27 = vsel %vm1838_vm3, %v3572_v21, 0.0  ;;  %3709 = vst.msk [vmem:[%s6044_s0 + $0x18] sm:$0xf] %vm3702_vm6, %v3676_v54  ;;  %v3404_v36 = vadd.f32 %v3334_v8, %v3230_v0  ;;  %4053 = vmatmul.msk.bf16.gmra.mxu2 %vm2033_vm5, %v5587_v11  ;;  %4073 = vmatmul.msk.bf16.gmra.mxu3 %vm2033_vm5, %v6114_v38  ;;  %v2957_v52 = vpack.c.bf16 %v2921_v32, %v2921_v32  ;;  %v4653_v21 = vpop.permute.xlu0 %4652  ;;  %v4660_v55 = vunpack.i.h.bf16 %v4658_v20 }
 0x1e9   : > { %v3610_v47 = vadd.f32 %v3609_v27, %v3608_v6  ;;  %4093 = vmatmul.msk.bf16.gmra.mxu0 %vm2033_vm5, %v6086_v24  ;;  %v2956_v46 = vpack.c.bf16 %v2920_v45, %v2920_v45  ;;  %v4655_v23 = vunpack.i.h.bf16 %v4653_v21  ;;  %v4654_v5 = vunpack.i.l.bf16 %v4653_v21 }
 0x1ea   : > { %v3436_v19 = vadd.f32 %v3404_v36, %v2391_v50  ;;  %v3023_v4 = vunpack.c.l.b16 %v2957_v52 }
 0x1eb   : > { %v2324_v60 = vpop.f32.mrf.mxu2  ;;  %v3127_v14 = vpop.f32.mrf.mxu3  ;;  %v3022_v58 = vunpack.c.l.b16 %v2956_v46  ;;  %v2886_v34 = vsel %vm1838_vm3, %v5915_v57, %v4654_v5 }
 0x1ec   : > { %v3472_v51 = vadd.f32 %v6033_v28, %v3436_v19  ;;  %v3233_v11 = vadd.f32 %v3232_v15, %v3127_v14  ;;  %v2392_v3 = vadd.f32 %v2324_v60, %v5917_v37 }
 0x1ee   : > { %v3510_v53 = vsel %vm1838_vm3, %v3472_v51, 0.0  ;;  %v3573_v10 = vmul.f32 %v3472_v51, %v3472_v51  ;;  %v3677_v61 = vpack.c.bf16 %v3472_v51, %v3472_v51  ;;  %v3234_v12 = vpop.f32.mrf.mxu0 }
 0x1ef   : > { %v3511_v24 = vadd.f32 %v3510_v53, %v3509_v2  ;;  %v3337_v16 = vpop.f32.mrf.mxu1 }
 0x1f0   : > { %v3611_v6 = vsel %vm1838_vm3, %v3573_v10, 0.0  ;;  %3710 = vst.msk [vmem:[%s6044_s0 + $0x1c] sm:$0xf] %vm3702_vm6, %v3677_v61  ;;  %v3405_v13 = vadd.f32 %v3337_v16, %v3233_v11  ;;  %v6170_v11 = vpack.c.b16 %v3023_v4, %v3022_v58  ;;  %v2887_v16 = vsel %vm1838_vm3, %v5920_v29, %v4655_v23 }
 0x1f1   : > { %v3612_v44 = vadd.f32 %v3611_v6, %v3610_v47  ;;  %v4668_v6 = vpop.permute.xlu0 %4667  ;;  %v2923_v29 = vsel %vm1875_vm4, %v2887_v16, %v4660_v55 }
 0x1f2   : > { %v3437_v41 = vadd.f32 %v3405_v13, %v2392_v3  ;;  %4113 = vmatmul.msk.bf16.gmra.mxu1 %vm2033_vm5, %v6142_v49  ;;  %v4669_v57 = vunpack.i.l.bf16 %v4668_v6  ;;  %v4670_v46 = vunpack.i.h.bf16 %v4668_v6 }
 0x1f3   : > { %v2326_v31 = vpop.f32.mrf.mxu2  ;;  %v3129_v0 = vpop.f32.mrf.mxu3 }
 0x1f4   : > { %v3473_v43 = vadd.f32 %v6033_v28, %v3437_v41  ;;  %v3235_v26 = vadd.f32 %v3234_v12, %v3129_v0  ;;  %v2393_v36 = vadd.f32 %v2326_v31, %v5939_v17  ;;  %v4673_v23 = vpop.permute.xlu1 %4672 }
 0x1f6   : > { %v3512_v37 = vsel %vm1838_vm3, %v3473_v43, 0.0  ;;  %v3574_v54 = vmul.f32 %v3473_v43, %v3473_v43  ;;  %v3678_v15 = vpack.c.bf16 %v3473_v43, %v3473_v43  ;;  %v3237_v2 = vpop.f32.mrf.mxu0 }
 0x1f7   : > { %v3513_v8 = vadd.f32 %v3512_v37, %v3511_v24  ;;  %v3339_v27 = vpop.f32.mrf.mxu1  ;;  %v6394_v37 = vld [vmem:[#allocation2_spill] sm:$0xff] }
 0x1f8   : > { %v3613_v50 = vsel %vm1838_vm3, %v3574_v54, 0.0  ;;  %3711 = vst.msk [vmem:[%s6044_s0 + $0x20] sm:$0xf] %vm3702_vm6, %v3678_v15  ;;  %v3406_v42 = vadd.f32 %v3339_v27, %v3235_v26  ;;  %4054 = vmatmul.msk.bf16.gmra.mxu2 %vm2033_vm5, %v5629_v7  ;;  %4074 = vmatmul.msk.bf16.gmra.mxu3 %vm2033_vm5, %v6142_v49  ;;  %v4663_v7 = vpop.permute.xlu2 %4662  ;;  %v6393_v26 = vld [vmem:[#allocation3_spill] sm:$0xff]  ;;  %v2959_v15 = vpack.c.bf16 %v2923_v29, %v2923_v29 }
 0x1f9   : > { %v3614_v47 = vadd.f32 %v3613_v50, %v3612_v44  ;;  %4094 = vmatmul.msk.bf16.gmra.mxu0 %vm2033_vm5, %v6114_v38  ;;  %v4659_v38 = vunpack.i.l.bf16 %v4658_v20  ;;  %v4664_v48 = vunpack.i.l.bf16 %v4663_v7  ;;  %v4665_v41 = vunpack.i.h.bf16 %v4663_v7 }
 0x1fa   : > { %v3438_v19 = vadd.f32 %v3406_v42, %v2393_v36 }
 0x1fb   : > { %v2329_v60 = vpop.f32.mrf.mxu2  ;;  %v3132_v14 = vpop.f32.mrf.mxu3  ;;  %v2922_v31 = vsel %vm1875_vm4, %v2886_v34, %v4659_v38  ;;  %v1873_v52 = vsel %vm1838_vm3, %v6393_v26, %v4664_v48  ;;  %v1874_v54 = vsel %vm1838_vm3, %v6394_v37, %v4665_v41 }
 0x1fc   : > { %v3474_v17 = vadd.f32 %v6033_v28, %v3438_v19  ;;  %v3238_v51 = vadd.f32 %v3237_v2, %v3132_v14  ;;  %v2394_v13 = vadd.f32 %v2329_v60, %v5956_v30  ;;  %v2958_v2 = vpack.c.bf16 %v2922_v31, %v2922_v31  ;;  %v6395_v14 = vld [vmem:[#allocation5_spill] sm:$0xff] }
 0x1fd   : > { %v1910_v42 = vsel %vm1875_vm4, %v1873_v52, %v4669_v57  ;;  %v1911_v58 = vsel %vm1875_vm4, %v1874_v54, %v4670_v46 }
 0x1fe   : > { %v3514_v53 = vsel %vm1838_vm3, %v3474_v17, 0.0  ;;  %v3575_v10 = vmul.f32 %v3474_v17, %v3474_v17  ;;  %v3679_v61 = vpack.c.bf16 %v3474_v17, %v3474_v17  ;;  %v3239_v12 = vpop.f32.mrf.mxu0  ;;  %v3025_v17 = vunpack.c.l.b16 %v2959_v15 }
 0x1ff   : > { %v3515_v25 = vadd.f32 %v3514_v53, %v3513_v8  ;;  %v3342_v24 = vpop.f32.mrf.mxu1  ;;  %v1946_v7 = vpack.c.bf16 %v1910_v42, %v1910_v42 }
 0x200   : > { %v3615_v3 = vsel %vm1838_vm3, %v3575_v10, 0.0  ;;  %3712 = vst.msk [vmem:[%s6044_s0 + $0x24] sm:$0xf] %vm3702_vm6, %v3679_v61  ;;  %v3407_v44 = vadd.f32 %v3342_v24, %v3238_v51  ;;  %v3024_v51 = vunpack.c.l.b16 %v2958_v2  ;;  %v4678_v53 = vpop.permute.xlu2 %4677  ;;  %v4674_v24 = vunpack.i.l.bf16 %v4673_v23 }
 0x201   : > { %v3616_v32 = vadd.f32 %v3615_v3, %v3614_v47  ;;  %v2281_v16 = vunpack.c.l.b16 %v1946_v7  ;;  %v4679_v29 = vunpack.i.l.bf16 %v4678_v53 }
 0x202   : > { %v3439_v45 = vadd.f32 %v3407_v44, %v2394_v13  ;;  %4114 = vmatmul.msk.bf16.gmra.mxu1 %vm2033_vm5, %v6170_v11  ;;  %v3041_v34 = vpack.c.b16 %v3025_v17, %v3024_v51 }
 0x203   : > { %v2331_v0 = vpop.f32.mrf.mxu2  ;;  %v3134_v43 = vpop.f32.mrf.mxu3 }
 0x204   : > { %v3475_v30 = vadd.f32 %v6033_v28, %v3439_v45  ;;  %v3240_v21 = vadd.f32 %v3239_v12, %v3134_v43  ;;  %v2395_v20 = vadd.f32 %v2331_v0, %v5970_v22  ;;  %v1947_v22 = vpack.c.bf16 %v1911_v58, %v1911_v58 }
 0x205   : > { %v4675_v12 = vunpack.i.h.bf16 %v4673_v23  ;;  %v2888_v43 = vsel %vm1838_vm3, %v6393_v26, %v4674_v24 }
 0x206   : > { %v3516_v8 = vsel %vm1838_vm3, %v3475_v30, 0.0  ;;  %v3576_v27 = vmul.f32 %v3475_v30, %v3475_v30  ;;  %v3680_v50 = vpack.c.bf16 %v3475_v30, %v3475_v30  ;;  %v3242_v36 = vpop.f32.mrf.mxu0  ;;  %v2282_v41 = vunpack.c.l.b16 %v1947_v22 }
 0x207   : > { %v3517_v47 = vadd.f32 %v3516_v8, %v3515_v25  ;;  %v3344_v4 = vpop.f32.mrf.mxu1  ;;  %v2889_v45 = vsel %vm1838_vm3, %v6394_v37, %v4675_v12  ;;  %v2924_v54 = vsel %vm1875_vm4, %v2888_v43, %v4679_v29 }
 0x208   : > { %v3617_v19 = vsel %vm1838_vm3, %v3576_v27, 0.0  ;;  %3713 = vst.msk [vmem:[%s6044_s0 + $0x28] sm:$0xf] %vm3702_vm6, %v3680_v50  ;;  %v3408_v60 = vadd.f32 %v3344_v4, %v3240_v21  ;;  %4055 = vmatmul.msk.bf16.gmra.mxu2 %vm2033_vm5, %v6395_v14  ;;  %4075 = vmatmul.msk.bf16.gmra.mxu3 %vm2033_vm5, %v6170_v11  ;;  %v2283_v8 = vpack.c.b16 %v2282_v41, %v2281_v16 }
 0x209   : > { %v3618_v5 = vadd.f32 %v3617_v19, %v3616_v32  ;;  %4095 = vmatmul.msk.bf16.gmra.mxu0 %vm2033_vm5, %v6142_v49  ;;  %v4680_v49 = vunpack.i.h.bf16 %v4678_v53  ;;  %v2960_v42 = vpack.c.bf16 %v2924_v54, %v2924_v54 }
 0x20a   : > { %v3440_v55 = vadd.f32 %v3408_v60, %v2395_v20 }
 0x20b   : > { %v2334_v10 = vpop.f32.mrf.mxu2  ;;  %v3137_v61 = vpop.f32.mrf.mxu3  ;;  %v2925_v30 = vsel %vm1875_vm4, %v2889_v45, %v4680_v49 }
 0x20c   : > { %v3476_v38 = vadd.f32 %v6033_v28, %v3440_v55  ;;  %v3243_v25 = vadd.f32 %v3242_v36, %v3137_v61  ;;  %v2396_v57 = vadd.f32 %v2334_v10, %v5979_v18  ;;  %v2961_v18 = vpack.c.bf16 %v2925_v30, %v2925_v30 }
 0x20e   : > { %v3518_v48 = vsel %vm1838_vm3, %v3476_v38, 0.0  ;;  %v3577_v6 = vmul.f32 %v3476_v38, %v3476_v38  ;;  %v3681_v3 = vpack.c.bf16 %v3476_v38, %v3476_v38  ;;  %v3244_v13 = vpop.f32.mrf.mxu0  ;;  %v3295_v23 = vunpack.c.l.b16 %v2961_v18 }
 0x20f   : > { %v3519_v44 = vadd.f32 %v3518_v48, %v3517_v47  ;;  %v3347_v32 = vpop.f32.mrf.mxu1 }
 0x210   : > { %v3619_v31 = vsel %vm1838_vm3, %v3577_v6, 0.0  ;;  %3714 = vst.msk [vmem:[%s6044_s0 + $0x2c] sm:$0xf] %vm3702_vm6, %v3681_v3  ;;  %v3409_v0 = vadd.f32 %v3347_v32, %v3243_v25 }
 0x211   : > { %v3620_v52 = vadd.f32 %v3619_v31, %v3618_v5  ;;  %v3294_v5 = vunpack.c.l.b16 %v2960_v42 }
 0x212   : > { %v3441_v46 = vadd.f32 %v3409_v0, %v2396_v57  ;;  %4115 = vmatmul.msk.bf16.gmra.mxu1 %vm2033_vm5, %v3041_v34 }
 0x213   : > { %v2336_v21 = vpop.f32.mrf.mxu2  ;;  %v3139_v37 = vpop.f32.mrf.mxu3  ;;  %v3296_v22 = vpack.c.b16 %v3295_v23, %v3294_v5 }
 0x214   : > { %v3477_v15 = vadd.f32 %v6033_v28, %v3441_v46  ;;  %v3245_v2 = vadd.f32 %v3244_v13, %v3139_v37  ;;  %v2397_v19 = vadd.f32 %v2336_v21, %v5992_v59 }
 0x216   : > { %v3520_v27 = vsel %vm1838_vm3, %v3477_v15, 0.0  ;;  %v3578_v50 = vmul.f32 %v3477_v15, %v3477_v15  ;;  %v3682_v26 = vpack.c.bf16 %v3477_v15, %v3477_v15  ;;  %v3247_v36 = vpop.f32.mrf.mxu0 }
 0x217   : > { %v3521_v47 = vadd.f32 %v3520_v27, %v3519_v44  ;;  %v3349_v4 = vpop.f32.mrf.mxu1 }
 0x218   : > { %v3621_v58 = vsel %vm1838_vm3, %v3578_v50, 0.0  ;;  %3715 = vst.msk [vmem:[%s6044_s0 + $0x30] sm:$0xf] %vm3702_vm6, %v3682_v26  ;;  %v3410_v20 = vadd.f32 %v3349_v4, %v3245_v2  ;;  %4056 = vmatmul.msk.bf16.gmra.mxu2 %vm2033_vm5, %v2283_v8  ;;  %4076 = vmatmul.msk.bf16.gmra.mxu3 %vm2033_vm5, %v3041_v34 }
 0x219   : > { %v3622_v60 = vadd.f32 %v3621_v58, %v3620_v52  ;;  %4096 = vmatmul.msk.bf16.gmra.mxu0 %vm2033_vm5, %v6170_v11 }
 0x21a   : > { %v3442_v14 = vadd.f32 %v3410_v20, %v2397_v19 }
 0x21b   : > { %v2339_v17 = vpop.f32.mrf.mxu2  ;;  %v3142_v51 = vpop.f32.mrf.mxu3 }
 0x21c   : > { %v3478_v7 = vadd.f32 %v6033_v28, %v3442_v14  ;;  %v3248_v55 = vadd.f32 %v3247_v36, %v3142_v51  ;;  %v2398_v11 = vadd.f32 %v2339_v17, %v6004_v56 }
 0x21e   : > { %v3522_v59 = vsel %vm1838_vm3, %v3478_v7, 0.0  ;;  %v3579_v53 = vmul.f32 %v3478_v7, %v3478_v7  ;;  %v3683_v10 = vpack.c.bf16 %v3478_v7, %v3478_v7  ;;  %v3249_v61 = vpop.f32.mrf.mxu0  ;;  %v6397_v7 = vld [vmem:[#allocation7_spill] sm:$0xff] }
 0x21f   : > { %v3523_v12 = vadd.f32 %v3522_v59, %v3521_v47  ;;  %v3352_v38 = vpop.f32.mrf.mxu1 }
 0x220   : > { %v3623_v25 = vsel %vm1838_vm3, %v3579_v53, 0.0  ;;  %3716 = vst.msk [vmem:[%s6044_s0 + $0x34] sm:$0xf] %vm3702_vm6, %v3683_v10  ;;  %v3411_v24 = vadd.f32 %v3352_v38, %v3248_v55 }
 0x221   : > { %v3624_v16 = vadd.f32 %v3623_v25, %v3622_v60 }
 0x222   : > { %v3443_v34 = vadd.f32 %v3411_v24, %v2398_v11  ;;  %4116 = vmatmul.msk.bf16.gmra.mxu1 %vm2033_vm5, %v3296_v22 }
 0x223   : > { %v2341_v48 = vpop.f32.mrf.mxu2  ;;  %v3144_v6 = vpop.f32.mrf.mxu3 }
 0x224   : > { %v3479_v3 = vadd.f32 %v6033_v28, %v3443_v34  ;;  %v3250_v13 = vadd.f32 %v3249_v61, %v3144_v6  ;;  %v2399_v31 = vadd.f32 %v2341_v48, %v6016_v1  ;;  %v6396_v1 = vld [vmem:[#allocation6_spill] sm:$0xff] }
 0x226   : > { %v3524_v49 = vsel %vm1838_vm3, %v3479_v3, 0.0  ;;  %v3580_v44 = vmul.f32 %v3479_v3, %v3479_v3  ;;  %v3684_v41 = vpack.c.bf16 %v3479_v3, %v3479_v3  ;;  %v3252_v32 = vpop.f32.mrf.mxu0  ;;  %v6398_v3 = vld [vmem:[#allocation8_spill] sm:$0xff] }
 0x227   : > { %v3525_v45 = vadd.f32 %v3524_v49, %v3523_v12  ;;  %v3354_v29 = vpop.f32.mrf.mxu1 }
 0x228   : > { %v3625_v56 = vsel %vm1838_vm3, %v3580_v44, 0.0  ;;  %3717 = vst.msk [vmem:[%s6044_s0 + $0x38] sm:$0xf] %vm3702_vm6, %v3684_v41  ;;  %v3412_v57 = vadd.f32 %v3354_v29, %v3250_v13 }
 0x229   : > { %v3626_v0 = vadd.f32 %v3625_v56, %v3624_v16 }
 0x22a   : > { %v3444_v43 = vadd.f32 %v3412_v57, %v2399_v31 }
 0x22b   : > { %v2344_v52 = vpop.f32.mrf.mxu2  ;;  %v3147_v46 = vpop.f32.mrf.mxu3 }
 0x22c   : > { %v3480_v30 = vadd.f32 %v6033_v28, %v3444_v43  ;;  %v3253_v21 = vadd.f32 %v3252_v32, %v3147_v46  ;;  %v2400_v50 = vadd.f32 %v2344_v52, %v6396_v1 }
 0x22e   : > { %v3526_v37 = vsel %vm1838_vm3, %v3480_v30, 0.0  ;;  %v3581_v54 = vmul.f32 %v3480_v30, %v3480_v30  ;;  %v3685_v15 = vpack.c.bf16 %v3480_v30, %v3480_v30  ;;  %v3254_v2 = vpop.f32.mrf.mxu0 }
 0x22f   : > { %v3527_v8 = vadd.f32 %v3526_v37, %v3525_v45  ;;  %v3357_v18 = vpop.f32.mrf.mxu1 }
 0x230   : > { %v3627_v27 = vsel %vm1838_vm3, %v3581_v54, 0.0  ;;  %3718 = vst.msk [vmem:[%s6044_s0 + $0x3c] sm:$0xf] %vm3702_vm6, %v3685_v15  ;;  %v3413_v26 = vadd.f32 %v3357_v18, %v3253_v21  ;;  %v6399_v21 = vld [vmem:[#allocation9_spill] sm:$0xff] }
 0x231   : > { %v3628_v36 = vadd.f32 %v3627_v27, %v3626_v0 }
 0x232   : > { %v3445_v42 = vadd.f32 %v3413_v26, %v2400_v50 }
 0x233   : > { %v2346_v47 = vpop.f32.mrf.mxu2  ;;  %v3149_v4 = vpop.f32.mrf.mxu3 }
 0x234   : > { %v3481_v58 = vadd.f32 %v6033_v28, %v3445_v42  ;;  %v3255_v19 = vadd.f32 %v3254_v2, %v3149_v4  ;;  %v2401_v55 = vadd.f32 %v2346_v47, %v6397_v7 }
 0x236   : > { %v3528_v20 = vsel %vm1838_vm3, %v3481_v58, 0.0  ;;  %v3582_v60 = vmul.f32 %v3481_v58, %v3481_v58  ;;  %v3686_v14 = vpack.c.bf16 %v3481_v58, %v3481_v58  ;;  %v3257_v23 = vpop.f32.mrf.mxu0 }
 0x237   : > { %v3529_v5 = vadd.f32 %v3528_v20, %v3527_v8  ;;  %v3359_v17 = vpop.f32.mrf.mxu1 }
 0x238   : > { %v3629_v51 = vsel %vm1838_vm3, %v3582_v60, 0.0  ;;  %3719 = vst.msk [vmem:[%s6044_s0 + $0x40] sm:$0xf] %vm3702_vm6, %v3686_v14  ;;  %v3414_v59 = vadd.f32 %v3359_v17, %v3255_v19  ;;  %v6400_v19 = vld [vmem:[#allocation10_spill] sm:$0xff] }
 0x239   : > { %v3630_v53 = vadd.f32 %v3629_v51, %v3628_v36 }
 0x23a   : > { %v3446_v10 = vadd.f32 %v3414_v59, %v2401_v55 }
 0x23b   : > { %v2349_v61 = vpop.f32.mrf.mxu2  ;;  %v3152_v22 = vpop.f32.mrf.mxu3 }
 0x23c   : > { %v3482_v12 = vadd.f32 %v6033_v28, %v3446_v10  ;;  %v3258_v38 = vadd.f32 %v3257_v23, %v3152_v22  ;;  %v2402_v13 = vadd.f32 %v2349_v61, %v6398_v3 }
 0x23e   : > { %v3530_v25 = vsel %vm1838_vm3, %v3482_v12, 0.0  ;;  %v3583_v11 = vmul.f32 %v3482_v12, %v3482_v12  ;;  %v3687_v24 = vpack.c.bf16 %v3482_v12, %v3482_v12  ;;  %v3259_v16 = vpop.f32.mrf.mxu0 }
 0x23f   : > { %v3531_v34 = vadd.f32 %v3530_v25, %v3529_v5  ;;  %v3362_v48 = vpop.f32.mrf.mxu1 }
 0x240   : > { %v3631_v6 = vsel %vm1838_vm3, %v3583_v11, 0.0  ;;  %3720 = vst.msk [vmem:[%s6044_s0 + $0x44] sm:$0xf] %vm3702_vm6, %v3687_v24  ;;  %v3415_v49 = vadd.f32 %v3362_v48, %v3258_v38  ;;  %v6401_v38 = vld [vmem:[#allocation11_spill] sm:$0xff] }
 0x241   : > { %v3632_v44 = vadd.f32 %v3631_v6, %v3630_v53 }
 0x242   : > { %v3447_v41 = vadd.f32 %v3415_v49, %v2402_v13 }
 0x243   : > { %v2351_v32 = vpop.f32.mrf.mxu2  ;;  %v3154_v45 = vpop.f32.mrf.mxu3 }
 0x244   : > { %v3483_v29 = vadd.f32 %v6033_v28, %v3447_v41  ;;  %v3260_v56 = vadd.f32 %v3259_v16, %v3154_v45  ;;  %v2403_v37 = vadd.f32 %v2351_v32, %v6399_v21 }
 0x246   : > { %v3532_v31 = vsel %vm1838_vm3, %v3483_v29, 0.0  ;;  %v3584_v57 = vmul.f32 %v3483_v29, %v3483_v29  ;;  %v3688_v0 = vpack.c.bf16 %v3483_v29, %v3483_v29  ;;  %v3262_v43 = vpop.f32.mrf.mxu0 }
 0x247   : > { %v3533_v52 = vadd.f32 %v3532_v31, %v3531_v34  ;;  %v3364_v46 = vpop.f32.mrf.mxu1 }
 0x248   : > { %v3633_v30 = vsel %vm1838_vm3, %v3584_v57, 0.0  ;;  %3721 = vst.msk [vmem:[%s6044_s0 + $0x48] sm:$0xf] %vm3702_vm6, %v3688_v0  ;;  %v3416_v54 = vadd.f32 %v3364_v46, %v3260_v56  ;;  %v6402_v56 = vld [vmem:[#allocation12_spill] sm:$0xff] }
 0x249   : > { %v3634_v15 = vadd.f32 %v3633_v30, %v3632_v44 }
 0x24a   : > { %v3448_v2 = vadd.f32 %v3416_v54, %v2403_v37 }
 0x24b   : > { %v2354_v8 = vpop.f32.mrf.mxu2  ;;  %v3157_v18 = vpop.f32.mrf.mxu3 }
 0x24c   : > { %v3484_v27 = vadd.f32 %v6033_v28, %v3448_v2  ;;  %v3263_v1 = vadd.f32 %v3262_v43, %v3157_v18  ;;  %v2404_v20 = vadd.f32 %v2354_v8, %v6400_v19 }
 0x24e   : > { %v3534_v50 = vsel %vm1838_vm3, %v3484_v27, 0.0  ;;  %v3585_v26 = vmul.f32 %v3484_v27, %v3484_v27  ;;  %v3689_v36 = vpack.c.bf16 %v3484_v27, %v3484_v27  ;;  %v3264_v42 = vpop.f32.mrf.mxu0 }
 0x24f   : > { %v3535_v47 = vadd.f32 %v3534_v50, %v3533_v52  ;;  %v3367_v4 = vpop.f32.mrf.mxu1 }
 0x250   : > { %v3635_v58 = vsel %vm1838_vm3, %v3585_v26, 0.0  ;;  %3722 = vst.msk [vmem:[%s6044_s0 + $0x4c] sm:$0xf] %vm3702_vm6, %v3689_v36  ;;  %v3417_v60 = vadd.f32 %v3367_v4, %v3263_v1  ;;  %v6403_v1 = vld [vmem:[#allocation13_spill] sm:$0xff]  ;;  %v6290_v4 = vld [vmem:[%s6369_s10] ss:$0 sm:$0xff] }
 0x251   : > { %v3636_v14 = vadd.f32 %v3635_v58, %v3634_v15 }
 0x252   : > { %v3449_v23 = vadd.f32 %v3417_v60, %v2404_v20 }
 0x253   : > { %v2356_v5 = vpop.f32.mrf.mxu2  ;;  %v3159_v17 = vpop.f32.mrf.mxu3 }
 0x254   : > { %v3485_v51 = vadd.f32 %v6033_v28, %v3449_v23  ;;  %v3265_v7 = vadd.f32 %v3264_v42, %v3159_v17  ;;  %v2405_v25 = vadd.f32 %v2356_v5, %v6401_v38 }
 0x256   : > { %v3536_v55 = vsel %vm1838_vm3, %v3485_v51, 0.0  ;;  %v3586_v59 = vmul.f32 %v3485_v51, %v3485_v51  ;;  %v3690_v53 = vpack.c.bf16 %v3485_v51, %v3485_v51  ;;  %v3267_v10 = vpop.f32.mrf.mxu0 }
 0x257   : > { %v3537_v61 = vadd.f32 %v3536_v55, %v3535_v47  ;;  %v3369_v22 = vpop.f32.mrf.mxu1 }
 0x258   : > { %v3637_v12 = vsel %vm1838_vm3, %v3586_v59, 0.0  ;;  %3723 = vst.msk [vmem:[%s6044_s0 + $0x50] sm:$0xf] %vm3702_vm6, %v3690_v53  ;;  %v3418_v11 = vadd.f32 %v3369_v22, %v3265_v7  ;;  %v6404_v7 = vld [vmem:[#allocation14_spill] sm:$0xff] }
 0x259   : > { %v3638_v24 = vadd.f32 %v3637_v12, %v3636_v14 }
 0x25a   : > { %v3450_v16 = vadd.f32 %v3418_v11, %v2405_v25 }
 0x25b   : > { %v2359_v34 = vpop.f32.mrf.mxu2  ;;  %v3162_v48 = vpop.f32.mrf.mxu3 }
 0x25c   : > { %v3486_v6 = vadd.f32 %v6033_v28, %v3450_v16  ;;  %v3268_v3 = vadd.f32 %v3267_v10, %v3162_v48  ;;  %v2406_v31 = vadd.f32 %v2359_v34, %v6402_v56 }
 0x25e   : > { %v3538_v13 = vsel %vm1838_vm3, %v3486_v6, 0.0  ;;  %v3587_v49 = vmul.f32 %v3486_v6, %v3486_v6  ;;  %v3691_v44 = vpack.c.bf16 %v3486_v6, %v3486_v6  ;;  %v3269_v41 = vpop.f32.mrf.mxu0 }
 0x25f   : > { %v3539_v32 = vadd.f32 %v3538_v13, %v3537_v61  ;;  %v3372_v45 = vpop.f32.mrf.mxu1 }
 0x260   : > { %v3639_v29 = vsel %vm1838_vm3, %v3587_v49, 0.0  ;;  %3724 = vst.msk [vmem:[%s6044_s0 + $0x54] sm:$0xf] %vm3702_vm6, %v3691_v44  ;;  %v3419_v57 = vadd.f32 %v3372_v45, %v3268_v3 }
 0x261   : > { %v3640_v0 = vadd.f32 %v3639_v29, %v3638_v24 }
 0x262   : > { %v3451_v43 = vadd.f32 %v3419_v57, %v2406_v31 }
 0x263   : > { %v2361_v52 = vpop.f32.mrf.mxu2  ;;  %v3164_v46 = vpop.f32.mrf.mxu3 }
 0x264   : > { %v3487_v30 = vadd.f32 %v6033_v28, %v3451_v43  ;;  %v3270_v21 = vadd.f32 %v3269_v41, %v3164_v46  ;;  %v2407_v50 = vadd.f32 %v2361_v52, %v6403_v1 }
 0x266   : > { %v3540_v37 = vsel %vm1838_vm3, %v3487_v30, 0.0  ;;  %v3588_v54 = vmul.f32 %v3487_v30, %v3487_v30  ;;  %v3692_v15 = vpack.c.bf16 %v3487_v30, %v3487_v30  ;;  %v3272_v2 = vpop.f32.mrf.mxu0 }
 0x267   : > { %v3541_v8 = vadd.f32 %v3540_v37, %v3539_v32  ;;  %v3374_v18 = vpop.f32.mrf.mxu1 }
 0x268   : > { %v3641_v27 = vsel %vm1838_vm3, %v3588_v54, 0.0  ;;  %3725 = vst.msk [vmem:[%s6044_s0 + $0x58] sm:$0xf] %vm3702_vm6, %v3692_v15  ;;  %v3420_v26 = vadd.f32 %v3374_v18, %v3270_v21 }
 0x269   : > { %v3642_v36 = vadd.f32 %v3641_v27, %v3640_v0 }
 0x26a   : > { %v3452_v42 = vadd.f32 %v3420_v26, %v2407_v50 }
 0x26b   : > { %v2364_v47 = vpop.f32.mrf.mxu2  ;;  %v3167_v28 = vpop.f32.mrf.mxu3 }
 0x26c   : > { %v3488_v58 = vadd.f32 %v6290_v4, %v3452_v42  ;;  %v3273_v19 = vadd.f32 %v3272_v2, %v3167_v28  ;;  %v2408_v55 = vadd.f32 %v2364_v47, %v6404_v7 }
 0x26e   : > { %v3542_v20 = vsel %vm1838_vm3, %v3488_v58, 0.0  ;;  %v3589_v60 = vmul.f32 %v3488_v58, %v3488_v58  ;;  %v3693_v14 = vpack.c.bf16 %v3488_v58, %v3488_v58  ;;  %v3274_v23 = vpop.f32.mrf.mxu0 }
 0x26f   : > { %v3543_v5 = vadd.f32 %v3542_v20, %v3541_v8  ;;  %v3377_v17 = vpop.f32.mrf.mxu1 }
 0x270   : > { %v3643_v51 = vsel %vm1838_vm3, %v3589_v60, 0.0  ;;  %3726 = vst.msk [vmem:[%s6044_s0 + $0x5c] sm:$0xf] %vm3702_vm6, %v3693_v14  ;;  %v3421_v59 = vadd.f32 %v3377_v17, %v3273_v19 }
 0x271   : > { %v3644_v53 = vadd.f32 %v3643_v51, %v3642_v36 }
 0x272   : > { %v3453_v10 = vadd.f32 %v3421_v59, %v2408_v55 }
 0x273   : > { %v2366_v61 = vpop.f32.mrf.mxu2  ;;  %v3169_v22 = vpop.f32.mrf.mxu3 }
 0x274   : > { %v3489_v12 = vadd.f32 %v6290_v4, %v3453_v10  ;;  %v3275_v38 = vadd.f32 %v3274_v23, %v3169_v22  ;;  %v2409_v3 = vadd.f32 %v2366_v61, %v5933_v62 }
 0x276   : > { %v3544_v25 = vsel %vm1838_vm3, %v3489_v12, 0.0  ;;  %v3590_v11 = vmul.f32 %v3489_v12, %v3489_v12  ;;  %v3694_v24 = vpack.c.bf16 %v3489_v12, %v3489_v12  ;;  %v3277_v16 = vpop.f32.mrf.mxu0 }
 0x277   : > { %v3545_v34 = vadd.f32 %v3544_v25, %v3543_v5  ;;  %v3379_v48 = vpop.f32.mrf.mxu1 }
 0x278   : > { %v3645_v6 = vsel %vm1838_vm3, %v3590_v11, 0.0  ;;  %3727 = vst.msk [vmem:[%s6044_s0 + $0x60] sm:$0xf] %vm3702_vm6, %v3694_v24  ;;  %v3422_v13 = vadd.f32 %v3379_v48, %v3275_v38 }
 0x279   : > { %v3646_v49 = vadd.f32 %v3645_v6, %v3644_v53 }
 0x27a   : > { %v3454_v44 = vadd.f32 %v3422_v13, %v2409_v3 }
 0x27b   : > { %v2369_v41 = vpop.f32.mrf.mxu2  ;;  %v3172_v32 = vpop.f32.mrf.mxu3 }
 0x27c   : > { %v3490_v45 = vadd.f32 %v6290_v4, %v3454_v44  ;;  %v3278_v29 = vadd.f32 %v3277_v16, %v3172_v32  ;;  %v2410_v62 = vadd.f32 %v2369_v41, %v5950_v40 }
 0x27e   : > { %v3546_v56 = vsel %vm1838_vm3, %v3490_v45, 0.0  ;;  %v3591_v31 = vmul.f32 %v3490_v45, %v3490_v45  ;;  %v3695_v57 = vpack.c.bf16 %v3490_v45, %v3490_v45  ;;  %v3279_v0 = vpop.f32.mrf.mxu0 }
 0x27f   : > { %v3547_v43 = vadd.f32 %v3546_v56, %v3545_v34  ;;  %v3382_v52 = vpop.f32.mrf.mxu1 }
 0x280   : > { %v3647_v46 = vsel %vm1838_vm3, %v3591_v31, 0.0  ;;  %3728 = vst.msk [vmem:[%s6044_s0 + $0x64] sm:$0xf] %vm3702_vm6, %v3695_v57  ;;  %v3423_v30 = vadd.f32 %v3382_v52, %v3278_v29 }
 0x281   : > { %v3648_v21 = vadd.f32 %v3647_v46, %v3646_v49 }
 0x282   : > { %v3455_v37 = vadd.f32 %v3423_v30, %v2410_v62 }
 0x283   : > { %v2371_v54 = vpop.f32.mrf.mxu2  ;;  %v3174_v15 = vpop.f32.mrf.mxu3 }
 0x284   : > { %v3491_v2 = vadd.f32 %v6290_v4, %v3455_v37  ;;  %v3280_v8 = vadd.f32 %v3279_v0, %v3174_v15  ;;  %v2411_v40 = vadd.f32 %v2371_v54, %v5966_v63 }
 0x286   : > { %v3548_v18 = vsel %vm1838_vm3, %v3491_v2, 0.0  ;;  %v3592_v27 = vmul.f32 %v3491_v2, %v3491_v2  ;;  %v3696_v1 = vpack.c.bf16 %v3491_v2, %v3491_v2  ;;  %v3282_v50 = vpop.f32.mrf.mxu0 }
 0x287   : > { %v3549_v26 = vadd.f32 %v3548_v18, %v3547_v43  ;;  %v3384_v36 = vpop.f32.mrf.mxu1 }
 0x288   : > { %v3649_v42 = vsel %vm1838_vm3, %v3592_v27, 0.0  ;;  %3729 = vst.msk [vmem:[%s6044_s0 + $0x68] sm:$0xf] %vm3702_vm6, %v3696_v1  ;;  %v3424_v47 = vadd.f32 %v3384_v36, %v3280_v8 }
 0x289   : > { %v3650_v28 = vadd.f32 %v3649_v42, %v3648_v21 }
 0x28a   : > { %v3456_v58 = vadd.f32 %v3424_v47, %v2411_v40 }
 0x28b   : > { %v2374_v19 = vpop.f32.mrf.mxu2  ;;  %v3177_v20 = vpop.f32.mrf.mxu3 }
 0x28c   : > { %v3492_v60 = vadd.f32 %v6290_v4, %v3456_v58  ;;  %v3283_v14 = vadd.f32 %v3282_v50, %v3177_v20  ;;  %v2412_v63 = vadd.f32 %v2374_v19, %v5977_v39 }
 0x28e   : > { %v3550_v23 = vsel %vm1838_vm3, %v3492_v60, 0.0  ;;  %v3593_v5 = vmul.f32 %v3492_v60, %v3492_v60  ;;  %v3697_v17 = vpack.c.bf16 %v3492_v60, %v3492_v60  ;;  %v3284_v7 = vpop.f32.mrf.mxu0 }
 0x28f   : > { %v3551_v51 = vadd.f32 %v3550_v23, %v3549_v26  ;;  %v3387_v55 = vpop.f32.mrf.mxu1 }
 0x290   : > { %v3651_v59 = vsel %vm1838_vm3, %v3593_v5, 0.0  ;;  %3730 = vst.msk [vmem:[%s6044_s0 + $0x6c] sm:$0xf] %vm3702_vm6, %v3697_v17  ;;  %v3425_v53 = vadd.f32 %v3387_v55, %v3283_v14 }
 0x291   : > { %v3652_v10 = vadd.f32 %v3651_v59, %v3650_v28 }
 0x292   : > { %v3457_v61 = vadd.f32 %v3425_v53, %v2412_v63 }
 0x293   : > { %v2376_v22 = vpop.f32.mrf.mxu2  ;;  %v3179_v12 = vpop.f32.mrf.mxu3 }
 0x294   : > { %v3493_v38 = vadd.f32 %v6290_v4, %v3457_v61  ;;  %v3285_v25 = vadd.f32 %v3284_v7, %v3179_v12  ;;  %v2413_v39 = vadd.f32 %v2376_v22, %v5988_v35 }
 0x296   : > { %v3552_v11 = vsel %vm1838_vm3, %v3493_v38, 0.0  ;;  %v3594_v24 = vmul.f32 %v3493_v38, %v3493_v38  ;;  %v3698_v16 = vpack.c.bf16 %v3493_v38, %v3493_v38  ;;  %v3287_v49 = vpop.f32.mrf.mxu0 }
 0x297   : > { %v3553_v34 = vadd.f32 %v3552_v11, %v3551_v51  ;;  %v3389_v48 = vpop.f32.mrf.mxu1 }
 0x298   : > { %v3653_v6 = vsel %vm1838_vm3, %v3594_v24, 0.0  ;;  %3731 = vst.msk [vmem:[%s6044_s0 + $0x70] sm:$0xf] %vm3702_vm6, %v3698_v16  ;;  %v3426_v3 = vadd.f32 %v3389_v48, %v3285_v25 }
 0x299   : > { %v3654_v13 = vadd.f32 %v3653_v6, %v3652_v10 }
 0x29a   : > { %v3458_v44 = vadd.f32 %v3426_v3, %v2413_v39 }
 0x29b   : > { %v2379_v41 = vpop.f32.mrf.mxu2  ;;  %v3182_v32 = vpop.f32.mrf.mxu3 }
 0x29c   : > { %v3494_v45 = vadd.f32 %v6290_v4, %v3458_v44  ;;  %v3288_v29 = vadd.f32 %v3287_v49, %v3182_v32  ;;  %v2414_v35 = vadd.f32 %v2379_v41, %v5998_v9 }
 0x29e   : > { %v3554_v56 = vsel %vm1838_vm3, %v3494_v45, 0.0  ;;  %v3595_v31 = vmul.f32 %v3494_v45, %v3494_v45  ;;  %v3699_v57 = vpack.c.bf16 %v3494_v45, %v3494_v45  ;;  %v3289_v21 = vpop.f32.mrf.mxu0 }
 0x29f   : > { %v3555_v0 = vadd.f32 %v3554_v56, %v3553_v34  ;;  %v3392_v43 = vpop.f32.mrf.mxu1 }
 0x2a0   : > { %v3655_v52 = vsel %vm1838_vm3, %v3595_v31, 0.0  ;;  %3732 = vst.msk [vmem:[%s6044_s0 + $0x74] sm:$0xf] %vm3702_vm6, %v3699_v57  ;;  %v3427_v46 = vadd.f32 %v3392_v43, %v3288_v29 }
 0x2a1   : > { %v3656_v62 = vadd.f32 %v3655_v52, %v3654_v13 }
 0x2a2   : > { %v3459_v30 = vadd.f32 %v3427_v46, %v2414_v35 }
 0x2a3   : > { %v3184_v37 = vpop.f32.mrf.mxu3  ;;  %v2381_v2 = vpop.f32.mrf.mxu2 }
 0x2a4   : > { %v3495_v54 = vadd.f32 %v6290_v4, %v3459_v30  ;;  %v3290_v15 = vadd.f32 %v3289_v21, %v3184_v37  ;;  %v2415_v9 = vadd.f32 %v2381_v2, %v6014_v33 }
 0x2a6   : > { %v3556_v8 = vsel %vm1838_vm3, %v3495_v54, 0.0  ;;  %v3596_v18 = vmul.f32 %v3495_v54, %v3495_v54  ;;  %v3700_v27 = vpack.c.bf16 %v3495_v54, %v3495_v54 }
 0x2a7   : > { %v3557_v1 = vadd.f32 %v3556_v8, %v3555_v0  ;;  %v3394_v50 = vpop.f32.mrf.mxu1 }
 0x2a8   : > { %v3657_v26 = vsel %vm1838_vm3, %v3596_v18, 0.0  ;;  %3733 = vst.msk [vmem:[%s6044_s0 + $0x78] sm:$0xf] %vm3702_vm6, %v3700_v27  ;;  %v3428_v36 = vadd.f32 %v3394_v50, %v3290_v15 }
 0x2a9   : > { %v3658_v42 = vadd.f32 %v3657_v26, %v3656_v62 }
 0x2aa   : > { %v3460_v40 = vadd.f32 %v3428_v36, %v2415_v9 }
 0x2ac   : > { %v3496_v47 = vadd.f32 %v6290_v4, %v3460_v40 }
 0x2ae   : > { %v3558_v28 = vsel %vm1838_vm3, %v3496_v47, 0.0  ;;  %v3597_v58 = vmul.f32 %v3496_v47, %v3496_v47  ;;  %v3701_v19 = vpack.c.bf16 %v3496_v47, %v3496_v47 }
 0x2af   : > { %v3559_v20 = vadd.f32 %v3558_v28, %v3557_v1 }
 0x2b0   : > { %v3659_v60 = vsel %vm1838_vm3, %v3597_v58, 0.0  ;;  %3734 = vst.msk [vmem:[%s6044_s0 + $0x7c] sm:$0xf] %vm3702_vm6, %v3701_v19 }
 0x2b1   : > { %v3560_v14 = vrot.slane %v3559_v20, 4  ;;  %v3660_v23 = vadd.f32 %v3659_v60, %v3658_v42 }
 0x2b3   : > { %v3561_v5 = vadd.f32 %v3560_v14, %v3559_v20  ;;  %v3661_v17 = vrot.slane %v3660_v23, 4 }
 0x2b5   : > { %v3562_v33 = vrot.slane %v3561_v5, 2  ;;  %v3662_v51 = vadd.f32 %v3661_v17, %v3660_v23 }
 0x2b7   : > { %v3563_v7 = vadd.f32 %v3562_v33, %v3561_v5  ;;  %v3663_v55 = vrot.slane %v3662_v51, 2 }
 0x2b9   : > { %v3564_v59 = vrot.slane %v3563_v7, 1  ;;  %v3664_v4 = vadd.f32 %v3663_v55, %v3662_v51 }
 0x2bb   : > { %v3665_v63 = vrot.slane %v3664_v4, 1  ;;  %v3565_v53 = vadd.f32 %v3564_v59, %v3563_v7 }
 0x2bd   : > { %v3666_v10 = vadd.f32 %v3665_v63, %v3664_v4 }
 0x2bf   : > { %v3667_v61 = vsel %vm997_vm0, %v3565_v53, %v3666_v10 }
 0x2c0   : > { %3669 = vst.msk [vmem:[%s763_s15] sm:$0x3] %vm3668_vm7, %v3667_v61 }
 0x2c1 PF: > { %s23_s19 = sadd.s32 1, %s4707_s19   ;;  %s6405_s17 = smov %s4703_s18 }
 0x2c2   : > { %p20_p5 = scmp.ge.s32.totalorder %s23_s19, 4   ;;  %s6406_s18 = smov %s6408_s20 }
 0x2c4   :  { %22 = sbr.rel (!%p20_p5) target bundleno = 2 (0x2), region = 121 }

</bundles_post_ra>
